<compile_context>
chip_gen: v6e
topology: v6e:2x2x1
jax: 0.10.0
libtpu: 0.0.40
codegen_flags: <defaults>
</compile_context>

<pallas_src>
import functools

import jax
import jax.numpy as jnp
from jax.experimental import pallas as pl
from jax.experimental.pallas import tpu as pltpu


def _sage_lstm_kernel(neigh_ref, self_ref, wih_ref, whh_ref, bcat_ref,
                      wself_ref, wneigh_ref, bias_ref, out_ref, gx_ref,
                      *, apply_relu):
    """One SAGEConv('lstm') layer for a tile of dst nodes.

    neigh_ref  : [K, tn, F_in]      time-major neighbor features (bf16)
    self_ref   : [tn, F_in]         dst-node features (bf16)
    wih_ref    : [F_in, 4*F_in]     packed input-to-hidden weights (= W_ih.T), bf16
    whh_ref    : [F_in, 4*F_in]     packed hidden-to-hidden weights (= W_hh.T), bf16
    bcat_ref   : [1, 4*F_in]        packed gate bias (b_ih + b_hh), f32
    wself_ref  : [F_in, F_out_p]    W_self.T, output-padded to 128 lanes, bf16
    wneigh_ref : [F_in, F_out_p]    W_neigh.T, output-padded, bf16
    bias_ref   : [1, F_out_p]       output bias, f32
    out_ref    : [tn, F_out_p]      f32 output tile
    gx_ref     : [K*tn, 4*F_in]     VMEM scratch for the hoisted input projection
    """
    k_steps, tn, f_in = neigh_ref.shape
    four_f = 4 * f_in

    # Self projection first: independent of the serial LSTM chain, so its MXU
    # work overlaps with (is hidden under) the recurrence latency.
    out_self = jnp.dot(self_ref[...], wself_ref[...],
                       preferred_element_type=jnp.float32) + bias_ref[...]

    # Hoisted input-to-hidden projection: one [K*tn, F_in] x [F_in, 4*F_in]
    # matmul covering every gate and timestep, bias folded in, staged in VMEM.
    # Rows for timestep t are the contiguous block [t*tn, (t+1)*tn).
    x_flat = neigh_ref[...].reshape(k_steps * tn, f_in)
    gx_ref[...] = jnp.dot(x_flat, wih_ref[...],
                          preferred_element_type=jnp.float32) + bcat_ref[...]

    w_hh = whh_ref[...]

    # Lane mask selecting the 'g' (tanh) slot inside the packed i|f|g|o block.
    lane = jax.lax.broadcasted_iota(jnp.int32, (tn, four_f), 1)
    g_mask = (lane >= 2 * f_in) & (lane < 3 * f_in)

    h = jnp.zeros((tn, f_in), jnp.float32)
    c = jnp.zeros((tn, f_in), jnp.float32)

    # LSTM recurrence over the (small, static) neighbor sequence.  Only the
    # single fused h @ W_hh_cat matmul sits on the serial dependence chain.
    for t in range(k_steps):
        pre = gx_ref[pl.ds(t * tn, tn), :] + jnp.dot(
            h.astype(w_hh.dtype), w_hh, preferred_element_type=jnp.float32)
        # Packed activation: full-vreg sigmoid/tanh, per-gate select via mask.
        act = jnp.where(g_mask, jnp.tanh(pre), jax.nn.sigmoid(pre))
        i_g = act[:, 0 * f_in:1 * f_in]
        f_g = act[:, 1 * f_in:2 * f_in]
        g_g = act[:, 2 * f_in:3 * f_in]
        o_g = act[:, 3 * f_in:4 * f_in]
        c = f_g * c + i_g * g_g
        h = o_g * jnp.tanh(c)

    # Neighbor projection; no lane-axis concat with the self half.
    out = out_self + jnp.dot(h.astype(wneigh_ref.dtype), wneigh_ref[...],
                             preferred_element_type=jnp.float32)
    if apply_relu:
        out = jnp.maximum(out, 0.0)
    out_ref[...] = out.astype(out_ref.dtype)


def _prep_layer(params, mm_dtype=jnp.bfloat16):
    """Repack canonical (PyTorch-style) params into the kernel-friendly layout."""
    f_in = params["w_ih"].shape[1]
    f_out = params["w_self"].shape[0]
    f_out_p = ((f_out + 127) // 128) * 128          # lane-dense output width

    # Packed (all gates, i|f|g|o) LSTM weights: x @ W_ih.T, h @ W_hh.T layout.
    w_ih_cat = params["w_ih"].T.astype(mm_dtype)          # [F_in, 4*F_in]
    w_hh_cat = params["w_hh"].T.astype(mm_dtype)          # [F_in, 4*F_in]
    b_cat = (params["b_ih"] + params["b_hh"]).astype(jnp.float32)   # [1, 4*F_in]

    # Separate, pre-transposed, output-padded projection weights.
    pad = ((0, 0), (0, f_out_p - f_out))
    w_self_t = jnp.pad(params["w_self"].T, pad).astype(mm_dtype)     # [F_in, F_out_p]
    w_neigh_t = jnp.pad(params["w_neigh"].T, pad).astype(mm_dtype)   # [F_in, F_out_p]
    bias = jnp.pad(params["bias"], pad).astype(jnp.float32)          # [1, F_out_p]
    return w_ih_cat, w_hh_cat, b_cat, w_self_t, w_neigh_t, bias, f_out, f_out_p


def sage_conv_lstm(self_feats, neigh_km, params, *, apply_relu, tile_n=None):
    """Run one SAGEConv('lstm') layer with a Pallas kernel tiled over dst nodes.

    self_feats : [N, F_in]     (bf16)
    neigh_km   : [K, N, F_in]  time-major gathered neighbor features (bf16)
    """
    n, f_in = self_feats.shape
    k = neigh_km.shape[0]
    (w_ih_cat, w_hh_cat, b_cat, w_self_t, w_neigh_t,
     bias, f_out, f_out_p) = _prep_layer(params)

    if tile_n is None:
        # 256 matches the v6e/v7x MXU M-dim, but only if >=2 grid steps remain
        # so both v7x TensorCores get work; otherwise stay at 128.
        tile_n = 256 if n > 256 else 128

    # Pad node count to a tile multiple (padded rows are sliced off below).
    n_pad = pl.cdiv(n, tile_n) * tile_n
    if n_pad != n:
        self_feats = jnp.pad(self_feats, ((0, n_pad - n), (0, 0)))
        neigh_km = jnp.pad(neigh_km, ((0, 0), (0, n_pad - n), (0, 0)))

    kernel = functools.partial(_sage_lstm_kernel, apply_relu=apply_relu)

    cost = pl.CostEstimate(
        flops=2 * n_pad * f_in * (2 * k * 4 * f_in + 2 * f_out_p),
        transcendentals=n_pad * k * (2 * 4 * f_in + f_in),
        bytes_accessed=int(neigh_km.size) * 2 + int(self_feats.size) * 2
                       + n_pad * f_out_p * 4,
    )

    out = pl.pallas_call(
        kernel,
        out_shape=jax.ShapeDtypeStruct((n_pad, f_out_p), jnp.float32),
        grid_spec=pltpu.PrefetchScalarGridSpec(
            num_scalar_prefetch=0,
            grid=(n_pad // tile_n,),
            in_specs=[
                pl.BlockSpec((k, tile_n, f_in), lambda i: (0, i, 0)),   # neigh (time-major)
                pl.BlockSpec((tile_n, f_in), lambda i: (i, 0)),         # self feats
                pl.BlockSpec((f_in, 4 * f_in), lambda i: (0, 0)),       # W_ih.T packed
                pl.BlockSpec((f_in, 4 * f_in), lambda i: (0, 0)),       # W_hh.T packed
                pl.BlockSpec((1, 4 * f_in), lambda i: (0, 0)),          # b_ih + b_hh packed
                pl.BlockSpec((f_in, f_out_p), lambda i: (0, 0)),        # W_self.T (padded)
                pl.BlockSpec((f_in, f_out_p), lambda i: (0, 0)),        # W_neigh.T (padded)
                pl.BlockSpec((1, f_out_p), lambda i: (0, 0)),           # bias (padded)
            ],
            out_specs=pl.BlockSpec((tile_n, f_out_p), lambda i: (i, 0)),
            scratch_shapes=[pltpu.VMEM((k * tile_n, 4 * f_in), jnp.float32)],
        ),
        compiler_params=pltpu.CompilerParams(dimension_semantics=("parallel",)),
        cost_estimate=cost,
    )(neigh_km, self_feats, w_ih_cat, w_hh_cat, b_cat, w_self_t, w_neigh_t, bias)

    return out[:n, :f_out]


def init_sage_params(key, in_feats, n_hidden, n_classes, n_layers):
    """Deterministic SAGEConv('lstm') parameter init (canonical PyTorch layout)."""
    dims = [in_feats] + [n_hidden] * (n_layers - 1) + [n_classes]
    layers = []
    for l in range(n_layers):
        f_in, f_out = dims[l], dims[l + 1]
        key, *ks = jax.random.split(key, 8)
        scale = 0.1
        layers.append(dict(
            w_ih=scale * jax.random.normal(ks[0], (4 * f_in, f_in), jnp.float32),
            w_hh=scale * jax.random.normal(ks[1], (4 * f_in, f_in), jnp.float32),
            b_ih=scale * jax.random.normal(ks[2], (1, 4 * f_in), jnp.float32),
            b_hh=scale * jax.random.normal(ks[3], (1, 4 * f_in), jnp.float32),
            w_self=scale * jax.random.normal(ks[4], (f_out, f_in), jnp.float32),
            w_neigh=scale * jax.random.normal(ks[5], (f_out, f_in), jnp.float32),
            bias=jnp.zeros((1, f_out), jnp.float32),
        ))
    return layers


def sage_forward(blocks_nbr_idx, x, layer_params):
    """Full SAGE.forward: per layer gather neighbors (glue), run Pallas kernel."""
    h = x
    n_layers = len(layer_params)
    for l, (nbr_idx, params) in enumerate(zip(blocks_nbr_idx, layer_params)):
        h_mm = h.astype(jnp.bfloat16)
        # Gather directly time-major in bf16: [K, N, F_in] (no transpose round trip).
        neigh_km = jnp.take(h_mm, nbr_idx.T, axis=0)
        is_last = (l == n_layers - 1)
        h = sage_conv_lstm(h_mm, neigh_km, params, apply_relu=not is_last)
        # dropout: identity (eval mode)
    return h


def _reference_forward(blocks_nbr_idx, x, layer_params):
    """Pure-JAX fp32 reference for correctness checking (canonical PyTorch math)."""
    h = x
    n_layers = len(layer_params)
    for l, (nbr_idx, p) in enumerate(zip(blocks_nbr_idx, layer_params)):
        neigh = jnp.take(h, nbr_idx, axis=0)             # [N, K, F_in]
        n, k, f_in = neigh.shape
        ht = jnp.zeros((n, f_in), jnp.float32)
        ct = jnp.zeros((n, f_in), jnp.float32)
        b = p["b_ih"] + p["b_hh"]
        for t in range(k):
            gates = neigh[:, t, :] @ p["w_ih"].T + ht @ p["w_hh"].T + b
            i_g = jax.nn.sigmoid(gates[:, 0 * f_in:1 * f_in])
            f_g = jax.nn.sigmoid(gates[:, 1 * f_in:2 * f_in])
            g_g = jnp.tanh(gates[:, 2 * f_in:3 * f_in])
            o_g = jax.nn.sigmoid(gates[:, 3 * f_in:4 * f_in])
            ct = f_g * ct + i_g * g_g
            ht = o_g * jnp.tanh(ct)
        out = h @ p["w_self"].T + ht @ p["w_neigh"].T + p["bias"]
        if l != n_layers - 1:
            out = jnp.maximum(out, 0.0)
        h = out
    return h


if __name__ == "__main__":
    # Deterministic problem: 200 nodes (exercises padding + a 2-step grid with
    # tile_n=128), fixed degree 4, 3-layer SAGE.
    N, K = 200, 4
    in_feats, n_hidden, n_classes, n_layers = 32, 32, 16, 3

    key = jax.random.PRNGKey(0)
    k_x, k_adj, k_par = jax.random.split(key, 3)

    x = jax.random.normal(k_x, (N, in_feats), jnp.float32)

    # One fixed-degree neighbor-index table per layer (the "blocks").
    adj_keys = jax.random.split(k_adj, n_layers)
    blocks_nbr_idx = [jax.random.randint(adj_keys[l], (N, K), 0, N, jnp.int32)
                      for l in range(n_layers)]

    layer_params = init_sage_params(k_par, in_feats, n_hidden, n_classes, n_layers)

    # jit the whole forward so the gather/pad glue fuses with the kernel dispatch.
    sage_forward_jit = jax.jit(sage_forward)
    out = sage_forward_jit(blocks_nbr_idx, x, layer_params)
    out = jax.block_until_ready(out)

    ref = _reference_forward(blocks_nbr_idx, x, layer_params)
    assert out.shape == (N, n_classes)
    # bf16 MXU operands (f32 accumulation) vs fp32 reference -> relaxed tolerance.
    assert jnp.allclose(out, ref, atol=5e-2, rtol=5e-2)

    print("KERNEL_OK")
</pallas_src>

<mosaic_0001>
module attributes {stable_mosaic.version = 11 : i64} {
  func.func @_sage_lstm_kernel(%arg0: i32, %arg1: memref<4x128x32xbf16, #tpu.memory_space<vmem>>, %arg2: memref<128x32xbf16, #tpu.memory_space<vmem>>, %arg3: memref<32x128xbf16, #tpu.memory_space<vmem>>, %arg4: memref<32x128xbf16, #tpu.memory_space<vmem>>, %arg5: memref<1x128xf32, #tpu.memory_space<vmem>>, %arg6: memref<32x128xbf16, #tpu.memory_space<vmem>>, %arg7: memref<32x128xbf16, #tpu.memory_space<vmem>>, %arg8: memref<1x128xf32, #tpu.memory_space<vmem>>, %arg9: memref<128x128xf32, #tpu.memory_space<vmem>>, %arg10: memref<512x128xf32, #tpu.memory_space<vmem>>) attributes {dimension_semantics = [#tpu.dimension_semantics<parallel>], iteration_bounds = array<i64: 2>, scalar_prefetch = 0 : i64, scratch_operands = 1 : i64, tpu.core_type = #tpu.core_type<tc>, window_params = [{transform_indices = @transform_0, window_bounds = array<i64: 4, 128, 32>}, {transform_indices = @transform_1, window_bounds = array<i64: 128, 32>}, {pipeline_mode = #tpu.pipeline_mode<synchronous>, transform_indices = @transform_2, window_bounds = array<i64: 32, 128>}, {pipeline_mode = #tpu.pipeline_mode<synchronous>, transform_indices = @transform_3, window_bounds = array<i64: 32, 128>}, {pipeline_mode = #tpu.pipeline_mode<synchronous>, transform_indices = @transform_4, window_bounds = array<i64: 1, 128>}, {pipeline_mode = #tpu.pipeline_mode<synchronous>, transform_indices = @transform_5, window_bounds = array<i64: 32, 128>}, {pipeline_mode = #tpu.pipeline_mode<synchronous>, transform_indices = @transform_6, window_bounds = array<i64: 32, 128>}, {pipeline_mode = #tpu.pipeline_mode<synchronous>, transform_indices = @transform_7, window_bounds = array<i64: 1, 128>}, {transform_indices = @transform_8, window_bounds = array<i64: 128, 128>}]} {
    %c0 = arith.constant 0 : index
    %c0_0 = arith.constant 0 : index
    %0 = vector.load %arg2[%c0, %c0_0] : memref<128x32xbf16, #tpu.memory_space<vmem>>, vector<128x32xbf16>
    %c0_1 = arith.constant 0 : index
    %c0_2 = arith.constant 0 : index
    %1 = vector.load %arg6[%c0_1, %c0_2] : memref<32x128xbf16, #tpu.memory_space<vmem>>, vector<32x128xbf16>
    %cst = arith.constant dense<0.000000e+00> : vector<128x128xf32>
    %2 = tpu.matmul %0, %1, %cst {dimension_numbers = #tpu.dot_dimension_numbers<[1], [0], [0], [1], [0, 0, 1, 1], [], []>} : vector<128x32xbf16>, vector<32x128xbf16>, vector<128x128xf32> -> vector<128x128xf32>
    %c0_3 = arith.constant 0 : index
    %c0_4 = arith.constant 0 : index
    %3 = vector.load %arg8[%c0_3, %c0_4] : memref<1x128xf32, #tpu.memory_space<vmem>>, vector<1x128xf32>
    %4 = vector.broadcast %3 : vector<1x128xf32> to vector<128x128xf32>
    %5 = arith.addf %2, %4 : vector<128x128xf32>
    %c0_5 = arith.constant 0 : index
    %c0_6 = arith.constant 0 : index
    %c0_7 = arith.constant 0 : index
    %6 = vector.load %arg1[%c0_5, %c0_6, %c0_7] : memref<4x128x32xbf16, #tpu.memory_space<vmem>>, vector<4x128x32xbf16>
    %7 = vector.shape_cast %6 : vector<4x128x32xbf16> to vector<512x32xbf16>
    %c0_8 = arith.constant 0 : index
    %c0_9 = arith.constant 0 : index
    %8 = vector.load %arg3[%c0_8, %c0_9] : memref<32x128xbf16, #tpu.memory_space<vmem>>, vector<32x128xbf16>
    %cst_10 = arith.constant dense<0.000000e+00> : vector<512x128xf32>
    %9 = tpu.matmul %7, %8, %cst_10 {dimension_numbers = #tpu.dot_dimension_numbers<[1], [0], [0], [1], [0, 0, 1, 1], [], []>} : vector<512x32xbf16>, vector<32x128xbf16>, vector<512x128xf32> -> vector<512x128xf32>
    %c0_11 = arith.constant 0 : index
    %c0_12 = arith.constant 0 : index
    %10 = vector.load %arg5[%c0_11, %c0_12] : memref<1x128xf32, #tpu.memory_space<vmem>>, vector<1x128xf32>
    %11 = vector.broadcast %10 : vector<1x128xf32> to vector<512x128xf32>
    %12 = arith.addf %9, %11 : vector<512x128xf32>
    %c0_13 = arith.constant 0 : index
    %c0_14 = arith.constant 0 : index
    %13 = vector.load %arg10[%c0_13, %c0_14] : memref<512x128xf32, #tpu.memory_space<vmem>>, vector<512x128xf32>
    tpu.vector_store %arg10[%c0_13, %c0_14], %12 {strides = array<i32>} : memref<512x128xf32, #tpu.memory_space<vmem>>, vector<512x128xf32>,
    %c0_15 = arith.constant 0 : index
    %c0_16 = arith.constant 0 : index
    %14 = vector.load %arg4[%c0_15, %c0_16] : memref<32x128xbf16, #tpu.memory_space<vmem>>, vector<32x128xbf16>
    %15 = tpu.iota {dimensions = array<i32: 1>} : vector<128x128xi32>
    %c64_i32 = arith.constant 64 : i32
    %16 = vector.broadcast %c64_i32 : i32 to vector<128x128xi32>
    %17 = arith.cmpi sge, %15, %16 : vector<128x128xi32>
    %c96_i32 = arith.constant 96 : i32
    %18 = vector.broadcast %c96_i32 : i32 to vector<128x128xi32>
    %19 = arith.cmpi slt, %15, %18 : vector<128x128xi32>
    %20 = arith.andi %17, %19 : vector<128x128xi1>
    %cst_17 = arith.constant 0.000000e+00 : f32
    %21 = vector.broadcast %cst_17 : f32 to vector<128x32xf32>
    %cst_18 = arith.constant 0.000000e+00 : f32
    %22 = vector.broadcast %cst_18 : f32 to vector<128x32xf32>
    %c0_19 = arith.constant 0 : index
    %c0_20 = arith.constant 0 : index
    %23 = vector.load %arg10[%c0_19, %c0_20] : memref<512x128xf32, #tpu.memory_space<vmem>>, vector<128x128xf32>
    %24 = arith.truncf %21 : vector<128x32xf32> to vector<128x32xbf16>
    %cst_21 = arith.constant dense<0.000000e+00> : vector<128x128xf32>
    %25 = tpu.matmul %24, %14, %cst_21 {dimension_numbers = #tpu.dot_dimension_numbers<[1], [0], [0], [1], [0, 0, 1, 1], [], []>} : vector<128x32xbf16>, vector<32x128xbf16>, vector<128x128xf32> -> vector<128x128xf32>
    %26 = arith.addf %23, %25 : vector<128x128xf32>
    %27 = math.tanh %26 : vector<128x128xf32>
    %28 = arith.negf %26 : vector<128x128xf32>
    %29 = math.exp %28 : vector<128x128xf32>
    %cst_22 = arith.constant 1.000000e+00 : f32
    %30 = vector.broadcast %cst_22 : f32 to vector<128x128xf32>
    %31 = arith.addf %30, %29 : vector<128x128xf32>
    %32 = arith.divf %30, %31 : vector<128x128xf32>
    %33 = arith.select %20, %27, %32 : vector<128x128xi1>, vector<128x128xf32>
    %34 = vector.extract_strided_slice %33 {offsets = [0, 0], sizes = [128, 32], strides = [1, 1]} : vector<128x128xf32> to vector<128x32xf32>
    %35 = vector.extract_strided_slice %33 {offsets = [0, 32], sizes = [128, 32], strides = [1, 1]} : vector<128x128xf32> to vector<128x32xf32>
    %36 = vector.extract_strided_slice %33 {offsets = [0, 64], sizes = [128, 32], strides = [1, 1]} : vector<128x128xf32> to vector<128x32xf32>
    %37 = vector.extract_strided_slice %33 {offsets = [0, 96], sizes = [128, 32], strides = [1, 1]} : vector<128x128xf32> to vector<128x32xf32>
    %38 = arith.mulf %35, %22 : vector<128x32xf32>
    %39 = arith.mulf %34, %36 : vector<128x32xf32>
    %40 = arith.addf %38, %39 : vector<128x32xf32>
    %41 = math.tanh %40 : vector<128x32xf32>
    %42 = arith.mulf %37, %41 : vector<128x32xf32>
    %c128 = arith.constant 128 : index
    %c0_23 = arith.constant 0 : index
    %43 = vector.load %arg10[%c128, %c0_23] : memref<512x128xf32, #tpu.memory_space<vmem>>, vector<128x128xf32>
    %44 = arith.truncf %42 : vector<128x32xf32> to vector<128x32xbf16>
    %cst_24 = arith.constant dense<0.000000e+00> : vector<128x128xf32>
    %45 = tpu.matmul %44, %14, %cst_24 {dimension_numbers = #tpu.dot_dimension_numbers<[1], [0], [0], [1], [0, 0, 1, 1], [], []>} : vector<128x32xbf16>, vector<32x128xbf16>, vector<128x128xf32> -> vector<128x128xf32>
    %46 = arith.addf %43, %45 : vector<128x128xf32>
    %47 = math.tanh %46 : vector<128x128xf32>
    %48 = arith.negf %46 : vector<128x128xf32>
    %49 = math.exp %48 : vector<128x128xf32>
    %cst_25 = arith.constant 1.000000e+00 : f32
    %50 = vector.broadcast %cst_25 : f32 to vector<128x128xf32>
    %51 = arith.addf %50, %49 : vector<128x128xf32>
    %52 = arith.divf %50, %51 : vector<128x128xf32>
    %53 = arith.select %20, %47, %52 : vector<128x128xi1>, vector<128x128xf32>
    %54 = vector.extract_strided_slice %53 {offsets = [0, 0], sizes = [128, 32], strides = [1, 1]} : vector<128x128xf32> to vector<128x32xf32>
    %55 = vector.extract_strided_slice %53 {offsets = [0, 32], sizes = [128, 32], strides = [1, 1]} : vector<128x128xf32> to vector<128x32xf32>
    %56 = vector.extract_strided_slice %53 {offsets = [0, 64], sizes = [128, 32], strides = [1, 1]} : vector<128x128xf32> to vector<128x32xf32>
    %57 = vector.extract_strided_slice %53 {offsets = [0, 96], sizes = [128, 32], strides = [1, 1]} : vector<128x128xf32> to vector<128x32xf32>
    %58 = arith.mulf %55, %40 : vector<128x32xf32>
    %59 = arith.mulf %54, %56 : vector<128x32xf32>
    %60 = arith.addf %58, %59 : vector<128x32xf32>
    %61 = math.tanh %60 : vector<128x32xf32>
    %62 = arith.mulf %57, %61 : vector<128x32xf32>
    %c256 = arith.constant 256 : index
    %c0_26 = arith.constant 0 : index
    %63 = vector.load %arg10[%c256, %c0_26] : memref<512x128xf32, #tpu.memory_space<vmem>>, vector<128x128xf32>
    %64 = arith.truncf %62 : vector<128x32xf32> to vector<128x32xbf16>
    %cst_27 = arith.constant dense<0.000000e+00> : vector<128x128xf32>
    %65 = tpu.matmul %64, %14, %cst_27 {dimension_numbers = #tpu.dot_dimension_numbers<[1], [0], [0], [1], [0, 0, 1, 1], [], []>} : vector<128x32xbf16>, vector<32x128xbf16>, vector<128x128xf32> -> vector<128x128xf32>
    %66 = arith.addf %63, %65 : vector<128x128xf32>
    %67 = math.tanh %66 : vector<128x128xf32>
    %68 = arith.negf %66 : vector<128x128xf32>
    %69 = math.exp %68 : vector<128x128xf32>
    %cst_28 = arith.constant 1.000000e+00 : f32
    %70 = vector.broadcast %cst_28 : f32 to vector<128x128xf32>
    %71 = arith.addf %70, %69 : vector<128x128xf32>
    %72 = arith.divf %70, %71 : vector<128x128xf32>
    %73 = arith.select %20, %67, %72 : vector<128x128xi1>, vector<128x128xf32>
    %74 = vector.extract_strided_slice %73 {offsets = [0, 0], sizes = [128, 32], strides = [1, 1]} : vector<128x128xf32> to vector<128x32xf32>
    %75 = vector.extract_strided_slice %73 {offsets = [0, 32], sizes = [128, 32], strides = [1, 1]} : vector<128x128xf32> to vector<128x32xf32>
    %76 = vector.extract_strided_slice %73 {offsets = [0, 64], sizes = [128, 32], strides = [1, 1]} : vector<128x128xf32> to vector<128x32xf32>
    %77 = vector.extract_strided_slice %73 {offsets = [0, 96], sizes = [128, 32], strides = [1, 1]} : vector<128x128xf32> to vector<128x32xf32>
    %78 = arith.mulf %75, %60 : vector<128x32xf32>
    %79 = arith.mulf %74, %76 : vector<128x32xf32>
    %80 = arith.addf %78, %79 : vector<128x32xf32>
    %81 = math.tanh %80 : vector<128x32xf32>
    %82 = arith.mulf %77, %81 : vector<128x32xf32>
    %c384 = arith.constant 384 : index
    %c0_29 = arith.constant 0 : index
    %83 = vector.load %arg10[%c384, %c0_29] : memref<512x128xf32, #tpu.memory_space<vmem>>, vector<128x128xf32>
    %84 = arith.truncf %82 : vector<128x32xf32> to vector<128x32xbf16>
    %cst_30 = arith.constant dense<0.000000e+00> : vector<128x128xf32>
    %85 = tpu.matmul %84, %14, %cst_30 {dimension_numbers = #tpu.dot_dimension_numbers<[1], [0], [0], [1], [0, 0, 1, 1], [], []>} : vector<128x32xbf16>, vector<32x128xbf16>, vector<128x128xf32> -> vector<128x128xf32>
    %86 = arith.addf %83, %85 : vector<128x128xf32>
    %87 = math.tanh %86 : vector<128x128xf32>
    %88 = arith.negf %86 : vector<128x128xf32>
    %89 = math.exp %88 : vector<128x128xf32>
    %cst_31 = arith.constant 1.000000e+00 : f32
    %90 = vector.broadcast %cst_31 : f32 to vector<128x128xf32>
    %91 = arith.addf %90, %89 : vector<128x128xf32>
    %92 = arith.divf %90, %91 : vector<128x128xf32>
    %93 = arith.select %20, %87, %92 : vector<128x128xi1>, vector<128x128xf32>
    %94 = vector.extract_strided_slice %93 {offsets = [0, 0], sizes = [128, 32], strides = [1, 1]} : vector<128x128xf32> to vector<128x32xf32>
    %95 = vector.extract_strided_slice %93 {offsets = [0, 32], sizes = [128, 32], strides = [1, 1]} : vector<128x128xf32> to vector<128x32xf32>
    %96 = vector.extract_strided_slice %93 {offsets = [0, 64], sizes = [128, 32], strides = [1, 1]} : vector<128x128xf32> to vector<128x32xf32>
    %97 = vector.extract_strided_slice %93 {offsets = [0, 96], sizes = [128, 32], strides = [1, 1]} : vector<128x128xf32> to vector<128x32xf32>
    %98 = arith.mulf %95, %80 : vector<128x32xf32>
    %99 = arith.mulf %94, %96 : vector<128x32xf32>
    %100 = arith.addf %98, %99 : vector<128x32xf32>
    %101 = math.tanh %100 : vector<128x32xf32>
    %102 = arith.mulf %97, %101 : vector<128x32xf32>
    %103 = arith.truncf %102 : vector<128x32xf32> to vector<128x32xbf16>
    %c0_32 = arith.constant 0 : index
    %c0_33 = arith.constant 0 : index
    %104 = vector.load %arg7[%c0_32, %c0_33] : memref<32x128xbf16, #tpu.memory_space<vmem>>, vector<32x128xbf16>
    %cst_34 = arith.constant dense<0.000000e+00> : vector<128x128xf32>
    %105 = tpu.matmul %103, %104, %cst_34 {dimension_numbers = #tpu.dot_dimension_numbers<[1], [0], [0], [1], [0, 0, 1, 1], [], []>} : vector<128x32xbf16>, vector<32x128xbf16>, vector<128x128xf32> -> vector<128x128xf32>
    %106 = arith.addf %5, %105 : vector<128x128xf32>
    %cst_35 = arith.constant 0.000000e+00 : f32
    %107 = vector.broadcast %cst_35 : f32 to vector<128x128xf32>
    %108 = arith.maximumf %106, %107 : vector<128x128xf32>
    %c0_36 = arith.constant 0 : index
    %c0_37 = arith.constant 0 : index
    %109 = vector.load %arg9[%c0_36, %c0_37] : memref<128x128xf32, #tpu.memory_space<vmem>>, vector<128x128xf32>
    tpu.vector_store %arg9[%c0_36, %c0_37], %108 {strides = array<i32>} : memref<128x128xf32, #tpu.memory_space<vmem>>, vector<128x128xf32>,
    return
  }
  func.func @transform_0(%arg0: i32) -> (i32, i32, i32) {
    %c0_i32 = arith.constant 0 : i32
    %c0_i32_0 = arith.constant 0 : i32
    %c0_i32_1 = arith.constant 0 : i32
    return %c0_i32, %arg0, %c0_i32_0 : i32, i32, i32
  }
  func.func @transform_1(%arg0: i32) -> (i32, i32) {
    %c0_i32 = arith.constant 0 : i32
    %c0_i32_0 = arith.constant 0 : i32
    return %arg0, %c0_i32 : i32, i32
  }
  func.func @transform_2(%arg0: i32) -> (i32, i32) {
    %c0_i32 = arith.constant 0 : i32
    %c0_i32_0 = arith.constant 0 : i32
    %c0_i32_1 = arith.constant 0 : i32
    return %c0_i32, %c0_i32_0 : i32, i32
  }
  func.func @transform_3(%arg0: i32) -> (i32, i32) {
    %c0_i32 = arith.constant 0 : i32
    %c0_i32_0 = arith.constant 0 : i32
    %c0_i32_1 = arith.constant 0 : i32
    return %c0_i32, %c0_i32_0 : i32, i32
  }
  func.func @transform_4(%arg0: i32) -> (i32, i32) {
    %c0_i32 = arith.constant 0 : i32
    %c0_i32_0 = arith.constant 0 : i32
    %c0_i32_1 = arith.constant 0 : i32
    return %c0_i32, %c0_i32_0 : i32, i32
  }
  func.func @transform_5(%arg0: i32) -> (i32, i32) {
    %c0_i32 = arith.constant 0 : i32
    %c0_i32_0 = arith.constant 0 : i32
    %c0_i32_1 = arith.constant 0 : i32
    return %c0_i32, %c0_i32_0 : i32, i32
  }
  func.func @transform_6(%arg0: i32) -> (i32, i32) {
    %c0_i32 = arith.constant 0 : i32
    %c0_i32_0 = arith.constant 0 : i32
    %c0_i32_1 = arith.constant 0 : i32
    return %c0_i32, %c0_i32_0 : i32, i32
  }
  func.func @transform_7(%arg0: i32) -> (i32, i32) {
    %c0_i32 = arith.constant 0 : i32
    %c0_i32_0 = arith.constant 0 : i32
    %c0_i32_1 = arith.constant 0 : i32
    return %c0_i32, %c0_i32_0 : i32, i32
  }
  func.func @transform_8(%arg0: i32) -> (i32, i32) {
    %c0_i32 = arith.constant 0 : i32
    %c0_i32_0 = arith.constant 0 : i32
    return %arg0, %c0_i32 : i32, i32
  }
}

module attributes {stable_mosaic.version = 11 : i64} {
  func.func @_sage_lstm_kernel(%arg0: i32, %arg1: memref<4x128x32xbf16, #tpu.memory_space<vmem>>, %arg2: memref<128x32xbf16, #tpu.memory_space<vmem>>, %arg3: memref<32x128xbf16, #tpu.memory_space<vmem>>, %arg4: memref<32x128xbf16, #tpu.memory_space<vmem>>, %arg5: memref<1x128xf32, #tpu.memory_space<vmem>>, %arg6: memref<32x128xbf16, #tpu.memory_space<vmem>>, %arg7: memref<32x128xbf16, #tpu.memory_space<vmem>>, %arg8: memref<1x128xf32, #tpu.memory_space<vmem>>, %arg9: memref<128x128xf32, #tpu.memory_space<vmem>>, %arg10: memref<512x128xf32, #tpu.memory_space<vmem>>) attributes {dimension_semantics = [#tpu.dimension_semantics<parallel>], iteration_bounds = array<i64: 2>, scalar_prefetch = 0 : i64, scratch_operands = 1 : i64, tpu.core_type = #tpu.core_type<tc>, window_params = [{transform_indices = @transform_0, window_bounds = array<i64: 4, 128, 32>}, {transform_indices = @transform_1, window_bounds = array<i64: 128, 32>}, {pipeline_mode = #tpu.pipeline_mode<synchronous>, transform_indices = @transform_2, window_bounds = array<i64: 32, 128>}, {pipeline_mode = #tpu.pipeline_mode<synchronous>, transform_indices = @transform_3, window_bounds = array<i64: 32, 128>}, {pipeline_mode = #tpu.pipeline_mode<synchronous>, transform_indices = @transform_4, window_bounds = array<i64: 1, 128>}, {pipeline_mode = #tpu.pipeline_mode<synchronous>, transform_indices = @transform_5, window_bounds = array<i64: 32, 128>}, {pipeline_mode = #tpu.pipeline_mode<synchronous>, transform_indices = @transform_6, window_bounds = array<i64: 32, 128>}, {pipeline_mode = #tpu.pipeline_mode<synchronous>, transform_indices = @transform_7, window_bounds = array<i64: 1, 128>}, {transform_indices = @transform_8, window_bounds = array<i64: 128, 128>}]} {
    %c0 = arith.constant 0 : index
    %c0_0 = arith.constant 0 : index
    %0 = vector.load %arg2[%c0, %c0_0] : memref<128x32xbf16, #tpu.memory_space<vmem>>, vector<128x32xbf16>
    %c0_1 = arith.constant 0 : index
    %c0_2 = arith.constant 0 : index
    %1 = vector.load %arg6[%c0_1, %c0_2] : memref<32x128xbf16, #tpu.memory_space<vmem>>, vector<32x128xbf16>
    %cst = arith.constant dense<0.000000e+00> : vector<128x128xf32>
    %2 = tpu.matmul %0, %1, %cst {dimension_numbers = #tpu.dot_dimension_numbers<[1], [0], [0], [1], [0, 0, 1, 1], [], []>} : vector<128x32xbf16>, vector<32x128xbf16>, vector<128x128xf32> -> vector<128x128xf32>
    %c0_3 = arith.constant 0 : index
    %c0_4 = arith.constant 0 : index
    %3 = vector.load %arg8[%c0_3, %c0_4] : memref<1x128xf32, #tpu.memory_space<vmem>>, vector<1x128xf32>
    %4 = vector.broadcast %3 : vector<1x128xf32> to vector<128x128xf32>
    %5 = arith.addf %2, %4 : vector<128x128xf32>
    %c0_5 = arith.constant 0 : index
    %c0_6 = arith.constant 0 : index
    %c0_7 = arith.constant 0 : index
    %6 = vector.load %arg1[%c0_5, %c0_6, %c0_7] : memref<4x128x32xbf16, #tpu.memory_space<vmem>>, vector<4x128x32xbf16>
    %7 = vector.shape_cast %6 : vector<4x128x32xbf16> to vector<512x32xbf16>
    %c0_8 = arith.constant 0 : index
    %c0_9 = arith.constant 0 : index
    %8 = vector.load %arg3[%c0_8, %c0_9] : memref<32x128xbf16, #tpu.memory_space<vmem>>, vector<32x128xbf16>
    %cst_10 = arith.constant dense<0.000000e+00> : vector<512x128xf32>
    %9 = tpu.matmul %7, %8, %cst_10 {dimension_numbers = #tpu.dot_dimension_numbers<[1], [0], [0], [1], [0, 0, 1, 1], [], []>} : vector<512x32xbf16>, vector<32x128xbf16>, vector<512x128xf32> -> vector<512x128xf32>
    %c0_11 = arith.constant 0 : index
    %c0_12 = arith.constant 0 : index
    %10 = vector.load %arg5[%c0_11, %c0_12] : memref<1x128xf32, #tpu.memory_space<vmem>>, vector<1x128xf32>
    %11 = vector.broadcast %10 : vector<1x128xf32> to vector<512x128xf32>
    %12 = arith.addf %9, %11 : vector<512x128xf32>
    %c0_13 = arith.constant 0 : index
    %c0_14 = arith.constant 0 : index
    %13 = vector.load %arg10[%c0_13, %c0_14] : memref<512x128xf32, #tpu.memory_space<vmem>>, vector<512x128xf32>
    tpu.vector_store %arg10[%c0_13, %c0_14], %12 {strides = array<i32>} : memref<512x128xf32, #tpu.memory_space<vmem>>, vector<512x128xf32>,
    %c0_15 = arith.constant 0 : index
    %c0_16 = arith.constant 0 : index
    %14 = vector.load %arg4[%c0_15, %c0_16] : memref<32x128xbf16, #tpu.memory_space<vmem>>, vector<32x128xbf16>
    %15 = tpu.iota {dimensions = array<i32: 1>} : vector<128x128xi32>
    %c64_i32 = arith.constant 64 : i32
    %16 = vector.broadcast %c64_i32 : i32 to vector<128x128xi32>
    %17 = arith.cmpi sge, %15, %16 : vector<128x128xi32>
    %c96_i32 = arith.constant 96 : i32
    %18 = vector.broadcast %c96_i32 : i32 to vector<128x128xi32>
    %19 = arith.cmpi slt, %15, %18 : vector<128x128xi32>
    %20 = arith.andi %17, %19 : vector<128x128xi1>
    %cst_17 = arith.constant 0.000000e+00 : f32
    %21 = vector.broadcast %cst_17 : f32 to vector<128x32xf32>
    %cst_18 = arith.constant 0.000000e+00 : f32
    %22 = vector.broadcast %cst_18 : f32 to vector<128x32xf32>
    %c0_19 = arith.constant 0 : index
    %c0_20 = arith.constant 0 : index
    %23 = vector.load %arg10[%c0_19, %c0_20] : memref<512x128xf32, #tpu.memory_space<vmem>>, vector<128x128xf32>
    %24 = arith.truncf %21 : vector<128x32xf32> to vector<128x32xbf16>
    %cst_21 = arith.constant dense<0.000000e+00> : vector<128x128xf32>
    %25 = tpu.matmul %24, %14, %cst_21 {dimension_numbers = #tpu.dot_dimension_numbers<[1], [0], [0], [1], [0, 0, 1, 1], [], []>} : vector<128x32xbf16>, vector<32x128xbf16>, vector<128x128xf32> -> vector<128x128xf32>
    %26 = arith.addf %23, %25 : vector<128x128xf32>
    %27 = math.tanh %26 : vector<128x128xf32>
    %28 = arith.negf %26 : vector<128x128xf32>
    %29 = math.exp %28 : vector<128x128xf32>
    %cst_22 = arith.constant 1.000000e+00 : f32
    %30 = vector.broadcast %cst_22 : f32 to vector<128x128xf32>
    %31 = arith.addf %30, %29 : vector<128x128xf32>
    %32 = arith.divf %30, %31 : vector<128x128xf32>
    %33 = arith.select %20, %27, %32 : vector<128x128xi1>, vector<128x128xf32>
    %34 = vector.extract_strided_slice %33 {offsets = [0, 0], sizes = [128, 32], strides = [1, 1]} : vector<128x128xf32> to vector<128x32xf32>
    %35 = vector.extract_strided_slice %33 {offsets = [0, 32], sizes = [128, 32], strides = [1, 1]} : vector<128x128xf32> to vector<128x32xf32>
    %36 = vector.extract_strided_slice %33 {offsets = [0, 64], sizes = [128, 32], strides = [1, 1]} : vector<128x128xf32> to vector<128x32xf32>
    %37 = vector.extract_strided_slice %33 {offsets = [0, 96], sizes = [128, 32], strides = [1, 1]} : vector<128x128xf32> to vector<128x32xf32>
    %38 = arith.mulf %35, %22 : vector<128x32xf32>
    %39 = arith.mulf %34, %36 : vector<128x32xf32>
    %40 = arith.addf %38, %39 : vector<128x32xf32>
    %41 = math.tanh %40 : vector<128x32xf32>
    %42 = arith.mulf %37, %41 : vector<128x32xf32>
    %c128 = arith.constant 128 : index
    %c0_23 = arith.constant 0 : index
    %43 = vector.load %arg10[%c128, %c0_23] : memref<512x128xf32, #tpu.memory_space<vmem>>, vector<128x128xf32>
    %44 = arith.truncf %42 : vector<128x32xf32> to vector<128x32xbf16>
    %cst_24 = arith.constant dense<0.000000e+00> : vector<128x128xf32>
    %45 = tpu.matmul %44, %14, %cst_24 {dimension_numbers = #tpu.dot_dimension_numbers<[1], [0], [0], [1], [0, 0, 1, 1], [], []>} : vector<128x32xbf16>, vector<32x128xbf16>, vector<128x128xf32> -> vector<128x128xf32>
    %46 = arith.addf %43, %45 : vector<128x128xf32>
    %47 = math.tanh %46 : vector<128x128xf32>
    %48 = arith.negf %46 : vector<128x128xf32>
    %49 = math.exp %48 : vector<128x128xf32>
    %cst_25 = arith.constant 1.000000e+00 : f32
    %50 = vector.broadcast %cst_25 : f32 to vector<128x128xf32>
    %51 = arith.addf %50, %49 : vector<128x128xf32>
    %52 = arith.divf %50, %51 : vector<128x128xf32>
    %53 = arith.select %20, %47, %52 : vector<128x128xi1>, vector<128x128xf32>
    %54 = vector.extract_strided_slice %53 {offsets = [0, 0], sizes = [128, 32], strides = [1, 1]} : vector<128x128xf32> to vector<128x32xf32>
    %55 = vector.extract_strided_slice %53 {offsets = [0, 32], sizes = [128, 32], strides = [1, 1]} : vector<128x128xf32> to vector<128x32xf32>
    %56 = vector.extract_strided_slice %53 {offsets = [0, 64], sizes = [128, 32], strides = [1, 1]} : vector<128x128xf32> to vector<128x32xf32>
    %57 = vector.extract_strided_slice %53 {offsets = [0, 96], sizes = [128, 32], strides = [1, 1]} : vector<128x128xf32> to vector<128x32xf32>
    %58 = arith.mulf %55, %40 : vector<128x32xf32>
    %59 = arith.mulf %54, %56 : vector<128x32xf32>
    %60 = arith.addf %58, %59 : vector<128x32xf32>
    %61 = math.tanh %60 : vector<128x32xf32>
    %62 = arith.mulf %57, %61 : vector<128x32xf32>
    %c256 = arith.constant 256 : index
    %c0_26 = arith.constant 0 : index
    %63 = vector.load %arg10[%c256, %c0_26] : memref<512x128xf32, #tpu.memory_space<vmem>>, vector<128x128xf32>
    %64 = arith.truncf %62 : vector<128x32xf32> to vector<128x32xbf16>
    %cst_27 = arith.constant dense<0.000000e+00> : vector<128x128xf32>
    %65 = tpu.matmul %64, %14, %cst_27 {dimension_numbers = #tpu.dot_dimension_numbers<[1], [0], [0], [1], [0, 0, 1, 1], [], []>} : vector<128x32xbf16>, vector<32x128xbf16>, vector<128x128xf32> -> vector<128x128xf32>
    %66 = arith.addf %63, %65 : vector<128x128xf32>
    %67 = math.tanh %66 : vector<128x128xf32>
    %68 = arith.negf %66 : vector<128x128xf32>
    %69 = math.exp %68 : vector<128x128xf32>
    %cst_28 = arith.constant 1.000000e+00 : f32
    %70 = vector.broadcast %cst_28 : f32 to vector<128x128xf32>
    %71 = arith.addf %70, %69 : vector<128x128xf32>
    %72 = arith.divf %70, %71 : vector<128x128xf32>
    %73 = arith.select %20, %67, %72 : vector<128x128xi1>, vector<128x128xf32>
    %74 = vector.extract_strided_slice %73 {offsets = [0, 0], sizes = [128, 32], strides = [1, 1]} : vector<128x128xf32> to vector<128x32xf32>
    %75 = vector.extract_strided_slice %73 {offsets = [0, 32], sizes = [128, 32], strides = [1, 1]} : vector<128x128xf32> to vector<128x32xf32>
    %76 = vector.extract_strided_slice %73 {offsets = [0, 64], sizes = [128, 32], strides = [1, 1]} : vector<128x128xf32> to vector<128x32xf32>
    %77 = vector.extract_strided_slice %73 {offsets = [0, 96], sizes = [128, 32], strides = [1, 1]} : vector<128x128xf32> to vector<128x32xf32>
    %78 = arith.mulf %75, %60 : vector<128x32xf32>
    %79 = arith.mulf %74, %76 : vector<128x32xf32>
    %80 = arith.addf %78, %79 : vector<128x32xf32>
    %81 = math.tanh %80 : vector<128x32xf32>
    %82 = arith.mulf %77, %81 : vector<128x32xf32>
    %c384 = arith.constant 384 : index
    %c0_29 = arith.constant 0 : index
    %83 = vector.load %arg10[%c384, %c0_29] : memref<512x128xf32, #tpu.memory_space<vmem>>, vector<128x128xf32>
    %84 = arith.truncf %82 : vector<128x32xf32> to vector<128x32xbf16>
    %cst_30 = arith.constant dense<0.000000e+00> : vector<128x128xf32>
    %85 = tpu.matmul %84, %14, %cst_30 {dimension_numbers = #tpu.dot_dimension_numbers<[1], [0], [0], [1], [0, 0, 1, 1], [], []>} : vector<128x32xbf16>, vector<32x128xbf16>, vector<128x128xf32> -> vector<128x128xf32>
    %86 = arith.addf %83, %85 : vector<128x128xf32>
    %87 = math.tanh %86 : vector<128x128xf32>
    %88 = arith.negf %86 : vector<128x128xf32>
    %89 = math.exp %88 : vector<128x128xf32>
    %cst_31 = arith.constant 1.000000e+00 : f32
    %90 = vector.broadcast %cst_31 : f32 to vector<128x128xf32>
    %91 = arith.addf %90, %89 : vector<128x128xf32>
    %92 = arith.divf %90, %91 : vector<128x128xf32>
    %93 = arith.select %20, %87, %92 : vector<128x128xi1>, vector<128x128xf32>
    %94 = vector.extract_strided_slice %93 {offsets = [0, 0], sizes = [128, 32], strides = [1, 1]} : vector<128x128xf32> to vector<128x32xf32>
    %95 = vector.extract_strided_slice %93 {offsets = [0, 32], sizes = [128, 32], strides = [1, 1]} : vector<128x128xf32> to vector<128x32xf32>
    %96 = vector.extract_strided_slice %93 {offsets = [0, 64], sizes = [128, 32], strides = [1, 1]} : vector<128x128xf32> to vector<128x32xf32>
    %97 = vector.extract_strided_slice %93 {offsets = [0, 96], sizes = [128, 32], strides = [1, 1]} : vector<128x128xf32> to vector<128x32xf32>
    %98 = arith.mulf %95, %80 : vector<128x32xf32>
    %99 = arith.mulf %94, %96 : vector<128x32xf32>
    %100 = arith.addf %98, %99 : vector<128x32xf32>
    %101 = math.tanh %100 : vector<128x32xf32>
    %102 = arith.mulf %97, %101 : vector<128x32xf32>
    %103 = arith.truncf %102 : vector<128x32xf32> to vector<128x32xbf16>
    %c0_32 = arith.constant 0 : index
    %c0_33 = arith.constant 0 : index
    %104 = vector.load %arg7[%c0_32, %c0_33] : memref<32x128xbf16, #tpu.memory_space<vmem>>, vector<32x128xbf16>
    %cst_34 = arith.constant dense<0.000000e+00> : vector<128x128xf32>
    %105 = tpu.matmul %103, %104, %cst_34 {dimension_numbers = #tpu.dot_dimension_numbers<[1], [0], [0], [1], [0, 0, 1, 1], [], []>} : vector<128x32xbf16>, vector<32x128xbf16>, vector<128x128xf32> -> vector<128x128xf32>
    %106 = arith.addf %5, %105 : vector<128x128xf32>
    %c0_35 = arith.constant 0 : index
    %c0_36 = arith.constant 0 : index
    %107 = vector.load %arg9[%c0_35, %c0_36] : memref<128x128xf32, #tpu.memory_space<vmem>>, vector<128x128xf32>
    tpu.vector_store %arg9[%c0_35, %c0_36], %106 {strides = array<i32>} : memref<128x128xf32, #tpu.memory_space<vmem>>, vector<128x128xf32>,
    return
  }
  func.func @transform_0(%arg0: i32) -> (i32, i32, i32) {
    %c0_i32 = arith.constant 0 : i32
    %c0_i32_0 = arith.constant 0 : i32
    %c0_i32_1 = arith.constant 0 : i32
    return %c0_i32, %arg0, %c0_i32_0 : i32, i32, i32
  }
  func.func @transform_1(%arg0: i32) -> (i32, i32) {
    %c0_i32 = arith.constant 0 : i32
    %c0_i32_0 = arith.constant 0 : i32
    return %arg0, %c0_i32 : i32, i32
  }
  func.func @transform_2(%arg0: i32) -> (i32, i32) {
    %c0_i32 = arith.constant 0 : i32
    %c0_i32_0 = arith.constant 0 : i32
    %c0_i32_1 = arith.constant 0 : i32
    return %c0_i32, %c0_i32_0 : i32, i32
  }
  func.func @transform_3(%arg0: i32) -> (i32, i32) {
    %c0_i32 = arith.constant 0 : i32
    %c0_i32_0 = arith.constant 0 : i32
    %c0_i32_1 = arith.constant 0 : i32
    return %c0_i32, %c0_i32_0 : i32, i32
  }
  func.func @transform_4(%arg0: i32) -> (i32, i32) {
    %c0_i32 = arith.constant 0 : i32
    %c0_i32_0 = arith.constant 0 : i32
    %c0_i32_1 = arith.constant 0 : i32
    return %c0_i32, %c0_i32_0 : i32, i32
  }
  func.func @transform_5(%arg0: i32) -> (i32, i32) {
    %c0_i32 = arith.constant 0 : i32
    %c0_i32_0 = arith.constant 0 : i32
    %c0_i32_1 = arith.constant 0 : i32
    return %c0_i32, %c0_i32_0 : i32, i32
  }
  func.func @transform_6(%arg0: i32) -> (i32, i32) {
    %c0_i32 = arith.constant 0 : i32
    %c0_i32_0 = arith.constant 0 : i32
    %c0_i32_1 = arith.constant 0 : i32
    return %c0_i32, %c0_i32_0 : i32, i32
  }
  func.func @transform_7(%arg0: i32) -> (i32, i32) {
    %c0_i32 = arith.constant 0 : i32
    %c0_i32_0 = arith.constant 0 : i32
    %c0_i32_1 = arith.constant 0 : i32
    return %c0_i32, %c0_i32_0 : i32, i32
  }
  func.func @transform_8(%arg0: i32) -> (i32, i32) {
    %c0_i32 = arith.constant 0 : i32
    %c0_i32_0 = arith.constant 0 : i32
    return %arg0, %c0_i32 : i32, i32
  }
}

</mosaic_0001>

<bundles_post_ra>
// kernel: sage_forward.3
= control target key start
LH: loop header
LB: loop body
LE: loop exit
PB: predicated region body
PF: predicated region fallthrough
CT: control target
= control target key end

     0   :  { %s5270_s27 = smov 0   ;;  %s5272_s28 = smov 0   ;;  %s6769_s0 = inlined_call_operand.vmem [shape: bf16[4,256,32], index: 0, kind: input, shape index: {}]   ;;  %s6770_s1 = inlined_call_operand.vmem [shape: bf16[256,32], index: 1, kind: input, shape index: {}]   ;;  %s6771_s2 = inlined_call_operand.vmem [shape: bf16[32,128], index: 2, kind: input, shape index: {}]   ;;  %s6772_s3 = inlined_call_operand.vmem [shape: bf16[32,128], index: 3, kind: input, shape index: {}]   ;;  %s6773_s4 = inlined_call_operand.vmem [shape: f32[1,128], index: 4, kind: input, shape index: {}]   ;;  %s6774_s5 = inlined_call_operand.vmem [shape: bf16[32,128], index: 5, kind: input, shape index: {}]   ;;  %s6775_s6 = inlined_call_operand.vmem [shape: bf16[32,128], index: 6, kind: input, shape index: {}]   ;;  %s6776_s7 = inlined_call_operand.vmem [shape: f32[1,128], index: 7, kind: input, shape index: {}]   ;;  %s6777_s8 = inlined_call_operand.vmem [shape: f32[256,128], index: 8, kind: output, shape index: {}]  }
   0x1   :  { %s5274_s29 = smov 0  }
   0x2 LB: > { %s4123_s30 = sadd.s32 4294967295, %s5220_s29   ;;  %s5287_s9 = sadd.s32 1, %s5220_s29   ;;  %s5220_s29 = sphi %s5274_s29, %s6786_s29   ;;  %s5216_s28 = sphi %s5272_s28, %s6785_s28   ;;  %s5212_s27 = sphi %s5270_s27, %s6784_s27  }
   0x3   : > { %s22_s10 = ssub.s32 %s5220_s29, %s5287_s9  ;;  %s25_s11 = sadd.s32 1, %s5216_s28 }
   0x4   : > { %p23_p0 = scmp.eq.s32.totalorder %s22_s10, 0  ;;  %p32_p1 = scmp.ne.s32.totalorder %s5216_s28, %s5212_s27 }
   0x5   : > { %p33_p2 = scmp.eq.s32.totalorder %s5220_s29, 0  ;;  %p4126_p4 = scmp.ge.s32.totalorder %s5220_s29, 2 }
   0x6   : > { %s5296_s12 = scalar_select %p23_p0, %s5216_s28, %s25_s11  }
   0x7   : > { %p34_p3 = por %p33_p2, %p32_p1  ;;  %254 = sbr.rel (%p4126_p4) target bundleno = 32 (0x20), region = 40 }
   0xc   : > { %257 = sbr.rel (!%p34_p3) target bundleno = 32 (0x20), region = 44  ;;  %s259_s13 = sand.u32 (%p34_p3), 1, %s5216_s28  }
   0xd   : > { %s4324_s14 = sshll.u32 (%p34_p3), %s5220_s29, 6  ;;  %s4127_s15 = sshll.u32 (%p34_p3), %s259_s13, 8 }
   0xe   : > { %s5304_s18 = scalar_lea.vmem (%p34_p3), %s6769_s0, %s4324_s14  ;;  %s5309_s19 = scalar_lea.vmem (%p34_p3), [#allocation3], %s4127_s15 }
   0xf   : > { %v281_v0 = vld [vmem:[%s5304_s18] sm:$0xff] (%p34_p3)   ;;  %v285_v1 = vld [vmem:[%s5304_s18 + $0x8] sm:$0xff] (%p34_p3)   ;;  %v289_v2 = vld [vmem:[%s5304_s18 + $0x10] sm:$0xff] (%p34_p3)  }
  0x10   : > { %282 = vst [vmem:[%s5309_s19] sm:$0xff] (%p34_p3), %v281_v0   ;;  %286 = vst [vmem:[%s5309_s19 + $0x8] sm:$0xff] (%p34_p3), %v285_v1   ;;  %v293_v3 = vld [vmem:[%s5304_s18 + $0x18] sm:$0xff] (%p34_p3)   ;;  %v297_v4 = vld [vmem:[%s5304_s18 + $0x20] sm:$0xff] (%p34_p3)  }
  0x11   : > { %290 = vst [vmem:[%s5309_s19 + $0x10] sm:$0xff] %v289_v2   ;;  %v301_v5 = vld [vmem:[%s5304_s18 + $0x28] sm:$0xff]   ;;  %294 = vst [vmem:[%s5309_s19 + $0x18] sm:$0xff] %v293_v3   ;;  %v305_v6 = vld [vmem:[%s5304_s18 + $0x30] sm:$0xff]  }
  0x12   : > { %298 = vst [vmem:[%s5309_s19 + $0x20] sm:$0xff] %v297_v4   ;;  %302 = vst [vmem:[%s5309_s19 + $0x28] sm:$0xff] %v301_v5   ;;  %v309_v7 = vld [vmem:[%s5304_s18 + $0x38] sm:$0xff]   ;;  %v313_v8 = vld [vmem:[%s5304_s18 + $0x80] sm:$0xff]  }
  0x13   : > { %306 = vst [vmem:[%s5309_s19 + $0x30] sm:$0xff] %v305_v6   ;;  %310 = vst [vmem:[%s5309_s19 + $0x38] sm:$0xff] %v309_v7   ;;  %v317_v9 = vld [vmem:[%s5304_s18 + $0x88] sm:$0xff]   ;;  %v321_v10 = vld [vmem:[%s5304_s18 + $0x90] sm:$0xff]  }
  0x14   : > { %314 = vst [vmem:[%s5309_s19 + $0x40] sm:$0xff] %v313_v8   ;;  %v325_v11 = vld [vmem:[%s5304_s18 + $0x98] sm:$0xff]   ;;  %318 = vst [vmem:[%s5309_s19 + $0x48] sm:$0xff] %v317_v9   ;;  %v329_v12 = vld [vmem:[%s5304_s18 + $0xa0] sm:$0xff]  }
  0x15   : > { %322 = vst [vmem:[%s5309_s19 + $0x50] sm:$0xff] %v321_v10   ;;  %326 = vst [vmem:[%s5309_s19 + $0x58] sm:$0xff] %v325_v11   ;;  %v333_v13 = vld [vmem:[%s5304_s18 + $0xa8] sm:$0xff]   ;;  %v337_v14 = vld [vmem:[%s5304_s18 + $0xb0] sm:$0xff]  }
  0x16   : > { %330 = vst [vmem:[%s5309_s19 + $0x60] sm:$0xff] %v329_v12   ;;  %334 = vst [vmem:[%s5309_s19 + $0x68] sm:$0xff] %v333_v13   ;;  %v341_v15 = vld [vmem:[%s5304_s18 + $0xb8] sm:$0xff]   ;;  %v345_v16 = vld [vmem:[%s5304_s18 + $0x100] sm:$0xff]  }
  0x17   : > { %338 = vst [vmem:[%s5309_s19 + $0x70] sm:$0xff] %v337_v14   ;;  %v349_v17 = vld [vmem:[%s5304_s18 + $0x108] sm:$0xff]   ;;  %342 = vst [vmem:[%s5309_s19 + $0x78] sm:$0xff] %v341_v15   ;;  %v353_v18 = vld [vmem:[%s5304_s18 + $0x110] sm:$0xff]  }
  0x18   : > { %346 = vst [vmem:[%s5309_s19 + $0x80] sm:$0xff] %v345_v16   ;;  %350 = vst [vmem:[%s5309_s19 + $0x88] sm:$0xff] %v349_v17   ;;  %v357_v19 = vld [vmem:[%s5304_s18 + $0x118] sm:$0xff]   ;;  %v361_v20 = vld [vmem:[%s5304_s18 + $0x120] sm:$0xff]  }
  0x19   : > { %354 = vst [vmem:[%s5309_s19 + $0x90] sm:$0xff] %v353_v18   ;;  %358 = vst [vmem:[%s5309_s19 + $0x98] sm:$0xff] %v357_v19   ;;  %v365_v21 = vld [vmem:[%s5304_s18 + $0x128] sm:$0xff]   ;;  %v369_v22 = vld [vmem:[%s5304_s18 + $0x130] sm:$0xff]  }
  0x1a   : > { %362 = vst [vmem:[%s5309_s19 + $0xa0] sm:$0xff] %v361_v20   ;;  %v373_v23 = vld [vmem:[%s5304_s18 + $0x138] sm:$0xff]   ;;  %366 = vst [vmem:[%s5309_s19 + $0xa8] sm:$0xff] %v365_v21   ;;  %v377_v24 = vld [vmem:[%s5304_s18 + $0x180] sm:$0xff]  }
  0x1b   : > { %370 = vst [vmem:[%s5309_s19 + $0xb0] sm:$0xff] %v369_v22   ;;  %374 = vst [vmem:[%s5309_s19 + $0xb8] sm:$0xff] %v373_v23   ;;  %v381_v25 = vld [vmem:[%s5304_s18 + $0x188] sm:$0xff]   ;;  %v385_v26 = vld [vmem:[%s5304_s18 + $0x190] sm:$0xff]  }
  0x1c   : > { %378 = vst [vmem:[%s5309_s19 + $0xc0] sm:$0xff] %v377_v24   ;;  %382 = vst [vmem:[%s5309_s19 + $0xc8] sm:$0xff] %v381_v25   ;;  %v389_v27 = vld [vmem:[%s5304_s18 + $0x198] sm:$0xff]   ;;  %v393_v28 = vld [vmem:[%s5304_s18 + $0x1a0] sm:$0xff]  }
  0x1d   : > { %386 = vst [vmem:[%s5309_s19 + $0xd0] sm:$0xff] %v385_v26   ;;  %v397_v29 = vld [vmem:[%s5304_s18 + $0x1a8] sm:$0xff]   ;;  %390 = vst [vmem:[%s5309_s19 + $0xd8] sm:$0xff] %v389_v27   ;;  %v401_v30 = vld [vmem:[%s5304_s18 + $0x1b0] sm:$0xff]  }
  0x1e   : > { %394 = vst [vmem:[%s5309_s19 + $0xe0] sm:$0xff] %v393_v28   ;;  %398 = vst [vmem:[%s5309_s19 + $0xe8] sm:$0xff] %v397_v29   ;;  %v405_v31 = vld [vmem:[%s5304_s18 + $0x1b8] sm:$0xff]  }
  0x1f   : > { %402 = vst [vmem:[%s5309_s19 + $0xf0] sm:$0xff] %v401_v30   ;;  %406 = vst [vmem:[%s5309_s19 + $0xf8] sm:$0xff] %v405_v31  }
  0x20 PF: > { %p4130_p5 = scmp.ge.s32.totalorder %s5220_s29, 1  ;;  %p568_p6 = scmp.lt.s32.totalorder %s5220_s29, 3 }
  0x22   : > { %p569_p7 = pnand %p4130_p5, %p568_p6 }
  0x24   : > { %572 = sbr.rel (%p569_p7) target bundleno = 3204 (0xc84), region = 89 }
  0x29   : > { %v4634_v32 = vld [vmem:[%s6774_s5 + $0x8] sm:$0xff]   ;;  %s4132_s22 = sshll.u32 %s4123_s30, 4  ;;  %v4635_v33 = vld [vmem:[%s6774_s5] sm:$0xff]   ;;  %vm706_vm0 = vcmask 261120   ;;  %s575_s19 = sand.u32 1, %s5212_s27   ;;  %v5222_v53 = vmov 0  }
  0x2a   : > { %p615_p8 = scmp.lt.s32.totalorder %s4132_s22, 31  ;;  %4419 = vmatprep.subr.bf16.mxu0 %v4634_v32  ;;  %v4638_v34 = vld [vmem:[%s6772_s3 + $0x8] sm:$0xff]   ;;  %v4645_v36 = vld [vmem:[%s6771_s2] sm:$0xff]   ;;  %s4131_s20 = sshll.u32 %s575_s19, 8 }
  0x2b   : > { %4420 = vmatpush3.bf16.msra.mxu0 %v4634_v32  ;;  %v4644_v35 = vld [vmem:[%s6771_s2 + $0x8] sm:$0xff]   ;;  %v4643_v37 = vld [vmem:[%s6772_s3] sm:$0xff]   ;;  %s5411_s27 = scalar_lea.vmem [#allocation3], %s4131_s20  ;;  %s5223_s24 = smov 64  }
  0x2c   : > { %s6788_s22 = smov (!%p615_p8, %s4132_s22), 31  ;;  %4421 = vmatprep.subr.bf16.mxu0 %v4635_v33  ;;  %4439 = vmatprep.subr.bf16.mxu1 %v4644_v35  ;;  %v4648_v43 = vld [vmem:[%s5411_s27] sm:$0xff]   ;;  %v4649_v44 = vld [vmem:[%s5411_s27 + $0x8] sm:$0xff]   ;;  %v4650_v45 = vld [vmem:[%s5411_s27 + $0x10] sm:$0xff]   ;;  %s5224_s25 = smov 32  }
  0x2d   : > { %s4133_s30 = sshll.u32 %s6788_s22, 2  ;;  %4440 = vmatpush3.bf16.msra.mxu1 %v4644_v35  ;;  %4443 = vmatprep.mubr.msk.bf16.mxu1 %vm706_vm0, %v4648_v43  ;;  %v4651_v48 = vld [vmem:[%s5411_s27 + $0x18] sm:$0xff]   ;;  %v4652_v49 = vld [vmem:[%s5411_s27 + $0x20] sm:$0xff]   ;;  %v4653_v51 = vld [vmem:[%s5411_s27 + $0x28] sm:$0xff]   ;;  %s4135_s21 = sshll.u32 %s6788_s22, 3 }
  0x2e   : > { %s5397_s16 = scalar_lea.vmem %s6770_s1, %s4133_s30  ;;  %4441 = vmatprep.subr.bf16.mxu1 %v4645_v36  ;;  %v4654_v52 = vld [vmem:[%s5411_s27 + $0x30] sm:$0xff]   ;;  %v4655_v54 = vld [vmem:[%s5411_s27 + $0x38] sm:$0xff]   ;;  %v5466_v10 = vld [vmem:[%s6773_s4] ss:$0 sm:$0xff] }
  0x2f   : > { %4422 = vmatpush3.bf16.msra.mxu0 %v4635_v33  ;;  %v4636_v38 = vld [vmem:[%s5397_s16] sm:$0xff]   ;;  %v4637_v39 = vld [vmem:[%s5397_s16 + $0x8] sm:$0xff]   ;;  %v4639_v40 = vld [vmem:[%s5397_s16 + $0x10] sm:$0xff]  }
  0x30   : > { %4507 = vmatprep.subr.bf16.mxu0 %v4638_v34  ;;  %4423 = vmatprep.mubr.msk.bf16.mxu0 %vm706_vm0, %v4636_v38  ;;  %v4640_v41 = vld [vmem:[%s5397_s16 + $0x18] sm:$0xff]   ;;  %v4641_v42 = vld [vmem:[%s5397_s16 + $0x20] sm:$0xff]   ;;  %v4642_v46 = vld [vmem:[%s5397_s16 + $0x28] sm:$0xff]  }
  0x31   : > { %4442 = vmatpush3.bf16.msra.mxu1 %v4645_v36  ;;  %v4646_v47 = vld [vmem:[%s5397_s16 + $0x30] sm:$0xff]   ;;  %v4647_v50 = vld [vmem:[%s5397_s16 + $0x38] sm:$0xff]  }
  0x32   : > { %4424 = vmatmul.mubr.msk.bf16.vlgmr.msra.gmra.mxu0 %vm706_vm0, %v4637_v39 }
  0x33   : > { %4508 = vmatpush3.bf16.msra.mxu0 %v4638_v34  ;;  %4427 = vmatprep.mubr.msk.bf16.mxu0 %vm706_vm0, %v4639_v40 }
  0x34   : > { %4509 = vmatprep.subr.bf16.mxu0 %v4643_v37  ;;  %4444 = vmatmul.mubr.msk.bf16.vlgmr.msra.gmra.mxu1 %vm706_vm0, %v4649_v44 }
  0x35   : > { %4447 = vmatprep.mubr.msk.bf16.mxu1 %vm706_vm0, %v4650_v45 }
  0x37   : > { %4510 = vmatpush3.bf16.msra.mxu0 %v4643_v37 }
  0x38   : > { %4527 = vmatprep.subr.bf16.mxu0 %v4638_v34 }
  0x3a   : > { %4428 = vmatmul.mubr.msk.bf16.gmra.mxu0 %vm706_vm0, %v4640_v41 }
  0x3b   : > { %4431 = vmatprep.mubr.msk.bf16.mxu0 %vm706_vm0, %v4641_v42 }
  0x3c   : > { %4448 = vmatmul.mubr.msk.bf16.gmra.mxu1 %vm706_vm0, %v4651_v48 }
  0x3d   : > { %4451 = vmatprep.mubr.msk.bf16.mxu1 %vm706_vm0, %v4652_v49 }
  0x42   : > { %4432 = vmatmul.mubr.msk.bf16.gmra.mxu0 %vm706_vm0, %v4642_v46 }
  0x43   : > { %4435 = vmatprep.mubr.msk.bf16.mxu0 %vm706_vm0, %v4646_v47 }
  0x44   : > { %4452 = vmatmul.mubr.msk.bf16.gmra.mxu1 %vm706_vm0, %v4653_v51 }
  0x45   : > { %4455 = vmatprep.mubr.msk.bf16.mxu1 %vm706_vm0, %v4654_v52 }
  0x4a   : > { %4436 = vmatmul.mubr.msk.bf16.gmra.mxu0 %vm706_vm0, %v4647_v50 }
  0x4b   : > { %4511 = vmatprep.mubr.bf16.mxu0 %v5222_v53 }
  0x4c   : > { %4456 = vmatmul.mubr.msk.bf16.gmra.mxu1 %vm706_vm0, %v4655_v54 }
  0x52   : > { %4512 = vmatmul.mubr.bf16.vlgmr.msra.gmra.mxu0 %v5222_v53 }
  0x53   : > { %4515 = vmatprep.mubr.bf16.mxu0 %v5222_v53  ;;  %4528 = vmatpush3.bf16.msra.mxu0 %v4638_v34 }
  0x54   : > { %4529 = vmatprep.subr.bf16.mxu0 %v4643_v37 }
  0x57   : > { %4530 = vmatpush3.bf16.msra.mxu0 %v4643_v37 }
  0x58   : > { %4547 = vmatprep.subr.bf16.mxu0 %v4638_v34 }
  0x5a   : > { %4516 = vmatmul.mubr.bf16.gmra.mxu0 %v5222_v53 }
  0x5b   : > { %4519 = vmatprep.mubr.bf16.mxu0 %v5222_v53 }
  0x62   : > { %4520 = vmatmul.mubr.bf16.gmra.mxu0 %v5222_v53 }
  0x63   : > { %4523 = vmatprep.mubr.bf16.mxu0 %v5222_v53 }
  0x6a   : > { %4524 = vmatmul.mubr.bf16.gmra.mxu0 %v5222_v53 }
  0xf2   : > { %v5437_v55 = vpop.f32.mrf.mxu0 }
  0xf4   : > { %v5439_v56 = vpop.f32.mrf.mxu0  ;;  %v4445_v60 = vpop.f32.mrf.mxu1 }
  0xf5   : > { %v1214_v14 = vadd.f32 %v4445_v60, %v5466_v10 }
  0xf6   : > { %v5441_v57 = vpop.f32.mrf.mxu0  ;;  %v1205_v62 = vpop.f32.mrf.mxu1 }
  0xf7   : > { %v1206_v18 = vadd.f32 %v5466_v10, %v1205_v62 }
  0xf8   : > { %v5443_v58 = vpop.f32.mrf.mxu0  ;;  %v4446_v0 = vpop.f32.mrf.mxu1 }
  0xf9   : > { %v1217_v21 = vadd.f32 %v4446_v0, %v5466_v10 }
  0xfa   : > { %v5445_v59 = vpop.f32.mrf.mxu0  ;;  %v1208_v3 = vpop.f32.mrf.mxu1 }
  0xfb   : > { %v1209_v24 = vadd.f32 %v5466_v10, %v1208_v3 }
  0xfc   : > { %v5447_v61 = vpop.f32.mrf.mxu0  ;;  %v4449_v6 = vpop.f32.mrf.mxu1 }
  0xfd   : > { %v1230_v27 = vadd.f32 %v4449_v6, %v5466_v10 }
  0xfe   : > { %v5449_v63 = vpop.f32.mrf.mxu0  ;;  %v1221_v9 = vpop.f32.mrf.mxu1 }
  0xff   : > { %v1222_v35 = vadd.f32 %v5466_v10, %v1221_v9 }
 0x100   : > { %v5451_v1 = vpop.f32.mrf.mxu0  ;;  %v4450_v13 = vpop.f32.mrf.mxu1 }
 0x101   : > { %v1233_v39 = vadd.f32 %v4450_v13, %v5466_v10 }
 0x102   : > { %v5453_v2 = vpop.f32.mrf.mxu0  ;;  %v1224_v17 = vpop.f32.mrf.mxu1 }
 0x103   : > { %v1225_v42 = vadd.f32 %v5466_v10, %v1224_v17  ;;  %v1528_v17 = vlaneseq }
 0x104   : > { %v5455_v4 = vpop.f32.mrf.mxu0  ;;  %v4453_v26 = vpop.f32.mrf.mxu1 }
 0x105   : > { %v1246_v45 = vadd.f32 %v4453_v26, %v5466_v10 }
 0x106   : > { %v5457_v5 = vpop.f32.mrf.mxu0  ;;  %v1237_v34 = vpop.f32.mrf.mxu1 }
 0x107   : > { %v1238_v53 = vadd.f32 %v5466_v10, %v1237_v34 }
 0x108   : > { %v5459_v7 = vpop.f32.mrf.mxu0  ;;  %v4454_v44 = vpop.f32.mrf.mxu1 }
 0x10a   : > { %v5461_v8 = vpop.f32.mrf.mxu0  ;;  %v1240_v51 = vpop.f32.mrf.mxu1 }
 0x10c   : > { %v5468_v11 = vpop.f32.mrf.mxu0 }
 0x10e   : > { %v5470_v12 = vpop.f32.mrf.mxu0 }
 0x10f   : > { %6778 = vst [vmem:[#allocation4_spill] sm:$0xff] %v5470_v12 }
 0x110   : > { %v5473_v15 = vpop.f32.mrf.mxu0 }
 0x111   : > { %6779 = vst [vmem:[#allocation5_spill] sm:$0xff] %v5473_v15 }
 0x112   : > { %v4513_v16 = vpop.f32.mrf.mxu0 }
 0x113   : > { %v1663_v19 = vadd.f32 %v4513_v16, %v1214_v14  ;;  %v4457_v14 = vpop.f32.mrf.mxu1 }
 0x114   : > { %v1598_v20 = vpop.f32.mrf.mxu0 }
 0x115   : > { %v4226_v22 = vmul.f32 -1.442695, %v1663_v19  ;;  %v1661_v23 = vadd.f32 %v1598_v20, %v1206_v18  ;;  %v1249_v20 = vadd.f32 %v4454_v44, %v5466_v10  ;;  %v1253_v26 = vpop.f32.mrf.mxu1 }
 0x116   : > { %v4514_v25 = vpop.f32.mrf.mxu0  ;;  %v1254_v44 = vadd.f32 %v5466_v10, %v1253_v26 }
 0x117   : > { %4682 = vpow2.f32 %v4226_v22  ;;  %v4224_v28 = vmul.f32 -1.442695, %v1661_v23  ;;  %v1664_v29 = vadd.f32 %v4514_v25, %v1217_v21  ;;  %v1241_v25 = vadd.f32 %v5466_v10, %v1240_v51 }
 0x118   : > { %v1601_v30 = vpop.f32.mrf.mxu0 }
 0x119   : > { %4684 = vpow2.f32 %v4224_v28  ;;  %v4227_v31 = vmul.f32 -1.442695, %v1664_v29  ;;  %v1662_v32 = vadd.f32 %v1601_v30, %v1209_v24 }
 0x11a   : > { %v4517_v33 = vpop.f32.mrf.mxu0 }
 0x11b   : > { %4686 = vpow2.f32 %v4227_v31  ;;  %v4225_v36 = vmul.f32 -1.442695, %v1662_v32  ;;  %v1667_v37 = vadd.f32 %v4517_v33, %v1230_v27 }
 0x11c   : > { %v1614_v38 = vpop.f32.mrf.mxu0 }
 0x11d   : > { %4688 = vpow2.f32 %v4225_v36  ;;  %v4230_v40 = vmul.f32 -1.442695, %v1667_v37  ;;  %v1665_v41 = vadd.f32 %v1614_v38, %v1222_v35  ;;  %v4458_v38 = vpop.f32.mrf.mxu1 }
 0x11e   : > { %v4518_v43 = vpop.f32.mrf.mxu0 }
 0x11f   : > { %4690 = vpow2.f32 %v4230_v40  ;;  %v4228_v46 = vmul.f32 -1.442695, %v1665_v41  ;;  %v5483_v47 = vadd.f32 %v4518_v43, %v1233_v39  ;;  %v1256_v51 = vpop.f32.mrf.mxu1 }
 0x120   : > { %v1617_v48 = vpop.f32.mrf.mxu0 }
 0x121   : > { %4692 = vpow2.f32 %v4228_v46  ;;  %v4231_v49 = vmul.f32 -1.442695, %v5483_v47  ;;  %v1666_v50 = vadd.f32 %v1617_v48, %v1225_v42 }
 0x122   : > { %4694 = vtanh.f32 %v1663_v19  ;;  %v4521_v52 = vpop.f32.mrf.mxu0 }
 0x123   : > { %4696 = vpow2.f32 %v4231_v49  ;;  %v4229_v54 = vmul.f32 -1.442695, %v1666_v50  ;;  %v5487_v60 = vadd.f32 %v4521_v52, %v1246_v45 }
 0x124   : > { %v4683_v62 = vpop.eup %4682  ;;  %4698 = vtanh.f32 %v1661_v23  ;;  %v1630_v0 = vpop.f32.mrf.mxu0 }
 0x125   : > { %v1743_v3 = vadd.f32 1.0, %v4683_v62  ;;  %4700 = vpow2.f32 %v4229_v54  ;;  %v5489_v6 = vadd.f32 %v1630_v0, %v1238_v53  ;;  %v4234_v13 = vmul.f32 -1.442695, %v5487_v60 }
 0x126   : > { %v4685_v9 = vpop.eup %4684  ;;  %4702 = vtanh.f32 %v1664_v29  ;;  %v4522_v16 = vpop.f32.mrf.mxu0  ;;  %v1529_v29 = vand.u32 127, %v1528_v17  ;;  %v1265_v62 = vadd.f32 %v4458_v38, %v5466_v10 }
 0x127   : > { %4704 = vrcp.f32 %v1743_v3  ;;  %v1741_v18 = vadd.f32 1.0, %v4685_v9  ;;  %v4232_v21 = vmul.f32 -1.442695, %v5489_v6  ;;  %v5495_v27 = vadd.f32 %v4522_v16, %v1249_v20 }
 0x128   : > { %v4687_v19 = vpop.eup %4686  ;;  %4706 = vtanh.f32 %v1662_v32  ;;  %v1633_v22 = vpop.f32.mrf.mxu0  ;;  %v1262_v32 = vadd.f32 %v4457_v14, %v5466_v10  ;;  %vm1530_vm1 = vcmp.ge.s32.totalorder %v1529_v29, 64  ;;  %vm1531_vm2 = vcmp.lt.s32.totalorder %v1529_v29, 96 }
 0x129   : > { %4708 = vrcp.f32 %v1741_v18  ;;  %v1744_v23 = vadd.f32 1.0, %v4687_v19  ;;  %v5498_v33 = vadd.f32 %v1633_v22, %v1241_v25  ;;  %v4235_v36 = vmul.f32 -1.442695, %v5495_v27  ;;  %vm5508_vm3 = vmand %vm1530_vm1, %vm1531_vm2 }
 0x12a   : > { %v4689_v24 = vpop.eup %4688  ;;  %4710 = vpow2.f32 %v4234_v13  ;;  %v4525_v28 = vpop.f32.mrf.mxu0  ;;  %v1257_v14 = vadd.f32 %v5466_v10, %v1256_v51 }
 0x12b   : > { %4712 = vrcp.f32 %v1744_v23  ;;  %v1742_v30 = vadd.f32 1.0, %v4689_v24  ;;  %v4233_v45 = vmul.f32 -1.442695, %v5498_v33  ;;  %v5503_v46 = vadd.f32 %v4525_v28, %v1262_v32 }
 0x12c   : > { %v4691_v31 = vpop.eup %4690  ;;  %4714 = vpow2.f32 %v4232_v21  ;;  %v1646_v34 = vpop.f32.mrf.mxu0 }
 0x12d   : > { %4716 = vrcp.f32 %v1742_v30  ;;  %v1747_v40 = vadd.f32 1.0, %v4691_v31  ;;  %v5505_v52 = vadd.f32 %v1646_v34, %v1254_v44  ;;  %v4238_v3 = vmul.f32 -1.442695, %v5503_v46 }
 0x12e   : > { %v4693_v35 = vpop.eup %4692  ;;  %4718 = vtanh.f32 %v1667_v37  ;;  %v4526_v48 = vpop.f32.mrf.mxu0 }
 0x12f   : > { %v4695_v39 = vpop.eup %4694  ;;  %4720 = vtanh.f32 %v1665_v41  ;;  %v1745_v42 = vadd.f32 1.0, %v4693_v35  ;;  %v5515_v16 = vadd.f32 %v4526_v48, %v1265_v62  ;;  %v4236_v19 = vmul.f32 -1.442695, %v5505_v52 }
 0x130   : > { %v4697_v43 = vpop.eup %4696  ;;  %4722 = vtanh.f32 %v1666_v50  ;;  %v1649_v9 = vpop.f32.mrf.mxu0 }
 0x131   : > { %v4699_v49 = vpop.eup %4698  ;;  %4724 = vrcp.f32 %v1745_v42  ;;  %v1748_v53 = vadd.f32 1.0, %v4697_v43  ;;  %v5524_v21 = vadd.f32 %v1649_v9, %v1257_v14  ;;  %v4239_v25 = vmul.f32 -1.442695, %v5515_v16 }
 0x132   : > { %v4701_v37 = vpop.eup %4700  ;;  %4726 = vpow2.f32 %v4235_v36 }
 0x133   : > { %v4703_v50 = vpop.eup %4702  ;;  %4728 = vrcp.f32 %v1747_v40  ;;  %v1746_v54 = vadd.f32 1.0, %v4701_v37  ;;  %v4237_v32 = vmul.f32 -1.442695, %v5524_v21 }
 0x134   : > { %v4705_v0 = vpop.eup %4704  ;;  %4730 = vpow2.f32 %v4233_v45 }
 0x135   : > { %v4707_v13 = vpop.eup %4706  ;;  %4732 = vrcp.f32 %v1746_v54  ;;  %v5519_v17 = vsel %vm5508_vm3, %v4695_v39, %v4705_v0 }
 0x136   : > { %v4709_v18 = vpop.eup %4708  ;;  %1841 = vrot.lane.b32.xlu1 %v5519_v17, %s5223_s24  ;;  %4734 = vrcp.f32 %v1748_v53 }
 0x137   : > { %v4711_v20 = vpop.eup %4710  ;;  %v5528_v22 = vsel %vm5508_vm3, %v4699_v49, %v4709_v18  ;;  %4736 = vpow2.f32 %v4238_v3 }
 0x138   : > { %v4713_v23 = vpop.eup %4712  ;;  %1837 = vrot.lane.b32.xlu0 %v5528_v22, %s5223_s24  ;;  %4738 = vtanh.f32 %v5483_v47  ;;  %v1751_v29 = vadd.f32 1.0, %v4711_v20 }
 0x139   : > { %v4715_v24 = vpop.eup %4714  ;;  %v5536_v26 = vsel %vm5508_vm3, %v4703_v50, %v4713_v23  ;;  %4740 = vpow2.f32 %v4236_v19 }
 0x13a   : > { %v4717_v28 = vpop.eup %4716  ;;  %v1749_v30 = vadd.f32 1.0, %v4715_v24  ;;  %1843 = vrot.lane.b32.xlu1 %v5536_v26, %s5223_s24  ;;  %4742 = vtanh.f32 %v5489_v6 }
 0x13b   : > { %v4719_v31 = vpop.eup %4718  ;;  %v5544_v47 = vsel %vm5508_vm3, %v4707_v13, %v4717_v28 }
 0x13c   : > { %v4721_v34 = vpop.eup %4720  ;;  %4744 = vrcp.f32 %v1749_v30  ;;  %1839 = vrot.lane.b32.xlu0 %v5544_v47, %s5223_s24 }
 0x13d   : > { %v4723_v35 = vpop.eup %4722  ;;  %4746 = vpow2.f32 %v4239_v25 }
 0x13e   : > { %v4725_v36 = vpop.eup %4724  ;;  %4748 = vrcp.f32 %v1751_v29 }
 0x13f   : > { %v4727_v38 = vpop.eup %4726  ;;  %4750 = vpow2.f32 %v4237_v32  ;;  %v5550_v6 = vsel %vm5508_vm3, %v4721_v34, %v4725_v36 }
 0x140   : > { %v4729_v39 = vpop.eup %4728  ;;  %4752 = vtanh.f32 %v5487_v60  ;;  %1845 = vrot.lane.b32.xlu0 %v5550_v6, %s5223_s24  ;;  %v1752_v43 = vadd.f32 1.0, %v4727_v38 }
 0x141   : > { %v4731_v40 = vpop.eup %4730  ;;  %4754 = vtanh.f32 %v5498_v33  ;;  %v5562_v48 = vsel %vm5508_vm3, %v4719_v31, %v4729_v39 }
 0x142   : > { %v4733_v42 = vpop.eup %4732  ;;  %v1750_v44 = vadd.f32 1.0, %v4731_v40 }
 0x143   : > { %v5558_v45 = vsel %vm5508_vm3, %v4723_v35, %v4733_v42  ;;  %v4735_v49 = vpop.eup %4734 }
 0x144   : > { %4756 = vrcp.f32 %v1750_v44  ;;  %1847 = vrot.lane.b32.xlu1 %v5558_v45, %s5223_s24  ;;  %1849 = vrot.lane.b32.xlu0 %v5562_v48, %s5223_s24  ;;  %v4737_v60 = vpop.eup %4736 }
 0x145   : > { %v4739_v37 = vpop.eup %4738  ;;  %4758 = vrcp.f32 %v1752_v43  ;;  %v1755_v53 = vadd.f32 1.0, %v4737_v60 }
 0x146   : > { %v4741_v33 = vpop.eup %4740  ;;  %v5570_v51 = vsel %vm5508_vm3, %v4739_v37, %v4735_v49  ;;  %4760 = vtanh.f32 %v5495_v27 }
 0x147   : > { %v4743_v50 = vpop.eup %4742  ;;  %v1753_v54 = vadd.f32 1.0, %v4741_v33  ;;  %4762 = vtanh.f32 %v5505_v52 }
 0x148   : > { %1851 = vrot.lane.b32.xlu1 %v5570_v51, %s5223_s24 }
 0x149   : > { %v4745_v62 = vpop.eup %4744  ;;  %4764 = vrcp.f32 %v1753_v54 }
 0x14a   : > { %v4747_v0 = vpop.eup %4746  ;;  %v5578_v3 = vsel %vm5508_vm3, %v4743_v50, %v4745_v62  ;;  %4766 = vrcp.f32 %v1755_v53 }
 0x14b   : > { %v4749_v9 = vpop.eup %4748  ;;  %1853 = vrot.lane.b32.xlu0 %v5578_v3, %s5223_s24  ;;  %4768 = vtanh.f32 %v5503_v46  ;;  %v1756_v14 = vadd.f32 1.0, %v4747_v0 }
 0x14c   : > { %v4751_v13 = vpop.eup %4750  ;;  %4770 = vtanh.f32 %v5524_v21 }
 0x14d   : > { %v4753_v27 = vpop.eup %4752  ;;  %v1754_v18 = vadd.f32 1.0, %v4751_v13 }
 0x14e   : > { %v5586_v52 = vsel %vm5508_vm3, %v4753_v27, %v4749_v9  ;;  %v4755_v19 = vpop.eup %4754 }
 0x14f   : > { %4772 = vrcp.f32 %v1754_v18  ;;  %1857 = vrot.lane.b32.xlu0 %v5586_v52, %s5223_s24 }
 0x150   : > { %4774 = vrcp.f32 %v1756_v14 }
 0x151   : > { %v4757_v20 = vpop.eup %4756  ;;  %4776 = vtanh.f32 %v5515_v16 }
 0x152   : > { %v5592_v23 = vsel %vm5508_vm3, %v4755_v19, %v4757_v20  ;;  %v4759_v46 = vpop.eup %4758 }
 0x153   : > { %1855 = vrot.lane.b32.xlu1 %v5592_v23, %s5223_s24  ;;  %v4761_v21 = vpop.eup %4760 }
 0x154   : > { %v4763_v24 = vpop.eup %4762  ;;  %v5599_v25 = vsel %vm5508_vm3, %v4761_v21, %v4759_v46 }
 0x156   : > { %v4765_v28 = vpop.eup %4764 }
 0x157   : > { %1859 = vrot.lane.b32.xlu1 %v5599_v25, %s5223_s24  ;;  %v5605_v29 = vsel %vm5508_vm3, %v4763_v24, %v4765_v28  ;;  %v4767_v30 = vpop.eup %4766 }
 0x158   : > { %1861 = vrot.lane.b32.xlu0 %v5605_v29, %s5223_s24  ;;  %v4769_v16 = vpop.eup %4768 }
 0x159   : > { %v4771_v31 = vpop.eup %4770  ;;  %v5611_v34 = vsel %vm5508_vm3, %v4769_v16, %v4767_v30 }
 0x15c   : > { %v4773_v32 = vpop.eup %4772  ;;  %1865 = vrot.lane.b32.xlu0 %v5611_v34, %s5223_s24 }
 0x15d   : > { %v5615_v35 = vsel %vm5508_vm3, %v4771_v31, %v4773_v32  ;;  %v4775_v36 = vpop.eup %4774 }
 0x15e   : > { %1863 = vrot.lane.b32.xlu1 %v5615_v35, %s5223_s24  ;;  %v4777_v38 = vpop.eup %4776 }
 0x15f   : > { %v5623_v39 = vsel %vm5508_vm3, %v4777_v38, %v4775_v36 }
 0x162   : > { %1867 = vrot.lane.b32.xlu1 %v5623_v39, %s5223_s24 }
 0x1a8   : > { %v1842_v40 = vpop.permute.xlu1 %1841 }
 0x1a9   : > { %v1887_v49 = vmul.f32 %v1842_v40, %v5519_v17 }
 0x1aa   : > { %v1838_v42 = vpop.permute.xlu0 %1837 }
 0x1ab   : > { %v1885_v43 = vmul.f32 %v1838_v42, %v5528_v22 }
 0x1ac   : > { %v1844_v37 = vpop.permute.xlu1 %1843 }
 0x1ad   : > { %1917 = vrot.lane.b32.xlu0 %v1885_v43, %s5224_s25  ;;  %v1888_v50 = vmul.f32 %v1844_v37, %v5536_v26  ;;  %v1805_v43 = vmul.f32 0.0, %v5528_v22  ;;  %v1807_v37 = vmul.f32 0.0, %v5519_v17 }
 0x1ae   : > { %v1840_v44 = vpop.permute.xlu0 %1839 }
 0x1af   : > { %v1886_v60 = vmul.f32 %v1840_v44, %v5544_v47 }
 0x1b1   : > { %1921 = vrot.lane.b32.xlu0 %v1887_v49, %s5224_s25  ;;  %1919 = vrot.lane.b32.xlu1 %v1886_v60, %s5224_s25  ;;  %v1806_v60 = vmul.f32 0.0, %v5544_v47 }
 0x1b2   : > { %v1846_v33 = vpop.permute.xlu0 %1845 }
 0x1b3   : > { %v1889_v53 = vmul.f32 %v1846_v33, %v5550_v6 }
 0x1b5   : > { %1923 = vrot.lane.b32.xlu1 %v1888_v50, %s5224_s25  ;;  %1925 = vrot.lane.b32.xlu0 %v1889_v53, %s5224_s25 }
 0x1b6   : > { %v1848_v54 = vpop.permute.xlu1 %1847  ;;  %v1850_v62 = vpop.permute.xlu0 %1849 }
 0x1b7   : > { %v1890_v0 = vmul.f32 %v1848_v54, %v5558_v45  ;;  %v1891_v9 = vmul.f32 %v1850_v62, %v5562_v48  ;;  %v1808_v62 = vmul.f32 0.0, %v5536_v26 }
 0x1b9   : > { %1927 = vrot.lane.b32.xlu1 %v1890_v0, %s5224_s25  ;;  %1929 = vrot.lane.b32.xlu0 %v1891_v9, %s5224_s25  ;;  %v1809_v0 = vmul.f32 0.0, %v5550_v6 }
 0x1ba   : > { %v1852_v13 = vpop.permute.xlu1 %1851 }
 0x1bb   : > { %v1892_v27 = vmul.f32 %v1852_v13, %v5570_v51 }
 0x1bd   : > { %v1854_v14 = vpop.permute.xlu0 %1853  ;;  %1931 = vrot.lane.b32.xlu1 %v1892_v27, %s5224_s25 }
 0x1be   : > { %v1893_v18 = vmul.f32 %v1854_v14, %v5578_v3 }
 0x1c0   : > { %1933 = vrot.lane.b32.xlu0 %v1893_v18, %s5224_s25  ;;  %v1810_v18 = vmul.f32 0.0, %v5558_v45 }
 0x1c1   : > { %v1858_v19 = vpop.permute.xlu0 %1857 }
 0x1c2   : > { %v1895_v20 = vmul.f32 %v1858_v19, %v5586_v52  ;;  %v1811_v19 = vmul.f32 0.0, %v5562_v48 }
 0x1c4   : > { %1937 = vrot.lane.b32.xlu0 %v1895_v20, %s5224_s25 }
 0x1c5   : > { %v1856_v46 = vpop.permute.xlu1 %1855 }
 0x1c6   : > { %v1894_v21 = vmul.f32 %v1856_v46, %v5592_v23 }
 0x1c8   : > { %1935 = vrot.lane.b32.xlu1 %v1894_v21, %s5224_s25 }
 0x1c9   : > { %v1860_v24 = vpop.permute.xlu1 %1859 }
 0x1ca   : > { %v1896_v28 = vmul.f32 %v1860_v24, %v5599_v25  ;;  %v1862_v30 = vpop.permute.xlu0 %1861 }
 0x1cb   : > { %v1897_v16 = vmul.f32 %v1862_v30, %v5605_v29 }
 0x1cc   : > { %1939 = vrot.lane.b32.xlu1 %v1896_v28, %s5224_s25  ;;  %v1812_v28 = vmul.f32 0.0, %v5570_v51 }
 0x1cd   : > { %1941 = vrot.lane.b32.xlu0 %v1897_v16, %s5224_s25 }
 0x1ce   : > { %v1866_v31 = vpop.permute.xlu0 %1865 }
 0x1cf   : > { %v1899_v36 = vmul.f32 %v1866_v31, %v5611_v34 }
 0x1d0   : > { %v1864_v32 = vpop.permute.xlu1 %1863 }
 0x1d1   : > { %v1898_v38 = vmul.f32 %v1864_v32, %v5615_v35  ;;  %1945 = vrot.lane.b32.xlu0 %v1899_v36, %s5224_s25  ;;  %v1813_v32 = vmul.f32 0.0, %v5578_v3 }
 0x1d3   : > { %1943 = vrot.lane.b32.xlu1 %v1898_v38, %s5224_s25 }
 0x1d4   : > { %v1868_v40 = vpop.permute.xlu1 %1867 }
 0x1d5   : > { %v1900_v42 = vmul.f32 %v1868_v40, %v5623_v39 }
 0x1d7   : > { %1947 = vrot.lane.b32.xlu1 %v1900_v42, %s5224_s25 }
 0x21f   : > { %v1918_v44 = vpop.permute.xlu0 %1917 }
 0x220   : > { %v5660_v49 = vadd.f32 %v1918_v44, %v1805_v43  ;;  %v1815_v43 = vmul.f32 0.0, %v5586_v52 }
 0x222   : > { %4778 = vtanh.f32 %v5660_v49 }
 0x223   : > { %v1920_v33 = vpop.permute.xlu1 %1919  ;;  %v1922_v50 = vpop.permute.xlu0 %1921 }
 0x224   : > { %v5665_v53 = vadd.f32 %v1920_v33, %v1806_v60  ;;  %v5667_v54 = vadd.f32 %v1922_v50, %v1807_v37  ;;  %v1814_v50 = vmul.f32 0.0, %v5592_v23 }
 0x226   : > { %4780 = vtanh.f32 %v5665_v53 }
 0x227   : > { %4782 = vtanh.f32 %v5667_v54  ;;  %v1924_v9 = vpop.permute.xlu1 %1923  ;;  %v1926_v13 = vpop.permute.xlu0 %1925 }
 0x228   : > { %v5673_v27 = vadd.f32 %v1924_v9, %v1808_v62  ;;  %v5675_v14 = vadd.f32 %v1926_v13, %v1809_v0 }
 0x22a   : > { %4784 = vtanh.f32 %v5673_v27 }
 0x22b   : > { %4786 = vtanh.f32 %v5675_v14  ;;  %v1928_v20 = vpop.permute.xlu1 %1927  ;;  %v1930_v46 = vpop.permute.xlu0 %1929 }
 0x22c   : > { %v5681_v21 = vadd.f32 %v1928_v20, %v1810_v18  ;;  %v5683_v24 = vadd.f32 %v1930_v46, %v1811_v19  ;;  %v1816_v18 = vmul.f32 0.0, %v5599_v25 }
 0x22e   : > { %4788 = vtanh.f32 %v5681_v21 }
 0x22f   : > { %v4779_v30 = vpop.eup %4778  ;;  %4790 = vtanh.f32 %v5683_v24  ;;  %v1932_v16 = vpop.permute.xlu1 %1931 }
 0x230   : > { %v5688_v31 = vadd.f32 %v1932_v16, %v1812_v28  ;;  %2013 = vrot.lane.b32.xlu0 %v4779_v30, %s5223_s24  ;;  %v1817_v28 = vmul.f32 0.0, %v5605_v29 }
 0x232   : > { %4792 = vtanh.f32 %v5688_v31  ;;  %v1934_v36 = vpop.permute.xlu0 %1933 }
 0x233   : > { %v4781_v38 = vpop.eup %4780  ;;  %v5693_v40 = vadd.f32 %v1934_v36, %v1813_v32  ;;  %v1819_v36 = vmul.f32 0.0, %v5611_v34 }
 0x234   : > { %v4783_v42 = vpop.eup %4782  ;;  %2015 = vrot.lane.b32.xlu1 %v4781_v38, %s5223_s24  ;;  %v1818_v38 = vmul.f32 0.0, %v5615_v35 }
 0x235   : > { %4794 = vtanh.f32 %v5693_v40  ;;  %2017 = vrot.lane.b32.xlu0 %v4783_v42, %s5223_s24 }
 0x236   : > { %v1938_v44 = vpop.permute.xlu0 %1937 }
 0x237   : > { %v4785_v60 = vpop.eup %4784  ;;  %v5699_v37 = vadd.f32 %v1938_v44, %v1815_v43 }
 0x238   : > { %v4787_v33 = vpop.eup %4786  ;;  %2019 = vrot.lane.b32.xlu1 %v4785_v60, %s5223_s24 }
 0x239   : > { %4796 = vtanh.f32 %v5699_v37  ;;  %2021 = vrot.lane.b32.xlu0 %v4787_v33, %s5223_s24 }
 0x23a   : > { %v1936_v62 = vpop.permute.xlu1 %1935 }
 0x23b   : > { %v4789_v0 = vpop.eup %4788  ;;  %v5705_v9 = vadd.f32 %v1936_v62, %v1814_v50  ;;  %v1820_v50 = vmul.f32 0.0, %v5623_v39 }
 0x23c   : > { %v4791_v13 = vpop.eup %4790  ;;  %2023 = vrot.lane.b32.xlu1 %v4789_v0, %s5223_s24 }
 0x23d   : > { %4798 = vtanh.f32 %v5705_v9  ;;  %2025 = vrot.lane.b32.xlu0 %v4791_v13, %s5223_s24 }
 0x23e   : > { %v1940_v19 = vpop.permute.xlu1 %1939 }
 0x23f   : > { %v4793_v20 = vpop.eup %4792  ;;  %v5711_v46 = vadd.f32 %v1940_v19, %v1816_v18  ;;  %v1942_v30 = vpop.permute.xlu0 %1941 }
 0x240   : > { %2027 = vrot.lane.b32.xlu1 %v4793_v20, %s5223_s24  ;;  %v5716_v16 = vadd.f32 %v1942_v30, %v1817_v28  ;;  %v4656_v20 = vld [vmem:[%s5411_s27 + $0x40] sm:$0xff]   ;;  %v4657_v28 = vld [vmem:[%s5411_s27 + $0x48] sm:$0xff]  }
 0x241   : > { %4800 = vtanh.f32 %v5711_v46  ;;  %4459 = vmatprep.mubr.msk.bf16.mxu1 %vm706_vm0, %v4656_v20 }
 0x242   : > { %v4795_v32 = vpop.eup %4794  ;;  %4802 = vtanh.f32 %v5716_v16  ;;  %4460 = vmatmul.mubr.msk.bf16.gmra.mxu1 %vm706_vm0, %v4657_v28  ;;  %v4661_v28 = vld [vmem:[%s5411_s27 + $0x68] sm:$0xff]  }
 0x243   : > { %2029 = vrot.lane.b32.xlu0 %v4795_v32, %s5223_s24  ;;  %v1946_v42 = vpop.permute.xlu0 %1945 }
 0x244   : > { %v5722_v44 = vadd.f32 %v1946_v42, %v1819_v36 }
 0x245   : > { %v1944_v43 = vpop.permute.xlu1 %1943 }
 0x246   : > { %v4797_v60 = vpop.eup %4796  ;;  %v5724_v33 = vadd.f32 %v1944_v43, %v1818_v38  ;;  %4804 = vtanh.f32 %v5722_v44  ;;  %v4658_v38 = vld [vmem:[%s5411_s27 + $0x50] sm:$0xff]   ;;  %v4659_v43 = vld [vmem:[%s5411_s27 + $0x58] sm:$0xff]  }
 0x247   : > { %2033 = vrot.lane.b32.xlu0 %v4797_v60, %s5223_s24  ;;  %4463 = vmatprep.mubr.msk.bf16.mxu1 %vm706_vm0, %v4658_v38 }
 0x248   : > { %4806 = vtanh.f32 %v5724_v33 }
 0x249   : > { %v1948_v62 = vpop.permute.xlu1 %1947 }
 0x24a   : > { %v4799_v0 = vpop.eup %4798  ;;  %v5730_v13 = vadd.f32 %v1948_v62, %v1820_v50  ;;  %4464 = vmatmul.mubr.msk.bf16.gmra.mxu1 %vm706_vm0, %v4659_v43 }
 0x24b   : > { %2031 = vrot.lane.b32.xlu1 %v4799_v0, %s5223_s24 }
 0x24c   : > { %4808 = vtanh.f32 %v5730_v13 }
 0x24e   : > { %v4801_v18 = vpop.eup %4800 }
 0x24f   : > { %2035 = vrot.lane.b32.xlu1 %v4801_v18, %s5223_s24  ;;  %v4803_v19 = vpop.eup %4802 }
 0x250   : > { %2037 = vrot.lane.b32.xlu0 %v4803_v19, %s5223_s24  ;;  %v4660_v19 = vld [vmem:[%s5411_s27 + $0x60] sm:$0xff]  }
 0x251   : > { %4467 = vmatprep.mubr.msk.bf16.mxu1 %vm706_vm0, %v4660_v19  ;;  %v4663_v19 = vld [vmem:[%s5411_s27 + $0x78] sm:$0xff]  }
 0x252   : > { %4468 = vmatmul.mubr.msk.bf16.gmra.mxu1 %vm706_vm0, %v4661_v28 }
 0x253   : > { %v4805_v30 = vpop.eup %4804 }
 0x254   : > { %2041 = vrot.lane.b32.xlu0 %v4805_v30, %s5223_s24 }
 0x255   : > { %v4807_v32 = vpop.eup %4806 }
 0x256   : > { %2039 = vrot.lane.b32.xlu1 %v4807_v32, %s5223_s24 }
 0x259   : > { %v4809_v36 = vpop.eup %4808 }
 0x25a   : > { %2043 = vrot.lane.b32.xlu1 %v4809_v36, %s5223_s24 }
 0x2a2   : > { %v2014_v42 = vpop.permute.xlu0 %2013 }
 0x2a3   : > { %v2061_v50 = vmul.f32 %v2014_v42, %v5528_v22 }
 0x2a6   : > { %v2016_v60 = vpop.permute.xlu1 %2015 }
 0x2a7   : > { %v2062_v62 = vmul.f32 %v2016_v60, %v5544_v47  ;;  %v2018_v0 = vpop.permute.xlu0 %2017 }
 0x2a8   : > { %v2063_v30 = vmul.f32 %v2018_v0, %v5519_v17 }
 0x2a9   : > { %v2093_v18 = vpack.c.bf16 %v2062_v62, %v2061_v50 }
 0x2aa   : > { %v2020_v20 = vpop.permute.xlu1 %2019 }
 0x2ab   : > { %v2064_v32 = vmul.f32 %v2020_v20, %v5536_v26  ;;  %v2022_v36 = vpop.permute.xlu0 %2021  ;;  %2109 = vrot.lane.b32.xlu0 %v2093_v18, %s5224_s25  ;;  %v4662_v18 = vld [vmem:[%s5411_s27 + $0x70] sm:$0xff]  }
 0x2ac   : > { %v2065_v38 = vmul.f32 %v2022_v36, %v5550_v6  ;;  %4471 = vmatprep.mubr.msk.bf16.mxu1 %vm706_vm0, %v4662_v18 }
 0x2ad   : > { %v2094_v22 = vpack.c.bf16 %v2064_v32, %v2063_v30  ;;  %4472 = vmatmul.mubr.msk.bf16.gmra.mxu1 %vm706_vm0, %v4663_v19 }
 0x2ae   : > { %v2024_v47 = vpop.permute.xlu1 %2023 }
 0x2af   : > { %v2066_v42 = vmul.f32 %v2024_v47, %v5558_v45  ;;  %2111 = vrot.lane.b32.xlu1 %v2094_v22, %s5224_s25  ;;  %v2026_v17 = vpop.permute.xlu0 %2025 }
 0x2b0   : > { %v2067_v60 = vmul.f32 %v2026_v17, %v5562_v48 }
 0x2b1   : > { %v2095_v43 = vpack.c.bf16 %v2066_v42, %v2065_v38 }
 0x2b2   : > { %v2028_v26 = vpop.permute.xlu1 %2027 }
 0x2b3   : > { %v2068_v50 = vmul.f32 %v2028_v26, %v5570_v51  ;;  %2113 = vrot.lane.b32.xlu0 %v2095_v43, %s5224_s25 }
 0x2b5   : > { %v2096_v62 = vpack.c.bf16 %v2068_v50, %v2067_v60  ;;  %v2030_v0 = vpop.permute.xlu0 %2029 }
 0x2b6   : > { %v2069_v45 = vmul.f32 %v2030_v0, %v5578_v3 }
 0x2b7   : > { %2115 = vrot.lane.b32.xlu1 %v2096_v62, %s5224_s25 }
 0x2b9   : > { %v2034_v48 = vpop.permute.xlu0 %2033 }
 0x2ba   : > { %v2071_v30 = vmul.f32 %v2034_v48, %v5586_v52 }
 0x2bd   : > { %v2032_v6 = vpop.permute.xlu1 %2031 }
 0x2be   : > { %v2070_v20 = vmul.f32 %v2032_v6, %v5592_v23 }
 0x2c0   : > { %v2097_v28 = vpack.c.bf16 %v2070_v20, %v2069_v45 }
 0x2c1   : > { %v2036_v51 = vpop.permute.xlu1 %2035 }
 0x2c2   : > { %v2072_v32 = vmul.f32 %v2036_v51, %v5599_v25  ;;  %2117 = vrot.lane.b32.xlu0 %v2097_v28, %s5224_s25  ;;  %v2038_v22 = vpop.permute.xlu0 %2037 }
 0x2c3   : > { %v2073_v38 = vmul.f32 %v2038_v22, %v5605_v29  ;;  %v5784_v29 = vld [vmem:[%s6772_s3 + $0x8] sm:$0xff]  }
 0x2c4   : > { %v2098_v36 = vpack.c.bf16 %v2072_v32, %v2071_v30 }
 0x2c6   : > { %2119 = vrot.lane.b32.xlu1 %v2098_v36, %s5224_s25  ;;  %v2042_v42 = vpop.permute.xlu0 %2041 }
 0x2c7   : > { %v2075_v43 = vmul.f32 %v2042_v42, %v5611_v34  ;;  %v5790_v34 = vld [vmem:[%s6772_s3] sm:$0xff]  }
 0x2c8   : > { %v2040_v47 = vpop.permute.xlu1 %2039 }
 0x2c9   : > { %v2074_v3 = vmul.f32 %v2040_v47, %v5615_v35 }
 0x2cb   : > { %v2099_v23 = vpack.c.bf16 %v2074_v3, %v2073_v38 }
 0x2cc   : > { %v2044_v17 = vpop.permute.xlu1 %2043 }
 0x2cd   : > { %v2076_v52 = vmul.f32 %v2044_v17, %v5623_v39  ;;  %2121 = vrot.lane.b32.xlu0 %v2099_v23, %s5224_s25 }
 0x2cf   : > { %v2100_v25 = vpack.c.bf16 %v2076_v52, %v2075_v43 }
 0x2d1   : > { %2123 = vrot.lane.b32.xlu1 %v2100_v25, %s5224_s25 }
 0x302   : > { %v4461_v19 = vpop.f32.mrf.mxu1 }
 0x303   : > { %v1278_v51 = vadd.f32 %v4461_v19, %v5466_v10 }
 0x304   : > { %v1269_v6 = vpop.f32.mrf.mxu1 }
 0x305   : > { %v1270_v36 = vadd.f32 %v5466_v10, %v1269_v6 }
 0x306   : > { %v4462_v45 = vpop.f32.mrf.mxu1 }
 0x307   : > { %v1281_v38 = vadd.f32 %v4462_v45, %v5466_v10 }
 0x308   : > { %v1272_v20 = vpop.f32.mrf.mxu1 }
 0x309   : > { %v1273_v23 = vadd.f32 %v5466_v10, %v1272_v20 }
 0x30a   : > { %v4465_v48 = vpop.f32.mrf.mxu1 }
 0x30b   : > { %v1294_v52 = vadd.f32 %v4465_v48, %v5466_v10 }
 0x30c   : > { %v1285_v28 = vpop.f32.mrf.mxu1 }
 0x30e   : > { %v4466_v32 = vpop.f32.mrf.mxu1 }
 0x30f   : > { %v1297_v45 = vadd.f32 %v4466_v32, %v5466_v10 }
 0x310   : > { %v1288_v43 = vpop.f32.mrf.mxu1 }
 0x31d   : > { %v2110_v26 = vpop.permute.xlu0 %2109 }
 0x31e   : > { %4531 = vmatprep.mubr.msk.bf16.mxu0 %vm706_vm0, %v2110_v26 }
 0x321   : > { %v2112_v60 = vpop.permute.xlu1 %2111 }
 0x322   : > { %4532 = vmatmul.mubr.msk.bf16.vlgmr.msra.gmra.mxu0 %vm706_vm0, %v2112_v60 }
 0x323   : > { %4548 = vmatpush3.bf16.msra.mxu0 %v5784_v29 }
 0x324   : > { %4549 = vmatprep.subr.bf16.mxu0 %v5790_v34 }
 0x325   : > { %v2114_v35 = vpop.permute.xlu0 %2113 }
 0x326   : > { %4535 = vmatprep.mubr.msk.bf16.mxu0 %vm706_vm0, %v2114_v35 }
 0x327   : > { %4550 = vmatpush3.bf16.msra.mxu0 %v5790_v34 }
 0x328   : > { %4567 = vmatprep.subr.bf16.mxu0 %v5784_v29 }
 0x329   : > { %v2116_v39 = vpop.permute.xlu1 %2115 }
 0x32a   : > { %4536 = vmatmul.mubr.msk.bf16.gmra.mxu0 %vm706_vm0, %v2116_v39 }
 0x334   : > { %v2118_v50 = vpop.permute.xlu0 %2117 }
 0x335   : > { %4539 = vmatprep.mubr.msk.bf16.mxu0 %vm706_vm0, %v2118_v50 }
 0x338   : > { %v2120_v62 = vpop.permute.xlu1 %2119 }
 0x339   : > { %4540 = vmatmul.mubr.msk.bf16.gmra.mxu0 %vm706_vm0, %v2120_v62  ;;  %v4469_v62 = vpop.f32.mrf.mxu1 }
 0x33b   : > { %v1301_v48 = vpop.f32.mrf.mxu1 }
 0x33f   : > { %v2122_v0 = vpop.permute.xlu0 %2121 }
 0x340   : > { %4543 = vmatprep.mubr.msk.bf16.mxu0 %vm706_vm0, %v2122_v0  ;;  %v1286_v0 = vadd.f32 %v5466_v10, %v1285_v28 }
 0x343   : > { %v2124_v18 = vpop.permute.xlu1 %2123 }
 0x344   : > { %4544 = vmatmul.mubr.msk.bf16.gmra.mxu0 %vm706_vm0, %v2124_v18 }
 0x3e2   : > { %v4533_v30 = vpop.f32.mrf.mxu0 }
 0x3e3   : > { %v2248_v22 = vadd.f32 %v4533_v30, %v1278_v51 }
 0x3e4   : > { %v2183_v47 = vpop.f32.mrf.mxu0 }
 0x3e5   : > { %v4250_v3 = vmul.f32 -1.442695, %v2248_v22  ;;  %v2246_v42 = vadd.f32 %v2183_v47, %v1270_v36  ;;  %v1289_v36 = vadd.f32 %v5466_v10, %v1288_v43 }
 0x3e6   : > { %v4534_v17 = vpop.f32.mrf.mxu0 }
 0x3e7   : > { %4810 = vpow2.f32 %v4250_v3  ;;  %v4248_v25 = vmul.f32 -1.442695, %v2246_v42  ;;  %v2249_v26 = vadd.f32 %v4534_v17, %v1281_v38  ;;  %v4470_v17 = vpop.f32.mrf.mxu1 }
 0x3e8   : > { %v2186_v60 = vpop.f32.mrf.mxu0 }
 0x3e9   : > { %4812 = vpow2.f32 %v4248_v25  ;;  %v4251_v35 = vmul.f32 -1.442695, %v2249_v26  ;;  %v2247_v39 = vadd.f32 %v2186_v60, %v1273_v23  ;;  %v1310_v60 = vadd.f32 %v4469_v62, %v5466_v10 }
 0x3ea   : > { %v4537_v50 = vpop.f32.mrf.mxu0 }
 0x3eb   : > { %4814 = vpow2.f32 %v4251_v35  ;;  %v4249_v18 = vmul.f32 -1.442695, %v2247_v39  ;;  %v2252_v19 = vadd.f32 %v4537_v50, %v1294_v52  ;;  %v1304_v35 = vpop.f32.mrf.mxu1 }
 0x3ec   : > { %v2199_v6 = vpop.f32.mrf.mxu0 }
 0x3ed   : > { %4816 = vpow2.f32 %v4249_v18  ;;  %v4254_v20 = vmul.f32 -1.442695, %v2252_v19  ;;  %v2250_v51 = vadd.f32 %v2199_v6, %v1286_v0  ;;  %v4473_v10 = vpop.f32.mrf.mxu1 }
 0x3ee   : > { %v4538_v30 = vpop.f32.mrf.mxu0 }
 0x3ef   : > { %4818 = vpow2.f32 %v4254_v20  ;;  %v4252_v47 = vmul.f32 -1.442695, %v2250_v51  ;;  %v5809_v38 = vadd.f32 %v4538_v30, %v1297_v45  ;;  %v5816_v45 = vld [vmem:[%s6773_s4] ss:$0 sm:$0xff] }
 0x3f0   : > { %v2202_v3 = vpop.f32.mrf.mxu0  ;;  %v1302_v20 = vadd.f32 %v5816_v45, %v1301_v48  ;;  %v1305_v48 = vadd.f32 %v5816_v45, %v1304_v35 }
 0x3f1   : > { %4820 = vpow2.f32 %v4252_v47  ;;  %v4255_v28 = vmul.f32 -1.442695, %v5809_v38  ;;  %v2251_v23 = vadd.f32 %v2202_v3, %v1289_v36 }
 0x3f3   : > { %4822 = vpow2.f32 %v4255_v28  ;;  %v4253_v52 = vmul.f32 -1.442695, %v2251_v23 }
 0x3f4   : > { %v4811_v32 = vpop.eup %4810 }
 0x3f5   : > { %4824 = vpow2.f32 %v4253_v52  ;;  %v2328_v43 = vadd.f32 1.0, %v4811_v32  ;;  %v1317_v32 = vpop.f32.mrf.mxu1 }
 0x3f6   : > { %v4813_v25 = vpop.eup %4812  ;;  %4826 = vtanh.f32 %v2248_v22 }
 0x3f7   : > { %4828 = vtanh.f32 %v2246_v42  ;;  %v2326_v50 = vadd.f32 1.0, %v4813_v25  ;;  %v4474_v35 = vpop.f32.mrf.mxu1 }
 0x3f8   : > { %v4815_v0 = vpop.eup %4814  ;;  %4830 = vtanh.f32 %v2249_v26  ;;  %v1313_v26 = vadd.f32 %v5816_v45, %v4470_v17 }
 0x3f9   : > { %4832 = vrcp.f32 %v2326_v50  ;;  %v4541_v18 = vpop.f32.mrf.mxu0  ;;  %v2329_v62 = vadd.f32 1.0, %v4815_v0  ;;  %v1326_v0 = vadd.f32 %v5816_v45, %v4473_v10 }
 0x3fa   : > { %v4817_v6 = vpop.eup %4816  ;;  %4834 = vtanh.f32 %v2247_v39  ;;  %v5819_v22 = vadd.f32 %v4541_v18, %v1310_v60 }
 0x3fb   : > { %4836 = vrcp.f32 %v2328_v43  ;;  %v2327_v42 = vadd.f32 1.0, %v4817_v6  ;;  %v2215_v30 = vpop.f32.mrf.mxu0 }
 0x3fc   : > { %v4819_v36 = vpop.eup %4818  ;;  %4838 = vtanh.f32 %v2252_v19  ;;  %v4258_v39 = vmul.f32 -1.442695, %v5819_v22  ;;  %v5823_v47 = vadd.f32 %v2215_v30, %v1302_v20 }
 0x3fd   : > { %4840 = vrcp.f32 %v2327_v42  ;;  %v4542_v3 = vpop.f32.mrf.mxu0  ;;  %v2332_v60 = vadd.f32 1.0, %v4819_v36 }
 0x3fe   : > { %v4821_v28 = vpop.eup %4820  ;;  %4842 = vtanh.f32 %v2250_v51  ;;  %v4256_v52 = vmul.f32 -1.442695, %v5823_v47  ;;  %v5827_v25 = vadd.f32 %v4542_v3, %v1313_v26 }
 0x3ff   : > { %4844 = vrcp.f32 %v2329_v62  ;;  %v2330_v19 = vadd.f32 1.0, %v4821_v28  ;;  %v2218_v43 = vpop.f32.mrf.mxu0  ;;  %v1329_v28 = vadd.f32 %v5816_v45, %v4474_v35 }
 0x400   : > { %v4823_v17 = vpop.eup %4822  ;;  %4846 = vpow2.f32 %v4258_v39  ;;  %v5829_v50 = vadd.f32 %v2218_v43, %v1305_v48  ;;  %v4259_v51 = vmul.f32 -1.442695, %v5827_v25  ;;  %v1318_v39 = vadd.f32 %v5816_v45, %v1317_v32  ;;  %v1320_v48 = vpop.f32.mrf.mxu1 }
 0x401   : > { %4848 = vrcp.f32 %v2330_v19  ;;  %v2333_v20 = vadd.f32 1.0, %v4823_v17 }
 0x402   : > { %v4825_v18 = vpop.eup %4824  ;;  %4850 = vpow2.f32 %v4256_v52  ;;  %v4257_v30 = vmul.f32 -1.442695, %v5829_v50 }
 0x403   : > { %v4827_v6 = vpop.eup %4826  ;;  %4852 = vrcp.f32 %v2332_v60  ;;  %v2331_v42 = vadd.f32 1.0, %v4825_v18  ;;  %v1321_v18 = vadd.f32 %v5816_v45, %v1320_v48 }
 0x404   : > { %v4829_v62 = vpop.eup %4828  ;;  %4854 = vtanh.f32 %v2251_v23  ;;  %v4545_v36 = vpop.f32.mrf.mxu0 }
 0x405   : > { %v4831_v26 = vpop.eup %4830  ;;  %4856 = vrcp.f32 %v2331_v42  ;;  %v5835_v3 = vadd.f32 %v4545_v36, %v1326_v0 }
 0x406   : > { %v4833_v10 = vpop.eup %4832  ;;  %4858 = vpow2.f32 %v4259_v51  ;;  %v2231_v52 = vpop.f32.mrf.mxu0 }
 0x407   : > { %v4835_v60 = vpop.eup %4834  ;;  %4860 = vrcp.f32 %v2333_v20  ;;  %v4262_v19 = vmul.f32 -1.442695, %v5835_v3  ;;  %v2258_v23 = vadd.f32 %v2231_v52, %v1318_v39  ;;  %v5841_v43 = vsel %vm5508_vm3, %v4829_v62, %v4833_v10 }
 0x408   : > { %v4837_v17 = vpop.eup %4836  ;;  %4862 = vpow2.f32 %v4257_v30  ;;  %v4546_v32 = vpop.f32.mrf.mxu0  ;;  %2422 = vrot.lane.b32.xlu0 %v5841_v43, %s5223_s24 }
 0x409   : > { %v4839_v0 = vpop.eup %4838  ;;  %4864 = vtanh.f32 %v5809_v38  ;;  %v4260_v51 = vmul.f32 -1.442695, %v2258_v23  ;;  %v5847_v35 = vadd.f32 %v4546_v32, %v1329_v28  ;;  %v5852_v30 = vsel %vm5508_vm3, %v4827_v6, %v4837_v17 }
 0x40a   : > { %v4841_v20 = vpop.eup %4840  ;;  %4866 = vpow2.f32 %v4262_v19  ;;  %v2234_v42 = vpop.f32.mrf.mxu0 }
 0x40b   : > { %v4843_v36 = vpop.eup %4842  ;;  %v4263_v62 = vmul.f32 -1.442695, %v5847_v35  ;;  %v2259_v39 = vadd.f32 %v2234_v42, %v1321_v18  ;;  %v5856_v10 = vsel %vm5508_vm3, %v4835_v60, %v4841_v20  ;;  %4868 = vpow2.f32 %v4260_v51 }
 0x40c   : > { %v4845_v38 = vpop.eup %4844  ;;  %2426 = vrot.lane.b32.xlu0 %v5852_v30, %s5223_s24  ;;  %2424 = vrot.lane.b32.xlu1 %v5856_v10, %s5223_s24 }
 0x40d   : > { %v4847_v28 = vpop.eup %4846  ;;  %v4261_v48 = vmul.f32 -1.442695, %v2259_v39  ;;  %4870 = vpow2.f32 %v4263_v62  ;;  %v5864_v6 = vsel %vm5508_vm3, %v4831_v26, %v4845_v38 }
 0x40e   : > { %v4849_v52 = vpop.eup %4848  ;;  %v2336_v32 = vadd.f32 1.0, %v4847_v28  ;;  %4872 = vtanh.f32 %v5823_v47 }
 0x40f   : > { %v4851_v19 = vpop.eup %4850  ;;  %v5868_v60 = vsel %vm5508_vm3, %v4843_v36, %v4849_v52  ;;  %4874 = vpow2.f32 %v4261_v48 }
 0x410   : > { %v4853_v17 = vpop.eup %4852  ;;  %v2334_v18 = vadd.f32 1.0, %v4851_v19  ;;  %2428 = vrot.lane.b32.xlu1 %v5864_v6, %s5223_s24  ;;  %2430 = vrot.lane.b32.xlu0 %v5868_v60, %s5223_s24 }
 0x411   : > { %v4855_v51 = vpop.eup %4854  ;;  %v5877_v42 = vsel %vm5508_vm3, %v4839_v0, %v4853_v17 }
 0x412   : > { %v4857_v20 = vpop.eup %4856  ;;  %4876 = vrcp.f32 %v2334_v18 }
 0x413   : > { %v4859_v26 = vpop.eup %4858  ;;  %v5881_v36 = vsel %vm5508_vm3, %v4855_v51, %v4857_v20  ;;  %4878 = vrcp.f32 %v2336_v32 }
 0x414   : > { %v4861_v47 = vpop.eup %4860  ;;  %2434 = vrot.lane.b32.xlu0 %v5877_v42, %s5223_s24  ;;  %2432 = vrot.lane.b32.xlu1 %v5881_v36, %s5223_s24  ;;  %4880 = vtanh.f32 %v5819_v22  ;;  %v2337_v28 = vadd.f32 1.0, %v4859_v26 }
 0x415   : > { %v4863_v62 = vpop.eup %4862  ;;  %4882 = vtanh.f32 %v5829_v50 }
 0x416   : > { %v4865_v38 = vpop.eup %4864  ;;  %v2335_v48 = vadd.f32 1.0, %v4863_v62 }
 0x417   : > { %v4867_v0 = vpop.eup %4866  ;;  %v5891_v52 = vsel %vm5508_vm3, %v4865_v38, %v4861_v47 }
 0x418   : > { %4884 = vrcp.f32 %v2335_v48  ;;  %2436 = vrot.lane.b32.xlu1 %v5891_v52, %s5223_s24  ;;  %v4869_v19 = vpop.eup %4868  ;;  %v2340_v17 = vadd.f32 1.0, %v4867_v0 }
 0x419   : > { %4886 = vtanh.f32 %v5827_v25  ;;  %v2338_v32 = vadd.f32 1.0, %v4869_v19 }
 0x41a   : > { %4888 = vrcp.f32 %v2337_v28  ;;  %v4871_v22 = vpop.eup %4870 }
 0x41b   : > { %4890 = vtanh.f32 %v2258_v23  ;;  %v4873_v18 = vpop.eup %4872  ;;  %v2341_v20 = vadd.f32 1.0, %v4871_v22 }
 0x41c   : > { %4892 = vrcp.f32 %v2338_v32  ;;  %v4875_v51 = vpop.eup %4874 }
 0x41d   : > { %4894 = vrcp.f32 %v2340_v17  ;;  %v2339_v26 = vadd.f32 1.0, %v4875_v51 }
 0x41e   : > { %4896 = vtanh.f32 %v5835_v3 }
 0x41f   : > { %v4877_v50 = vpop.eup %4876  ;;  %4898 = vtanh.f32 %v2259_v39 }
 0x420   : > { %v5899_v47 = vsel %vm5508_vm3, %v4873_v18, %v4877_v50  ;;  %v4879_v25 = vpop.eup %4878  ;;  %4900 = vrcp.f32 %v2339_v26 }
 0x421   : > { %2438 = vrot.lane.b32.xlu0 %v5899_v47, %s5223_s24  ;;  %v4881_v23 = vpop.eup %4880  ;;  %4902 = vrcp.f32 %v2341_v20 }
 0x422   : > { %v4883_v62 = vpop.eup %4882  ;;  %v5905_v38 = vsel %vm5508_vm3, %v4881_v23, %v4879_v25  ;;  %4904 = vtanh.f32 %v5847_v35 }
 0x425   : > { %v4885_v3 = vpop.eup %4884  ;;  %2442 = vrot.lane.b32.xlu0 %v5905_v38, %s5223_s24 }
 0x426   : > { %v4887_v39 = vpop.eup %4886  ;;  %v5912_v28 = vsel %vm5508_vm3, %v4883_v62, %v4885_v3 }
 0x427   : > { %v4889_v48 = vpop.eup %4888  ;;  %2440 = vrot.lane.b32.xlu1 %v5912_v28, %s5223_s24 }
 0x428   : > { %v4891_v0 = vpop.eup %4890  ;;  %v5918_v17 = vsel %vm5508_vm3, %v4887_v39, %v4889_v48 }
 0x429   : > { %v4893_v19 = vpop.eup %4892 }
 0x42a   : > { %v5922_v35 = vsel %vm5508_vm3, %v4891_v0, %v4893_v19  ;;  %v4895_v32 = vpop.eup %4894 }
 0x42b   : > { %2444 = vrot.lane.b32.xlu1 %v5918_v17, %s5223_s24  ;;  %2446 = vrot.lane.b32.xlu0 %v5922_v35, %s5223_s24  ;;  %v4897_v22 = vpop.eup %4896 }
 0x42c   : > { %v4899_v18 = vpop.eup %4898  ;;  %v5930_v50 = vsel %vm5508_vm3, %v4897_v22, %v4895_v32 }
 0x42d   : > { %v4901_v51 = vpop.eup %4900 }
 0x42e   : > { %v5936_v20 = vsel %vm5508_vm3, %v4899_v18, %v4901_v51  ;;  %v4903_v26 = vpop.eup %4902 }
 0x42f   : > { %2450 = vrot.lane.b32.xlu0 %v5930_v50, %s5223_s24  ;;  %2448 = vrot.lane.b32.xlu1 %v5936_v20, %s5223_s24  ;;  %v4905_v25 = vpop.eup %4904 }
 0x430   : > { %v5942_v23 = vsel %vm5508_vm3, %v4905_v25, %v4903_v26 }
 0x433   : > { %2452 = vrot.lane.b32.xlu1 %v5942_v23, %s5223_s24 }
 0x47a   : > { %v2423_v62 = vpop.permute.xlu0 %2422 }
 0x47b   : > { %v2470_v3 = vmul.f32 %v2423_v62, %v5841_v43 }
 0x47d   : > { %2502 = vrot.lane.b32.xlu0 %v2470_v3, %s5224_s25 }
 0x47e   : > { %v2425_v39 = vpop.permute.xlu1 %2424  ;;  %v2427_v48 = vpop.permute.xlu0 %2426 }
 0x47f   : > { %v2471_v0 = vmul.f32 %v2425_v39, %v5856_v10  ;;  %v2472_v19 = vmul.f32 %v2427_v48, %v5852_v30 }
 0x481   : > { %2504 = vrot.lane.b32.xlu1 %v2471_v0, %s5224_s25  ;;  %2506 = vrot.lane.b32.xlu0 %v2472_v19, %s5224_s25 }
 0x482   : > { %v2429_v32 = vpop.permute.xlu1 %2428  ;;  %v2431_v22 = vpop.permute.xlu0 %2430 }
 0x483   : > { %v2473_v18 = vmul.f32 %v2429_v32, %v5864_v6  ;;  %v2474_v51 = vmul.f32 %v2431_v22, %v5868_v60 }
 0x485   : > { %2508 = vrot.lane.b32.xlu1 %v2473_v18, %s5224_s25  ;;  %2510 = vrot.lane.b32.xlu0 %v2474_v51, %s5224_s25 }
 0x486   : > { %v2433_v26 = vpop.permute.xlu1 %2432  ;;  %v2435_v25 = vpop.permute.xlu0 %2434 }
 0x487   : > { %v2475_v62 = vmul.f32 %v2433_v26, %v5881_v36  ;;  %v2476_v3 = vmul.f32 %v2435_v25, %v5877_v42 }
 0x489   : > { %2512 = vrot.lane.b32.xlu1 %v2475_v62, %s5224_s25  ;;  %2514 = vrot.lane.b32.xlu0 %v2476_v3, %s5224_s25 }
 0x48a   : > { %v2437_v39 = vpop.permute.xlu1 %2436 }
 0x48b   : > { %v2477_v48 = vmul.f32 %v2437_v39, %v5891_v52 }
 0x48d   : > { %2516 = vrot.lane.b32.xlu1 %v2477_v48, %s5224_s25 }
 0x493   : > { %v2439_v0 = vpop.permute.xlu0 %2438 }
 0x494   : > { %v2478_v19 = vmul.f32 %v2439_v0, %v5899_v47 }
 0x496   : > { %2518 = vrot.lane.b32.xlu0 %v2478_v19, %s5224_s25 }
 0x497   : > { %v2443_v32 = vpop.permute.xlu0 %2442 }
 0x498   : > { %v2480_v22 = vmul.f32 %v2443_v32, %v5905_v38 }
 0x499   : > { %v2441_v18 = vpop.permute.xlu1 %2440 }
 0x49a   : > { %v2479_v51 = vmul.f32 %v2441_v18, %v5912_v28  ;;  %2522 = vrot.lane.b32.xlu0 %v2480_v22, %s5224_s25  ;;  %v2390_v18 = vmul.f32 %v5841_v43, %v5660_v49  ;;  %v2393_v49 = vmul.f32 %v5864_v6, %v5673_v27 }
 0x49c   : > { %2520 = vrot.lane.b32.xlu1 %v2479_v51, %s5224_s25 }
 0x49d   : > { %v2445_v26 = vpop.permute.xlu1 %2444  ;;  %v2447_v25 = vpop.permute.xlu0 %2446 }
 0x49e   : > { %v2481_v62 = vmul.f32 %v2445_v26, %v5918_v17  ;;  %v2482_v3 = vmul.f32 %v2447_v25, %v5922_v35  ;;  %v2391_v25 = vmul.f32 %v5856_v10, %v5665_v53 }
 0x4a0   : > { %2524 = vrot.lane.b32.xlu1 %v2481_v62, %s5224_s25  ;;  %2526 = vrot.lane.b32.xlu0 %v2482_v3, %s5224_s25  ;;  %v2392_v62 = vmul.f32 %v5852_v30, %v5667_v54 }
 0x4a1   : > { %v2451_v39 = vpop.permute.xlu0 %2450  ;;  %v2449_v48 = vpop.permute.xlu1 %2448 }
 0x4a2   : > { %v2484_v0 = vmul.f32 %v2451_v39, %v5930_v50  ;;  %v2483_v19 = vmul.f32 %v2449_v48, %v5936_v20 }
 0x4a4   : > { %2530 = vrot.lane.b32.xlu0 %v2484_v0, %s5224_s25  ;;  %2528 = vrot.lane.b32.xlu1 %v2483_v19, %s5224_s25  ;;  %v2394_v19 = vmul.f32 %v5868_v60, %v5675_v14 }
 0x4a5   : > { %v2453_v32 = vpop.permute.xlu1 %2452 }
 0x4a6   : > { %v2485_v22 = vmul.f32 %v2453_v32, %v5942_v23 }
 0x4a8   : > { %2532 = vrot.lane.b32.xlu1 %v2485_v22, %s5224_s25 }
 0x4ef   : > { %v2503_v51 = vpop.permute.xlu0 %2502 }
 0x4f0   : > { %v5980_v26 = vadd.f32 %v2503_v51, %v2390_v18  ;;  %v2395_v18 = vmul.f32 %v5881_v36, %v5681_v21  ;;  %v2396_v51 = vmul.f32 %v5877_v42, %v5683_v24 }
 0x4f2   : > { %4906 = vtanh.f32 %v5980_v26 }
 0x4f3   : > { %v2505_v3 = vpop.permute.xlu1 %2504  ;;  %v2507_v39 = vpop.permute.xlu0 %2506 }
 0x4f4   : > { %v5987_v48 = vadd.f32 %v2505_v3, %v2391_v25  ;;  %v5989_v0 = vadd.f32 %v2507_v39, %v2392_v62  ;;  %v2397_v3 = vmul.f32 %v5891_v52, %v5688_v31  ;;  %v2398_v31 = vmul.f32 %v5899_v47, %v5693_v40 }
 0x4f5   : > { %v2399_v40 = vmul.f32 %v5912_v28, %v5705_v9  ;;  %v2402_v9 = vmul.f32 %v5922_v35, %v5716_v16 }
 0x4f6   : > { %4908 = vtanh.f32 %v5987_v48 }
 0x4f7   : > { %4910 = vtanh.f32 %v5989_v0  ;;  %v2509_v53 = vpop.permute.xlu1 %2508  ;;  %v2511_v32 = vpop.permute.xlu0 %2510 }
 0x4f8   : > { %v5997_v22 = vadd.f32 %v2509_v53, %v2393_v49  ;;  %v5999_v54 = vadd.f32 %v2511_v32, %v2394_v19 }
 0x4fa   : > { %4912 = vtanh.f32 %v5997_v22 }
 0x4fb   : > { %4914 = vtanh.f32 %v5999_v54  ;;  %v2513_v27 = vpop.permute.xlu1 %2512  ;;  %v2515_v14 = vpop.permute.xlu0 %2514 }
 0x4fc   : > { %v6007_v25 = vadd.f32 %v2513_v27, %v2395_v18  ;;  %v6009_v62 = vadd.f32 %v2515_v14, %v2396_v51  ;;  %v2400_v14 = vmul.f32 %v5905_v38, %v5699_v37  ;;  %v2401_v37 = vmul.f32 %v5918_v17, %v5711_v46 }
 0x4fe   : > { %4916 = vtanh.f32 %v6007_v25 }
 0x4ff   : > { %v4907_v39 = vpop.eup %4906  ;;  %4918 = vtanh.f32 %v6009_v62  ;;  %v2517_v21 = vpop.permute.xlu1 %2516 }
 0x500   : > { %v6015_v49 = vadd.f32 %v2517_v21, %v2397_v3  ;;  %2598 = vrot.lane.b32.xlu0 %v4907_v39, %s5223_s24 }
 0x502   : > { %4920 = vtanh.f32 %v6015_v49 }
 0x503   : > { %v4909_v24 = vpop.eup %4908 }
 0x504   : > { %v4911_v19 = vpop.eup %4910  ;;  %2600 = vrot.lane.b32.xlu1 %v4909_v24, %s5223_s24 }
 0x505   : > { %2602 = vrot.lane.b32.xlu0 %v4911_v19, %s5223_s24 }
 0x507   : > { %v4913_v53 = vpop.eup %4912 }
 0x508   : > { %v4915_v32 = vpop.eup %4914  ;;  %v2519_v18 = vpop.permute.xlu0 %2518  ;;  %2604 = vrot.lane.b32.xlu1 %v4913_v53, %s5223_s24 }
 0x509   : > { %v6024_v51 = vadd.f32 %v2519_v18, %v2398_v31  ;;  %2606 = vrot.lane.b32.xlu0 %v4915_v32, %s5223_s24 }
 0x50b   : > { %v4917_v27 = vpop.eup %4916  ;;  %4922 = vtanh.f32 %v6024_v51 }
 0x50c   : > { %v4919_v3 = vpop.eup %4918  ;;  %v2523_v39 = vpop.permute.xlu0 %2522  ;;  %2608 = vrot.lane.b32.xlu1 %v4917_v27, %s5223_s24 }
 0x50d   : > { %v6033_v21 = vadd.f32 %v2523_v39, %v2400_v14  ;;  %2610 = vrot.lane.b32.xlu0 %v4919_v3, %s5223_s24  ;;  %v2404_v14 = vmul.f32 %v5930_v50, %v5722_v44  ;;  %v2403_v3 = vmul.f32 %v5936_v20, %v5724_v33  ;;  %v2405_v44 = vmul.f32 %v5942_v23, %v5730_v13 }
 0x50e   : > { %v2521_v24 = vpop.permute.xlu1 %2520 }
 0x50f   : > { %v4921_v19 = vpop.eup %4920  ;;  %v6036_v53 = vadd.f32 %v2521_v24, %v2399_v40  ;;  %4924 = vtanh.f32 %v6033_v21 }
 0x510   : > { %2612 = vrot.lane.b32.xlu1 %v4921_v19, %s5223_s24 }
 0x511   : > { %4926 = vtanh.f32 %v6036_v53 }
 0x512   : > { %v2525_v31 = vpop.permute.xlu1 %2524  ;;  %v2527_v32 = vpop.permute.xlu0 %2526 }
 0x513   : > { %v6045_v18 = vadd.f32 %v2525_v31, %v2401_v37  ;;  %v6047_v27 = vadd.f32 %v2527_v32, %v2402_v9 }
 0x515   : > { %4928 = vtanh.f32 %v6045_v18 }
 0x516   : > { %4930 = vtanh.f32 %v6047_v27  ;;  %v2531_v46 = vpop.permute.xlu0 %2530  ;;  %v2529_v39 = vpop.permute.xlu1 %2528 }
 0x517   : > { %v6055_v40 = vadd.f32 %v2531_v46, %v2404_v14  ;;  %v6057_v24 = vadd.f32 %v2529_v39, %v2403_v3  ;;  %v4664_v14 = vld [vmem:[%s5411_s27 + $0x80] sm:$0xff]   ;;  %v4665_v3 = vld [vmem:[%s5411_s27 + $0x88] sm:$0xff]  }
 0x518   : > { %v4923_v16 = vpop.eup %4922  ;;  %4475 = vmatprep.mubr.msk.bf16.mxu1 %vm706_vm0, %v4664_v14 }
 0x519   : > { %4932 = vtanh.f32 %v6055_v40  ;;  %2614 = vrot.lane.b32.xlu0 %v4923_v16, %s5223_s24  ;;  %4476 = vmatmul.mubr.msk.bf16.gmra.mxu1 %vm706_vm0, %v4665_v3  ;;  %v4666_v16 = vld [vmem:[%s5411_s27 + $0x90] sm:$0xff]   ;;  %v4668_v3 = vld [vmem:[%s5411_s27 + $0xa0] sm:$0xff]  }
 0x51a   : > { %4934 = vtanh.f32 %v6057_v24  ;;  %v2533_v19 = vpop.permute.xlu1 %2532  ;;  %4479 = vmatprep.mubr.msk.bf16.mxu1 %vm706_vm0, %v4666_v16 }
 0x51b   : > { %v6064_v37 = vadd.f32 %v2533_v19, %v2405_v44  ;;  %v4667_v19 = vld [vmem:[%s5411_s27 + $0x98] sm:$0xff]  }
 0x51c   : > { %v4925_v33 = vpop.eup %4924 }
 0x51d   : > { %2618 = vrot.lane.b32.xlu0 %v4925_v33, %s5223_s24  ;;  %4936 = vtanh.f32 %v6064_v37 }
 0x51e   : > { %v4927_v9 = vpop.eup %4926 }
 0x51f   : > { %2616 = vrot.lane.b32.xlu1 %v4927_v9, %s5223_s24 }
 0x521   : > { %4480 = vmatmul.mubr.msk.bf16.gmra.mxu1 %vm706_vm0, %v4667_v19 }
 0x522   : > { %v4929_v31 = vpop.eup %4928  ;;  %4483 = vmatprep.mubr.msk.bf16.mxu1 %vm706_vm0, %v4668_v3 }
 0x523   : > { %v4931_v32 = vpop.eup %4930  ;;  %2620 = vrot.lane.b32.xlu1 %v4929_v31, %s5223_s24 }
 0x524   : > { %2622 = vrot.lane.b32.xlu0 %v4931_v32, %s5223_s24 }
 0x526   : > { %v4933_v13 = vpop.eup %4932 }
 0x527   : > { %v4935_v46 = vpop.eup %4934 }
 0x528   : > { %2624 = vrot.lane.b32.xlu1 %v4935_v46, %s5223_s24  ;;  %2626 = vrot.lane.b32.xlu0 %v4933_v13, %s5223_s24  ;;  %v4669_v13 = vld [vmem:[%s5411_s27 + $0xa8] sm:$0xff]  }
 0x529   : > { %4484 = vmatmul.mubr.msk.bf16.gmra.mxu1 %vm706_vm0, %v4669_v13 }
 0x52a   : > { %v4937_v39 = vpop.eup %4936 }
 0x52c   : > { %2628 = vrot.lane.b32.xlu1 %v4937_v39, %s5223_s24 }
 0x572   : > { %v2599_v44 = vpop.permute.xlu0 %2598 }
 0x573   : > { %v2646_v9 = vmul.f32 %v2599_v44, %v5841_v43 }
 0x576   : > { %v2601_v33 = vpop.permute.xlu1 %2600 }
 0x577   : > { %v2647_v31 = vmul.f32 %v2601_v33, %v5856_v10  ;;  %v2603_v32 = vpop.permute.xlu0 %2602 }
 0x578   : > { %v2648_v15 = vmul.f32 %v2603_v32, %v5852_v30  ;;  %v4670_v32 = vld [vmem:[%s5411_s27 + $0xb0] sm:$0xff]  }
 0x579   : > { %v2678_v14 = vpack.c.bf16 %v2647_v31, %v2646_v9  ;;  %4487 = vmatprep.mubr.msk.bf16.mxu1 %vm706_vm0, %v4670_v32 }
 0x57a   : > { %v2605_v46 = vpop.permute.xlu1 %2604 }
 0x57b   : > { %v2649_v39 = vmul.f32 %v2605_v46, %v5864_v6  ;;  %v2607_v12 = vpop.permute.xlu0 %2606  ;;  %2694 = vrot.lane.b32.xlu0 %v2678_v14, %s5224_s25  ;;  %v4671_v14 = vld [vmem:[%s5411_s27 + $0xb8] sm:$0xff]  }
 0x57c   : > { %v2650_v16 = vmul.f32 %v2607_v12, %v5868_v60  ;;  %4488 = vmatmul.mubr.msk.bf16.gmra.mxu1 %vm706_vm0, %v4671_v14 }
 0x57d   : > { %v2679_v43 = vpack.c.bf16 %v2649_v39, %v2648_v15 }
 0x57e   : > { %v2609_v10 = vpop.permute.xlu1 %2608 }
 0x57f   : > { %v2651_v44 = vmul.f32 %v2609_v10, %v5881_v36  ;;  %2696 = vrot.lane.b32.xlu1 %v2679_v43, %s5224_s25  ;;  %v2611_v30 = vpop.permute.xlu0 %2610 }
 0x580   : > { %v2652_v33 = vmul.f32 %v2611_v30, %v5877_v42 }
 0x581   : > { %v2680_v19 = vpack.c.bf16 %v2651_v44, %v2650_v16 }
 0x582   : > { %v2613_v6 = vpop.permute.xlu1 %2612 }
 0x583   : > { %v2653_v9 = vmul.f32 %v2613_v6, %v5891_v52  ;;  %2698 = vrot.lane.b32.xlu0 %v2680_v19, %s5224_s25 }
 0x585   : > { %v2681_v31 = vpack.c.bf16 %v2653_v9, %v2652_v33 }
 0x587   : > { %2700 = vrot.lane.b32.xlu1 %v2681_v31, %s5224_s25 }
 0x58b   : > { %v2615_v15 = vpop.permute.xlu0 %2614 }
 0x58c   : > { %v2654_v36 = vmul.f32 %v2615_v15, %v5899_v47 }
 0x58f   : > { %v2619_v12 = vpop.permute.xlu0 %2618 }
 0x590   : > { %v2656_v46 = vmul.f32 %v2619_v12, %v5905_v38 }
 0x591   : > { %v2617_v60 = vpop.permute.xlu1 %2616 }
 0x592   : > { %v2655_v42 = vmul.f32 %v2617_v60, %v5912_v28 }
 0x594   : > { %v2682_v3 = vpack.c.bf16 %v2655_v42, %v2654_v36 }
 0x595   : > { %v2621_v52 = vpop.permute.xlu1 %2620 }
 0x596   : > { %v2657_v13 = vmul.f32 %v2621_v52, %v5918_v17  ;;  %v2623_v39 = vpop.permute.xlu0 %2622  ;;  %2702 = vrot.lane.b32.xlu0 %v2682_v3, %s5224_s25 }
 0x597   : > { %v2658_v16 = vmul.f32 %v2623_v39, %v5922_v35 }
 0x598   : > { %v2683_v43 = vpack.c.bf16 %v2657_v13, %v2656_v46 }
 0x59a   : > { %v2625_v10 = vpop.permute.xlu1 %2624  ;;  %2704 = vrot.lane.b32.xlu1 %v2683_v43, %s5224_s25  ;;  %v2627_v47 = vpop.permute.xlu0 %2626 }
 0x59b   : > { %v2659_v44 = vmul.f32 %v2625_v10, %v5936_v20  ;;  %v2660_v19 = vmul.f32 %v2627_v47, %v5930_v50 }
 0x59d   : > { %v2684_v30 = vpack.c.bf16 %v2659_v44, %v2658_v16 }
 0x59e   : > { %v2629_v28 = vpop.permute.xlu1 %2628 }
 0x59f   : > { %v2661_v38 = vmul.f32 %v2629_v28, %v5942_v23  ;;  %2706 = vrot.lane.b32.xlu0 %v2684_v30, %s5224_s25 }
 0x5a1   : > { %v2685_v17 = vpack.c.bf16 %v2661_v38, %v2660_v19 }
 0x5a3   : > { %2708 = vrot.lane.b32.xlu1 %v2685_v17, %s5224_s25 }
 0x5d9   : > { %v4477_v31 = vpop.f32.mrf.mxu1 }
 0x5da   : > { %v1342_v12 = vadd.f32 %v5816_v45, %v4477_v31 }
 0x5db   : > { %v1333_v15 = vpop.f32.mrf.mxu1 }
 0x5dc   : > { %v1334_v42 = vadd.f32 %v5816_v45, %v1333_v15 }
 0x5dd   : > { %v4478_v32 = vpop.f32.mrf.mxu1 }
 0x5de   : > { %v1345_v13 = vadd.f32 %v5816_v45, %v4478_v32 }
 0x5df   : > { %v1336_v14 = vpop.f32.mrf.mxu1 }
 0x5e0   : > { %v1337_v10 = vadd.f32 %v5816_v45, %v1336_v14 }
 0x5ed   : > { %v2695_v6 = vpop.permute.xlu0 %2694 }
 0x5ee   : > { %4551 = vmatprep.mubr.msk.bf16.mxu0 %vm706_vm0, %v2695_v6 }
 0x5f1   : > { %v2697_v33 = vpop.permute.xlu1 %2696 }
 0x5f2   : > { %4552 = vmatmul.mubr.msk.bf16.vlgmr.msra.gmra.mxu0 %vm706_vm0, %v2697_v33 }
 0x5f3   : > { %4568 = vmatpush3.bf16.msra.mxu0 %v5784_v29 }
 0x5f4   : > { %4569 = vmatprep.subr.bf16.mxu0 %v5790_v34 }
 0x5f5   : > { %v2699_v35 = vpop.permute.xlu0 %2698 }
 0x5f6   : > { %4555 = vmatprep.mubr.msk.bf16.mxu0 %vm706_vm0, %v2699_v35 }
 0x5f7   : > { %4570 = vmatpush3.bf16.msra.mxu0 %v5790_v34  ;;  %v4481_v34 = vpop.f32.mrf.mxu1 }
 0x5f8   : > { %v1358_v44 = vadd.f32 %v5816_v45, %v4481_v34 }
 0x5f9   : > { %v2701_v50 = vpop.permute.xlu1 %2700  ;;  %v1349_v60 = vpop.f32.mrf.mxu1 }
 0x5fa   : > { %4556 = vmatmul.mubr.msk.bf16.gmra.mxu0 %vm706_vm0, %v2701_v50  ;;  %v1350_v33 = vadd.f32 %v5816_v45, %v1349_v60 }
 0x5fb   : > { %v4482_v52 = vpop.f32.mrf.mxu1 }
 0x5fd   : > { %v1352_v28 = vpop.f32.mrf.mxu1 }
 0x5fe   : > { %v1353_v32 = vadd.f32 %v5816_v45, %v1352_v28 }
 0x608   : > { %v2703_v20 = vpop.permute.xlu0 %2702 }
 0x609   : > { %4559 = vmatprep.mubr.msk.bf16.mxu0 %vm706_vm0, %v2703_v20  ;;  %v4485_v20 = vpop.f32.mrf.mxu1 }
 0x60b   : > { %v1365_v34 = vpop.f32.mrf.mxu1 }
 0x60c   : > { %v2705_v23 = vpop.permute.xlu1 %2704 }
 0x60d   : > { %4560 = vmatmul.mubr.msk.bf16.gmra.mxu0 %vm706_vm0, %v2705_v23 }
 0x611   : > { %v2707_v9 = vpop.permute.xlu0 %2706 }
 0x612   : > { %4563 = vmatprep.mubr.msk.bf16.mxu0 %vm706_vm0, %v2707_v9  ;;  %v1361_v9 = vadd.f32 %v5816_v45, %v4482_v52 }
 0x615   : > { %v2709_v29 = vpop.permute.xlu1 %2708 }
 0x616   : > { %4564 = vmatmul.mubr.msk.bf16.gmra.mxu0 %vm706_vm0, %v2709_v29 }
 0x6b2   : > { %v4553_v36 = vpop.f32.mrf.mxu0 }
 0x6b3   : > { %v2833_v3 = vadd.f32 %v4553_v36, %v1342_v12 }
 0x6b4   : > { %v2768_v46 = vpop.f32.mrf.mxu0 }
 0x6b5   : > { %v4274_v39 = vmul.f32 -1.442695, %v2833_v3  ;;  %v2831_v43 = vadd.f32 %v2768_v46, %v1334_v42  ;;  %v4486_v46 = vpop.f32.mrf.mxu1 }
 0x6b6   : > { %v4554_v16 = vpop.f32.mrf.mxu0 }
 0x6b7   : > { %4938 = vpow2.f32 %v4274_v39  ;;  %v4272_v47 = vmul.f32 -1.442695, %v2831_v43  ;;  %v2834_v30 = vadd.f32 %v4554_v16, %v1345_v13 }
 0x6b8   : > { %v2771_v19 = vpop.f32.mrf.mxu0 }
 0x6b9   : > { %4940 = vpow2.f32 %v4272_v47  ;;  %v4275_v38 = vmul.f32 -1.442695, %v2834_v30  ;;  %v2832_v17 = vadd.f32 %v2771_v19, %v1337_v10  ;;  %v1374_v19 = vadd.f32 %v5816_v45, %v4485_v20 }
 0x6ba   : > { %v4557_v6 = vpop.f32.mrf.mxu0 }
 0x6bb   : > { %4942 = vpow2.f32 %v4275_v38  ;;  %v4273_v35 = vmul.f32 -1.442695, %v2832_v17  ;;  %v2837_v50 = vadd.f32 %v4557_v6, %v1358_v44  ;;  %v1368_v44 = vpop.f32.mrf.mxu1 }
 0x6bc   : > { %v2784_v23 = vpop.f32.mrf.mxu0 }
 0x6bd   : > { %4944 = vpow2.f32 %v4273_v35  ;;  %v4278_v29 = vmul.f32 -1.442695, %v2837_v50  ;;  %v2835_v31 = vadd.f32 %v2784_v23, %v1350_v33  ;;  %v4489_v33 = vpop.f32.mrf.mxu1 }
 0x6be   : > { %v4558_v15 = vpop.f32.mrf.mxu0 }
 0x6bf   : > { %4946 = vpow2.f32 %v4278_v29  ;;  %v4276_v14 = vmul.f32 -1.442695, %v2835_v31  ;;  %v6133_v12 = vadd.f32 %v4558_v15, %v1361_v9 }
 0x6c0   : > { %v2787_v36 = vpop.f32.mrf.mxu0 }
 0x6c1   : > { %4948 = vpow2.f32 %v4276_v14  ;;  %v4279_v60 = vmul.f32 -1.442695, %v6133_v12  ;;  %v2836_v42 = vadd.f32 %v2787_v36, %v1353_v32  ;;  %v1381_v32 = vpop.f32.mrf.mxu1  ;;  %v1377_v14 = vadd.f32 %v5816_v45, %v4486_v46 }
 0x6c3   : > { %4950 = vpow2.f32 %v4279_v60  ;;  %v4277_v13 = vmul.f32 -1.442695, %v2836_v42  ;;  %v4490_v46 = vpop.f32.mrf.mxu1 }
 0x6c4   : > { %v4939_v52 = vpop.eup %4938 }
 0x6c5   : > { %4952 = vpow2.f32 %v4277_v13  ;;  %v2913_v10 = vadd.f32 1.0, %v4939_v52 }
 0x6c6   : > { %v4941_v39 = vpop.eup %4940  ;;  %4954 = vtanh.f32 %v2833_v3  ;;  %v1366_v3 = vadd.f32 %v5816_v45, %v1365_v34  ;;  %v1369_v34 = vadd.f32 %v5816_v45, %v1368_v44 }
 0x6c7   : > { %v2911_v16 = vadd.f32 1.0, %v4941_v39  ;;  %4956 = vtanh.f32 %v2831_v43 }
 0x6c8   : > { %v4943_v47 = vpop.eup %4942 }
 0x6c9   : > { %4958 = vrcp.f32 %v2911_v16  ;;  %v2914_v38 = vadd.f32 1.0, %v4943_v47 }
 0x6ca   : > { %v4945_v28 = vpop.eup %4944  ;;  %4960 = vtanh.f32 %v2834_v30 }
 0x6cb   : > { %4962 = vrcp.f32 %v2913_v10  ;;  %v2912_v6 = vadd.f32 1.0, %v4945_v28 }
 0x6cc   : > { %v4947_v35 = vpop.eup %4946  ;;  %4964 = vtanh.f32 %v2832_v17 }
 0x6cd   : > { %4966 = vrcp.f32 %v2912_v6  ;;  %v4561_v23 = vpop.f32.mrf.mxu0  ;;  %v2917_v43 = vadd.f32 1.0, %v4947_v35 }
 0x6ce   : > { %v4949_v9 = vpop.eup %4948  ;;  %4968 = vtanh.f32 %v2837_v50  ;;  %v6138_v29 = vadd.f32 %v4561_v23, %v1374_v19  ;;  %v1382_v23 = vadd.f32 %v5816_v45, %v1381_v32 }
 0x6cf   : > { %4970 = vrcp.f32 %v2914_v38  ;;  %v2915_v15 = vadd.f32 1.0, %v4949_v9  ;;  %v2800_v30 = vpop.f32.mrf.mxu0 }
 0x6d0   : > { %v4951_v20 = vpop.eup %4950  ;;  %4972 = vtanh.f32 %v2835_v31  ;;  %v4282_v36 = vmul.f32 -1.442695, %v6138_v29  ;;  %v6142_v17 = vadd.f32 %v2800_v30, %v1366_v3  ;;  %v1390_v31 = vadd.f32 %v5816_v45, %v4489_v33  ;;  %v1384_v33 = vpop.f32.mrf.mxu1 }
 0x6d1   : > { %4974 = vrcp.f32 %v2915_v15  ;;  %v4562_v60 = vpop.f32.mrf.mxu0  ;;  %v2918_v39 = vadd.f32 1.0, %v4951_v20  ;;  %v1393_v20 = vadd.f32 %v5816_v45, %v4490_v46 }
 0x6d2   : > { %v4953_v50 = vpop.eup %4952  ;;  %4976 = vtanh.f32 %v2836_v42  ;;  %v4280_v13 = vmul.f32 -1.442695, %v6142_v17  ;;  %v6146_v52 = vadd.f32 %v4562_v60, %v1377_v14  ;;  %v1385_v60 = vadd.f32 %v5816_v45, %v1384_v33 }
 0x6d3   : > { %4978 = vrcp.f32 %v2917_v43  ;;  %v2916_v10 = vadd.f32 1.0, %v4953_v50  ;;  %v2803_v16 = vpop.f32.mrf.mxu0  ;;  %v4955_v47 = vpop.eup %4954 }
 0x6d4   : > { %4980 = vpow2.f32 %v4282_v36  ;;  %v4283_v28 = vmul.f32 -1.442695, %v6146_v52  ;;  %v6150_v19 = vadd.f32 %v2803_v16, %v1369_v34  ;;  %v4957_v42 = vpop.eup %4956 }
 0x6d5   : > { %4982 = vrcp.f32 %v2916_v10 }
 0x6d6   : > { %v4959_v44 = vpop.eup %4958  ;;  %4984 = vpow2.f32 %v4280_v13  ;;  %v4281_v38 = vmul.f32 -1.442695, %v6150_v19  ;;  %v4565_v6 = vpop.f32.mrf.mxu0 }
 0x6d7   : > { %v4961_v35 = vpop.eup %4960  ;;  %4986 = vrcp.f32 %v2918_v39  ;;  %v6154_v9 = vadd.f32 %v4565_v6, %v1390_v31  ;;  %v6158_v3 = vsel %vm5508_vm3, %v4957_v42, %v4959_v44 }
 0x6d8   : > { %v4963_v43 = vpop.eup %4962  ;;  %4988 = vpow2.f32 %v4283_v28  ;;  %v2816_v15 = vpop.f32.mrf.mxu0  ;;  %3007 = vrot.lane.b32.xlu0 %v6158_v3, %s5223_s24 }
 0x6d9   : > { %v4965_v30 = vpop.eup %4964  ;;  %4990 = vtanh.f32 %v6133_v12  ;;  %v4286_v32 = vmul.f32 -1.442695, %v6154_v9  ;;  %v2843_v14 = vadd.f32 %v2816_v15, %v1382_v23  ;;  %v6170_v10 = vsel %vm5508_vm3, %v4955_v47, %v4963_v43 }
 0x6da   : > { %v4967_v36 = vpop.eup %4966  ;;  %4992 = vpow2.f32 %v4281_v38  ;;  %v4566_v50 = vpop.f32.mrf.mxu0 }
 0x6db   : > { %v4969_v34 = vpop.eup %4968  ;;  %v4284_v13 = vmul.f32 -1.442695, %v2843_v14  ;;  %v6166_v39 = vadd.f32 %v4566_v50, %v1393_v20  ;;  %v6174_v12 = vsel %vm5508_vm3, %v4965_v30, %v4967_v36  ;;  %4994 = vpow2.f32 %v4286_v32 }
 0x6dc   : > { %v4971_v31 = vpop.eup %4970  ;;  %v2819_v46 = vpop.f32.mrf.mxu0  ;;  %3011 = vrot.lane.b32.xlu0 %v6170_v10, %s5223_s24  ;;  %3009 = vrot.lane.b32.xlu1 %v6174_v12, %s5223_s24 }
 0x6dd   : > { %v4973_v45 = vpop.eup %4972  ;;  %v4287_v16 = vmul.f32 -1.442695, %v6166_v39  ;;  %v2844_v28 = vadd.f32 %v2819_v46, %v1385_v60  ;;  %4996 = vpow2.f32 %v4284_v13  ;;  %v6183_v38 = vsel %vm5508_vm3, %v4961_v35, %v4971_v31 }
 0x6de   : > { %v4975_v42 = vpop.eup %4974 }
 0x6df   : > { %v4977_v47 = vpop.eup %4976  ;;  %v4285_v44 = vmul.f32 -1.442695, %v2844_v28  ;;  %v6187_v6 = vsel %vm5508_vm3, %v4973_v45, %v4975_v42  ;;  %4998 = vpow2.f32 %v4287_v16 }
 0x6e0   : > { %v4979_v23 = vpop.eup %4978  ;;  %3013 = vrot.lane.b32.xlu1 %v6183_v38, %s5223_s24  ;;  %3015 = vrot.lane.b32.xlu0 %v6187_v6, %s5223_s24 }
 0x6e1   : > { %v4981_v33 = vpop.eup %4980  ;;  %5000 = vpow2.f32 %v4285_v44  ;;  %v6195_v35 = vsel %vm5508_vm3, %v4969_v34, %v4979_v23 }
 0x6e2   : > { %v4983_v43 = vpop.eup %4982  ;;  %v2921_v32 = vadd.f32 1.0, %v4981_v33  ;;  %5002 = vtanh.f32 %v6142_v17 }
 0x6e3   : > { %v4985_v15 = vpop.eup %4984  ;;  %v6199_v30 = vsel %vm5508_vm3, %v4977_v47, %v4983_v43 }
 0x6e4   : > { %v4987_v20 = vpop.eup %4986  ;;  %v2919_v36 = vadd.f32 1.0, %v4985_v15  ;;  %3019 = vrot.lane.b32.xlu0 %v6195_v35, %s5223_s24  ;;  %3017 = vrot.lane.b32.xlu1 %v6199_v30, %s5223_s24 }
 0x6e5   : > { %v4989_v60 = vpop.eup %4988 }
 0x6e6   : > { %v4991_v50 = vpop.eup %4990  ;;  %5004 = vrcp.f32 %v2919_v36  ;;  %v2922_v31 = vadd.f32 1.0, %v4989_v60 }
 0x6e7   : > { %v4993_v34 = vpop.eup %4992  ;;  %5006 = vtanh.f32 %v6138_v29  ;;  %v6209_v13 = vsel %vm5508_vm3, %v4991_v50, %v4987_v20 }
 0x6e8   : > { %5008 = vrcp.f32 %v2921_v32  ;;  %v2920_v46 = vadd.f32 1.0, %v4993_v34  ;;  %3021 = vrot.lane.b32.xlu1 %v6209_v13, %s5223_s24  ;;  %v4995_v45 = vpop.eup %4994 }
 0x6e9   : > { %5010 = vtanh.f32 %v6150_v19  ;;  %v2925_v16 = vadd.f32 1.0, %v4995_v45 }
 0x6ea   : > { %5012 = vrcp.f32 %v2920_v46  ;;  %v4997_v17 = vpop.eup %4996 }
 0x6eb   : > { %5014 = vtanh.f32 %v6146_v52  ;;  %v2923_v29 = vadd.f32 1.0, %v4997_v17 }
 0x6ec   : > { %5016 = vrcp.f32 %v2922_v31  ;;  %v4999_v42 = vpop.eup %4998 }
 0x6ed   : > { %5018 = vtanh.f32 %v2843_v14  ;;  %v2926_v44 = vadd.f32 1.0, %v4999_v42 }
 0x6ee   : > { %5020 = vrcp.f32 %v2923_v29  ;;  %v5001_v47 = vpop.eup %5000 }
 0x6ef   : > { %5022 = vrcp.f32 %v2925_v16  ;;  %v2924_v23 = vadd.f32 1.0, %v5001_v47  ;;  %v5003_v33 = vpop.eup %5002 }
 0x6f0   : > { %5024 = vtanh.f32 %v6154_v9 }
 0x6f1   : > { %5026 = vtanh.f32 %v2844_v28 }
 0x6f2   : > { %5028 = vrcp.f32 %v2924_v23 }
 0x6f3   : > { %v5005_v43 = vpop.eup %5004  ;;  %5030 = vrcp.f32 %v2926_v44 }
 0x6f4   : > { %v5007_v19 = vpop.eup %5006  ;;  %v6218_v52 = vsel %vm5508_vm3, %v5003_v33, %v5005_v43  ;;  %5032 = vtanh.f32 %v6166_v39 }
 0x6f5   : > { %v5009_v15 = vpop.eup %5008  ;;  %3023 = vrot.lane.b32.xlu0 %v6218_v52, %s5223_s24 }
 0x6f6   : > { %v5011_v14 = vpop.eup %5010  ;;  %v6225_v28 = vsel %vm5508_vm3, %v5007_v19, %v5009_v15 }
 0x6f7   : > { %v5013_v20 = vpop.eup %5012 }
 0x6f8   : > { %v5015_v9 = vpop.eup %5014  ;;  %v6229_v32 = vsel %vm5508_vm3, %v5011_v14, %v5013_v20 }
 0x6f9   : > { %v5017_v36 = vpop.eup %5016  ;;  %3027 = vrot.lane.b32.xlu0 %v6225_v28, %s5223_s24  ;;  %3025 = vrot.lane.b32.xlu1 %v6229_v32, %s5223_s24 }
 0x6fa   : > { %v5019_v60 = vpop.eup %5018  ;;  %v6237_v39 = vsel %vm5508_vm3, %v5015_v9, %v5017_v36 }
 0x6fb   : > { %v5021_v50 = vpop.eup %5020 }
 0x6fc   : > { %v6241_v34 = vsel %vm5508_vm3, %v5019_v60, %v5021_v50  ;;  %v5023_v31 = vpop.eup %5022 }
 0x6fd   : > { %3029 = vrot.lane.b32.xlu1 %v6237_v39, %s5223_s24  ;;  %3031 = vrot.lane.b32.xlu0 %v6241_v34, %s5223_s24  ;;  %v5025_v46 = vpop.eup %5024 }
 0x6fe   : > { %v5027_v45 = vpop.eup %5026  ;;  %v6249_v16 = vsel %vm5508_vm3, %v5025_v46, %v5023_v31 }
 0x6ff   : > { %v5029_v17 = vpop.eup %5028 }
 0x700   : > { %v6255_v29 = vsel %vm5508_vm3, %v5027_v45, %v5029_v17  ;;  %v5031_v42 = vpop.eup %5030 }
 0x701   : > { %3035 = vrot.lane.b32.xlu0 %v6249_v16, %s5223_s24  ;;  %3033 = vrot.lane.b32.xlu1 %v6255_v29, %s5223_s24  ;;  %v5033_v47 = vpop.eup %5032 }
 0x702   : > { %v6261_v44 = vsel %vm5508_vm3, %v5033_v47, %v5031_v42 }
 0x705   : > { %3037 = vrot.lane.b32.xlu1 %v6261_v44, %s5223_s24 }
 0x74a   : > { %v3008_v23 = vpop.permute.xlu0 %3007 }
 0x74b   : > { %v3055_v33 = vmul.f32 %v3008_v23, %v6158_v3 }
 0x74d   : > { %3087 = vrot.lane.b32.xlu0 %v3055_v33, %s5224_s25 }
 0x74e   : > { %v3010_v43 = vpop.permute.xlu1 %3009  ;;  %v3012_v19 = vpop.permute.xlu0 %3011 }
 0x74f   : > { %v3056_v15 = vmul.f32 %v3010_v43, %v6174_v12  ;;  %v3057_v14 = vmul.f32 %v3012_v19, %v6170_v10 }
 0x751   : > { %3089 = vrot.lane.b32.xlu1 %v3056_v15, %s5224_s25  ;;  %3091 = vrot.lane.b32.xlu0 %v3057_v14, %s5224_s25 }
 0x752   : > { %v3014_v20 = vpop.permute.xlu1 %3013  ;;  %v3016_v9 = vpop.permute.xlu0 %3015 }
 0x753   : > { %v3058_v36 = vmul.f32 %v3014_v20, %v6183_v38  ;;  %v3059_v60 = vmul.f32 %v3016_v9, %v6187_v6 }
 0x755   : > { %3093 = vrot.lane.b32.xlu1 %v3058_v36, %s5224_s25  ;;  %3095 = vrot.lane.b32.xlu0 %v3059_v60, %s5224_s25 }
 0x756   : > { %v3018_v50 = vpop.permute.xlu1 %3017  ;;  %v3020_v31 = vpop.permute.xlu0 %3019 }
 0x757   : > { %v3060_v46 = vmul.f32 %v3018_v50, %v6199_v30  ;;  %v3061_v45 = vmul.f32 %v3020_v31, %v6195_v35 }
 0x759   : > { %3097 = vrot.lane.b32.xlu1 %v3060_v46, %s5224_s25  ;;  %3099 = vrot.lane.b32.xlu0 %v3061_v45, %s5224_s25 }
 0x75a   : > { %v3022_v17 = vpop.permute.xlu1 %3021 }
 0x75b   : > { %v3062_v42 = vmul.f32 %v3022_v17, %v6209_v13 }
 0x75d   : > { %3101 = vrot.lane.b32.xlu1 %v3062_v42, %s5224_s25  ;;  %v2975_v42 = vmul.f32 %v6158_v3, %v5980_v26  ;;  %v2978_v26 = vmul.f32 %v6183_v38, %v5997_v22 }
 0x767   : > { %v3024_v47 = vpop.permute.xlu0 %3023 }
 0x768   : > { %v3063_v23 = vmul.f32 %v3024_v47, %v6218_v52 }
 0x76a   : > { %3103 = vrot.lane.b32.xlu0 %v3063_v23, %s5224_s25 }
 0x76b   : > { %v3026_v33 = vpop.permute.xlu1 %3025  ;;  %v3028_v43 = vpop.permute.xlu0 %3027 }
 0x76c   : > { %v3064_v19 = vmul.f32 %v3026_v33, %v6229_v32  ;;  %v3065_v15 = vmul.f32 %v3028_v43, %v6225_v28  ;;  %v2976_v33 = vmul.f32 %v6174_v12, %v5987_v48  ;;  %v2977_v43 = vmul.f32 %v6170_v10, %v5989_v0 }
 0x76e   : > { %3105 = vrot.lane.b32.xlu1 %v3064_v19, %s5224_s25  ;;  %3107 = vrot.lane.b32.xlu0 %v3065_v15, %s5224_s25 }
 0x76f   : > { %v3030_v14 = vpop.permute.xlu1 %3029  ;;  %v3032_v20 = vpop.permute.xlu0 %3031 }
 0x770   : > { %v3066_v9 = vmul.f32 %v3030_v14, %v6237_v39  ;;  %v3067_v36 = vmul.f32 %v3032_v20, %v6241_v34 }
 0x772   : > { %3109 = vrot.lane.b32.xlu1 %v3066_v9, %s5224_s25  ;;  %3111 = vrot.lane.b32.xlu0 %v3067_v36, %s5224_s25  ;;  %v2979_v9 = vmul.f32 %v6187_v6, %v5999_v54 }
 0x773   : > { %v3036_v60 = vpop.permute.xlu0 %3035  ;;  %v3034_v50 = vpop.permute.xlu1 %3033 }
 0x774   : > { %v3069_v31 = vmul.f32 %v3036_v60, %v6249_v16  ;;  %v3068_v46 = vmul.f32 %v3034_v50, %v6255_v29  ;;  %v2980_v50 = vmul.f32 %v6199_v30, %v6007_v25 }
 0x776   : > { %3115 = vrot.lane.b32.xlu0 %v3069_v31, %s5224_s25  ;;  %3113 = vrot.lane.b32.xlu1 %v3068_v46, %s5224_s25  ;;  %v2981_v31 = vmul.f32 %v6195_v35, %v6009_v62 }
 0x777   : > { %v3038_v45 = vpop.permute.xlu1 %3037 }
 0x778   : > { %v3070_v17 = vmul.f32 %v3038_v45, %v6261_v44 }
 0x77a   : > { %3117 = vrot.lane.b32.xlu1 %v3070_v17, %s5224_s25  ;;  %v2982_v17 = vmul.f32 %v6209_v13, %v6015_v49 }
 0x7bf   : > { %v3088_v47 = vpop.permute.xlu0 %3087 }
 0x7c0   : > { %v6299_v23 = vadd.f32 %v3088_v47, %v2975_v42 }
 0x7c2   : > { %5034 = vtanh.f32 %v6299_v23 }
 0x7c3   : > { %v3090_v19 = vpop.permute.xlu1 %3089  ;;  %v3092_v15 = vpop.permute.xlu0 %3091 }
 0x7c4   : > { %v6306_v14 = vadd.f32 %v3090_v19, %v2976_v33  ;;  %v6308_v20 = vadd.f32 %v3092_v15, %v2977_v43  ;;  %v2983_v15 = vmul.f32 %v6218_v52, %v6024_v51 }
 0x7c6   : > { %5036 = vtanh.f32 %v6306_v14 }
 0x7c7   : > { %5038 = vtanh.f32 %v6308_v20  ;;  %v3094_v48 = vpop.permute.xlu1 %3093  ;;  %v3096_v36 = vpop.permute.xlu0 %3095 }
 0x7c8   : > { %v6316_v60 = vadd.f32 %v3094_v48, %v2978_v26  ;;  %v6318_v0 = vadd.f32 %v3096_v36, %v2979_v9 }
 0x7ca   : > { %5040 = vtanh.f32 %v6316_v60 }
 0x7cb   : > { %5042 = vtanh.f32 %v6318_v0  ;;  %v3098_v22 = vpop.permute.xlu1 %3097  ;;  %v3100_v54 = vpop.permute.xlu0 %3099 }
 0x7cc   : > { %v6326_v46 = vadd.f32 %v3098_v22, %v2980_v50  ;;  %v6328_v45 = vadd.f32 %v3100_v54, %v2981_v31  ;;  %v2984_v50 = vmul.f32 %v6229_v32, %v6036_v53  ;;  %v2985_v31 = vmul.f32 %v6225_v28, %v6033_v21 }
 0x7ce   : > { %5044 = vtanh.f32 %v6326_v46 }
 0x7cf   : > { %v5035_v42 = vpop.eup %5034  ;;  %5046 = vtanh.f32 %v6328_v45  ;;  %v3102_v25 = vpop.permute.xlu1 %3101 }
 0x7d0   : > { %v6334_v47 = vadd.f32 %v3102_v25, %v2982_v17  ;;  %3183 = vrot.lane.b32.xlu0 %v5035_v42, %s5223_s24  ;;  %v2986_v42 = vmul.f32 %v6237_v39, %v6045_v18  ;;  %v2987_v25 = vmul.f32 %v6241_v34, %v6047_v27  ;;  %v2988_v18 = vmul.f32 %v6255_v29, %v6057_v24 }
 0x7d2   : > { %5048 = vtanh.f32 %v6334_v47 }
 0x7d3   : > { %v5037_v62 = vpop.eup %5036 }
 0x7d4   : > { %v5039_v33 = vpop.eup %5038  ;;  %3185 = vrot.lane.b32.xlu1 %v5037_v62, %s5223_s24 }
 0x7d5   : > { %3187 = vrot.lane.b32.xlu0 %v5039_v33, %s5223_s24 }
 0x7d7   : > { %v5041_v43 = vpop.eup %5040 }
 0x7d8   : > { %v5043_v19 = vpop.eup %5042  ;;  %3189 = vrot.lane.b32.xlu1 %v5041_v43, %s5223_s24  ;;  %v2989_v43 = vmul.f32 %v6249_v16, %v6055_v40  ;;  %v2990_v40 = vmul.f32 %v6261_v44, %v6064_v37  ;;  %v4672_v37 = vld [vmem:[%s5411_s27 + $0xc0] sm:$0xff]  }
 0x7d9   : > { %3191 = vrot.lane.b32.xlu0 %v5043_v19, %s5223_s24  ;;  %4491 = vmatprep.mubr.msk.bf16.mxu1 %vm706_vm0, %v4672_v37 }
 0x7db   : > { %v5045_v49 = vpop.eup %5044 }
 0x7dc   : > { %v5047_v26 = vpop.eup %5046  ;;  %v3104_v9 = vpop.permute.xlu0 %3103  ;;  %3193 = vrot.lane.b32.xlu1 %v5045_v49, %s5223_s24 }
 0x7dd   : > { %v6345_v48 = vadd.f32 %v3104_v9, %v2983_v15  ;;  %3195 = vrot.lane.b32.xlu0 %v5047_v26, %s5223_s24 }
 0x7df   : > { %v5049_v36 = vpop.eup %5048  ;;  %5050 = vtanh.f32 %v6345_v48 }
 0x7e0   : > { %v3106_v22 = vpop.permute.xlu1 %3105  ;;  %v3108_v54 = vpop.permute.xlu0 %3107  ;;  %3197 = vrot.lane.b32.xlu1 %v5049_v36, %s5223_s24 }
 0x7e1   : > { %v6354_v51 = vadd.f32 %v3106_v22, %v2984_v50  ;;  %v6356_v17 = vadd.f32 %v3108_v54, %v2985_v31  ;;  %v4673_v54 = vld [vmem:[%s5411_s27 + $0xc8] sm:$0xff]  }
 0x7e2   : > { %4492 = vmatmul.mubr.msk.bf16.gmra.mxu1 %vm706_vm0, %v4673_v54 }
 0x7e3   : > { %5052 = vtanh.f32 %v6354_v51 }
 0x7e4   : > { %5054 = vtanh.f32 %v6356_v17  ;;  %v3110_v53 = vpop.permute.xlu1 %3109  ;;  %v3112_v21 = vpop.permute.xlu0 %3111 }
 0x7e5   : > { %v6364_v62 = vadd.f32 %v3110_v53, %v2986_v42  ;;  %v6366_v33 = vadd.f32 %v3112_v21, %v2987_v25  ;;  %v4674_v21 = vld [vmem:[%s5411_s27 + $0xd0] sm:$0xff]  }
 0x7e6   : > { %4495 = vmatprep.mubr.msk.bf16.mxu1 %vm706_vm0, %v4674_v21 }
 0x7e7   : > { %5056 = vtanh.f32 %v6364_v62 }
 0x7e8   : > { %5058 = vtanh.f32 %v6366_v33  ;;  %v3116_v19 = vpop.permute.xlu0 %3115  ;;  %v3114_v27 = vpop.permute.xlu1 %3113 }
 0x7e9   : > { %v6374_v49 = vadd.f32 %v3116_v19, %v2989_v43  ;;  %v6376_v15 = vadd.f32 %v3114_v27, %v2988_v18  ;;  %v4675_v18 = vld [vmem:[%s5411_s27 + $0xd8] sm:$0xff]  }
 0x7ea   : > { %4496 = vmatmul.mubr.msk.bf16.gmra.mxu1 %vm706_vm0, %v4675_v18 }
 0x7eb   : > { %5060 = vtanh.f32 %v6374_v49 }
 0x7ec   : > { %v5051_v26 = vpop.eup %5050  ;;  %5062 = vtanh.f32 %v6376_v15  ;;  %v3118_v9 = vpop.permute.xlu1 %3117 }
 0x7ed   : > { %3199 = vrot.lane.b32.xlu0 %v5051_v26, %s5223_s24  ;;  %v6383_v24 = vadd.f32 %v3118_v9, %v2990_v40 }
 0x7ef   : > { %5064 = vtanh.f32 %v6383_v24 }
 0x7f0   : > { %v5053_v36 = vpop.eup %5052 }
 0x7f1   : > { %v5055_v50 = vpop.eup %5054  ;;  %3201 = vrot.lane.b32.xlu1 %v5053_v36, %s5223_s24  ;;  %v4676_v36 = vld [vmem:[%s5411_s27 + $0xe0] sm:$0xff]  }
 0x7f2   : > { %3203 = vrot.lane.b32.xlu0 %v5055_v50, %s5223_s24  ;;  %4499 = vmatprep.mubr.msk.bf16.mxu1 %vm706_vm0, %v4676_v36 }
 0x7f4   : > { %v5057_v31 = vpop.eup %5056 }
 0x7f5   : > { %v5059_v22 = vpop.eup %5058  ;;  %3205 = vrot.lane.b32.xlu1 %v5057_v31, %s5223_s24  ;;  %v4677_v31 = vld [vmem:[%s5411_s27 + $0xe8] sm:$0xff]  }
 0x7f6   : > { %3207 = vrot.lane.b32.xlu0 %v5059_v22, %s5223_s24  ;;  %4500 = vmatmul.mubr.msk.bf16.gmra.mxu1 %vm706_vm0, %v4677_v31 }
 0x7f8   : > { %v5061_v42 = vpop.eup %5060 }
 0x7f9   : > { %v5063_v25 = vpop.eup %5062 }
 0x7fa   : > { %3209 = vrot.lane.b32.xlu1 %v5063_v25, %s5223_s24  ;;  %3211 = vrot.lane.b32.xlu0 %v5061_v42, %s5223_s24 }
 0x7fc   : > { %v5065_v53 = vpop.eup %5064 }
 0x7fe   : > { %3213 = vrot.lane.b32.xlu1 %v5065_v53, %s5223_s24 }
 0x842   : > { %v3184_v43 = vpop.permute.xlu0 %3183 }
 0x843   : > { %v3231_v27 = vmul.f32 %v3184_v43, %v6158_v3 }
 0x846   : > { %v3186_v19 = vpop.permute.xlu1 %3185 }
 0x847   : > { %v3232_v26 = vmul.f32 %v3186_v19, %v6174_v12  ;;  %v3188_v40 = vpop.permute.xlu0 %3187  ;;  %v4678_v19 = vld [vmem:[%s5411_s27 + $0xf0] sm:$0xff]  }
 0x848   : > { %v3233_v22 = vmul.f32 %v3188_v40, %v6170_v10  ;;  %4503 = vmatprep.mubr.msk.bf16.mxu1 %vm706_vm0, %v4678_v19 }
 0x849   : > { %v3263_v9 = vpack.c.bf16 %v3232_v26, %v3231_v27  ;;  %v4679_v27 = vld [vmem:[%s5411_s27 + $0xf8] sm:$0xff]  }
 0x84a   : > { %v3190_v50 = vpop.permute.xlu1 %3189  ;;  %4504 = vmatmul.mubr.msk.bf16.gmra.mxu1 %vm706_vm0, %v4679_v27 }
 0x84b   : > { %v3234_v37 = vmul.f32 %v3190_v50, %v6183_v38  ;;  %v3192_v54 = vpop.permute.xlu0 %3191  ;;  %3279 = vrot.lane.b32.xlu0 %v3263_v9, %s5224_s25 }
 0x84c   : > { %v3235_v42 = vmul.f32 %v3192_v54, %v6187_v6 }
 0x84d   : > { %v3264_v3 = vpack.c.bf16 %v3234_v37, %v3233_v22 }
 0x84e   : > { %v3194_v12 = vpop.permute.xlu1 %3193 }
 0x84f   : > { %v3236_v25 = vmul.f32 %v3194_v12, %v6199_v30  ;;  %3281 = vrot.lane.b32.xlu1 %v3264_v3, %s5224_s25  ;;  %v3196_v10 = vpop.permute.xlu0 %3195 }
 0x850   : > { %v3237_v21 = vmul.f32 %v3196_v10, %v6195_v35 }
 0x851   : > { %v3265_v53 = vpack.c.bf16 %v3236_v25, %v3235_v42 }
 0x852   : > { %v3198_v38 = vpop.permute.xlu1 %3197 }
 0x853   : > { %v3238_v43 = vmul.f32 %v3198_v38, %v6209_v13  ;;  %3283 = vrot.lane.b32.xlu0 %v3265_v53, %s5224_s25 }
 0x855   : > { %v3266_v18 = vpack.c.bf16 %v3238_v43, %v3237_v21 }
 0x857   : > { %3285 = vrot.lane.b32.xlu1 %v3266_v18, %s5224_s25 }
 0x85f   : > { %v3200_v26 = vpop.permute.xlu0 %3199 }
 0x860   : > { %v3239_v30 = vmul.f32 %v3200_v26, %v6218_v52  ;;  %v6444_v26 = vld [vmem:[%s6773_s4] ss:$0 sm:$0xff] }
 0x863   : > { %v3202_v6 = vpop.permute.xlu1 %3201 }
 0x864   : > { %v3240_v40 = vmul.f32 %v3202_v6, %v6229_v32  ;;  %v3204_v35 = vpop.permute.xlu0 %3203 }
 0x865   : > { %v3241_v36 = vmul.f32 %v3204_v35, %v6225_v28 }
 0x866   : > { %v3267_v9 = vpack.c.bf16 %v3240_v40, %v3239_v30 }
 0x867   : > { %v3206_v13 = vpop.permute.xlu1 %3205 }
 0x868   : > { %v3242_v50 = vmul.f32 %v3206_v13, %v6237_v39  ;;  %v3208_v31 = vpop.permute.xlu0 %3207  ;;  %3287 = vrot.lane.b32.xlu0 %v3267_v9, %s5224_s25 }
 0x869   : > { %v3243_v54 = vmul.f32 %v3208_v31, %v6241_v34 }
 0x86a   : > { %v3268_v22 = vpack.c.bf16 %v3242_v50, %v3241_v36 }
 0x86c   : > { %v3210_v37 = vpop.permute.xlu1 %3209  ;;  %3289 = vrot.lane.b32.xlu1 %v3268_v22, %s5224_s25  ;;  %v3212_v3 = vpop.permute.xlu0 %3211 }
 0x86d   : > { %v3244_v52 = vmul.f32 %v3210_v37, %v6255_v29  ;;  %v3245_v42 = vmul.f32 %v3212_v3, %v6249_v16 }
 0x86f   : > { %v3269_v32 = vpack.c.bf16 %v3244_v52, %v3243_v54 }
 0x870   : > { %v3214_v12 = vpop.permute.xlu1 %3213 }
 0x871   : > { %v3246_v28 = vmul.f32 %v3214_v12, %v6261_v44  ;;  %3291 = vrot.lane.b32.xlu0 %v3269_v32, %s5224_s25 }
 0x873   : > { %v3270_v39 = vpack.c.bf16 %v3246_v28, %v3245_v42 }
 0x875   : > { %3293 = vrot.lane.b32.xlu1 %v3270_v39, %s5224_s25 }
 0x8a2   : > { %v4493_v21 = vpop.f32.mrf.mxu1 }
 0x8a3   : > { %v1406_v6 = vadd.f32 %v6444_v26, %v4493_v21 }
 0x8a4   : > { %v1397_v43 = vpop.f32.mrf.mxu1 }
 0x8a5   : > { %v1398_v35 = vadd.f32 %v6444_v26, %v1397_v43 }
 0x8a6   : > { %v4494_v18 = vpop.f32.mrf.mxu1 }
 0x8a7   : > { %v1409_v36 = vadd.f32 %v6444_v26, %v4494_v18 }
 0x8a8   : > { %v1400_v19 = vpop.f32.mrf.mxu1 }
 0x8a9   : > { %v1401_v22 = vadd.f32 %v6444_v26, %v1400_v19 }
 0x8aa   : > { %v4497_v27 = vpop.f32.mrf.mxu1 }
 0x8ab   : > { %v1422_v52 = vadd.f32 %v6444_v26, %v4497_v27 }
 0x8ac   : > { %v1413_v40 = vpop.f32.mrf.mxu1 }
 0x8ae   : > { %v4498_v54 = vpop.f32.mrf.mxu1 }
 0x8b0   : > { %v1416_v39 = vpop.f32.mrf.mxu1 }
 0x8b1   : > { %v1417_v18 = vadd.f32 %v6444_v26, %v1416_v39 }
 0x8b6   : > { %v4501_v21 = vpop.f32.mrf.mxu1 }
 0x8bd   : > { %v3280_v25 = vpop.permute.xlu0 %3279 }
 0x8be   : > { %4571 = vmatprep.mubr.msk.bf16.mxu0 %vm706_vm0, %v3280_v25 }
 0x8c1   : > { %v3282_v10 = vpop.permute.xlu1 %3281 }
 0x8c2   : > { %4572 = vmatmul.mubr.msk.bf16.vlgmr.msra.gmra.mxu0 %vm706_vm0, %v3282_v10  ;;  %v1414_v10 = vadd.f32 %v6444_v26, %v1413_v40 }
 0x8c5   : > { %v3284_v34 = vpop.permute.xlu0 %3283 }
 0x8c6   : > { %4575 = vmatprep.mubr.msk.bf16.mxu0 %vm706_vm0, %v3284_v34 }
 0x8c9   : > { %v3286_v29 = vpop.permute.xlu1 %3285 }
 0x8ca   : > { %4576 = vmatmul.mubr.msk.bf16.gmra.mxu0 %vm706_vm0, %v3286_v29 }
 0x8da   : > { %v3288_v16 = vpop.permute.xlu0 %3287 }
 0x8db   : > { %4579 = vmatprep.mubr.msk.bf16.mxu0 %vm706_vm0, %v3288_v16 }
 0x8de   : > { %v3290_v44 = vpop.permute.xlu1 %3289 }
 0x8df   : > { %4580 = vmatmul.mubr.msk.bf16.gmra.mxu0 %vm706_vm0, %v3290_v44  ;;  %v1425_v44 = vadd.f32 %v6444_v26, %v4498_v54 }
 0x8e3   : > { %v3292_v53 = vpop.permute.xlu0 %3291 }
 0x8e4   : > { %4583 = vmatprep.mubr.msk.bf16.mxu0 %vm706_vm0, %v3292_v53 }
 0x8e7   : > { %v3294_v38 = vpop.permute.xlu1 %3293 }
 0x8e8   : > { %4584 = vmatmul.mubr.msk.bf16.gmra.mxu0 %vm706_vm0, %v3294_v38 }
 0x982   : > { %v4573_v30 = vpop.f32.mrf.mxu0 }
 0x983   : > { %v3418_v9 = vadd.f32 %v4573_v30, %v1406_v6 }
 0x984   : > { %v3353_v13 = vpop.f32.mrf.mxu0 }
 0x985   : > { %v4298_v50 = vmul.f32 -1.442695, %v3418_v9  ;;  %v3416_v31 = vadd.f32 %v3353_v13, %v1398_v35  ;;  %v1429_v35 = vpop.f32.mrf.mxu1 }
 0x986   : > { %v4574_v37 = vpop.f32.mrf.mxu0 }
 0x987   : > { %5066 = vpow2.f32 %v4298_v50  ;;  %v4296_v3 = vmul.f32 -1.442695, %v3416_v31  ;;  %v3419_v32 = vadd.f32 %v4574_v37, %v1409_v36  ;;  %v4502_v37 = vpop.f32.mrf.mxu1 }
 0x988   : > { %v3356_v12 = vpop.f32.mrf.mxu0 }
 0x989   : > { %5068 = vpow2.f32 %v4296_v3  ;;  %v4299_v42 = vmul.f32 -1.442695, %v3419_v32  ;;  %v3417_v28 = vadd.f32 %v3356_v12, %v1401_v22 }
 0x98a   : > { %v4577_v25 = vpop.f32.mrf.mxu0 }
 0x98b   : > { %5070 = vpow2.f32 %v4299_v42  ;;  %v4297_v34 = vmul.f32 -1.442695, %v3417_v28  ;;  %v3422_v29 = vadd.f32 %v4577_v25, %v1422_v52  ;;  %v1432_v42 = vpop.f32.mrf.mxu1 }
 0x98c   : > { %v3369_v16 = vpop.f32.mrf.mxu0 }
 0x98d   : > { %5072 = vpow2.f32 %v4297_v34  ;;  %v4302_v53 = vmul.f32 -1.442695, %v3422_v29  ;;  %v3420_v38 = vadd.f32 %v3369_v16, %v1414_v10  ;;  %v1438_v10 = vadd.f32 %v6444_v26, %v4501_v21  ;;  %v4505_v16 = vpop.f32.mrf.mxu1 }
 0x98e   : > { %v4578_v43 = vpop.f32.mrf.mxu0 }
 0x98f   : > { %5074 = vpow2.f32 %v4302_v53  ;;  %v4300_v19 = vmul.f32 -1.442695, %v3420_v38  ;;  %v6454_v27 = vadd.f32 %v4578_v43, %v1425_v44  ;;  %v1430_v43 = vadd.f32 %v6444_v26, %v1429_v35 }
 0x990   : > { %v3372_v6 = vpop.f32.mrf.mxu0  ;;  %v1433_v35 = vadd.f32 %v6444_v26, %v1432_v42 }
 0x991   : > { %5076 = vpow2.f32 %v4300_v19  ;;  %v4303_v30 = vmul.f32 -1.442695, %v6454_v27  ;;  %v3421_v40 = vadd.f32 %v3372_v6, %v1417_v18 }
 0x993   : > { %5078 = vpow2.f32 %v4303_v30  ;;  %v4301_v13 = vmul.f32 -1.442695, %v3421_v40 }
 0x994   : > { %v5067_v36 = vpop.eup %5066 }
 0x995   : > { %5080 = vpow2.f32 %v4301_v13  ;;  %v3498_v22 = vadd.f32 1.0, %v5067_v36 }
 0x996   : > { %v5069_v50 = vpop.eup %5068  ;;  %5082 = vtanh.f32 %v3418_v9 }
 0x997   : > { %v3496_v54 = vadd.f32 1.0, %v5069_v50  ;;  %5084 = vtanh.f32 %v3416_v31 }
 0x998   : > { %v5071_v52 = vpop.eup %5070 }
 0x999   : > { %5086 = vrcp.f32 %v3496_v54  ;;  %v3499_v12 = vadd.f32 1.0, %v5071_v52 }
 0x99a   : > { %v5073_v3 = vpop.eup %5072  ;;  %5088 = vrcp.f32 %v3498_v22 }
 0x99b   : > { %5090 = vtanh.f32 %v3419_v32  ;;  %v3497_v39 = vadd.f32 1.0, %v5073_v3  ;;  %v1441_v32 = vadd.f32 %v6444_v26, %v4502_v37 }
 0x99c   : > { %v5075_v25 = vpop.eup %5074  ;;  %5092 = vtanh.f32 %v3417_v28 }
 0x99d   : > { %5094 = vrcp.f32 %v3497_v39  ;;  %v3502_v9 = vadd.f32 1.0, %v5075_v25 }
 0x99e   : > { %v5077_v34 = vpop.eup %5076  ;;  %5096 = vrcp.f32 %v3499_v12 }
 0x99f   : > { %5098 = vtanh.f32 %v3422_v29  ;;  %v3500_v44 = vadd.f32 1.0, %v5077_v34  ;;  %v4581_v53 = vpop.f32.mrf.mxu0  ;;  %v1445_v29 = vpop.f32.mrf.mxu1 }
 0x9a0   : > { %v5079_v31 = vpop.eup %5078  ;;  %5100 = vtanh.f32 %v3420_v38  ;;  %v6459_v18 = vadd.f32 %v4581_v53, %v1438_v10 }
 0x9a1   : > { %5102 = vrcp.f32 %v3500_v44  ;;  %v3385_v28 = vpop.f32.mrf.mxu0  ;;  %v3503_v21 = vadd.f32 1.0, %v5079_v31  ;;  %v4506_v12 = vpop.f32.mrf.mxu1  ;;  %v1446_v44 = vadd.f32 %v6444_v26, %v1445_v29 }
 0x9a2   : > { %v5081_v19 = vpop.eup %5080  ;;  %5104 = vtanh.f32 %v3421_v40  ;;  %v4306_v6 = vmul.f32 -1.442695, %v6459_v18  ;;  %v6463_v30 = vadd.f32 %v3385_v28, %v1430_v43  ;;  %v1454_v40 = vadd.f32 %v6444_v26, %v4505_v16 }
 0x9a3   : > { %5106 = vrcp.f32 %v3502_v9  ;;  %v3501_v13 = vadd.f32 1.0, %v5081_v19  ;;  %v4582_v36 = vpop.f32.mrf.mxu0  ;;  %v5083_v38 = vpop.eup %5082  ;;  %v1457_v43 = vadd.f32 %v6444_v26, %v4506_v12 }
 0x9a4   : > { %5108 = vpow2.f32 %v4306_v6  ;;  %v4304_v50 = vmul.f32 -1.442695, %v6463_v30  ;;  %v6467_v22 = vadd.f32 %v4582_v36, %v1441_v32  ;;  %v5085_v37 = vpop.eup %5084  ;;  %v1448_v32 = vpop.f32.mrf.mxu1 }
 0x9a5   : > { %5110 = vrcp.f32 %v3501_v13  ;;  %v3388_v54 = vpop.f32.mrf.mxu0 }
 0x9a6   : > { %v5087_v52 = vpop.eup %5086  ;;  %5112 = vrcp.f32 %v3503_v21  ;;  %v4307_v3 = vmul.f32 -1.442695, %v6467_v22  ;;  %v6471_v39 = vadd.f32 %v3388_v54, %v1433_v35 }
 0x9a7   : > { %v5089_v25 = vpop.eup %5088  ;;  %5114 = vpow2.f32 %v4304_v50  ;;  %v6475_v42 = vsel %vm5508_vm3, %v5085_v37, %v5087_v52 }
 0x9a8   : > { %v5091_v10 = vpop.eup %5090  ;;  %5116 = vtanh.f32 %v6454_v27  ;;  %v4305_v34 = vmul.f32 -1.442695, %v6471_v39  ;;  %v4585_v16 = vpop.f32.mrf.mxu0  ;;  %3592 = vrot.lane.b32.xlu0 %v6475_v42, %s5223_s24  ;;  %v6487_v27 = vsel %vm5508_vm3, %v5083_v38, %v5089_v25  ;;  %v1449_v38 = vadd.f32 %v6444_v26, %v1448_v32 }
 0x9a9   : > { %v5093_v9 = vpop.eup %5092  ;;  %5118 = vpow2.f32 %v4307_v3  ;;  %v6482_v53 = vadd.f32 %v4585_v16, %v1454_v40 }
 0x9aa   : > { %v5095_v31 = vpop.eup %5094  ;;  %v3401_v28 = vpop.f32.mrf.mxu0  ;;  %5120 = vpow2.f32 %v4305_v34 }
 0x9ab   : > { %v5097_v19 = vpop.eup %5096  ;;  %v4310_v21 = vmul.f32 -1.442695, %v6482_v53  ;;  %v3428_v6 = vadd.f32 %v3401_v28, %v1446_v44  ;;  %v6492_v29 = vsel %vm5508_vm3, %v5093_v9, %v5095_v31 }
 0x9ac   : > { %v5099_v13 = vpop.eup %5098  ;;  %v4586_v36 = vpop.f32.mrf.mxu0  ;;  %3596 = vrot.lane.b32.xlu0 %v6487_v27, %s5223_s24  ;;  %3594 = vrot.lane.b32.xlu1 %v6492_v29, %s5223_s24  ;;  %v6501_v52 = vsel %vm5508_vm3, %v5091_v10, %v5097_v19 }
 0x9ad   : > { %v5101_v35 = vpop.eup %5100  ;;  %5122 = vpow2.f32 %v4310_v21  ;;  %v4308_v50 = vmul.f32 -1.442695, %v3428_v6  ;;  %v3431_v37 = vadd.f32 %v4586_v36, %v1457_v43 }
 0x9ae   : > { %v5103_v40 = vpop.eup %5102  ;;  %v3404_v54 = vpop.f32.mrf.mxu0 }
 0x9af   : > { %v5105_v3 = vpop.eup %5104  ;;  %5124 = vpow2.f32 %v4308_v50  ;;  %v4311_v12 = vmul.f32 -1.442695, %v3431_v37  ;;  %v3429_v25 = vadd.f32 %v3404_v54, %v1449_v38  ;;  %v6505_v34 = vsel %vm5508_vm3, %v5101_v35, %v5103_v40 }
 0x9b0   : > { %v5107_v16 = vpop.eup %5106  ;;  %3598 = vrot.lane.b32.xlu1 %v6501_v52, %s5223_s24  ;;  %3600 = vrot.lane.b32.xlu0 %v6505_v34, %s5223_s24 }
 0x9b1   : > { %v5109_v26 = vpop.eup %5108  ;;  %5126 = vpow2.f32 %v4311_v12  ;;  %v4309_v9 = vmul.f32 -1.442695, %v3429_v25  ;;  %v6513_v31 = vsel %vm5508_vm3, %v5099_v13, %v5107_v16 }
 0x9b2   : > { %v5111_v10 = vpop.eup %5110  ;;  %v3506_v19 = vadd.f32 1.0, %v5109_v26 }
 0x9b3   : > { %v5113_v44 = vpop.eup %5112  ;;  %5128 = vpow2.f32 %v4309_v9  ;;  %v6517_v43 = vsel %vm5508_vm3, %v5105_v3, %v5111_v10 }
 0x9b4   : > { %v5115_v32 = vpop.eup %5114  ;;  %3604 = vrot.lane.b32.xlu0 %v6513_v31, %s5223_s24  ;;  %3602 = vrot.lane.b32.xlu1 %v6517_v43, %s5223_s24  ;;  %5130 = vtanh.f32 %v6463_v30 }
 0x9b5   : > { %v5117_v28 = vpop.eup %5116  ;;  %v3504_v21 = vadd.f32 1.0, %v5115_v32 }
 0x9b6   : > { %v5119_v36 = vpop.eup %5118  ;;  %v6526_v13 = vsel %vm5508_vm3, %v5117_v28, %v5113_v44 }
 0x9b7   : > { %5132 = vrcp.f32 %v3504_v21  ;;  %v5121_v35 = vpop.eup %5120  ;;  %v3507_v38 = vadd.f32 1.0, %v5119_v36 }
 0x9b8   : > { %5134 = vtanh.f32 %v6459_v18  ;;  %3606 = vrot.lane.b32.xlu1 %v6526_v13, %s5223_s24  ;;  %v3505_v50 = vadd.f32 1.0, %v5121_v35 }
 0x9b9   : > { %5136 = vrcp.f32 %v3506_v19 }
 0x9ba   : > { %v5123_v40 = vpop.eup %5122  ;;  %5138 = vtanh.f32 %v6471_v39 }
 0x9bb   : > { %5140 = vrcp.f32 %v3505_v50  ;;  %v3510_v30 = vadd.f32 1.0, %v5123_v40 }
 0x9bc   : > { %v5125_v54 = vpop.eup %5124  ;;  %5142 = vtanh.f32 %v6467_v22 }
 0x9bd   : > { %5144 = vrcp.f32 %v3507_v38  ;;  %v3508_v3 = vadd.f32 1.0, %v5125_v54 }
 0x9be   : > { %v5127_v12 = vpop.eup %5126  ;;  %5146 = vtanh.f32 %v3428_v6 }
 0x9bf   : > { %5148 = vrcp.f32 %v3508_v3  ;;  %v3511_v16 = vadd.f32 1.0, %v5127_v12 }
 0x9c0   : > { %v5129_v18 = vpop.eup %5128  ;;  %5150 = vtanh.f32 %v6482_v53 }
 0x9c1   : > { %5152 = vrcp.f32 %v3510_v30  ;;  %v3509_v26 = vadd.f32 1.0, %v5129_v18  ;;  %v5131_v9 = vpop.eup %5130 }
 0x9c2   : > { %5154 = vtanh.f32 %v3429_v25 }
 0x9c3   : > { %5156 = vrcp.f32 %v3509_v26 }
 0x9c4   : > { %v5133_v39 = vpop.eup %5132  ;;  %5158 = vrcp.f32 %v3511_v16 }
 0x9c5   : > { %v5135_v10 = vpop.eup %5134  ;;  %v6536_v22 = vsel %vm5508_vm3, %v5131_v9, %v5133_v39  ;;  %5160 = vtanh.f32 %v3431_v37 }
 0x9c6   : > { %v5137_v44 = vpop.eup %5136  ;;  %3608 = vrot.lane.b32.xlu0 %v6536_v22, %s5223_s24 }
 0x9c7   : > { %v5139_v6 = vpop.eup %5138  ;;  %v6542_v25 = vsel %vm5508_vm3, %v5135_v10, %v5137_v44 }
 0x9c8   : > { %v5141_v53 = vpop.eup %5140 }
 0x9c9   : > { %v5143_v32 = vpop.eup %5142  ;;  %v6546_v28 = vsel %vm5508_vm3, %v5139_v6, %v5141_v53 }
 0x9ca   : > { %v5145_v19 = vpop.eup %5144  ;;  %3612 = vrot.lane.b32.xlu0 %v6542_v25, %s5223_s24  ;;  %3610 = vrot.lane.b32.xlu1 %v6546_v28, %s5223_s24 }
 0x9cb   : > { %v5147_v21 = vpop.eup %5146  ;;  %v6554_v35 = vsel %vm5508_vm3, %v5143_v32, %v5145_v19 }
 0x9cc   : > { %v5149_v36 = vpop.eup %5148 }
 0x9cd   : > { %v5151_v37 = vpop.eup %5150  ;;  %v6558_v38 = vsel %vm5508_vm3, %v5147_v21, %v5149_v36 }
 0x9ce   : > { %v5153_v50 = vpop.eup %5152  ;;  %3614 = vrot.lane.b32.xlu1 %v6554_v35, %s5223_s24  ;;  %3616 = vrot.lane.b32.xlu0 %v6558_v38, %s5223_s24 }
 0x9cf   : > { %v5155_v40 = vpop.eup %5154  ;;  %v6566_v30 = vsel %vm5508_vm3, %v5151_v37, %v5153_v50 }
 0x9d0   : > { %v5157_v54 = vpop.eup %5156 }
 0x9d1   : > { %v6570_v3 = vsel %vm5508_vm3, %v5155_v40, %v5157_v54  ;;  %v5159_v12 = vpop.eup %5158 }
 0x9d2   : > { %3620 = vrot.lane.b32.xlu0 %v6566_v30, %s5223_s24  ;;  %3618 = vrot.lane.b32.xlu1 %v6570_v3, %s5223_s24  ;;  %v5161_v18 = vpop.eup %5160 }
 0x9d3   : > { %v6578_v16 = vsel %vm5508_vm3, %v5161_v18, %v5159_v12 }
 0x9d6   : > { %3622 = vrot.lane.b32.xlu1 %v6578_v16, %s5223_s24 }
 0xa1a   : > { %v3593_v26 = vpop.permute.xlu0 %3592 }
 0xa1b   : > { %v3640_v9 = vmul.f32 %v3593_v26, %v6475_v42 }
 0xa1d   : > { %3672 = vrot.lane.b32.xlu0 %v3640_v9, %s5224_s25 }
 0xa1e   : > { %v3595_v39 = vpop.permute.xlu1 %3594  ;;  %v3597_v10 = vpop.permute.xlu0 %3596 }
 0xa1f   : > { %v3641_v44 = vmul.f32 %v3595_v39, %v6492_v29  ;;  %v3642_v6 = vmul.f32 %v3597_v10, %v6487_v27 }
 0xa21   : > { %3674 = vrot.lane.b32.xlu1 %v3641_v44, %s5224_s25  ;;  %3676 = vrot.lane.b32.xlu0 %v3642_v6, %s5224_s25 }
 0xa22   : > { %v3599_v41 = vpop.permute.xlu1 %3598  ;;  %v3601_v53 = vpop.permute.xlu0 %3600 }
 0xa23   : > { %v3643_v32 = vmul.f32 %v3599_v41, %v6501_v52  ;;  %v3644_v19 = vmul.f32 %v3601_v53, %v6505_v34 }
 0xa25   : > { %3678 = vrot.lane.b32.xlu1 %v3643_v32, %s5224_s25  ;;  %3680 = vrot.lane.b32.xlu0 %v3644_v19, %s5224_s25 }
 0xa26   : > { %v3603_v21 = vpop.permute.xlu1 %3602  ;;  %v3605_v36 = vpop.permute.xlu0 %3604 }
 0xa27   : > { %v3645_v37 = vmul.f32 %v3603_v21, %v6517_v43  ;;  %v3646_v50 = vmul.f32 %v3605_v36, %v6513_v31 }
 0xa29   : > { %3682 = vrot.lane.b32.xlu1 %v3645_v37, %s5224_s25  ;;  %3684 = vrot.lane.b32.xlu0 %v3646_v50, %s5224_s25 }
 0xa2a   : > { %v3607_v40 = vpop.permute.xlu1 %3606 }
 0xa2b   : > { %v3647_v54 = vmul.f32 %v3607_v40, %v6526_v13  ;;  %v4680_v40 = vld [vmem:[%s6775_s6 + $0x8] sm:$0xff]  }
 0xa2c   : > { %4587 = vmatprep.subr.bf16.mxu1 %v4680_v40 }
 0xa2d   : > { %3686 = vrot.lane.b32.xlu1 %v3647_v54, %s5224_s25  ;;  %4588 = vmatpush3.bf16.msra.mxu1 %v4680_v40  ;;  %v3560_v54 = vmul.f32 %v6475_v42, %v6299_v23  ;;  %v3564_v23 = vmul.f32 %v6505_v34, %v6318_v0  ;;  %v3567_v0 = vmul.f32 %v6526_v13, %v6334_v47 }
 0xa38   : > { %v3609_v12 = vpop.permute.xlu0 %3608 }
 0xa39   : > { %v3648_v18 = vmul.f32 %v3609_v12, %v6536_v22 }
 0xa3b   : > { %3688 = vrot.lane.b32.xlu0 %v3648_v18, %s5224_s25 }
 0xa3c   : > { %v3611_v26 = vpop.permute.xlu1 %3610  ;;  %v3613_v9 = vpop.permute.xlu0 %3612 }
 0xa3d   : > { %v3649_v39 = vmul.f32 %v3611_v26, %v6546_v28  ;;  %v3650_v10 = vmul.f32 %v3613_v9, %v6542_v25  ;;  %v3561_v26 = vmul.f32 %v6492_v29, %v6306_v14  ;;  %v3562_v9 = vmul.f32 %v6487_v27, %v6308_v20 }
 0xa3e   : > { %v3565_v14 = vmul.f32 %v6517_v43, %v6326_v46  ;;  %v3566_v20 = vmul.f32 %v6513_v31, %v6328_v45 }
 0xa3f   : > { %3690 = vrot.lane.b32.xlu1 %v3649_v39, %s5224_s25  ;;  %3692 = vrot.lane.b32.xlu0 %v3650_v10, %s5224_s25 }
 0xa40   : > { %v3615_v44 = vpop.permute.xlu1 %3614  ;;  %v3617_v6 = vpop.permute.xlu0 %3616 }
 0xa41   : > { %v3651_v41 = vmul.f32 %v3615_v44, %v6554_v35  ;;  %v3652_v53 = vmul.f32 %v3617_v6, %v6558_v38 }
 0xa43   : > { %3694 = vrot.lane.b32.xlu1 %v3651_v41, %s5224_s25  ;;  %3696 = vrot.lane.b32.xlu0 %v3652_v53, %s5224_s25  ;;  %v3563_v41 = vmul.f32 %v6501_v52, %v6316_v60 }
 0xa44   : > { %v3619_v32 = vpop.permute.xlu1 %3618  ;;  %v3621_v19 = vpop.permute.xlu0 %3620 }
 0xa45   : > { %v3653_v21 = vmul.f32 %v3619_v32, %v6570_v3  ;;  %v3654_v36 = vmul.f32 %v3621_v19, %v6566_v30 }
 0xa47   : > { %3698 = vrot.lane.b32.xlu1 %v3653_v21, %s5224_s25  ;;  %3700 = vrot.lane.b32.xlu0 %v3654_v36, %s5224_s25 }
 0xa48   : > { %v3623_v37 = vpop.permute.xlu1 %3622 }
 0xa49   : > { %v3655_v50 = vmul.f32 %v3623_v37, %v6578_v16 }
 0xa4b   : > { %3702 = vrot.lane.b32.xlu1 %v3655_v50, %s5224_s25 }
 0xa8f   : > { %v3673_v12 = vpop.permute.xlu0 %3672 }
 0xa90   : > { %v3720_v18 = vadd.f32 %v3673_v12, %v3560_v54 }
 0xa92   : > { %5162 = vtanh.f32 %v3720_v18 }
 0xa93   : > { %v3675_v39 = vpop.permute.xlu1 %3674  ;;  %v3677_v10 = vpop.permute.xlu0 %3676 }
 0xa94   : > { %v3721_v44 = vadd.f32 %v3675_v39, %v3561_v26  ;;  %v3722_v6 = vadd.f32 %v3677_v10, %v3562_v9  ;;  %v3568_v39 = vmul.f32 %v6536_v22, %v6345_v48 }
 0xa96   : > { %5164 = vtanh.f32 %v3721_v44 }
 0xa97   : > { %5166 = vtanh.f32 %v3722_v6  ;;  %v3679_v53 = vpop.permute.xlu1 %3678  ;;  %v3681_v32 = vpop.permute.xlu0 %3680 }
 0xa98   : > { %v3723_v19 = vadd.f32 %v3679_v53, %v3563_v41  ;;  %v3724_v21 = vadd.f32 %v3681_v32, %v3564_v23  ;;  %v3569_v41 = vmul.f32 %v6546_v28, %v6354_v51  ;;  %v3570_v23 = vmul.f32 %v6542_v25, %v6356_v17 }
 0xa99   : > { %v3573_v17 = vmul.f32 %v6570_v3, %v6376_v15 }
 0xa9a   : > { %5168 = vtanh.f32 %v3723_v19 }
 0xa9b   : > { %5170 = vtanh.f32 %v3724_v21  ;;  %v3683_v36 = vpop.permute.xlu1 %3682  ;;  %v3685_v37 = vpop.permute.xlu0 %3684  ;;  %v3571_v21 = vmul.f32 %v6554_v35, %v6364_v62 }
 0xa9c   : > { %v3725_v50 = vadd.f32 %v3683_v36, %v3565_v14  ;;  %v3726_v60 = vadd.f32 %v3685_v37, %v3566_v20  ;;  %v3572_v14 = vmul.f32 %v6558_v38, %v6366_v33  ;;  %v3575_v33 = vmul.f32 %v6578_v16, %v6383_v24 }
 0xa9e   : > { %5172 = vtanh.f32 %v3725_v50  ;;  %v3574_v50 = vmul.f32 %v6566_v30, %v6374_v49 }
 0xa9f   : > { %v5163_v40 = vpop.eup %5162  ;;  %5174 = vtanh.f32 %v3726_v60  ;;  %v3687_v54 = vpop.permute.xlu1 %3686 }
 0xaa0   : > { %v3727_v12 = vadd.f32 %v3687_v54, %v3567_v0  ;;  %3768 = vrot.lane.b32.xlu0 %v5163_v40, %s5223_s24 }
 0xaa2   : > { %5176 = vtanh.f32 %v3727_v12 }
 0xaa3   : > { %v5165_v46 = vpop.eup %5164 }
 0xaa4   : > { %v5167_v18 = vpop.eup %5166  ;;  %3770 = vrot.lane.b32.xlu1 %v5165_v46, %s5223_s24 }
 0xaa5   : > { %3772 = vrot.lane.b32.xlu0 %v5167_v18, %s5223_s24 }
 0xaa7   : > { %v5169_v45 = vpop.eup %5168 }
 0xaa8   : > { %v5171_v26 = vpop.eup %5170  ;;  %3774 = vrot.lane.b32.xlu1 %v5169_v45, %s5223_s24  ;;  %v4681_v45 = vld [vmem:[%s6775_s6] sm:$0xff]  }
 0xaa9   : > { %3776 = vrot.lane.b32.xlu0 %v5171_v26, %s5223_s24  ;;  %4589 = vmatprep.subr.bf16.mxu1 %v4681_v45 }
 0xaaa   : > { %4590 = vmatpush3.bf16.msra.mxu1 %v4681_v45 }
 0xaab   : > { %v5173_v47 = vpop.eup %5172 }
 0xaac   : > { %v5175_v9 = vpop.eup %5174  ;;  %3778 = vrot.lane.b32.xlu1 %v5173_v47, %s5223_s24 }
 0xaad   : > { %v3689_v10 = vpop.permute.xlu0 %3688  ;;  %3780 = vrot.lane.b32.xlu0 %v5175_v9, %s5223_s24 }
 0xaae   : > { %v3728_v44 = vadd.f32 %v3689_v10, %v3568_v39 }
 0xaaf   : > { %v5177_v6 = vpop.eup %5176 }
 0xab0   : > { %5178 = vtanh.f32 %v3728_v44  ;;  %3782 = vrot.lane.b32.xlu1 %v5177_v6, %s5223_s24 }
 0xab1   : > { %v3691_v53 = vpop.permute.xlu1 %3690  ;;  %v3693_v32 = vpop.permute.xlu0 %3692 }
 0xab2   : > { %v3729_v19 = vadd.f32 %v3691_v53, %v3569_v41  ;;  %v3730_v48 = vadd.f32 %v3693_v32, %v3570_v23 }
 0xab4   : > { %5180 = vtanh.f32 %v3729_v19 }
 0xab5   : > { %5182 = vtanh.f32 %v3730_v48  ;;  %v3695_v20 = vpop.permute.xlu1 %3694  ;;  %v3697_v36 = vpop.permute.xlu0 %3696 }
 0xab6   : > { %v3731_v51 = vadd.f32 %v3695_v20, %v3571_v21  ;;  %v3732_v37 = vadd.f32 %v3697_v36, %v3572_v14 }
 0xab8   : > { %5184 = vtanh.f32 %v3731_v51 }
 0xab9   : > { %5186 = vtanh.f32 %v3732_v37  ;;  %v3699_v60 = vpop.permute.xlu1 %3698  ;;  %v3701_v0 = vpop.permute.xlu0 %3700 }
 0xaba   : > { %v3733_v40 = vadd.f32 %v3699_v60, %v3573_v17  ;;  %v3734_v62 = vadd.f32 %v3701_v0, %v3574_v50 }
 0xabc   : > { %5188 = vtanh.f32 %v3733_v40 }
 0xabd   : > { %v5179_v54 = vpop.eup %5178  ;;  %5190 = vtanh.f32 %v3734_v62  ;;  %v3703_v12 = vpop.permute.xlu1 %3702 }
 0xabe   : > { %v3735_v46 = vadd.f32 %v3703_v12, %v3575_v33  ;;  %3784 = vrot.lane.b32.xlu0 %v5179_v54, %s5223_s24 }
 0xac0   : > { %5192 = vtanh.f32 %v3735_v46 }
 0xac1   : > { %v5181_v15 = vpop.eup %5180 }
 0xac2   : > { %v5183_v18 = vpop.eup %5182  ;;  %3786 = vrot.lane.b32.xlu1 %v5181_v15, %s5223_s24 }
 0xac3   : > { %3788 = vrot.lane.b32.xlu0 %v5183_v18, %s5223_s24 }
 0xac5   : > { %v5185_v49 = vpop.eup %5184 }
 0xac6   : > { %v5187_v26 = vpop.eup %5186  ;;  %3790 = vrot.lane.b32.xlu1 %v5185_v49, %s5223_s24 }
 0xac7   : > { %3792 = vrot.lane.b32.xlu0 %v5187_v26, %s5223_s24 }
 0xac9   : > { %v5189_v24 = vpop.eup %5188 }
 0xaca   : > { %v5191_v47 = vpop.eup %5190  ;;  %3794 = vrot.lane.b32.xlu1 %v5189_v24, %s5223_s24 }
 0xacb   : > { %3796 = vrot.lane.b32.xlu0 %v5191_v47, %s5223_s24  ;;  %v6703_v47 = vld [vmem:[%s6776_s7] ss:$0 sm:$0xff] }
 0xacd   : > { %v5193_v9 = vpop.eup %5192 }
 0xace   : > { %3798 = vrot.lane.b32.xlu1 %v5193_v9, %s5223_s24  ;;  %v774_v9 = vadd.f32 %v5437_v55, %v6703_v47 }
 0xb12   : > { %v3769_v39 = vpop.permute.xlu0 %3768 }
 0xb13   : > { %v3816_v44 = vmul.f32 %v3769_v39, %v6475_v42 }
 0xb16   : > { %v3771_v10 = vpop.permute.xlu1 %3770 }
 0xb17   : > { %v3817_v6 = vmul.f32 %v3771_v10, %v6492_v29  ;;  %v3773_v41 = vpop.permute.xlu0 %3772  ;;  %v766_v10 = vadd.f32 %v6703_v47, %v5439_v56 }
 0xb18   : > { %v3818_v32 = vmul.f32 %v3773_v41, %v6487_v27  ;;  %v777_v41 = vadd.f32 %v5441_v57, %v6703_v47  ;;  %v782_v57 = vadd.f32 %v6703_v47, %v5447_v61 }
 0xb19   : > { %v3832_v23 = vpack.c.bf16 %v3817_v6, %v3816_v44 }
 0xb1a   : > { %v3775_v53 = vpop.permute.xlu1 %3774 }
 0xb1b   : > { %v3819_v19 = vmul.f32 %v3775_v53, %v6501_v52  ;;  %v3777_v48 = vpop.permute.xlu0 %3776  ;;  %3852 = vrot.lane.b32.xlu0 %v3832_v23, %s5224_s25 }
 0xb1c   : > { %v3820_v20 = vmul.f32 %v3777_v48, %v6505_v34 }
 0xb1d   : > { %v3833_v21 = vpack.c.bf16 %v3819_v19, %v3818_v32  ;;  %v769_v32 = vadd.f32 %v6703_v47, %v5443_v58 }
 0xb1e   : > { %v3779_v14 = vpop.permute.xlu1 %3778 }
 0xb1f   : > { %v3821_v36 = vmul.f32 %v3779_v14, %v6517_v43  ;;  %3854 = vrot.lane.b32.xlu1 %v3833_v21, %s5224_s25  ;;  %v3781_v42 = vpop.permute.xlu0 %3780  ;;  %v790_v21 = vadd.f32 %v5445_v59, %v6703_v47 }
 0xb20   : > { %v3822_v37 = vmul.f32 %v3781_v42, %v6513_v31 }
 0xb21   : > { %v3834_v29 = vpack.c.bf16 %v3821_v36, %v3820_v20 }
 0xb22   : > { %v3783_v51 = vpop.permute.xlu1 %3782 }
 0xb23   : > { %v3823_v27 = vmul.f32 %v3783_v51, %v6526_v13  ;;  %3856 = vrot.lane.b32.xlu0 %v3834_v29, %s5224_s25  ;;  %v793_v51 = vadd.f32 %v5449_v63, %v6703_v47  ;;  %v806_v63 = vadd.f32 %v5453_v2, %v6703_v47 }
 0xb25   : > { %v3835_v52 = vpack.c.bf16 %v3823_v27, %v3822_v37 }
 0xb27   : > { %3858 = vrot.lane.b32.xlu1 %v3835_v52, %s5224_s25  ;;  %v785_v52 = vadd.f32 %v6703_v47, %v5451_v1 }
 0xb30   : > { %v3785_v17 = vpop.permute.xlu0 %3784 }
 0xb31   : > { %v3824_v34 = vmul.f32 %v3785_v17, %v6536_v22 }
 0xb34   : > { %v3787_v50 = vpop.permute.xlu1 %3786 }
 0xb35   : > { %v3825_v43 = vmul.f32 %v3787_v50, %v6546_v28  ;;  %v3789_v60 = vpop.permute.xlu0 %3788 }
 0xb36   : > { %v3826_v62 = vmul.f32 %v3789_v60, %v6542_v25 }
 0xb37   : > { %v3836_v0 = vpack.c.bf16 %v3825_v43, %v3824_v34 }
 0xb38   : > { %v3791_v40 = vpop.permute.xlu1 %3790 }
 0xb39   : > { %v3827_v31 = vmul.f32 %v3791_v40, %v6554_v35  ;;  %v3793_v33 = vpop.permute.xlu0 %3792  ;;  %3860 = vrot.lane.b32.xlu0 %v3836_v0, %s5224_s25  ;;  %v798_v40 = vadd.f32 %v6703_v47, %v5455_v4  ;;  %v822_v4 = vadd.f32 %v5461_v8, %v6703_v47 }
 0xb3a   : > { %v3828_v12 = vmul.f32 %v3793_v33, %v6558_v38 }
 0xb3b   : > { %v3837_v13 = vpack.c.bf16 %v3827_v31, %v3826_v62  ;;  %v809_v31 = vadd.f32 %v5457_v5, %v6703_v47  ;;  %v814_v5 = vadd.f32 %v6703_v47, %v5468_v11 }
 0xb3c   : > { %v3795_v54 = vpop.permute.xlu1 %3794 }
 0xb3d   : > { %v3829_v46 = vmul.f32 %v3795_v54, %v6570_v3  ;;  %3862 = vrot.lane.b32.xlu1 %v3837_v13, %s5224_s25  ;;  %v3797_v22 = vpop.permute.xlu0 %3796 }
 0xb3e   : > { %v3830_v18 = vmul.f32 %v3797_v22, %v6566_v30 }
 0xb3f   : > { %v3838_v28 = vpack.c.bf16 %v3829_v46, %v3828_v12  ;;  %v801_v12 = vadd.f32 %v6703_v47, %v5459_v7 }
 0xb40   : > { %v3799_v15 = vpop.permute.xlu1 %3798 }
 0xb41   : > { %v3831_v25 = vmul.f32 %v3799_v15, %v6578_v16  ;;  %3864 = vrot.lane.b32.xlu0 %v3838_v28, %s5224_s25 }
 0xb43   : > { %v3839_v35 = vpack.c.bf16 %v3831_v25, %v3830_v18 }
 0xb45   : > { %3866 = vrot.lane.b32.xlu1 %v3839_v35, %s5224_s25  ;;  %s6713_s25 = scalar_lea.vmem %s6777_s8, %s4135_s21 }
 0xb8d   : > { %v3853_v49 = vpop.permute.xlu0 %3852 }
 0xb8e   : > { %4591 = vmatprep.mubr.msk.bf16.mxu1 %vm706_vm0, %v3853_v49  ;;  %v6782_v49 = vld [vmem:[#allocation4_spill] sm:$0xff] }
 0xb91   : > { %v3855_v38 = vpop.permute.xlu1 %3854 }
 0xb92   : > { %4592 = vmatmul.mubr.msk.bf16.vlgmr.msra.gmra.mxu1 %vm706_vm0, %v3855_v38  ;;  %v825_v38 = vadd.f32 %v6782_v49, %v6703_v47 }
 0xb95   : > { %v3857_v3 = vpop.permute.xlu0 %3856 }
 0xb96   : > { %4595 = vmatprep.mubr.msk.bf16.mxu1 %vm706_vm0, %v3857_v3 }
 0xb99   : > { %v3859_v45 = vpop.permute.xlu1 %3858 }
 0xb9a   : > { %4596 = vmatmul.mubr.msk.bf16.gmra.mxu1 %vm706_vm0, %v3859_v45 }
 0xbab   : > { %v3861_v30 = vpop.permute.xlu0 %3860 }
 0xbac   : > { %4599 = vmatprep.mubr.msk.bf16.mxu1 %vm706_vm0, %v3861_v30  ;;  %v6783_v30 = vld [vmem:[#allocation5_spill] sm:$0xff] }
 0xbaf   : > { %v3863_v16 = vpop.permute.xlu1 %3862 }
 0xbb0   : > { %4600 = vmatmul.mubr.msk.bf16.gmra.mxu1 %vm706_vm0, %v3863_v16  ;;  %v817_v16 = vadd.f32 %v6703_v47, %v6783_v30 }
 0xbb3   : > { %v3865_v26 = vpop.permute.xlu0 %3864 }
 0xbb4   : > { %4603 = vmatprep.mubr.msk.bf16.mxu1 %vm706_vm0, %v3865_v26 }
 0xbb7   : > { %v3867_v24 = vpop.permute.xlu1 %3866 }
 0xbb8   : > { %4604 = vmatmul.mubr.msk.bf16.gmra.mxu1 %vm706_vm0, %v3867_v24 }
 0xc52   : > { %v4593_v39 = vpop.f32.mrf.mxu1 }
 0xc53   : > { %v4003_v44 = vadd.f32 %v4593_v39, %v774_v9 }
 0xc54   : > { %v3938_v6 = vpop.f32.mrf.mxu1 }
 0xc55   : > { %v4019_v23 = vmax.f32 %v4003_v44, 0.0  ;;  %v4001_v55 = vadd.f32 %v3938_v6, %v766_v10 }
 0xc56   : > { %v4594_v53 = vpop.f32.mrf.mxu1 }
 0xc57   : > { %4035 = vst [vmem:[%s6713_s25 + $0x10] sm:$0xff] %v4019_v23  ;;  %v4017_v56 = vmax.f32 %v4001_v55, 0.0  ;;  %v4004_v19 = vadd.f32 %v4594_v53, %v777_v41 }
 0xc58   : > { %v3941_v48 = vpop.f32.mrf.mxu1 }
 0xc59   : > { %4033 = vst [vmem:[%s6713_s25] sm:$0xff] %v4017_v56  ;;  %v4020_v14 = vmax.f32 %v4004_v19, 0.0  ;;  %v4002_v20 = vadd.f32 %v3941_v48, %v769_v32 }
 0xc5a   : > { %v4597_v36 = vpop.f32.mrf.mxu1 }
 0xc5b   : > { %4036 = vst [vmem:[%s6713_s25 + $0x18] sm:$0xff] %v4020_v14  ;;  %v4018_v42 = vmax.f32 %v4002_v20, 0.0  ;;  %v4007_v58 = vadd.f32 %v4597_v36, %v790_v21 }
 0xc5c   : > { %v3954_v29 = vpop.f32.mrf.mxu1 }
 0xc5d   : > { %4034 = vst [vmem:[%s6713_s25 + $0x8] sm:$0xff] %v4018_v42  ;;  %v4023_v59 = vmax.f32 %v4007_v58, 0.0  ;;  %v4005_v37 = vadd.f32 %v3954_v29, %v782_v57 }
 0xc5e   : > { %v4598_v27 = vpop.f32.mrf.mxu1 }
 0xc5f   : > { %4039 = vst [vmem:[%s6713_s25 + $0x30] sm:$0xff] %v4023_v59  ;;  %v4021_v17 = vmax.f32 %v4005_v37, 0.0  ;;  %v4008_v50 = vadd.f32 %v4598_v27, %v793_v51 }
 0xc60   : > { %v3957_v61 = vpop.f32.mrf.mxu1 }
 0xc61   : > { %4037 = vst [vmem:[%s6713_s25 + $0x20] sm:$0xff] %v4021_v17  ;;  %v4024_v34 = vmax.f32 %v4008_v50, 0.0  ;;  %v4006_v43 = vadd.f32 %v3957_v61, %v785_v52 }
 0xc63   : > { %4040 = vst [vmem:[%s6713_s25 + $0x38] sm:$0xff] %v4024_v34  ;;  %v4022_v60 = vmax.f32 %v4006_v43, 0.0 }
 0xc65   : > { %4038 = vst [vmem:[%s6713_s25 + $0x28] sm:$0xff] %v4022_v60 }
 0xc70   : > { %v4601_v0 = vpop.f32.mrf.mxu1 }
 0xc71   : > { %v4011_v1 = vadd.f32 %v4601_v0, %v806_v63 }
 0xc72   : > { %v3970_v62 = vpop.f32.mrf.mxu1 }
 0xc73   : > { %v4027_v33 = vmax.f32 %v4011_v1, 0.0  ;;  %v4009_v13 = vadd.f32 %v3970_v62, %v798_v40 }
 0xc74   : > { %v4602_v54 = vpop.f32.mrf.mxu1 }
 0xc75   : > { %4043 = vst [vmem:[%s6713_s25 + $0x50] sm:$0xff] %v4027_v33  ;;  %v4025_v46 = vmax.f32 %v4009_v13, 0.0  ;;  %v4012_v2 = vadd.f32 %v4602_v54, %v809_v31 }
 0xc76   : > { %v3973_v22 = vpop.f32.mrf.mxu1 }
 0xc77   : > { %4041 = vst [vmem:[%s6713_s25 + $0x40] sm:$0xff] %v4025_v46  ;;  %v4028_v28 = vmax.f32 %v4012_v2, 0.0  ;;  %v4010_v15 = vadd.f32 %v3973_v22, %v801_v12 }
 0xc78   : > { %v4605_v18 = vpop.f32.mrf.mxu1 }
 0xc79   : > { %4044 = vst [vmem:[%s6713_s25 + $0x58] sm:$0xff] %v4028_v28  ;;  %v4026_v25 = vmax.f32 %v4010_v15, 0.0  ;;  %v4015_v7 = vadd.f32 %v4605_v18, %v822_v4 }
 0xc7a   : > { %v3986_v35 = vpop.f32.mrf.mxu1 }
 0xc7b   : > { %4042 = vst [vmem:[%s6713_s25 + $0x48] sm:$0xff] %v4026_v25  ;;  %v4031_v8 = vmax.f32 %v4015_v7, 0.0  ;;  %v4013_v3 = vadd.f32 %v3986_v35, %v814_v5 }
 0xc7c   : > { %v4606_v45 = vpop.f32.mrf.mxu1 }
 0xc7d   : > { %4047 = vst [vmem:[%s6713_s25 + $0x70] sm:$0xff] %v4031_v8  ;;  %v4029_v26 = vmax.f32 %v4013_v3, 0.0  ;;  %v4016_v24 = vadd.f32 %v4606_v45, %v825_v38 }
 0xc7e   : > { %v3989_v11 = vpop.f32.mrf.mxu1 }
 0xc7f   : > { %4045 = vst [vmem:[%s6713_s25 + $0x60] sm:$0xff] %v4029_v26  ;;  %v4032_v9 = vmax.f32 %v4016_v24, 0.0  ;;  %v4014_v39 = vadd.f32 %v3989_v11, %v817_v16 }
 0xc81   : > { %4048 = vst [vmem:[%s6713_s25 + $0x78] sm:$0xff] %v4032_v9  ;;  %v4030_v10 = vmax.f32 %v4014_v39, 0.0 }
 0xc83   : > { %4046 = vst [vmem:[%s6713_s25 + $0x68] sm:$0xff] %v4030_v10 }
 0xc84 PF: > { %p15_p9 = scmp.ge.s32.totalorder %s5287_s9, 4   ;;  %s6784_s27 = smov %s5216_s28 }
 0xc85   : > { %s6785_s28 = smov %s5296_s12  ;;  %s6786_s29 = smov %s5287_s9 }
 0xc86   :  { %17 = sbr.rel (!%p15_p9) target bundleno = 2 (0x2), region = 131 }

// kernel: sage_forward.5
= control target key start
LH: loop header
LB: loop body
LE: loop exit
PB: predicated region body
PF: predicated region fallthrough
CT: control target
= control target key end

     0   :  { %s5254_s27 = smov 0   ;;  %s5256_s28 = smov 0   ;;  %s6735_s0 = inlined_call_operand.vmem [shape: bf16[4,256,32], index: 0, kind: input, shape index: {}]   ;;  %s6736_s1 = inlined_call_operand.vmem [shape: bf16[256,32], index: 1, kind: input, shape index: {}]   ;;  %s6737_s2 = inlined_call_operand.vmem [shape: bf16[32,128], index: 2, kind: input, shape index: {}]   ;;  %s6738_s3 = inlined_call_operand.vmem [shape: bf16[32,128], index: 3, kind: input, shape index: {}]   ;;  %s6739_s4 = inlined_call_operand.vmem [shape: f32[1,128], index: 4, kind: input, shape index: {}]   ;;  %s6740_s5 = inlined_call_operand.vmem [shape: bf16[32,128], index: 5, kind: input, shape index: {}]   ;;  %s6741_s6 = inlined_call_operand.vmem [shape: bf16[32,128], index: 6, kind: input, shape index: {}]   ;;  %s6742_s7 = inlined_call_operand.vmem [shape: f32[1,128], index: 7, kind: input, shape index: {}]   ;;  %s6743_s8 = inlined_call_operand.vmem [shape: f32[256,128], index: 8, kind: output, shape index: {}]  }
   0x1   :  { %s5258_s29 = smov 0  }
   0x2 LB: > { %s4107_s30 = sadd.s32 4294967295, %s5204_s29   ;;  %s5271_s9 = sadd.s32 1, %s5204_s29   ;;  %s5204_s29 = sphi %s5258_s29, %s6752_s29   ;;  %s5200_s28 = sphi %s5256_s28, %s6751_s28   ;;  %s5196_s27 = sphi %s5254_s27, %s6750_s27  }
   0x3   : > { %s22_s10 = ssub.s32 %s5204_s29, %s5271_s9  ;;  %s25_s11 = sadd.s32 1, %s5200_s28 }
   0x4   : > { %p23_p0 = scmp.eq.s32.totalorder %s22_s10, 0  ;;  %p32_p1 = scmp.ne.s32.totalorder %s5200_s28, %s5196_s27 }
   0x5   : > { %p33_p2 = scmp.eq.s32.totalorder %s5204_s29, 0  ;;  %p4110_p4 = scmp.ge.s32.totalorder %s5204_s29, 2 }
   0x6   : > { %s5280_s12 = scalar_select %p23_p0, %s5200_s28, %s25_s11  }
   0x7   : > { %p34_p3 = por %p33_p2, %p32_p1  ;;  %254 = sbr.rel (%p4110_p4) target bundleno = 32 (0x20), region = 40 }
   0xc   : > { %257 = sbr.rel (!%p34_p3) target bundleno = 32 (0x20), region = 44  ;;  %s259_s13 = sand.u32 (%p34_p3), 1, %s5200_s28  }
   0xd   : > { %s4308_s14 = sshll.u32 (%p34_p3), %s5204_s29, 6  ;;  %s4111_s15 = sshll.u32 (%p34_p3), %s259_s13, 8 }
   0xe   : > { %s5288_s18 = scalar_lea.vmem (%p34_p3), %s6735_s0, %s4308_s14  ;;  %s5293_s19 = scalar_lea.vmem (%p34_p3), [#allocation3], %s4111_s15 }
   0xf   : > { %v281_v0 = vld [vmem:[%s5288_s18] sm:$0xff] (%p34_p3)   ;;  %v285_v1 = vld [vmem:[%s5288_s18 + $0x8] sm:$0xff] (%p34_p3)   ;;  %v289_v2 = vld [vmem:[%s5288_s18 + $0x10] sm:$0xff] (%p34_p3)  }
  0x10   : > { %282 = vst [vmem:[%s5293_s19] sm:$0xff] (%p34_p3), %v281_v0   ;;  %286 = vst [vmem:[%s5293_s19 + $0x8] sm:$0xff] (%p34_p3), %v285_v1   ;;  %v293_v3 = vld [vmem:[%s5288_s18 + $0x18] sm:$0xff] (%p34_p3)   ;;  %v297_v4 = vld [vmem:[%s5288_s18 + $0x20] sm:$0xff] (%p34_p3)  }
  0x11   : > { %290 = vst [vmem:[%s5293_s19 + $0x10] sm:$0xff] %v289_v2   ;;  %v301_v5 = vld [vmem:[%s5288_s18 + $0x28] sm:$0xff]   ;;  %294 = vst [vmem:[%s5293_s19 + $0x18] sm:$0xff] %v293_v3   ;;  %v305_v6 = vld [vmem:[%s5288_s18 + $0x30] sm:$0xff]  }
  0x12   : > { %298 = vst [vmem:[%s5293_s19 + $0x20] sm:$0xff] %v297_v4   ;;  %302 = vst [vmem:[%s5293_s19 + $0x28] sm:$0xff] %v301_v5   ;;  %v309_v7 = vld [vmem:[%s5288_s18 + $0x38] sm:$0xff]   ;;  %v313_v8 = vld [vmem:[%s5288_s18 + $0x80] sm:$0xff]  }
  0x13   : > { %306 = vst [vmem:[%s5293_s19 + $0x30] sm:$0xff] %v305_v6   ;;  %310 = vst [vmem:[%s5293_s19 + $0x38] sm:$0xff] %v309_v7   ;;  %v317_v9 = vld [vmem:[%s5288_s18 + $0x88] sm:$0xff]   ;;  %v321_v10 = vld [vmem:[%s5288_s18 + $0x90] sm:$0xff]  }
  0x14   : > { %314 = vst [vmem:[%s5293_s19 + $0x40] sm:$0xff] %v313_v8   ;;  %v325_v11 = vld [vmem:[%s5288_s18 + $0x98] sm:$0xff]   ;;  %318 = vst [vmem:[%s5293_s19 + $0x48] sm:$0xff] %v317_v9   ;;  %v329_v12 = vld [vmem:[%s5288_s18 + $0xa0] sm:$0xff]  }
  0x15   : > { %322 = vst [vmem:[%s5293_s19 + $0x50] sm:$0xff] %v321_v10   ;;  %326 = vst [vmem:[%s5293_s19 + $0x58] sm:$0xff] %v325_v11   ;;  %v333_v13 = vld [vmem:[%s5288_s18 + $0xa8] sm:$0xff]   ;;  %v337_v14 = vld [vmem:[%s5288_s18 + $0xb0] sm:$0xff]  }
  0x16   : > { %330 = vst [vmem:[%s5293_s19 + $0x60] sm:$0xff] %v329_v12   ;;  %334 = vst [vmem:[%s5293_s19 + $0x68] sm:$0xff] %v333_v13   ;;  %v341_v15 = vld [vmem:[%s5288_s18 + $0xb8] sm:$0xff]   ;;  %v345_v16 = vld [vmem:[%s5288_s18 + $0x100] sm:$0xff]  }
  0x17   : > { %338 = vst [vmem:[%s5293_s19 + $0x70] sm:$0xff] %v337_v14   ;;  %v349_v17 = vld [vmem:[%s5288_s18 + $0x108] sm:$0xff]   ;;  %342 = vst [vmem:[%s5293_s19 + $0x78] sm:$0xff] %v341_v15   ;;  %v353_v18 = vld [vmem:[%s5288_s18 + $0x110] sm:$0xff]  }
  0x18   : > { %346 = vst [vmem:[%s5293_s19 + $0x80] sm:$0xff] %v345_v16   ;;  %350 = vst [vmem:[%s5293_s19 + $0x88] sm:$0xff] %v349_v17   ;;  %v357_v19 = vld [vmem:[%s5288_s18 + $0x118] sm:$0xff]   ;;  %v361_v20 = vld [vmem:[%s5288_s18 + $0x120] sm:$0xff]  }
  0x19   : > { %354 = vst [vmem:[%s5293_s19 + $0x90] sm:$0xff] %v353_v18   ;;  %358 = vst [vmem:[%s5293_s19 + $0x98] sm:$0xff] %v357_v19   ;;  %v365_v21 = vld [vmem:[%s5288_s18 + $0x128] sm:$0xff]   ;;  %v369_v22 = vld [vmem:[%s5288_s18 + $0x130] sm:$0xff]  }
  0x1a   : > { %362 = vst [vmem:[%s5293_s19 + $0xa0] sm:$0xff] %v361_v20   ;;  %v373_v23 = vld [vmem:[%s5288_s18 + $0x138] sm:$0xff]   ;;  %366 = vst [vmem:[%s5293_s19 + $0xa8] sm:$0xff] %v365_v21   ;;  %v377_v24 = vld [vmem:[%s5288_s18 + $0x180] sm:$0xff]  }
  0x1b   : > { %370 = vst [vmem:[%s5293_s19 + $0xb0] sm:$0xff] %v369_v22   ;;  %374 = vst [vmem:[%s5293_s19 + $0xb8] sm:$0xff] %v373_v23   ;;  %v381_v25 = vld [vmem:[%s5288_s18 + $0x188] sm:$0xff]   ;;  %v385_v26 = vld [vmem:[%s5288_s18 + $0x190] sm:$0xff]  }
  0x1c   : > { %378 = vst [vmem:[%s5293_s19 + $0xc0] sm:$0xff] %v377_v24   ;;  %382 = vst [vmem:[%s5293_s19 + $0xc8] sm:$0xff] %v381_v25   ;;  %v389_v27 = vld [vmem:[%s5288_s18 + $0x198] sm:$0xff]   ;;  %v393_v28 = vld [vmem:[%s5288_s18 + $0x1a0] sm:$0xff]  }
  0x1d   : > { %386 = vst [vmem:[%s5293_s19 + $0xd0] sm:$0xff] %v385_v26   ;;  %v397_v29 = vld [vmem:[%s5288_s18 + $0x1a8] sm:$0xff]   ;;  %390 = vst [vmem:[%s5293_s19 + $0xd8] sm:$0xff] %v389_v27   ;;  %v401_v30 = vld [vmem:[%s5288_s18 + $0x1b0] sm:$0xff]  }
  0x1e   : > { %394 = vst [vmem:[%s5293_s19 + $0xe0] sm:$0xff] %v393_v28   ;;  %398 = vst [vmem:[%s5293_s19 + $0xe8] sm:$0xff] %v397_v29   ;;  %v405_v31 = vld [vmem:[%s5288_s18 + $0x1b8] sm:$0xff]  }
  0x1f   : > { %402 = vst [vmem:[%s5293_s19 + $0xf0] sm:$0xff] %v401_v30   ;;  %406 = vst [vmem:[%s5293_s19 + $0xf8] sm:$0xff] %v405_v31  }
  0x20 PF: > { %p4114_p5 = scmp.ge.s32.totalorder %s5204_s29, 1  ;;  %p568_p6 = scmp.lt.s32.totalorder %s5204_s29, 3 }
  0x22   : > { %p569_p7 = pnand %p4114_p5, %p568_p6 }
  0x24   : > { %572 = sbr.rel (%p569_p7) target bundleno = 3202 (0xc82), region = 89 }
  0x29   : > { %v4618_v32 = vld [vmem:[%s6740_s5 + $0x8] sm:$0xff]   ;;  %s4116_s22 = sshll.u32 %s4107_s30, 4  ;;  %v4619_v33 = vld [vmem:[%s6740_s5] sm:$0xff]   ;;  %vm706_vm0 = vcmask 261120   ;;  %s575_s19 = sand.u32 1, %s5196_s27   ;;  %v5206_v53 = vmov 0  }
  0x2a   : > { %p615_p8 = scmp.lt.s32.totalorder %s4116_s22, 31  ;;  %4403 = vmatprep.subr.bf16.mxu0 %v4618_v32  ;;  %v4622_v34 = vld [vmem:[%s6738_s3 + $0x8] sm:$0xff]   ;;  %v4629_v36 = vld [vmem:[%s6737_s2] sm:$0xff]   ;;  %s4115_s20 = sshll.u32 %s575_s19, 8 }
  0x2b   : > { %4404 = vmatpush3.bf16.msra.mxu0 %v4618_v32  ;;  %v4628_v35 = vld [vmem:[%s6737_s2 + $0x8] sm:$0xff]   ;;  %v4627_v37 = vld [vmem:[%s6738_s3] sm:$0xff]   ;;  %s5395_s27 = scalar_lea.vmem [#allocation3], %s4115_s20  ;;  %s5207_s24 = smov 64  }
  0x2c   : > { %s6754_s22 = smov (!%p615_p8, %s4116_s22), 31  ;;  %4405 = vmatprep.subr.bf16.mxu0 %v4619_v33  ;;  %4423 = vmatprep.subr.bf16.mxu1 %v4628_v35  ;;  %v4632_v43 = vld [vmem:[%s5395_s27] sm:$0xff]   ;;  %v4633_v44 = vld [vmem:[%s5395_s27 + $0x8] sm:$0xff]   ;;  %v4634_v45 = vld [vmem:[%s5395_s27 + $0x10] sm:$0xff]   ;;  %s5208_s25 = smov 32  }
  0x2d   : > { %s4117_s30 = sshll.u32 %s6754_s22, 2  ;;  %4424 = vmatpush3.bf16.msra.mxu1 %v4628_v35  ;;  %4427 = vmatprep.mubr.msk.bf16.mxu1 %vm706_vm0, %v4632_v43  ;;  %v4635_v48 = vld [vmem:[%s5395_s27 + $0x18] sm:$0xff]   ;;  %v4636_v49 = vld [vmem:[%s5395_s27 + $0x20] sm:$0xff]   ;;  %v4637_v51 = vld [vmem:[%s5395_s27 + $0x28] sm:$0xff]   ;;  %s4119_s21 = sshll.u32 %s6754_s22, 3 }
  0x2e   : > { %s5381_s16 = scalar_lea.vmem %s6736_s1, %s4117_s30  ;;  %4425 = vmatprep.subr.bf16.mxu1 %v4629_v36  ;;  %v4638_v52 = vld [vmem:[%s5395_s27 + $0x30] sm:$0xff]   ;;  %v4639_v54 = vld [vmem:[%s5395_s27 + $0x38] sm:$0xff]   ;;  %v5450_v10 = vld [vmem:[%s6739_s4] ss:$0 sm:$0xff] }
  0x2f   : > { %4406 = vmatpush3.bf16.msra.mxu0 %v4619_v33  ;;  %v4620_v38 = vld [vmem:[%s5381_s16] sm:$0xff]   ;;  %v4621_v39 = vld [vmem:[%s5381_s16 + $0x8] sm:$0xff]   ;;  %v4623_v40 = vld [vmem:[%s5381_s16 + $0x10] sm:$0xff]  }
  0x30   : > { %4491 = vmatprep.subr.bf16.mxu0 %v4622_v34  ;;  %4407 = vmatprep.mubr.msk.bf16.mxu0 %vm706_vm0, %v4620_v38  ;;  %v4624_v41 = vld [vmem:[%s5381_s16 + $0x18] sm:$0xff]   ;;  %v4625_v42 = vld [vmem:[%s5381_s16 + $0x20] sm:$0xff]   ;;  %v4626_v46 = vld [vmem:[%s5381_s16 + $0x28] sm:$0xff]  }
  0x31   : > { %4426 = vmatpush3.bf16.msra.mxu1 %v4629_v36  ;;  %v4630_v47 = vld [vmem:[%s5381_s16 + $0x30] sm:$0xff]   ;;  %v4631_v50 = vld [vmem:[%s5381_s16 + $0x38] sm:$0xff]  }
  0x32   : > { %4408 = vmatmul.mubr.msk.bf16.vlgmr.msra.gmra.mxu0 %vm706_vm0, %v4621_v39 }
  0x33   : > { %4492 = vmatpush3.bf16.msra.mxu0 %v4622_v34  ;;  %4411 = vmatprep.mubr.msk.bf16.mxu0 %vm706_vm0, %v4623_v40 }
  0x34   : > { %4493 = vmatprep.subr.bf16.mxu0 %v4627_v37  ;;  %4428 = vmatmul.mubr.msk.bf16.vlgmr.msra.gmra.mxu1 %vm706_vm0, %v4633_v44 }
  0x35   : > { %4431 = vmatprep.mubr.msk.bf16.mxu1 %vm706_vm0, %v4634_v45 }
  0x37   : > { %4494 = vmatpush3.bf16.msra.mxu0 %v4627_v37 }
  0x38   : > { %4511 = vmatprep.subr.bf16.mxu0 %v4622_v34 }
  0x3a   : > { %4412 = vmatmul.mubr.msk.bf16.gmra.mxu0 %vm706_vm0, %v4624_v41 }
  0x3b   : > { %4415 = vmatprep.mubr.msk.bf16.mxu0 %vm706_vm0, %v4625_v42 }
  0x3c   : > { %4432 = vmatmul.mubr.msk.bf16.gmra.mxu1 %vm706_vm0, %v4635_v48 }
  0x3d   : > { %4435 = vmatprep.mubr.msk.bf16.mxu1 %vm706_vm0, %v4636_v49 }
  0x42   : > { %4416 = vmatmul.mubr.msk.bf16.gmra.mxu0 %vm706_vm0, %v4626_v46 }
  0x43   : > { %4419 = vmatprep.mubr.msk.bf16.mxu0 %vm706_vm0, %v4630_v47 }
  0x44   : > { %4436 = vmatmul.mubr.msk.bf16.gmra.mxu1 %vm706_vm0, %v4637_v51 }
  0x45   : > { %4439 = vmatprep.mubr.msk.bf16.mxu1 %vm706_vm0, %v4638_v52 }
  0x4a   : > { %4420 = vmatmul.mubr.msk.bf16.gmra.mxu0 %vm706_vm0, %v4631_v50 }
  0x4b   : > { %4495 = vmatprep.mubr.bf16.mxu0 %v5206_v53 }
  0x4c   : > { %4440 = vmatmul.mubr.msk.bf16.gmra.mxu1 %vm706_vm0, %v4639_v54 }
  0x52   : > { %4496 = vmatmul.mubr.bf16.vlgmr.msra.gmra.mxu0 %v5206_v53 }
  0x53   : > { %4499 = vmatprep.mubr.bf16.mxu0 %v5206_v53  ;;  %4512 = vmatpush3.bf16.msra.mxu0 %v4622_v34 }
  0x54   : > { %4513 = vmatprep.subr.bf16.mxu0 %v4627_v37 }
  0x57   : > { %4514 = vmatpush3.bf16.msra.mxu0 %v4627_v37 }
  0x58   : > { %4531 = vmatprep.subr.bf16.mxu0 %v4622_v34 }
  0x5a   : > { %4500 = vmatmul.mubr.bf16.gmra.mxu0 %v5206_v53 }
  0x5b   : > { %4503 = vmatprep.mubr.bf16.mxu0 %v5206_v53 }
  0x62   : > { %4504 = vmatmul.mubr.bf16.gmra.mxu0 %v5206_v53 }
  0x63   : > { %4507 = vmatprep.mubr.bf16.mxu0 %v5206_v53 }
  0x6a   : > { %4508 = vmatmul.mubr.bf16.gmra.mxu0 %v5206_v53 }
  0xf2   : > { %v5421_v55 = vpop.f32.mrf.mxu0 }
  0xf4   : > { %v5423_v56 = vpop.f32.mrf.mxu0  ;;  %v4429_v60 = vpop.f32.mrf.mxu1 }
  0xf5   : > { %v1214_v14 = vadd.f32 %v4429_v60, %v5450_v10 }
  0xf6   : > { %v5425_v57 = vpop.f32.mrf.mxu0  ;;  %v1205_v62 = vpop.f32.mrf.mxu1 }
  0xf7   : > { %v1206_v18 = vadd.f32 %v5450_v10, %v1205_v62 }
  0xf8   : > { %v5427_v58 = vpop.f32.mrf.mxu0  ;;  %v4430_v0 = vpop.f32.mrf.mxu1 }
  0xf9   : > { %v1217_v21 = vadd.f32 %v4430_v0, %v5450_v10 }
  0xfa   : > { %v5429_v59 = vpop.f32.mrf.mxu0  ;;  %v1208_v3 = vpop.f32.mrf.mxu1 }
  0xfb   : > { %v1209_v24 = vadd.f32 %v5450_v10, %v1208_v3 }
  0xfc   : > { %v5431_v61 = vpop.f32.mrf.mxu0  ;;  %v4433_v6 = vpop.f32.mrf.mxu1 }
  0xfd   : > { %v1230_v27 = vadd.f32 %v4433_v6, %v5450_v10 }
  0xfe   : > { %v5433_v63 = vpop.f32.mrf.mxu0  ;;  %v1221_v9 = vpop.f32.mrf.mxu1 }
  0xff   : > { %v1222_v35 = vadd.f32 %v5450_v10, %v1221_v9 }
 0x100   : > { %v5435_v1 = vpop.f32.mrf.mxu0  ;;  %v4434_v13 = vpop.f32.mrf.mxu1 }
 0x101   : > { %v1233_v39 = vadd.f32 %v4434_v13, %v5450_v10 }
 0x102   : > { %v5437_v2 = vpop.f32.mrf.mxu0  ;;  %v1224_v17 = vpop.f32.mrf.mxu1 }
 0x103   : > { %v1225_v42 = vadd.f32 %v5450_v10, %v1224_v17  ;;  %v1528_v17 = vlaneseq }
 0x104   : > { %v5439_v4 = vpop.f32.mrf.mxu0  ;;  %v4437_v26 = vpop.f32.mrf.mxu1 }
 0x105   : > { %v1246_v45 = vadd.f32 %v4437_v26, %v5450_v10 }
 0x106   : > { %v5441_v5 = vpop.f32.mrf.mxu0  ;;  %v1237_v34 = vpop.f32.mrf.mxu1 }
 0x107   : > { %v1238_v53 = vadd.f32 %v5450_v10, %v1237_v34 }
 0x108   : > { %v5443_v7 = vpop.f32.mrf.mxu0  ;;  %v4438_v44 = vpop.f32.mrf.mxu1 }
 0x10a   : > { %v5445_v8 = vpop.f32.mrf.mxu0  ;;  %v1240_v51 = vpop.f32.mrf.mxu1 }
 0x10c   : > { %v5452_v11 = vpop.f32.mrf.mxu0 }
 0x10e   : > { %v5454_v12 = vpop.f32.mrf.mxu0 }
 0x10f   : > { %6744 = vst [vmem:[#allocation4_spill] sm:$0xff] %v5454_v12 }
 0x110   : > { %v5457_v15 = vpop.f32.mrf.mxu0 }
 0x111   : > { %6745 = vst [vmem:[#allocation5_spill] sm:$0xff] %v5457_v15 }
 0x112   : > { %v4497_v16 = vpop.f32.mrf.mxu0 }
 0x113   : > { %v1663_v19 = vadd.f32 %v4497_v16, %v1214_v14  ;;  %v4441_v14 = vpop.f32.mrf.mxu1 }
 0x114   : > { %v1598_v20 = vpop.f32.mrf.mxu0 }
 0x115   : > { %v4210_v22 = vmul.f32 -1.442695, %v1663_v19  ;;  %v1661_v23 = vadd.f32 %v1598_v20, %v1206_v18  ;;  %v1249_v20 = vadd.f32 %v4438_v44, %v5450_v10  ;;  %v1253_v26 = vpop.f32.mrf.mxu1 }
 0x116   : > { %v4498_v25 = vpop.f32.mrf.mxu0  ;;  %v1254_v44 = vadd.f32 %v5450_v10, %v1253_v26 }
 0x117   : > { %4666 = vpow2.f32 %v4210_v22  ;;  %v4208_v28 = vmul.f32 -1.442695, %v1661_v23  ;;  %v1664_v29 = vadd.f32 %v4498_v25, %v1217_v21  ;;  %v1241_v25 = vadd.f32 %v5450_v10, %v1240_v51 }
 0x118   : > { %v1601_v30 = vpop.f32.mrf.mxu0 }
 0x119   : > { %4668 = vpow2.f32 %v4208_v28  ;;  %v4211_v31 = vmul.f32 -1.442695, %v1664_v29  ;;  %v1662_v32 = vadd.f32 %v1601_v30, %v1209_v24 }
 0x11a   : > { %v4501_v33 = vpop.f32.mrf.mxu0 }
 0x11b   : > { %4670 = vpow2.f32 %v4211_v31  ;;  %v4209_v36 = vmul.f32 -1.442695, %v1662_v32  ;;  %v1667_v37 = vadd.f32 %v4501_v33, %v1230_v27 }
 0x11c   : > { %v1614_v38 = vpop.f32.mrf.mxu0 }
 0x11d   : > { %4672 = vpow2.f32 %v4209_v36  ;;  %v4214_v40 = vmul.f32 -1.442695, %v1667_v37  ;;  %v1665_v41 = vadd.f32 %v1614_v38, %v1222_v35  ;;  %v4442_v38 = vpop.f32.mrf.mxu1 }
 0x11e   : > { %v4502_v43 = vpop.f32.mrf.mxu0 }
 0x11f   : > { %4674 = vpow2.f32 %v4214_v40  ;;  %v4212_v46 = vmul.f32 -1.442695, %v1665_v41  ;;  %v5467_v47 = vadd.f32 %v4502_v43, %v1233_v39  ;;  %v1256_v51 = vpop.f32.mrf.mxu1 }
 0x120   : > { %v1617_v48 = vpop.f32.mrf.mxu0 }
 0x121   : > { %4676 = vpow2.f32 %v4212_v46  ;;  %v4215_v49 = vmul.f32 -1.442695, %v5467_v47  ;;  %v1666_v50 = vadd.f32 %v1617_v48, %v1225_v42 }
 0x122   : > { %4678 = vtanh.f32 %v1663_v19  ;;  %v4505_v52 = vpop.f32.mrf.mxu0 }
 0x123   : > { %4680 = vpow2.f32 %v4215_v49  ;;  %v4213_v54 = vmul.f32 -1.442695, %v1666_v50  ;;  %v5471_v60 = vadd.f32 %v4505_v52, %v1246_v45 }
 0x124   : > { %v4667_v62 = vpop.eup %4666  ;;  %4682 = vtanh.f32 %v1661_v23  ;;  %v1630_v0 = vpop.f32.mrf.mxu0 }
 0x125   : > { %v1743_v3 = vadd.f32 1.0, %v4667_v62  ;;  %4684 = vpow2.f32 %v4213_v54  ;;  %v5473_v6 = vadd.f32 %v1630_v0, %v1238_v53  ;;  %v4218_v13 = vmul.f32 -1.442695, %v5471_v60 }
 0x126   : > { %v4669_v9 = vpop.eup %4668  ;;  %4686 = vtanh.f32 %v1664_v29  ;;  %v4506_v16 = vpop.f32.mrf.mxu0  ;;  %v1529_v29 = vand.u32 127, %v1528_v17  ;;  %v1265_v62 = vadd.f32 %v4442_v38, %v5450_v10 }
 0x127   : > { %4688 = vrcp.f32 %v1743_v3  ;;  %v1741_v18 = vadd.f32 1.0, %v4669_v9  ;;  %v4216_v21 = vmul.f32 -1.442695, %v5473_v6  ;;  %v5479_v27 = vadd.f32 %v4506_v16, %v1249_v20 }
 0x128   : > { %v4671_v19 = vpop.eup %4670  ;;  %4690 = vtanh.f32 %v1662_v32  ;;  %v1633_v22 = vpop.f32.mrf.mxu0  ;;  %v1262_v32 = vadd.f32 %v4441_v14, %v5450_v10  ;;  %vm1530_vm1 = vcmp.ge.s32.totalorder %v1529_v29, 64  ;;  %vm1531_vm2 = vcmp.lt.s32.totalorder %v1529_v29, 96 }
 0x129   : > { %4692 = vrcp.f32 %v1741_v18  ;;  %v1744_v23 = vadd.f32 1.0, %v4671_v19  ;;  %v5482_v33 = vadd.f32 %v1633_v22, %v1241_v25  ;;  %v4219_v36 = vmul.f32 -1.442695, %v5479_v27  ;;  %vm5492_vm3 = vmand %vm1530_vm1, %vm1531_vm2 }
 0x12a   : > { %v4673_v24 = vpop.eup %4672  ;;  %4694 = vpow2.f32 %v4218_v13  ;;  %v4509_v28 = vpop.f32.mrf.mxu0  ;;  %v1257_v14 = vadd.f32 %v5450_v10, %v1256_v51 }
 0x12b   : > { %4696 = vrcp.f32 %v1744_v23  ;;  %v1742_v30 = vadd.f32 1.0, %v4673_v24  ;;  %v4217_v45 = vmul.f32 -1.442695, %v5482_v33  ;;  %v5487_v46 = vadd.f32 %v4509_v28, %v1262_v32 }
 0x12c   : > { %v4675_v31 = vpop.eup %4674  ;;  %4698 = vpow2.f32 %v4216_v21  ;;  %v1646_v34 = vpop.f32.mrf.mxu0 }
 0x12d   : > { %4700 = vrcp.f32 %v1742_v30  ;;  %v1747_v40 = vadd.f32 1.0, %v4675_v31  ;;  %v5489_v52 = vadd.f32 %v1646_v34, %v1254_v44  ;;  %v4222_v3 = vmul.f32 -1.442695, %v5487_v46 }
 0x12e   : > { %v4677_v35 = vpop.eup %4676  ;;  %4702 = vtanh.f32 %v1667_v37  ;;  %v4510_v48 = vpop.f32.mrf.mxu0 }
 0x12f   : > { %v4679_v39 = vpop.eup %4678  ;;  %4704 = vtanh.f32 %v1665_v41  ;;  %v1745_v42 = vadd.f32 1.0, %v4677_v35  ;;  %v5499_v16 = vadd.f32 %v4510_v48, %v1265_v62  ;;  %v4220_v19 = vmul.f32 -1.442695, %v5489_v52 }
 0x130   : > { %v4681_v43 = vpop.eup %4680  ;;  %4706 = vtanh.f32 %v1666_v50  ;;  %v1649_v9 = vpop.f32.mrf.mxu0 }
 0x131   : > { %v4683_v49 = vpop.eup %4682  ;;  %4708 = vrcp.f32 %v1745_v42  ;;  %v1748_v53 = vadd.f32 1.0, %v4681_v43  ;;  %v5508_v21 = vadd.f32 %v1649_v9, %v1257_v14  ;;  %v4223_v25 = vmul.f32 -1.442695, %v5499_v16 }
 0x132   : > { %v4685_v37 = vpop.eup %4684  ;;  %4710 = vpow2.f32 %v4219_v36 }
 0x133   : > { %v4687_v50 = vpop.eup %4686  ;;  %4712 = vrcp.f32 %v1747_v40  ;;  %v1746_v54 = vadd.f32 1.0, %v4685_v37  ;;  %v4221_v32 = vmul.f32 -1.442695, %v5508_v21 }
 0x134   : > { %v4689_v0 = vpop.eup %4688  ;;  %4714 = vpow2.f32 %v4217_v45 }
 0x135   : > { %v4691_v13 = vpop.eup %4690  ;;  %4716 = vrcp.f32 %v1746_v54  ;;  %v5503_v17 = vsel %vm5492_vm3, %v4679_v39, %v4689_v0 }
 0x136   : > { %v4693_v18 = vpop.eup %4692  ;;  %1841 = vrot.lane.b32.xlu1 %v5503_v17, %s5207_s24  ;;  %4718 = vrcp.f32 %v1748_v53 }
 0x137   : > { %v4695_v20 = vpop.eup %4694  ;;  %v5512_v22 = vsel %vm5492_vm3, %v4683_v49, %v4693_v18  ;;  %4720 = vpow2.f32 %v4222_v3 }
 0x138   : > { %v4697_v23 = vpop.eup %4696  ;;  %1837 = vrot.lane.b32.xlu0 %v5512_v22, %s5207_s24  ;;  %4722 = vtanh.f32 %v5467_v47  ;;  %v1751_v29 = vadd.f32 1.0, %v4695_v20 }
 0x139   : > { %v4699_v24 = vpop.eup %4698  ;;  %v5520_v26 = vsel %vm5492_vm3, %v4687_v50, %v4697_v23  ;;  %4724 = vpow2.f32 %v4220_v19 }
 0x13a   : > { %v4701_v28 = vpop.eup %4700  ;;  %v1749_v30 = vadd.f32 1.0, %v4699_v24  ;;  %1843 = vrot.lane.b32.xlu1 %v5520_v26, %s5207_s24  ;;  %4726 = vtanh.f32 %v5473_v6 }
 0x13b   : > { %v4703_v31 = vpop.eup %4702  ;;  %v5528_v47 = vsel %vm5492_vm3, %v4691_v13, %v4701_v28 }
 0x13c   : > { %v4705_v34 = vpop.eup %4704  ;;  %4728 = vrcp.f32 %v1749_v30  ;;  %1839 = vrot.lane.b32.xlu0 %v5528_v47, %s5207_s24 }
 0x13d   : > { %v4707_v35 = vpop.eup %4706  ;;  %4730 = vpow2.f32 %v4223_v25 }
 0x13e   : > { %v4709_v36 = vpop.eup %4708  ;;  %4732 = vrcp.f32 %v1751_v29 }
 0x13f   : > { %v4711_v38 = vpop.eup %4710  ;;  %4734 = vpow2.f32 %v4221_v32  ;;  %v5534_v6 = vsel %vm5492_vm3, %v4705_v34, %v4709_v36 }
 0x140   : > { %v4713_v39 = vpop.eup %4712  ;;  %4736 = vtanh.f32 %v5471_v60  ;;  %1845 = vrot.lane.b32.xlu0 %v5534_v6, %s5207_s24  ;;  %v1752_v43 = vadd.f32 1.0, %v4711_v38 }
 0x141   : > { %v4715_v40 = vpop.eup %4714  ;;  %4738 = vtanh.f32 %v5482_v33  ;;  %v5546_v48 = vsel %vm5492_vm3, %v4703_v31, %v4713_v39 }
 0x142   : > { %v4717_v42 = vpop.eup %4716  ;;  %v1750_v44 = vadd.f32 1.0, %v4715_v40 }
 0x143   : > { %v5542_v45 = vsel %vm5492_vm3, %v4707_v35, %v4717_v42  ;;  %v4719_v49 = vpop.eup %4718 }
 0x144   : > { %4740 = vrcp.f32 %v1750_v44  ;;  %1847 = vrot.lane.b32.xlu1 %v5542_v45, %s5207_s24  ;;  %1849 = vrot.lane.b32.xlu0 %v5546_v48, %s5207_s24  ;;  %v4721_v60 = vpop.eup %4720 }
 0x145   : > { %v4723_v37 = vpop.eup %4722  ;;  %4742 = vrcp.f32 %v1752_v43  ;;  %v1755_v53 = vadd.f32 1.0, %v4721_v60 }
 0x146   : > { %v4725_v33 = vpop.eup %4724  ;;  %v5554_v51 = vsel %vm5492_vm3, %v4723_v37, %v4719_v49  ;;  %4744 = vtanh.f32 %v5479_v27 }
 0x147   : > { %v4727_v50 = vpop.eup %4726  ;;  %v1753_v54 = vadd.f32 1.0, %v4725_v33  ;;  %4746 = vtanh.f32 %v5489_v52 }
 0x148   : > { %1851 = vrot.lane.b32.xlu1 %v5554_v51, %s5207_s24 }
 0x149   : > { %v4729_v62 = vpop.eup %4728  ;;  %4748 = vrcp.f32 %v1753_v54 }
 0x14a   : > { %v4731_v0 = vpop.eup %4730  ;;  %v5562_v3 = vsel %vm5492_vm3, %v4727_v50, %v4729_v62  ;;  %4750 = vrcp.f32 %v1755_v53 }
 0x14b   : > { %v4733_v9 = vpop.eup %4732  ;;  %1853 = vrot.lane.b32.xlu0 %v5562_v3, %s5207_s24  ;;  %4752 = vtanh.f32 %v5487_v46  ;;  %v1756_v14 = vadd.f32 1.0, %v4731_v0 }
 0x14c   : > { %v4735_v13 = vpop.eup %4734  ;;  %4754 = vtanh.f32 %v5508_v21 }
 0x14d   : > { %v4737_v27 = vpop.eup %4736  ;;  %v1754_v18 = vadd.f32 1.0, %v4735_v13 }
 0x14e   : > { %v5570_v52 = vsel %vm5492_vm3, %v4737_v27, %v4733_v9  ;;  %v4739_v19 = vpop.eup %4738 }
 0x14f   : > { %4756 = vrcp.f32 %v1754_v18  ;;  %1857 = vrot.lane.b32.xlu0 %v5570_v52, %s5207_s24 }
 0x150   : > { %4758 = vrcp.f32 %v1756_v14 }
 0x151   : > { %v4741_v20 = vpop.eup %4740  ;;  %4760 = vtanh.f32 %v5499_v16 }
 0x152   : > { %v5576_v23 = vsel %vm5492_vm3, %v4739_v19, %v4741_v20  ;;  %v4743_v46 = vpop.eup %4742 }
 0x153   : > { %1855 = vrot.lane.b32.xlu1 %v5576_v23, %s5207_s24  ;;  %v4745_v21 = vpop.eup %4744 }
 0x154   : > { %v4747_v24 = vpop.eup %4746  ;;  %v5583_v25 = vsel %vm5492_vm3, %v4745_v21, %v4743_v46 }
 0x156   : > { %v4749_v28 = vpop.eup %4748 }
 0x157   : > { %1859 = vrot.lane.b32.xlu1 %v5583_v25, %s5207_s24  ;;  %v5589_v29 = vsel %vm5492_vm3, %v4747_v24, %v4749_v28  ;;  %v4751_v30 = vpop.eup %4750 }
 0x158   : > { %1861 = vrot.lane.b32.xlu0 %v5589_v29, %s5207_s24  ;;  %v4753_v16 = vpop.eup %4752 }
 0x159   : > { %v4755_v31 = vpop.eup %4754  ;;  %v5595_v34 = vsel %vm5492_vm3, %v4753_v16, %v4751_v30 }
 0x15c   : > { %v4757_v32 = vpop.eup %4756  ;;  %1865 = vrot.lane.b32.xlu0 %v5595_v34, %s5207_s24 }
 0x15d   : > { %v5599_v35 = vsel %vm5492_vm3, %v4755_v31, %v4757_v32  ;;  %v4759_v36 = vpop.eup %4758 }
 0x15e   : > { %1863 = vrot.lane.b32.xlu1 %v5599_v35, %s5207_s24  ;;  %v4761_v38 = vpop.eup %4760 }
 0x15f   : > { %v5607_v39 = vsel %vm5492_vm3, %v4761_v38, %v4759_v36 }
 0x162   : > { %1867 = vrot.lane.b32.xlu1 %v5607_v39, %s5207_s24 }
 0x1a8   : > { %v1842_v40 = vpop.permute.xlu1 %1841 }
 0x1a9   : > { %v1887_v49 = vmul.f32 %v1842_v40, %v5503_v17 }
 0x1aa   : > { %v1838_v42 = vpop.permute.xlu0 %1837 }
 0x1ab   : > { %v1885_v43 = vmul.f32 %v1838_v42, %v5512_v22 }
 0x1ac   : > { %v1844_v37 = vpop.permute.xlu1 %1843 }
 0x1ad   : > { %1917 = vrot.lane.b32.xlu0 %v1885_v43, %s5208_s25  ;;  %v1888_v50 = vmul.f32 %v1844_v37, %v5520_v26  ;;  %v1805_v43 = vmul.f32 0.0, %v5512_v22  ;;  %v1807_v37 = vmul.f32 0.0, %v5503_v17 }
 0x1ae   : > { %v1840_v44 = vpop.permute.xlu0 %1839 }
 0x1af   : > { %v1886_v60 = vmul.f32 %v1840_v44, %v5528_v47 }
 0x1b1   : > { %1921 = vrot.lane.b32.xlu0 %v1887_v49, %s5208_s25  ;;  %1919 = vrot.lane.b32.xlu1 %v1886_v60, %s5208_s25  ;;  %v1806_v60 = vmul.f32 0.0, %v5528_v47 }
 0x1b2   : > { %v1846_v33 = vpop.permute.xlu0 %1845 }
 0x1b3   : > { %v1889_v53 = vmul.f32 %v1846_v33, %v5534_v6 }
 0x1b5   : > { %1923 = vrot.lane.b32.xlu1 %v1888_v50, %s5208_s25  ;;  %1925 = vrot.lane.b32.xlu0 %v1889_v53, %s5208_s25 }
 0x1b6   : > { %v1848_v54 = vpop.permute.xlu1 %1847  ;;  %v1850_v62 = vpop.permute.xlu0 %1849 }
 0x1b7   : > { %v1890_v0 = vmul.f32 %v1848_v54, %v5542_v45  ;;  %v1891_v9 = vmul.f32 %v1850_v62, %v5546_v48  ;;  %v1808_v62 = vmul.f32 0.0, %v5520_v26 }
 0x1b9   : > { %1927 = vrot.lane.b32.xlu1 %v1890_v0, %s5208_s25  ;;  %1929 = vrot.lane.b32.xlu0 %v1891_v9, %s5208_s25  ;;  %v1809_v0 = vmul.f32 0.0, %v5534_v6 }
 0x1ba   : > { %v1852_v13 = vpop.permute.xlu1 %1851 }
 0x1bb   : > { %v1892_v27 = vmul.f32 %v1852_v13, %v5554_v51 }
 0x1bd   : > { %v1854_v14 = vpop.permute.xlu0 %1853  ;;  %1931 = vrot.lane.b32.xlu1 %v1892_v27, %s5208_s25 }
 0x1be   : > { %v1893_v18 = vmul.f32 %v1854_v14, %v5562_v3 }
 0x1c0   : > { %1933 = vrot.lane.b32.xlu0 %v1893_v18, %s5208_s25  ;;  %v1810_v18 = vmul.f32 0.0, %v5542_v45 }
 0x1c1   : > { %v1858_v19 = vpop.permute.xlu0 %1857 }
 0x1c2   : > { %v1895_v20 = vmul.f32 %v1858_v19, %v5570_v52  ;;  %v1811_v19 = vmul.f32 0.0, %v5546_v48 }
 0x1c4   : > { %1937 = vrot.lane.b32.xlu0 %v1895_v20, %s5208_s25 }
 0x1c5   : > { %v1856_v46 = vpop.permute.xlu1 %1855 }
 0x1c6   : > { %v1894_v21 = vmul.f32 %v1856_v46, %v5576_v23 }
 0x1c8   : > { %1935 = vrot.lane.b32.xlu1 %v1894_v21, %s5208_s25 }
 0x1c9   : > { %v1860_v24 = vpop.permute.xlu1 %1859 }
 0x1ca   : > { %v1896_v28 = vmul.f32 %v1860_v24, %v5583_v25  ;;  %v1862_v30 = vpop.permute.xlu0 %1861 }
 0x1cb   : > { %v1897_v16 = vmul.f32 %v1862_v30, %v5589_v29 }
 0x1cc   : > { %1939 = vrot.lane.b32.xlu1 %v1896_v28, %s5208_s25  ;;  %v1812_v28 = vmul.f32 0.0, %v5554_v51 }
 0x1cd   : > { %1941 = vrot.lane.b32.xlu0 %v1897_v16, %s5208_s25 }
 0x1ce   : > { %v1866_v31 = vpop.permute.xlu0 %1865 }
 0x1cf   : > { %v1899_v36 = vmul.f32 %v1866_v31, %v5595_v34 }
 0x1d0   : > { %v1864_v32 = vpop.permute.xlu1 %1863 }
 0x1d1   : > { %v1898_v38 = vmul.f32 %v1864_v32, %v5599_v35  ;;  %1945 = vrot.lane.b32.xlu0 %v1899_v36, %s5208_s25  ;;  %v1813_v32 = vmul.f32 0.0, %v5562_v3 }
 0x1d3   : > { %1943 = vrot.lane.b32.xlu1 %v1898_v38, %s5208_s25 }
 0x1d4   : > { %v1868_v40 = vpop.permute.xlu1 %1867 }
 0x1d5   : > { %v1900_v42 = vmul.f32 %v1868_v40, %v5607_v39 }
 0x1d7   : > { %1947 = vrot.lane.b32.xlu1 %v1900_v42, %s5208_s25 }
 0x21f   : > { %v1918_v44 = vpop.permute.xlu0 %1917 }
 0x220   : > { %v5644_v49 = vadd.f32 %v1918_v44, %v1805_v43  ;;  %v1815_v43 = vmul.f32 0.0, %v5570_v52 }
 0x222   : > { %4762 = vtanh.f32 %v5644_v49 }
 0x223   : > { %v1920_v33 = vpop.permute.xlu1 %1919  ;;  %v1922_v50 = vpop.permute.xlu0 %1921 }
 0x224   : > { %v5649_v53 = vadd.f32 %v1920_v33, %v1806_v60  ;;  %v5651_v54 = vadd.f32 %v1922_v50, %v1807_v37  ;;  %v1814_v50 = vmul.f32 0.0, %v5576_v23 }
 0x226   : > { %4764 = vtanh.f32 %v5649_v53 }
 0x227   : > { %4766 = vtanh.f32 %v5651_v54  ;;  %v1924_v9 = vpop.permute.xlu1 %1923  ;;  %v1926_v13 = vpop.permute.xlu0 %1925 }
 0x228   : > { %v5657_v27 = vadd.f32 %v1924_v9, %v1808_v62  ;;  %v5659_v14 = vadd.f32 %v1926_v13, %v1809_v0 }
 0x22a   : > { %4768 = vtanh.f32 %v5657_v27 }
 0x22b   : > { %4770 = vtanh.f32 %v5659_v14  ;;  %v1928_v20 = vpop.permute.xlu1 %1927  ;;  %v1930_v46 = vpop.permute.xlu0 %1929 }
 0x22c   : > { %v5665_v21 = vadd.f32 %v1928_v20, %v1810_v18  ;;  %v5667_v24 = vadd.f32 %v1930_v46, %v1811_v19  ;;  %v1816_v18 = vmul.f32 0.0, %v5583_v25 }
 0x22e   : > { %4772 = vtanh.f32 %v5665_v21 }
 0x22f   : > { %v4763_v30 = vpop.eup %4762  ;;  %4774 = vtanh.f32 %v5667_v24  ;;  %v1932_v16 = vpop.permute.xlu1 %1931 }
 0x230   : > { %v5672_v31 = vadd.f32 %v1932_v16, %v1812_v28  ;;  %2013 = vrot.lane.b32.xlu0 %v4763_v30, %s5207_s24  ;;  %v1817_v28 = vmul.f32 0.0, %v5589_v29 }
 0x232   : > { %4776 = vtanh.f32 %v5672_v31  ;;  %v1934_v36 = vpop.permute.xlu0 %1933 }
 0x233   : > { %v4765_v38 = vpop.eup %4764  ;;  %v5677_v40 = vadd.f32 %v1934_v36, %v1813_v32  ;;  %v1819_v36 = vmul.f32 0.0, %v5595_v34 }
 0x234   : > { %v4767_v42 = vpop.eup %4766  ;;  %2015 = vrot.lane.b32.xlu1 %v4765_v38, %s5207_s24  ;;  %v1818_v38 = vmul.f32 0.0, %v5599_v35 }
 0x235   : > { %4778 = vtanh.f32 %v5677_v40  ;;  %2017 = vrot.lane.b32.xlu0 %v4767_v42, %s5207_s24 }
 0x236   : > { %v1938_v44 = vpop.permute.xlu0 %1937 }
 0x237   : > { %v4769_v60 = vpop.eup %4768  ;;  %v5683_v37 = vadd.f32 %v1938_v44, %v1815_v43 }
 0x238   : > { %v4771_v33 = vpop.eup %4770  ;;  %2019 = vrot.lane.b32.xlu1 %v4769_v60, %s5207_s24 }
 0x239   : > { %4780 = vtanh.f32 %v5683_v37  ;;  %2021 = vrot.lane.b32.xlu0 %v4771_v33, %s5207_s24 }
 0x23a   : > { %v1936_v62 = vpop.permute.xlu1 %1935 }
 0x23b   : > { %v4773_v0 = vpop.eup %4772  ;;  %v5689_v9 = vadd.f32 %v1936_v62, %v1814_v50  ;;  %v1820_v50 = vmul.f32 0.0, %v5607_v39 }
 0x23c   : > { %v4775_v13 = vpop.eup %4774  ;;  %2023 = vrot.lane.b32.xlu1 %v4773_v0, %s5207_s24 }
 0x23d   : > { %4782 = vtanh.f32 %v5689_v9  ;;  %2025 = vrot.lane.b32.xlu0 %v4775_v13, %s5207_s24 }
 0x23e   : > { %v1940_v19 = vpop.permute.xlu1 %1939 }
 0x23f   : > { %v4777_v20 = vpop.eup %4776  ;;  %v5695_v46 = vadd.f32 %v1940_v19, %v1816_v18  ;;  %v1942_v30 = vpop.permute.xlu0 %1941 }
 0x240   : > { %2027 = vrot.lane.b32.xlu1 %v4777_v20, %s5207_s24  ;;  %v5700_v16 = vadd.f32 %v1942_v30, %v1817_v28  ;;  %v4640_v20 = vld [vmem:[%s5395_s27 + $0x40] sm:$0xff]   ;;  %v4641_v28 = vld [vmem:[%s5395_s27 + $0x48] sm:$0xff]  }
 0x241   : > { %4784 = vtanh.f32 %v5695_v46  ;;  %4443 = vmatprep.mubr.msk.bf16.mxu1 %vm706_vm0, %v4640_v20 }
 0x242   : > { %v4779_v32 = vpop.eup %4778  ;;  %4786 = vtanh.f32 %v5700_v16  ;;  %4444 = vmatmul.mubr.msk.bf16.gmra.mxu1 %vm706_vm0, %v4641_v28  ;;  %v4645_v28 = vld [vmem:[%s5395_s27 + $0x68] sm:$0xff]  }
 0x243   : > { %2029 = vrot.lane.b32.xlu0 %v4779_v32, %s5207_s24  ;;  %v1946_v42 = vpop.permute.xlu0 %1945 }
 0x244   : > { %v5706_v44 = vadd.f32 %v1946_v42, %v1819_v36 }
 0x245   : > { %v1944_v43 = vpop.permute.xlu1 %1943 }
 0x246   : > { %v4781_v60 = vpop.eup %4780  ;;  %v5708_v33 = vadd.f32 %v1944_v43, %v1818_v38  ;;  %4788 = vtanh.f32 %v5706_v44  ;;  %v4642_v38 = vld [vmem:[%s5395_s27 + $0x50] sm:$0xff]   ;;  %v4643_v43 = vld [vmem:[%s5395_s27 + $0x58] sm:$0xff]  }
 0x247   : > { %2033 = vrot.lane.b32.xlu0 %v4781_v60, %s5207_s24  ;;  %4447 = vmatprep.mubr.msk.bf16.mxu1 %vm706_vm0, %v4642_v38 }
 0x248   : > { %4790 = vtanh.f32 %v5708_v33 }
 0x249   : > { %v1948_v62 = vpop.permute.xlu1 %1947 }
 0x24a   : > { %v4783_v0 = vpop.eup %4782  ;;  %v5714_v13 = vadd.f32 %v1948_v62, %v1820_v50  ;;  %4448 = vmatmul.mubr.msk.bf16.gmra.mxu1 %vm706_vm0, %v4643_v43 }
 0x24b   : > { %2031 = vrot.lane.b32.xlu1 %v4783_v0, %s5207_s24 }
 0x24c   : > { %4792 = vtanh.f32 %v5714_v13 }
 0x24e   : > { %v4785_v18 = vpop.eup %4784 }
 0x24f   : > { %2035 = vrot.lane.b32.xlu1 %v4785_v18, %s5207_s24  ;;  %v4787_v19 = vpop.eup %4786 }
 0x250   : > { %2037 = vrot.lane.b32.xlu0 %v4787_v19, %s5207_s24  ;;  %v4644_v19 = vld [vmem:[%s5395_s27 + $0x60] sm:$0xff]  }
 0x251   : > { %4451 = vmatprep.mubr.msk.bf16.mxu1 %vm706_vm0, %v4644_v19  ;;  %v4647_v19 = vld [vmem:[%s5395_s27 + $0x78] sm:$0xff]  }
 0x252   : > { %4452 = vmatmul.mubr.msk.bf16.gmra.mxu1 %vm706_vm0, %v4645_v28 }
 0x253   : > { %v4789_v30 = vpop.eup %4788 }
 0x254   : > { %2041 = vrot.lane.b32.xlu0 %v4789_v30, %s5207_s24 }
 0x255   : > { %v4791_v32 = vpop.eup %4790 }
 0x256   : > { %2039 = vrot.lane.b32.xlu1 %v4791_v32, %s5207_s24 }
 0x259   : > { %v4793_v36 = vpop.eup %4792 }
 0x25a   : > { %2043 = vrot.lane.b32.xlu1 %v4793_v36, %s5207_s24 }
 0x2a2   : > { %v2014_v42 = vpop.permute.xlu0 %2013 }
 0x2a3   : > { %v2061_v50 = vmul.f32 %v2014_v42, %v5512_v22 }
 0x2a6   : > { %v2016_v60 = vpop.permute.xlu1 %2015 }
 0x2a7   : > { %v2062_v62 = vmul.f32 %v2016_v60, %v5528_v47  ;;  %v2018_v0 = vpop.permute.xlu0 %2017 }
 0x2a8   : > { %v2063_v30 = vmul.f32 %v2018_v0, %v5503_v17 }
 0x2a9   : > { %v2093_v18 = vpack.c.bf16 %v2062_v62, %v2061_v50 }
 0x2aa   : > { %v2020_v20 = vpop.permute.xlu1 %2019 }
 0x2ab   : > { %v2064_v32 = vmul.f32 %v2020_v20, %v5520_v26  ;;  %v2022_v36 = vpop.permute.xlu0 %2021  ;;  %2109 = vrot.lane.b32.xlu0 %v2093_v18, %s5208_s25  ;;  %v4646_v18 = vld [vmem:[%s5395_s27 + $0x70] sm:$0xff]  }
 0x2ac   : > { %v2065_v38 = vmul.f32 %v2022_v36, %v5534_v6  ;;  %4455 = vmatprep.mubr.msk.bf16.mxu1 %vm706_vm0, %v4646_v18 }
 0x2ad   : > { %v2094_v22 = vpack.c.bf16 %v2064_v32, %v2063_v30  ;;  %4456 = vmatmul.mubr.msk.bf16.gmra.mxu1 %vm706_vm0, %v4647_v19 }
 0x2ae   : > { %v2024_v47 = vpop.permute.xlu1 %2023 }
 0x2af   : > { %v2066_v42 = vmul.f32 %v2024_v47, %v5542_v45  ;;  %2111 = vrot.lane.b32.xlu1 %v2094_v22, %s5208_s25  ;;  %v2026_v17 = vpop.permute.xlu0 %2025 }
 0x2b0   : > { %v2067_v60 = vmul.f32 %v2026_v17, %v5546_v48 }
 0x2b1   : > { %v2095_v43 = vpack.c.bf16 %v2066_v42, %v2065_v38 }
 0x2b2   : > { %v2028_v26 = vpop.permute.xlu1 %2027 }
 0x2b3   : > { %v2068_v50 = vmul.f32 %v2028_v26, %v5554_v51  ;;  %2113 = vrot.lane.b32.xlu0 %v2095_v43, %s5208_s25 }
 0x2b5   : > { %v2096_v62 = vpack.c.bf16 %v2068_v50, %v2067_v60  ;;  %v2030_v0 = vpop.permute.xlu0 %2029 }
 0x2b6   : > { %v2069_v45 = vmul.f32 %v2030_v0, %v5562_v3 }
 0x2b7   : > { %2115 = vrot.lane.b32.xlu1 %v2096_v62, %s5208_s25 }
 0x2b9   : > { %v2034_v48 = vpop.permute.xlu0 %2033 }
 0x2ba   : > { %v2071_v30 = vmul.f32 %v2034_v48, %v5570_v52 }
 0x2bd   : > { %v2032_v6 = vpop.permute.xlu1 %2031 }
 0x2be   : > { %v2070_v20 = vmul.f32 %v2032_v6, %v5576_v23 }
 0x2c0   : > { %v2097_v28 = vpack.c.bf16 %v2070_v20, %v2069_v45 }
 0x2c1   : > { %v2036_v51 = vpop.permute.xlu1 %2035 }
 0x2c2   : > { %v2072_v32 = vmul.f32 %v2036_v51, %v5583_v25  ;;  %2117 = vrot.lane.b32.xlu0 %v2097_v28, %s5208_s25  ;;  %v2038_v22 = vpop.permute.xlu0 %2037 }
 0x2c3   : > { %v2073_v38 = vmul.f32 %v2038_v22, %v5589_v29  ;;  %v5768_v29 = vld [vmem:[%s6738_s3 + $0x8] sm:$0xff]  }
 0x2c4   : > { %v2098_v36 = vpack.c.bf16 %v2072_v32, %v2071_v30 }
 0x2c6   : > { %2119 = vrot.lane.b32.xlu1 %v2098_v36, %s5208_s25  ;;  %v2042_v42 = vpop.permute.xlu0 %2041 }
 0x2c7   : > { %v2075_v43 = vmul.f32 %v2042_v42, %v5595_v34  ;;  %v5774_v34 = vld [vmem:[%s6738_s3] sm:$0xff]  }
 0x2c8   : > { %v2040_v47 = vpop.permute.xlu1 %2039 }
 0x2c9   : > { %v2074_v3 = vmul.f32 %v2040_v47, %v5599_v35 }
 0x2cb   : > { %v2099_v23 = vpack.c.bf16 %v2074_v3, %v2073_v38 }
 0x2cc   : > { %v2044_v17 = vpop.permute.xlu1 %2043 }
 0x2cd   : > { %v2076_v52 = vmul.f32 %v2044_v17, %v5607_v39  ;;  %2121 = vrot.lane.b32.xlu0 %v2099_v23, %s5208_s25 }
 0x2cf   : > { %v2100_v25 = vpack.c.bf16 %v2076_v52, %v2075_v43 }
 0x2d1   : > { %2123 = vrot.lane.b32.xlu1 %v2100_v25, %s5208_s25 }
 0x302   : > { %v4445_v19 = vpop.f32.mrf.mxu1 }
 0x303   : > { %v1278_v51 = vadd.f32 %v4445_v19, %v5450_v10 }
 0x304   : > { %v1269_v6 = vpop.f32.mrf.mxu1 }
 0x305   : > { %v1270_v36 = vadd.f32 %v5450_v10, %v1269_v6 }
 0x306   : > { %v4446_v45 = vpop.f32.mrf.mxu1 }
 0x307   : > { %v1281_v38 = vadd.f32 %v4446_v45, %v5450_v10 }
 0x308   : > { %v1272_v20 = vpop.f32.mrf.mxu1 }
 0x309   : > { %v1273_v23 = vadd.f32 %v5450_v10, %v1272_v20 }
 0x30a   : > { %v4449_v48 = vpop.f32.mrf.mxu1 }
 0x30b   : > { %v1294_v52 = vadd.f32 %v4449_v48, %v5450_v10 }
 0x30c   : > { %v1285_v28 = vpop.f32.mrf.mxu1 }
 0x30e   : > { %v4450_v32 = vpop.f32.mrf.mxu1 }
 0x30f   : > { %v1297_v45 = vadd.f32 %v4450_v32, %v5450_v10 }
 0x310   : > { %v1288_v43 = vpop.f32.mrf.mxu1 }
 0x31d   : > { %v2110_v26 = vpop.permute.xlu0 %2109 }
 0x31e   : > { %4515 = vmatprep.mubr.msk.bf16.mxu0 %vm706_vm0, %v2110_v26 }
 0x321   : > { %v2112_v60 = vpop.permute.xlu1 %2111 }
 0x322   : > { %4516 = vmatmul.mubr.msk.bf16.vlgmr.msra.gmra.mxu0 %vm706_vm0, %v2112_v60 }
 0x323   : > { %4532 = vmatpush3.bf16.msra.mxu0 %v5768_v29 }
 0x324   : > { %4533 = vmatprep.subr.bf16.mxu0 %v5774_v34 }
 0x325   : > { %v2114_v35 = vpop.permute.xlu0 %2113 }
 0x326   : > { %4519 = vmatprep.mubr.msk.bf16.mxu0 %vm706_vm0, %v2114_v35 }
 0x327   : > { %4534 = vmatpush3.bf16.msra.mxu0 %v5774_v34 }
 0x328   : > { %4551 = vmatprep.subr.bf16.mxu0 %v5768_v29 }
 0x329   : > { %v2116_v39 = vpop.permute.xlu1 %2115 }
 0x32a   : > { %4520 = vmatmul.mubr.msk.bf16.gmra.mxu0 %vm706_vm0, %v2116_v39 }
 0x334   : > { %v2118_v50 = vpop.permute.xlu0 %2117 }
 0x335   : > { %4523 = vmatprep.mubr.msk.bf16.mxu0 %vm706_vm0, %v2118_v50 }
 0x338   : > { %v2120_v62 = vpop.permute.xlu1 %2119 }
 0x339   : > { %4524 = vmatmul.mubr.msk.bf16.gmra.mxu0 %vm706_vm0, %v2120_v62  ;;  %v4453_v62 = vpop.f32.mrf.mxu1 }
 0x33b   : > { %v1301_v48 = vpop.f32.mrf.mxu1 }
 0x33f   : > { %v2122_v0 = vpop.permute.xlu0 %2121 }
 0x340   : > { %4527 = vmatprep.mubr.msk.bf16.mxu0 %vm706_vm0, %v2122_v0  ;;  %v1286_v0 = vadd.f32 %v5450_v10, %v1285_v28 }
 0x343   : > { %v2124_v18 = vpop.permute.xlu1 %2123 }
 0x344   : > { %4528 = vmatmul.mubr.msk.bf16.gmra.mxu0 %vm706_vm0, %v2124_v18 }
 0x3e2   : > { %v4517_v30 = vpop.f32.mrf.mxu0 }
 0x3e3   : > { %v2248_v22 = vadd.f32 %v4517_v30, %v1278_v51 }
 0x3e4   : > { %v2183_v47 = vpop.f32.mrf.mxu0 }
 0x3e5   : > { %v4234_v3 = vmul.f32 -1.442695, %v2248_v22  ;;  %v2246_v42 = vadd.f32 %v2183_v47, %v1270_v36  ;;  %v1289_v36 = vadd.f32 %v5450_v10, %v1288_v43 }
 0x3e6   : > { %v4518_v17 = vpop.f32.mrf.mxu0 }
 0x3e7   : > { %4794 = vpow2.f32 %v4234_v3  ;;  %v4232_v25 = vmul.f32 -1.442695, %v2246_v42  ;;  %v2249_v26 = vadd.f32 %v4518_v17, %v1281_v38  ;;  %v4454_v17 = vpop.f32.mrf.mxu1 }
 0x3e8   : > { %v2186_v60 = vpop.f32.mrf.mxu0 }
 0x3e9   : > { %4796 = vpow2.f32 %v4232_v25  ;;  %v4235_v35 = vmul.f32 -1.442695, %v2249_v26  ;;  %v2247_v39 = vadd.f32 %v2186_v60, %v1273_v23  ;;  %v1310_v60 = vadd.f32 %v4453_v62, %v5450_v10 }
 0x3ea   : > { %v4521_v50 = vpop.f32.mrf.mxu0 }
 0x3eb   : > { %4798 = vpow2.f32 %v4235_v35  ;;  %v4233_v18 = vmul.f32 -1.442695, %v2247_v39  ;;  %v2252_v19 = vadd.f32 %v4521_v50, %v1294_v52  ;;  %v1304_v35 = vpop.f32.mrf.mxu1 }
 0x3ec   : > { %v2199_v6 = vpop.f32.mrf.mxu0 }
 0x3ed   : > { %4800 = vpow2.f32 %v4233_v18  ;;  %v4238_v20 = vmul.f32 -1.442695, %v2252_v19  ;;  %v2250_v51 = vadd.f32 %v2199_v6, %v1286_v0  ;;  %v4457_v10 = vpop.f32.mrf.mxu1 }
 0x3ee   : > { %v4522_v30 = vpop.f32.mrf.mxu0 }
 0x3ef   : > { %4802 = vpow2.f32 %v4238_v20  ;;  %v4236_v47 = vmul.f32 -1.442695, %v2250_v51  ;;  %v5793_v38 = vadd.f32 %v4522_v30, %v1297_v45  ;;  %v5800_v45 = vld [vmem:[%s6739_s4] ss:$0 sm:$0xff] }
 0x3f0   : > { %v2202_v3 = vpop.f32.mrf.mxu0  ;;  %v1302_v20 = vadd.f32 %v5800_v45, %v1301_v48  ;;  %v1305_v48 = vadd.f32 %v5800_v45, %v1304_v35 }
 0x3f1   : > { %4804 = vpow2.f32 %v4236_v47  ;;  %v4239_v28 = vmul.f32 -1.442695, %v5793_v38  ;;  %v2251_v23 = vadd.f32 %v2202_v3, %v1289_v36 }
 0x3f3   : > { %4806 = vpow2.f32 %v4239_v28  ;;  %v4237_v52 = vmul.f32 -1.442695, %v2251_v23 }
 0x3f4   : > { %v4795_v32 = vpop.eup %4794 }
 0x3f5   : > { %4808 = vpow2.f32 %v4237_v52  ;;  %v2328_v43 = vadd.f32 1.0, %v4795_v32  ;;  %v1317_v32 = vpop.f32.mrf.mxu1 }
 0x3f6   : > { %v4797_v25 = vpop.eup %4796  ;;  %4810 = vtanh.f32 %v2248_v22 }
 0x3f7   : > { %4812 = vtanh.f32 %v2246_v42  ;;  %v2326_v50 = vadd.f32 1.0, %v4797_v25  ;;  %v4458_v35 = vpop.f32.mrf.mxu1 }
 0x3f8   : > { %v4799_v0 = vpop.eup %4798  ;;  %4814 = vtanh.f32 %v2249_v26  ;;  %v1313_v26 = vadd.f32 %v5800_v45, %v4454_v17 }
 0x3f9   : > { %4816 = vrcp.f32 %v2326_v50  ;;  %v4525_v18 = vpop.f32.mrf.mxu0  ;;  %v2329_v62 = vadd.f32 1.0, %v4799_v0  ;;  %v1326_v0 = vadd.f32 %v5800_v45, %v4457_v10 }
 0x3fa   : > { %v4801_v6 = vpop.eup %4800  ;;  %4818 = vtanh.f32 %v2247_v39  ;;  %v5803_v22 = vadd.f32 %v4525_v18, %v1310_v60 }
 0x3fb   : > { %4820 = vrcp.f32 %v2328_v43  ;;  %v2327_v42 = vadd.f32 1.0, %v4801_v6  ;;  %v2215_v30 = vpop.f32.mrf.mxu0 }
 0x3fc   : > { %v4803_v36 = vpop.eup %4802  ;;  %4822 = vtanh.f32 %v2252_v19  ;;  %v4242_v39 = vmul.f32 -1.442695, %v5803_v22  ;;  %v5807_v47 = vadd.f32 %v2215_v30, %v1302_v20 }
 0x3fd   : > { %4824 = vrcp.f32 %v2327_v42  ;;  %v4526_v3 = vpop.f32.mrf.mxu0  ;;  %v2332_v60 = vadd.f32 1.0, %v4803_v36 }
 0x3fe   : > { %v4805_v28 = vpop.eup %4804  ;;  %4826 = vtanh.f32 %v2250_v51  ;;  %v4240_v52 = vmul.f32 -1.442695, %v5807_v47  ;;  %v5811_v25 = vadd.f32 %v4526_v3, %v1313_v26 }
 0x3ff   : > { %4828 = vrcp.f32 %v2329_v62  ;;  %v2330_v19 = vadd.f32 1.0, %v4805_v28  ;;  %v2218_v43 = vpop.f32.mrf.mxu0  ;;  %v1329_v28 = vadd.f32 %v5800_v45, %v4458_v35 }
 0x400   : > { %v4807_v17 = vpop.eup %4806  ;;  %4830 = vpow2.f32 %v4242_v39  ;;  %v5813_v50 = vadd.f32 %v2218_v43, %v1305_v48  ;;  %v4243_v51 = vmul.f32 -1.442695, %v5811_v25  ;;  %v1318_v39 = vadd.f32 %v5800_v45, %v1317_v32  ;;  %v1320_v48 = vpop.f32.mrf.mxu1 }
 0x401   : > { %4832 = vrcp.f32 %v2330_v19  ;;  %v2333_v20 = vadd.f32 1.0, %v4807_v17 }
 0x402   : > { %v4809_v18 = vpop.eup %4808  ;;  %4834 = vpow2.f32 %v4240_v52  ;;  %v4241_v30 = vmul.f32 -1.442695, %v5813_v50 }
 0x403   : > { %v4811_v6 = vpop.eup %4810  ;;  %4836 = vrcp.f32 %v2332_v60  ;;  %v2331_v42 = vadd.f32 1.0, %v4809_v18  ;;  %v1321_v18 = vadd.f32 %v5800_v45, %v1320_v48 }
 0x404   : > { %v4813_v62 = vpop.eup %4812  ;;  %4838 = vtanh.f32 %v2251_v23  ;;  %v4529_v36 = vpop.f32.mrf.mxu0 }
 0x405   : > { %v4815_v26 = vpop.eup %4814  ;;  %4840 = vrcp.f32 %v2331_v42  ;;  %v5819_v3 = vadd.f32 %v4529_v36, %v1326_v0 }
 0x406   : > { %v4817_v10 = vpop.eup %4816  ;;  %4842 = vpow2.f32 %v4243_v51  ;;  %v2231_v52 = vpop.f32.mrf.mxu0 }
 0x407   : > { %v4819_v60 = vpop.eup %4818  ;;  %4844 = vrcp.f32 %v2333_v20  ;;  %v4246_v19 = vmul.f32 -1.442695, %v5819_v3  ;;  %v2258_v23 = vadd.f32 %v2231_v52, %v1318_v39  ;;  %v5825_v43 = vsel %vm5492_vm3, %v4813_v62, %v4817_v10 }
 0x408   : > { %v4821_v17 = vpop.eup %4820  ;;  %4846 = vpow2.f32 %v4241_v30  ;;  %v4530_v32 = vpop.f32.mrf.mxu0  ;;  %2422 = vrot.lane.b32.xlu0 %v5825_v43, %s5207_s24 }
 0x409   : > { %v4823_v0 = vpop.eup %4822  ;;  %4848 = vtanh.f32 %v5793_v38  ;;  %v4244_v51 = vmul.f32 -1.442695, %v2258_v23  ;;  %v5831_v35 = vadd.f32 %v4530_v32, %v1329_v28  ;;  %v5836_v30 = vsel %vm5492_vm3, %v4811_v6, %v4821_v17 }
 0x40a   : > { %v4825_v20 = vpop.eup %4824  ;;  %4850 = vpow2.f32 %v4246_v19  ;;  %v2234_v42 = vpop.f32.mrf.mxu0 }
 0x40b   : > { %v4827_v36 = vpop.eup %4826  ;;  %v4247_v62 = vmul.f32 -1.442695, %v5831_v35  ;;  %v2259_v39 = vadd.f32 %v2234_v42, %v1321_v18  ;;  %v5840_v10 = vsel %vm5492_vm3, %v4819_v60, %v4825_v20  ;;  %4852 = vpow2.f32 %v4244_v51 }
 0x40c   : > { %v4829_v38 = vpop.eup %4828  ;;  %2426 = vrot.lane.b32.xlu0 %v5836_v30, %s5207_s24  ;;  %2424 = vrot.lane.b32.xlu1 %v5840_v10, %s5207_s24 }
 0x40d   : > { %v4831_v28 = vpop.eup %4830  ;;  %v4245_v48 = vmul.f32 -1.442695, %v2259_v39  ;;  %4854 = vpow2.f32 %v4247_v62  ;;  %v5848_v6 = vsel %vm5492_vm3, %v4815_v26, %v4829_v38 }
 0x40e   : > { %v4833_v52 = vpop.eup %4832  ;;  %v2336_v32 = vadd.f32 1.0, %v4831_v28  ;;  %4856 = vtanh.f32 %v5807_v47 }
 0x40f   : > { %v4835_v19 = vpop.eup %4834  ;;  %v5852_v60 = vsel %vm5492_vm3, %v4827_v36, %v4833_v52  ;;  %4858 = vpow2.f32 %v4245_v48 }
 0x410   : > { %v4837_v17 = vpop.eup %4836  ;;  %v2334_v18 = vadd.f32 1.0, %v4835_v19  ;;  %2428 = vrot.lane.b32.xlu1 %v5848_v6, %s5207_s24  ;;  %2430 = vrot.lane.b32.xlu0 %v5852_v60, %s5207_s24 }
 0x411   : > { %v4839_v51 = vpop.eup %4838  ;;  %v5861_v42 = vsel %vm5492_vm3, %v4823_v0, %v4837_v17 }
 0x412   : > { %v4841_v20 = vpop.eup %4840  ;;  %4860 = vrcp.f32 %v2334_v18 }
 0x413   : > { %v4843_v26 = vpop.eup %4842  ;;  %v5865_v36 = vsel %vm5492_vm3, %v4839_v51, %v4841_v20  ;;  %4862 = vrcp.f32 %v2336_v32 }
 0x414   : > { %v4845_v47 = vpop.eup %4844  ;;  %2434 = vrot.lane.b32.xlu0 %v5861_v42, %s5207_s24  ;;  %2432 = vrot.lane.b32.xlu1 %v5865_v36, %s5207_s24  ;;  %4864 = vtanh.f32 %v5803_v22  ;;  %v2337_v28 = vadd.f32 1.0, %v4843_v26 }
 0x415   : > { %v4847_v62 = vpop.eup %4846  ;;  %4866 = vtanh.f32 %v5813_v50 }
 0x416   : > { %v4849_v38 = vpop.eup %4848  ;;  %v2335_v48 = vadd.f32 1.0, %v4847_v62 }
 0x417   : > { %v4851_v0 = vpop.eup %4850  ;;  %v5875_v52 = vsel %vm5492_vm3, %v4849_v38, %v4845_v47 }
 0x418   : > { %4868 = vrcp.f32 %v2335_v48  ;;  %2436 = vrot.lane.b32.xlu1 %v5875_v52, %s5207_s24  ;;  %v4853_v19 = vpop.eup %4852  ;;  %v2340_v17 = vadd.f32 1.0, %v4851_v0 }
 0x419   : > { %4870 = vtanh.f32 %v5811_v25  ;;  %v2338_v32 = vadd.f32 1.0, %v4853_v19 }
 0x41a   : > { %4872 = vrcp.f32 %v2337_v28  ;;  %v4855_v22 = vpop.eup %4854 }
 0x41b   : > { %4874 = vtanh.f32 %v2258_v23  ;;  %v4857_v18 = vpop.eup %4856  ;;  %v2341_v20 = vadd.f32 1.0, %v4855_v22 }
 0x41c   : > { %4876 = vrcp.f32 %v2338_v32  ;;  %v4859_v51 = vpop.eup %4858 }
 0x41d   : > { %4878 = vrcp.f32 %v2340_v17  ;;  %v2339_v26 = vadd.f32 1.0, %v4859_v51 }
 0x41e   : > { %4880 = vtanh.f32 %v5819_v3 }
 0x41f   : > { %v4861_v50 = vpop.eup %4860  ;;  %4882 = vtanh.f32 %v2259_v39 }
 0x420   : > { %v5883_v47 = vsel %vm5492_vm3, %v4857_v18, %v4861_v50  ;;  %v4863_v25 = vpop.eup %4862  ;;  %4884 = vrcp.f32 %v2339_v26 }
 0x421   : > { %2438 = vrot.lane.b32.xlu0 %v5883_v47, %s5207_s24  ;;  %v4865_v23 = vpop.eup %4864  ;;  %4886 = vrcp.f32 %v2341_v20 }
 0x422   : > { %v4867_v62 = vpop.eup %4866  ;;  %v5889_v38 = vsel %vm5492_vm3, %v4865_v23, %v4863_v25  ;;  %4888 = vtanh.f32 %v5831_v35 }
 0x425   : > { %v4869_v3 = vpop.eup %4868  ;;  %2442 = vrot.lane.b32.xlu0 %v5889_v38, %s5207_s24 }
 0x426   : > { %v4871_v39 = vpop.eup %4870  ;;  %v5896_v28 = vsel %vm5492_vm3, %v4867_v62, %v4869_v3 }
 0x427   : > { %v4873_v48 = vpop.eup %4872  ;;  %2440 = vrot.lane.b32.xlu1 %v5896_v28, %s5207_s24 }
 0x428   : > { %v4875_v0 = vpop.eup %4874  ;;  %v5902_v17 = vsel %vm5492_vm3, %v4871_v39, %v4873_v48 }
 0x429   : > { %v4877_v19 = vpop.eup %4876 }
 0x42a   : > { %v5906_v35 = vsel %vm5492_vm3, %v4875_v0, %v4877_v19  ;;  %v4879_v32 = vpop.eup %4878 }
 0x42b   : > { %2444 = vrot.lane.b32.xlu1 %v5902_v17, %s5207_s24  ;;  %2446 = vrot.lane.b32.xlu0 %v5906_v35, %s5207_s24  ;;  %v4881_v22 = vpop.eup %4880 }
 0x42c   : > { %v4883_v18 = vpop.eup %4882  ;;  %v5914_v50 = vsel %vm5492_vm3, %v4881_v22, %v4879_v32 }
 0x42d   : > { %v4885_v51 = vpop.eup %4884 }
 0x42e   : > { %v5920_v20 = vsel %vm5492_vm3, %v4883_v18, %v4885_v51  ;;  %v4887_v26 = vpop.eup %4886 }
 0x42f   : > { %2450 = vrot.lane.b32.xlu0 %v5914_v50, %s5207_s24  ;;  %2448 = vrot.lane.b32.xlu1 %v5920_v20, %s5207_s24  ;;  %v4889_v25 = vpop.eup %4888 }
 0x430   : > { %v5926_v23 = vsel %vm5492_vm3, %v4889_v25, %v4887_v26 }
 0x433   : > { %2452 = vrot.lane.b32.xlu1 %v5926_v23, %s5207_s24 }
 0x47a   : > { %v2423_v62 = vpop.permute.xlu0 %2422 }
 0x47b   : > { %v2470_v3 = vmul.f32 %v2423_v62, %v5825_v43 }
 0x47d   : > { %2502 = vrot.lane.b32.xlu0 %v2470_v3, %s5208_s25 }
 0x47e   : > { %v2425_v39 = vpop.permute.xlu1 %2424  ;;  %v2427_v48 = vpop.permute.xlu0 %2426 }
 0x47f   : > { %v2471_v0 = vmul.f32 %v2425_v39, %v5840_v10  ;;  %v2472_v19 = vmul.f32 %v2427_v48, %v5836_v30 }
 0x481   : > { %2504 = vrot.lane.b32.xlu1 %v2471_v0, %s5208_s25  ;;  %2506 = vrot.lane.b32.xlu0 %v2472_v19, %s5208_s25 }
 0x482   : > { %v2429_v32 = vpop.permute.xlu1 %2428  ;;  %v2431_v22 = vpop.permute.xlu0 %2430 }
 0x483   : > { %v2473_v18 = vmul.f32 %v2429_v32, %v5848_v6  ;;  %v2474_v51 = vmul.f32 %v2431_v22, %v5852_v60 }
 0x485   : > { %2508 = vrot.lane.b32.xlu1 %v2473_v18, %s5208_s25  ;;  %2510 = vrot.lane.b32.xlu0 %v2474_v51, %s5208_s25 }
 0x486   : > { %v2433_v26 = vpop.permute.xlu1 %2432  ;;  %v2435_v25 = vpop.permute.xlu0 %2434 }
 0x487   : > { %v2475_v62 = vmul.f32 %v2433_v26, %v5865_v36  ;;  %v2476_v3 = vmul.f32 %v2435_v25, %v5861_v42 }
 0x489   : > { %2512 = vrot.lane.b32.xlu1 %v2475_v62, %s5208_s25  ;;  %2514 = vrot.lane.b32.xlu0 %v2476_v3, %s5208_s25 }
 0x48a   : > { %v2437_v39 = vpop.permute.xlu1 %2436 }
 0x48b   : > { %v2477_v48 = vmul.f32 %v2437_v39, %v5875_v52 }
 0x48d   : > { %2516 = vrot.lane.b32.xlu1 %v2477_v48, %s5208_s25 }
 0x493   : > { %v2439_v0 = vpop.permute.xlu0 %2438 }
 0x494   : > { %v2478_v19 = vmul.f32 %v2439_v0, %v5883_v47 }
 0x496   : > { %2518 = vrot.lane.b32.xlu0 %v2478_v19, %s5208_s25 }
 0x497   : > { %v2443_v32 = vpop.permute.xlu0 %2442 }
 0x498   : > { %v2480_v22 = vmul.f32 %v2443_v32, %v5889_v38 }
 0x499   : > { %v2441_v18 = vpop.permute.xlu1 %2440 }
 0x49a   : > { %v2479_v51 = vmul.f32 %v2441_v18, %v5896_v28  ;;  %2522 = vrot.lane.b32.xlu0 %v2480_v22, %s5208_s25  ;;  %v2390_v18 = vmul.f32 %v5825_v43, %v5644_v49  ;;  %v2393_v49 = vmul.f32 %v5848_v6, %v5657_v27 }
 0x49c   : > { %2520 = vrot.lane.b32.xlu1 %v2479_v51, %s5208_s25 }
 0x49d   : > { %v2445_v26 = vpop.permute.xlu1 %2444  ;;  %v2447_v25 = vpop.permute.xlu0 %2446 }
 0x49e   : > { %v2481_v62 = vmul.f32 %v2445_v26, %v5902_v17  ;;  %v2482_v3 = vmul.f32 %v2447_v25, %v5906_v35  ;;  %v2391_v25 = vmul.f32 %v5840_v10, %v5649_v53 }
 0x4a0   : > { %2524 = vrot.lane.b32.xlu1 %v2481_v62, %s5208_s25  ;;  %2526 = vrot.lane.b32.xlu0 %v2482_v3, %s5208_s25  ;;  %v2392_v62 = vmul.f32 %v5836_v30, %v5651_v54 }
 0x4a1   : > { %v2451_v39 = vpop.permute.xlu0 %2450  ;;  %v2449_v48 = vpop.permute.xlu1 %2448 }
 0x4a2   : > { %v2484_v0 = vmul.f32 %v2451_v39, %v5914_v50  ;;  %v2483_v19 = vmul.f32 %v2449_v48, %v5920_v20 }
 0x4a4   : > { %2530 = vrot.lane.b32.xlu0 %v2484_v0, %s5208_s25  ;;  %2528 = vrot.lane.b32.xlu1 %v2483_v19, %s5208_s25  ;;  %v2394_v19 = vmul.f32 %v5852_v60, %v5659_v14 }
 0x4a5   : > { %v2453_v32 = vpop.permute.xlu1 %2452 }
 0x4a6   : > { %v2485_v22 = vmul.f32 %v2453_v32, %v5926_v23 }
 0x4a8   : > { %2532 = vrot.lane.b32.xlu1 %v2485_v22, %s5208_s25 }
 0x4ef   : > { %v2503_v51 = vpop.permute.xlu0 %2502 }
 0x4f0   : > { %v5964_v26 = vadd.f32 %v2503_v51, %v2390_v18  ;;  %v2395_v18 = vmul.f32 %v5865_v36, %v5665_v21  ;;  %v2396_v51 = vmul.f32 %v5861_v42, %v5667_v24 }
 0x4f2   : > { %4890 = vtanh.f32 %v5964_v26 }
 0x4f3   : > { %v2505_v3 = vpop.permute.xlu1 %2504  ;;  %v2507_v39 = vpop.permute.xlu0 %2506 }
 0x4f4   : > { %v5971_v48 = vadd.f32 %v2505_v3, %v2391_v25  ;;  %v5973_v0 = vadd.f32 %v2507_v39, %v2392_v62  ;;  %v2397_v3 = vmul.f32 %v5875_v52, %v5672_v31  ;;  %v2398_v31 = vmul.f32 %v5883_v47, %v5677_v40 }
 0x4f5   : > { %v2399_v40 = vmul.f32 %v5896_v28, %v5689_v9  ;;  %v2402_v9 = vmul.f32 %v5906_v35, %v5700_v16 }
 0x4f6   : > { %4892 = vtanh.f32 %v5971_v48 }
 0x4f7   : > { %4894 = vtanh.f32 %v5973_v0  ;;  %v2509_v53 = vpop.permute.xlu1 %2508  ;;  %v2511_v32 = vpop.permute.xlu0 %2510 }
 0x4f8   : > { %v5981_v22 = vadd.f32 %v2509_v53, %v2393_v49  ;;  %v5983_v54 = vadd.f32 %v2511_v32, %v2394_v19 }
 0x4fa   : > { %4896 = vtanh.f32 %v5981_v22 }
 0x4fb   : > { %4898 = vtanh.f32 %v5983_v54  ;;  %v2513_v27 = vpop.permute.xlu1 %2512  ;;  %v2515_v14 = vpop.permute.xlu0 %2514 }
 0x4fc   : > { %v5991_v25 = vadd.f32 %v2513_v27, %v2395_v18  ;;  %v5993_v62 = vadd.f32 %v2515_v14, %v2396_v51  ;;  %v2400_v14 = vmul.f32 %v5889_v38, %v5683_v37  ;;  %v2401_v37 = vmul.f32 %v5902_v17, %v5695_v46 }
 0x4fe   : > { %4900 = vtanh.f32 %v5991_v25 }
 0x4ff   : > { %v4891_v39 = vpop.eup %4890  ;;  %4902 = vtanh.f32 %v5993_v62  ;;  %v2517_v21 = vpop.permute.xlu1 %2516 }
 0x500   : > { %v5999_v49 = vadd.f32 %v2517_v21, %v2397_v3  ;;  %2598 = vrot.lane.b32.xlu0 %v4891_v39, %s5207_s24 }
 0x502   : > { %4904 = vtanh.f32 %v5999_v49 }
 0x503   : > { %v4893_v24 = vpop.eup %4892 }
 0x504   : > { %v4895_v19 = vpop.eup %4894  ;;  %2600 = vrot.lane.b32.xlu1 %v4893_v24, %s5207_s24 }
 0x505   : > { %2602 = vrot.lane.b32.xlu0 %v4895_v19, %s5207_s24 }
 0x507   : > { %v4897_v53 = vpop.eup %4896 }
 0x508   : > { %v4899_v32 = vpop.eup %4898  ;;  %v2519_v18 = vpop.permute.xlu0 %2518  ;;  %2604 = vrot.lane.b32.xlu1 %v4897_v53, %s5207_s24 }
 0x509   : > { %v6008_v51 = vadd.f32 %v2519_v18, %v2398_v31  ;;  %2606 = vrot.lane.b32.xlu0 %v4899_v32, %s5207_s24 }
 0x50b   : > { %v4901_v27 = vpop.eup %4900  ;;  %4906 = vtanh.f32 %v6008_v51 }
 0x50c   : > { %v4903_v3 = vpop.eup %4902  ;;  %v2523_v39 = vpop.permute.xlu0 %2522  ;;  %2608 = vrot.lane.b32.xlu1 %v4901_v27, %s5207_s24 }
 0x50d   : > { %v6017_v21 = vadd.f32 %v2523_v39, %v2400_v14  ;;  %2610 = vrot.lane.b32.xlu0 %v4903_v3, %s5207_s24  ;;  %v2404_v14 = vmul.f32 %v5914_v50, %v5706_v44  ;;  %v2403_v3 = vmul.f32 %v5920_v20, %v5708_v33  ;;  %v2405_v44 = vmul.f32 %v5926_v23, %v5714_v13 }
 0x50e   : > { %v2521_v24 = vpop.permute.xlu1 %2520 }
 0x50f   : > { %v4905_v19 = vpop.eup %4904  ;;  %v6020_v53 = vadd.f32 %v2521_v24, %v2399_v40  ;;  %4908 = vtanh.f32 %v6017_v21 }
 0x510   : > { %2612 = vrot.lane.b32.xlu1 %v4905_v19, %s5207_s24 }
 0x511   : > { %4910 = vtanh.f32 %v6020_v53 }
 0x512   : > { %v2525_v31 = vpop.permute.xlu1 %2524  ;;  %v2527_v32 = vpop.permute.xlu0 %2526 }
 0x513   : > { %v6029_v18 = vadd.f32 %v2525_v31, %v2401_v37  ;;  %v6031_v27 = vadd.f32 %v2527_v32, %v2402_v9 }
 0x515   : > { %4912 = vtanh.f32 %v6029_v18 }
 0x516   : > { %4914 = vtanh.f32 %v6031_v27  ;;  %v2531_v46 = vpop.permute.xlu0 %2530  ;;  %v2529_v39 = vpop.permute.xlu1 %2528 }
 0x517   : > { %v6039_v40 = vadd.f32 %v2531_v46, %v2404_v14  ;;  %v6041_v24 = vadd.f32 %v2529_v39, %v2403_v3  ;;  %v4648_v14 = vld [vmem:[%s5395_s27 + $0x80] sm:$0xff]   ;;  %v4649_v3 = vld [vmem:[%s5395_s27 + $0x88] sm:$0xff]  }
 0x518   : > { %v4907_v16 = vpop.eup %4906  ;;  %4459 = vmatprep.mubr.msk.bf16.mxu1 %vm706_vm0, %v4648_v14 }
 0x519   : > { %4916 = vtanh.f32 %v6039_v40  ;;  %2614 = vrot.lane.b32.xlu0 %v4907_v16, %s5207_s24  ;;  %4460 = vmatmul.mubr.msk.bf16.gmra.mxu1 %vm706_vm0, %v4649_v3  ;;  %v4650_v16 = vld [vmem:[%s5395_s27 + $0x90] sm:$0xff]   ;;  %v4652_v3 = vld [vmem:[%s5395_s27 + $0xa0] sm:$0xff]  }
 0x51a   : > { %4918 = vtanh.f32 %v6041_v24  ;;  %v2533_v19 = vpop.permute.xlu1 %2532  ;;  %4463 = vmatprep.mubr.msk.bf16.mxu1 %vm706_vm0, %v4650_v16 }
 0x51b   : > { %v6048_v37 = vadd.f32 %v2533_v19, %v2405_v44  ;;  %v4651_v19 = vld [vmem:[%s5395_s27 + $0x98] sm:$0xff]  }
 0x51c   : > { %v4909_v33 = vpop.eup %4908 }
 0x51d   : > { %2618 = vrot.lane.b32.xlu0 %v4909_v33, %s5207_s24  ;;  %4920 = vtanh.f32 %v6048_v37 }
 0x51e   : > { %v4911_v9 = vpop.eup %4910 }
 0x51f   : > { %2616 = vrot.lane.b32.xlu1 %v4911_v9, %s5207_s24 }
 0x521   : > { %4464 = vmatmul.mubr.msk.bf16.gmra.mxu1 %vm706_vm0, %v4651_v19 }
 0x522   : > { %v4913_v31 = vpop.eup %4912  ;;  %4467 = vmatprep.mubr.msk.bf16.mxu1 %vm706_vm0, %v4652_v3 }
 0x523   : > { %v4915_v32 = vpop.eup %4914  ;;  %2620 = vrot.lane.b32.xlu1 %v4913_v31, %s5207_s24 }
 0x524   : > { %2622 = vrot.lane.b32.xlu0 %v4915_v32, %s5207_s24 }
 0x526   : > { %v4917_v13 = vpop.eup %4916 }
 0x527   : > { %v4919_v46 = vpop.eup %4918 }
 0x528   : > { %2624 = vrot.lane.b32.xlu1 %v4919_v46, %s5207_s24  ;;  %2626 = vrot.lane.b32.xlu0 %v4917_v13, %s5207_s24  ;;  %v4653_v13 = vld [vmem:[%s5395_s27 + $0xa8] sm:$0xff]  }
 0x529   : > { %4468 = vmatmul.mubr.msk.bf16.gmra.mxu1 %vm706_vm0, %v4653_v13 }
 0x52a   : > { %v4921_v39 = vpop.eup %4920 }
 0x52c   : > { %2628 = vrot.lane.b32.xlu1 %v4921_v39, %s5207_s24 }
 0x572   : > { %v2599_v44 = vpop.permute.xlu0 %2598 }
 0x573   : > { %v2646_v9 = vmul.f32 %v2599_v44, %v5825_v43 }
 0x576   : > { %v2601_v33 = vpop.permute.xlu1 %2600 }
 0x577   : > { %v2647_v31 = vmul.f32 %v2601_v33, %v5840_v10  ;;  %v2603_v32 = vpop.permute.xlu0 %2602 }
 0x578   : > { %v2648_v15 = vmul.f32 %v2603_v32, %v5836_v30  ;;  %v4654_v32 = vld [vmem:[%s5395_s27 + $0xb0] sm:$0xff]  }
 0x579   : > { %v2678_v14 = vpack.c.bf16 %v2647_v31, %v2646_v9  ;;  %4471 = vmatprep.mubr.msk.bf16.mxu1 %vm706_vm0, %v4654_v32 }
 0x57a   : > { %v2605_v46 = vpop.permute.xlu1 %2604 }
 0x57b   : > { %v2649_v39 = vmul.f32 %v2605_v46, %v5848_v6  ;;  %v2607_v12 = vpop.permute.xlu0 %2606  ;;  %2694 = vrot.lane.b32.xlu0 %v2678_v14, %s5208_s25  ;;  %v4655_v14 = vld [vmem:[%s5395_s27 + $0xb8] sm:$0xff]  }
 0x57c   : > { %v2650_v16 = vmul.f32 %v2607_v12, %v5852_v60  ;;  %4472 = vmatmul.mubr.msk.bf16.gmra.mxu1 %vm706_vm0, %v4655_v14 }
 0x57d   : > { %v2679_v43 = vpack.c.bf16 %v2649_v39, %v2648_v15 }
 0x57e   : > { %v2609_v10 = vpop.permute.xlu1 %2608 }
 0x57f   : > { %v2651_v44 = vmul.f32 %v2609_v10, %v5865_v36  ;;  %2696 = vrot.lane.b32.xlu1 %v2679_v43, %s5208_s25  ;;  %v2611_v30 = vpop.permute.xlu0 %2610 }
 0x580   : > { %v2652_v33 = vmul.f32 %v2611_v30, %v5861_v42 }
 0x581   : > { %v2680_v19 = vpack.c.bf16 %v2651_v44, %v2650_v16 }
 0x582   : > { %v2613_v6 = vpop.permute.xlu1 %2612 }
 0x583   : > { %v2653_v9 = vmul.f32 %v2613_v6, %v5875_v52  ;;  %2698 = vrot.lane.b32.xlu0 %v2680_v19, %s5208_s25 }
 0x585   : > { %v2681_v31 = vpack.c.bf16 %v2653_v9, %v2652_v33 }
 0x587   : > { %2700 = vrot.lane.b32.xlu1 %v2681_v31, %s5208_s25 }
 0x58b   : > { %v2615_v15 = vpop.permute.xlu0 %2614 }
 0x58c   : > { %v2654_v36 = vmul.f32 %v2615_v15, %v5883_v47 }
 0x58f   : > { %v2619_v12 = vpop.permute.xlu0 %2618 }
 0x590   : > { %v2656_v46 = vmul.f32 %v2619_v12, %v5889_v38 }
 0x591   : > { %v2617_v60 = vpop.permute.xlu1 %2616 }
 0x592   : > { %v2655_v42 = vmul.f32 %v2617_v60, %v5896_v28 }
 0x594   : > { %v2682_v3 = vpack.c.bf16 %v2655_v42, %v2654_v36 }
 0x595   : > { %v2621_v52 = vpop.permute.xlu1 %2620 }
 0x596   : > { %v2657_v13 = vmul.f32 %v2621_v52, %v5902_v17  ;;  %v2623_v39 = vpop.permute.xlu0 %2622  ;;  %2702 = vrot.lane.b32.xlu0 %v2682_v3, %s5208_s25 }
 0x597   : > { %v2658_v16 = vmul.f32 %v2623_v39, %v5906_v35 }
 0x598   : > { %v2683_v43 = vpack.c.bf16 %v2657_v13, %v2656_v46 }
 0x59a   : > { %v2625_v10 = vpop.permute.xlu1 %2624  ;;  %2704 = vrot.lane.b32.xlu1 %v2683_v43, %s5208_s25  ;;  %v2627_v47 = vpop.permute.xlu0 %2626 }
 0x59b   : > { %v2659_v44 = vmul.f32 %v2625_v10, %v5920_v20  ;;  %v2660_v19 = vmul.f32 %v2627_v47, %v5914_v50 }
 0x59d   : > { %v2684_v30 = vpack.c.bf16 %v2659_v44, %v2658_v16 }
 0x59e   : > { %v2629_v28 = vpop.permute.xlu1 %2628 }
 0x59f   : > { %v2661_v38 = vmul.f32 %v2629_v28, %v5926_v23  ;;  %2706 = vrot.lane.b32.xlu0 %v2684_v30, %s5208_s25 }
 0x5a1   : > { %v2685_v17 = vpack.c.bf16 %v2661_v38, %v2660_v19 }
 0x5a3   : > { %2708 = vrot.lane.b32.xlu1 %v2685_v17, %s5208_s25 }
 0x5d9   : > { %v4461_v31 = vpop.f32.mrf.mxu1 }
 0x5da   : > { %v1342_v12 = vadd.f32 %v5800_v45, %v4461_v31 }
 0x5db   : > { %v1333_v15 = vpop.f32.mrf.mxu1 }
 0x5dc   : > { %v1334_v42 = vadd.f32 %v5800_v45, %v1333_v15 }
 0x5dd   : > { %v4462_v32 = vpop.f32.mrf.mxu1 }
 0x5de   : > { %v1345_v13 = vadd.f32 %v5800_v45, %v4462_v32 }
 0x5df   : > { %v1336_v14 = vpop.f32.mrf.mxu1 }
 0x5e0   : > { %v1337_v10 = vadd.f32 %v5800_v45, %v1336_v14 }
 0x5ed   : > { %v2695_v6 = vpop.permute.xlu0 %2694 }
 0x5ee   : > { %4535 = vmatprep.mubr.msk.bf16.mxu0 %vm706_vm0, %v2695_v6 }
 0x5f1   : > { %v2697_v33 = vpop.permute.xlu1 %2696 }
 0x5f2   : > { %4536 = vmatmul.mubr.msk.bf16.vlgmr.msra.gmra.mxu0 %vm706_vm0, %v2697_v33 }
 0x5f3   : > { %4552 = vmatpush3.bf16.msra.mxu0 %v5768_v29 }
 0x5f4   : > { %4553 = vmatprep.subr.bf16.mxu0 %v5774_v34 }
 0x5f5   : > { %v2699_v35 = vpop.permute.xlu0 %2698 }
 0x5f6   : > { %4539 = vmatprep.mubr.msk.bf16.mxu0 %vm706_vm0, %v2699_v35 }
 0x5f7   : > { %4554 = vmatpush3.bf16.msra.mxu0 %v5774_v34  ;;  %v4465_v34 = vpop.f32.mrf.mxu1 }
 0x5f8   : > { %v1358_v44 = vadd.f32 %v5800_v45, %v4465_v34 }
 0x5f9   : > { %v2701_v50 = vpop.permute.xlu1 %2700  ;;  %v1349_v60 = vpop.f32.mrf.mxu1 }
 0x5fa   : > { %4540 = vmatmul.mubr.msk.bf16.gmra.mxu0 %vm706_vm0, %v2701_v50  ;;  %v1350_v33 = vadd.f32 %v5800_v45, %v1349_v60 }
 0x5fb   : > { %v4466_v52 = vpop.f32.mrf.mxu1 }
 0x5fd   : > { %v1352_v28 = vpop.f32.mrf.mxu1 }
 0x5fe   : > { %v1353_v32 = vadd.f32 %v5800_v45, %v1352_v28 }
 0x608   : > { %v2703_v20 = vpop.permute.xlu0 %2702 }
 0x609   : > { %4543 = vmatprep.mubr.msk.bf16.mxu0 %vm706_vm0, %v2703_v20  ;;  %v4469_v20 = vpop.f32.mrf.mxu1 }
 0x60b   : > { %v1365_v34 = vpop.f32.mrf.mxu1 }
 0x60c   : > { %v2705_v23 = vpop.permute.xlu1 %2704 }
 0x60d   : > { %4544 = vmatmul.mubr.msk.bf16.gmra.mxu0 %vm706_vm0, %v2705_v23 }
 0x611   : > { %v2707_v9 = vpop.permute.xlu0 %2706 }
 0x612   : > { %4547 = vmatprep.mubr.msk.bf16.mxu0 %vm706_vm0, %v2707_v9  ;;  %v1361_v9 = vadd.f32 %v5800_v45, %v4466_v52 }
 0x615   : > { %v2709_v29 = vpop.permute.xlu1 %2708 }
 0x616   : > { %4548 = vmatmul.mubr.msk.bf16.gmra.mxu0 %vm706_vm0, %v2709_v29 }
 0x6b2   : > { %v4537_v36 = vpop.f32.mrf.mxu0 }
 0x6b3   : > { %v2833_v3 = vadd.f32 %v4537_v36, %v1342_v12 }
 0x6b4   : > { %v2768_v46 = vpop.f32.mrf.mxu0 }
 0x6b5   : > { %v4258_v39 = vmul.f32 -1.442695, %v2833_v3  ;;  %v2831_v43 = vadd.f32 %v2768_v46, %v1334_v42  ;;  %v4470_v46 = vpop.f32.mrf.mxu1 }
 0x6b6   : > { %v4538_v16 = vpop.f32.mrf.mxu0 }
 0x6b7   : > { %4922 = vpow2.f32 %v4258_v39  ;;  %v4256_v47 = vmul.f32 -1.442695, %v2831_v43  ;;  %v2834_v30 = vadd.f32 %v4538_v16, %v1345_v13 }
 0x6b8   : > { %v2771_v19 = vpop.f32.mrf.mxu0 }
 0x6b9   : > { %4924 = vpow2.f32 %v4256_v47  ;;  %v4259_v38 = vmul.f32 -1.442695, %v2834_v30  ;;  %v2832_v17 = vadd.f32 %v2771_v19, %v1337_v10  ;;  %v1374_v19 = vadd.f32 %v5800_v45, %v4469_v20 }
 0x6ba   : > { %v4541_v6 = vpop.f32.mrf.mxu0 }
 0x6bb   : > { %4926 = vpow2.f32 %v4259_v38  ;;  %v4257_v35 = vmul.f32 -1.442695, %v2832_v17  ;;  %v2837_v50 = vadd.f32 %v4541_v6, %v1358_v44  ;;  %v1368_v44 = vpop.f32.mrf.mxu1 }
 0x6bc   : > { %v2784_v23 = vpop.f32.mrf.mxu0 }
 0x6bd   : > { %4928 = vpow2.f32 %v4257_v35  ;;  %v4262_v29 = vmul.f32 -1.442695, %v2837_v50  ;;  %v2835_v31 = vadd.f32 %v2784_v23, %v1350_v33  ;;  %v4473_v33 = vpop.f32.mrf.mxu1 }
 0x6be   : > { %v4542_v15 = vpop.f32.mrf.mxu0 }
 0x6bf   : > { %4930 = vpow2.f32 %v4262_v29  ;;  %v4260_v14 = vmul.f32 -1.442695, %v2835_v31  ;;  %v6117_v12 = vadd.f32 %v4542_v15, %v1361_v9 }
 0x6c0   : > { %v2787_v36 = vpop.f32.mrf.mxu0 }
 0x6c1   : > { %4932 = vpow2.f32 %v4260_v14  ;;  %v4263_v60 = vmul.f32 -1.442695, %v6117_v12  ;;  %v2836_v42 = vadd.f32 %v2787_v36, %v1353_v32  ;;  %v1381_v32 = vpop.f32.mrf.mxu1  ;;  %v1377_v14 = vadd.f32 %v5800_v45, %v4470_v46 }
 0x6c3   : > { %4934 = vpow2.f32 %v4263_v60  ;;  %v4261_v13 = vmul.f32 -1.442695, %v2836_v42  ;;  %v4474_v46 = vpop.f32.mrf.mxu1 }
 0x6c4   : > { %v4923_v52 = vpop.eup %4922 }
 0x6c5   : > { %4936 = vpow2.f32 %v4261_v13  ;;  %v2913_v10 = vadd.f32 1.0, %v4923_v52 }
 0x6c6   : > { %v4925_v39 = vpop.eup %4924  ;;  %4938 = vtanh.f32 %v2833_v3  ;;  %v1366_v3 = vadd.f32 %v5800_v45, %v1365_v34  ;;  %v1369_v34 = vadd.f32 %v5800_v45, %v1368_v44 }
 0x6c7   : > { %v2911_v16 = vadd.f32 1.0, %v4925_v39  ;;  %4940 = vtanh.f32 %v2831_v43 }
 0x6c8   : > { %v4927_v47 = vpop.eup %4926 }
 0x6c9   : > { %4942 = vrcp.f32 %v2911_v16  ;;  %v2914_v38 = vadd.f32 1.0, %v4927_v47 }
 0x6ca   : > { %v4929_v28 = vpop.eup %4928  ;;  %4944 = vtanh.f32 %v2834_v30 }
 0x6cb   : > { %4946 = vrcp.f32 %v2913_v10  ;;  %v2912_v6 = vadd.f32 1.0, %v4929_v28 }
 0x6cc   : > { %v4931_v35 = vpop.eup %4930  ;;  %4948 = vtanh.f32 %v2832_v17 }
 0x6cd   : > { %4950 = vrcp.f32 %v2912_v6  ;;  %v4545_v23 = vpop.f32.mrf.mxu0  ;;  %v2917_v43 = vadd.f32 1.0, %v4931_v35 }
 0x6ce   : > { %v4933_v9 = vpop.eup %4932  ;;  %4952 = vtanh.f32 %v2837_v50  ;;  %v6122_v29 = vadd.f32 %v4545_v23, %v1374_v19  ;;  %v1382_v23 = vadd.f32 %v5800_v45, %v1381_v32 }
 0x6cf   : > { %4954 = vrcp.f32 %v2914_v38  ;;  %v2915_v15 = vadd.f32 1.0, %v4933_v9  ;;  %v2800_v30 = vpop.f32.mrf.mxu0 }
 0x6d0   : > { %v4935_v20 = vpop.eup %4934  ;;  %4956 = vtanh.f32 %v2835_v31  ;;  %v4266_v36 = vmul.f32 -1.442695, %v6122_v29  ;;  %v6126_v17 = vadd.f32 %v2800_v30, %v1366_v3  ;;  %v1390_v31 = vadd.f32 %v5800_v45, %v4473_v33  ;;  %v1384_v33 = vpop.f32.mrf.mxu1 }
 0x6d1   : > { %4958 = vrcp.f32 %v2915_v15  ;;  %v4546_v60 = vpop.f32.mrf.mxu0  ;;  %v2918_v39 = vadd.f32 1.0, %v4935_v20  ;;  %v1393_v20 = vadd.f32 %v5800_v45, %v4474_v46 }
 0x6d2   : > { %v4937_v50 = vpop.eup %4936  ;;  %4960 = vtanh.f32 %v2836_v42  ;;  %v4264_v13 = vmul.f32 -1.442695, %v6126_v17  ;;  %v6130_v52 = vadd.f32 %v4546_v60, %v1377_v14  ;;  %v1385_v60 = vadd.f32 %v5800_v45, %v1384_v33 }
 0x6d3   : > { %4962 = vrcp.f32 %v2917_v43  ;;  %v2916_v10 = vadd.f32 1.0, %v4937_v50  ;;  %v2803_v16 = vpop.f32.mrf.mxu0  ;;  %v4939_v47 = vpop.eup %4938 }
 0x6d4   : > { %4964 = vpow2.f32 %v4266_v36  ;;  %v4267_v28 = vmul.f32 -1.442695, %v6130_v52  ;;  %v6134_v19 = vadd.f32 %v2803_v16, %v1369_v34  ;;  %v4941_v42 = vpop.eup %4940 }
 0x6d5   : > { %4966 = vrcp.f32 %v2916_v10 }
 0x6d6   : > { %v4943_v44 = vpop.eup %4942  ;;  %4968 = vpow2.f32 %v4264_v13  ;;  %v4265_v38 = vmul.f32 -1.442695, %v6134_v19  ;;  %v4549_v6 = vpop.f32.mrf.mxu0 }
 0x6d7   : > { %v4945_v35 = vpop.eup %4944  ;;  %4970 = vrcp.f32 %v2918_v39  ;;  %v6138_v9 = vadd.f32 %v4549_v6, %v1390_v31  ;;  %v6142_v3 = vsel %vm5492_vm3, %v4941_v42, %v4943_v44 }
 0x6d8   : > { %v4947_v43 = vpop.eup %4946  ;;  %4972 = vpow2.f32 %v4267_v28  ;;  %v2816_v15 = vpop.f32.mrf.mxu0  ;;  %3007 = vrot.lane.b32.xlu0 %v6142_v3, %s5207_s24 }
 0x6d9   : > { %v4949_v30 = vpop.eup %4948  ;;  %4974 = vtanh.f32 %v6117_v12  ;;  %v4270_v32 = vmul.f32 -1.442695, %v6138_v9  ;;  %v2843_v14 = vadd.f32 %v2816_v15, %v1382_v23  ;;  %v6154_v10 = vsel %vm5492_vm3, %v4939_v47, %v4947_v43 }
 0x6da   : > { %v4951_v36 = vpop.eup %4950  ;;  %4976 = vpow2.f32 %v4265_v38  ;;  %v4550_v50 = vpop.f32.mrf.mxu0 }
 0x6db   : > { %v4953_v34 = vpop.eup %4952  ;;  %v4268_v13 = vmul.f32 -1.442695, %v2843_v14  ;;  %v6150_v39 = vadd.f32 %v4550_v50, %v1393_v20  ;;  %v6158_v12 = vsel %vm5492_vm3, %v4949_v30, %v4951_v36  ;;  %4978 = vpow2.f32 %v4270_v32 }
 0x6dc   : > { %v4955_v31 = vpop.eup %4954  ;;  %v2819_v46 = vpop.f32.mrf.mxu0  ;;  %3011 = vrot.lane.b32.xlu0 %v6154_v10, %s5207_s24  ;;  %3009 = vrot.lane.b32.xlu1 %v6158_v12, %s5207_s24 }
 0x6dd   : > { %v4957_v45 = vpop.eup %4956  ;;  %v4271_v16 = vmul.f32 -1.442695, %v6150_v39  ;;  %v2844_v28 = vadd.f32 %v2819_v46, %v1385_v60  ;;  %4980 = vpow2.f32 %v4268_v13  ;;  %v6167_v38 = vsel %vm5492_vm3, %v4945_v35, %v4955_v31 }
 0x6de   : > { %v4959_v42 = vpop.eup %4958 }
 0x6df   : > { %v4961_v47 = vpop.eup %4960  ;;  %v4269_v44 = vmul.f32 -1.442695, %v2844_v28  ;;  %v6171_v6 = vsel %vm5492_vm3, %v4957_v45, %v4959_v42  ;;  %4982 = vpow2.f32 %v4271_v16 }
 0x6e0   : > { %v4963_v23 = vpop.eup %4962  ;;  %3013 = vrot.lane.b32.xlu1 %v6167_v38, %s5207_s24  ;;  %3015 = vrot.lane.b32.xlu0 %v6171_v6, %s5207_s24 }
 0x6e1   : > { %v4965_v33 = vpop.eup %4964  ;;  %4984 = vpow2.f32 %v4269_v44  ;;  %v6179_v35 = vsel %vm5492_vm3, %v4953_v34, %v4963_v23 }
 0x6e2   : > { %v4967_v43 = vpop.eup %4966  ;;  %v2921_v32 = vadd.f32 1.0, %v4965_v33  ;;  %4986 = vtanh.f32 %v6126_v17 }
 0x6e3   : > { %v4969_v15 = vpop.eup %4968  ;;  %v6183_v30 = vsel %vm5492_vm3, %v4961_v47, %v4967_v43 }
 0x6e4   : > { %v4971_v20 = vpop.eup %4970  ;;  %v2919_v36 = vadd.f32 1.0, %v4969_v15  ;;  %3019 = vrot.lane.b32.xlu0 %v6179_v35, %s5207_s24  ;;  %3017 = vrot.lane.b32.xlu1 %v6183_v30, %s5207_s24 }
 0x6e5   : > { %v4973_v60 = vpop.eup %4972 }
 0x6e6   : > { %v4975_v50 = vpop.eup %4974  ;;  %4988 = vrcp.f32 %v2919_v36  ;;  %v2922_v31 = vadd.f32 1.0, %v4973_v60 }
 0x6e7   : > { %v4977_v34 = vpop.eup %4976  ;;  %4990 = vtanh.f32 %v6122_v29  ;;  %v6193_v13 = vsel %vm5492_vm3, %v4975_v50, %v4971_v20 }
 0x6e8   : > { %4992 = vrcp.f32 %v2921_v32  ;;  %v2920_v46 = vadd.f32 1.0, %v4977_v34  ;;  %3021 = vrot.lane.b32.xlu1 %v6193_v13, %s5207_s24  ;;  %v4979_v45 = vpop.eup %4978 }
 0x6e9   : > { %4994 = vtanh.f32 %v6134_v19  ;;  %v2925_v16 = vadd.f32 1.0, %v4979_v45 }
 0x6ea   : > { %4996 = vrcp.f32 %v2920_v46  ;;  %v4981_v17 = vpop.eup %4980 }
 0x6eb   : > { %4998 = vtanh.f32 %v6130_v52  ;;  %v2923_v29 = vadd.f32 1.0, %v4981_v17 }
 0x6ec   : > { %5000 = vrcp.f32 %v2922_v31  ;;  %v4983_v42 = vpop.eup %4982 }
 0x6ed   : > { %5002 = vtanh.f32 %v2843_v14  ;;  %v2926_v44 = vadd.f32 1.0, %v4983_v42 }
 0x6ee   : > { %5004 = vrcp.f32 %v2923_v29  ;;  %v4985_v47 = vpop.eup %4984 }
 0x6ef   : > { %5006 = vrcp.f32 %v2925_v16  ;;  %v2924_v23 = vadd.f32 1.0, %v4985_v47  ;;  %v4987_v33 = vpop.eup %4986 }
 0x6f0   : > { %5008 = vtanh.f32 %v6138_v9 }
 0x6f1   : > { %5010 = vtanh.f32 %v2844_v28 }
 0x6f2   : > { %5012 = vrcp.f32 %v2924_v23 }
 0x6f3   : > { %v4989_v43 = vpop.eup %4988  ;;  %5014 = vrcp.f32 %v2926_v44 }
 0x6f4   : > { %v4991_v19 = vpop.eup %4990  ;;  %v6202_v52 = vsel %vm5492_vm3, %v4987_v33, %v4989_v43  ;;  %5016 = vtanh.f32 %v6150_v39 }
 0x6f5   : > { %v4993_v15 = vpop.eup %4992  ;;  %3023 = vrot.lane.b32.xlu0 %v6202_v52, %s5207_s24 }
 0x6f6   : > { %v4995_v14 = vpop.eup %4994  ;;  %v6209_v28 = vsel %vm5492_vm3, %v4991_v19, %v4993_v15 }
 0x6f7   : > { %v4997_v20 = vpop.eup %4996 }
 0x6f8   : > { %v4999_v9 = vpop.eup %4998  ;;  %v6213_v32 = vsel %vm5492_vm3, %v4995_v14, %v4997_v20 }
 0x6f9   : > { %v5001_v36 = vpop.eup %5000  ;;  %3027 = vrot.lane.b32.xlu0 %v6209_v28, %s5207_s24  ;;  %3025 = vrot.lane.b32.xlu1 %v6213_v32, %s5207_s24 }
 0x6fa   : > { %v5003_v60 = vpop.eup %5002  ;;  %v6221_v39 = vsel %vm5492_vm3, %v4999_v9, %v5001_v36 }
 0x6fb   : > { %v5005_v50 = vpop.eup %5004 }
 0x6fc   : > { %v6225_v34 = vsel %vm5492_vm3, %v5003_v60, %v5005_v50  ;;  %v5007_v31 = vpop.eup %5006 }
 0x6fd   : > { %3029 = vrot.lane.b32.xlu1 %v6221_v39, %s5207_s24  ;;  %3031 = vrot.lane.b32.xlu0 %v6225_v34, %s5207_s24  ;;  %v5009_v46 = vpop.eup %5008 }
 0x6fe   : > { %v5011_v45 = vpop.eup %5010  ;;  %v6233_v16 = vsel %vm5492_vm3, %v5009_v46, %v5007_v31 }
 0x6ff   : > { %v5013_v17 = vpop.eup %5012 }
 0x700   : > { %v6239_v29 = vsel %vm5492_vm3, %v5011_v45, %v5013_v17  ;;  %v5015_v42 = vpop.eup %5014 }
 0x701   : > { %3035 = vrot.lane.b32.xlu0 %v6233_v16, %s5207_s24  ;;  %3033 = vrot.lane.b32.xlu1 %v6239_v29, %s5207_s24  ;;  %v5017_v47 = vpop.eup %5016 }
 0x702   : > { %v6245_v44 = vsel %vm5492_vm3, %v5017_v47, %v5015_v42 }
 0x705   : > { %3037 = vrot.lane.b32.xlu1 %v6245_v44, %s5207_s24 }
 0x74a   : > { %v3008_v23 = vpop.permute.xlu0 %3007 }
 0x74b   : > { %v3055_v33 = vmul.f32 %v3008_v23, %v6142_v3 }
 0x74d   : > { %3087 = vrot.lane.b32.xlu0 %v3055_v33, %s5208_s25 }
 0x74e   : > { %v3010_v43 = vpop.permute.xlu1 %3009  ;;  %v3012_v19 = vpop.permute.xlu0 %3011 }
 0x74f   : > { %v3056_v15 = vmul.f32 %v3010_v43, %v6158_v12  ;;  %v3057_v14 = vmul.f32 %v3012_v19, %v6154_v10 }
 0x751   : > { %3089 = vrot.lane.b32.xlu1 %v3056_v15, %s5208_s25  ;;  %3091 = vrot.lane.b32.xlu0 %v3057_v14, %s5208_s25 }
 0x752   : > { %v3014_v20 = vpop.permute.xlu1 %3013  ;;  %v3016_v9 = vpop.permute.xlu0 %3015 }
 0x753   : > { %v3058_v36 = vmul.f32 %v3014_v20, %v6167_v38  ;;  %v3059_v60 = vmul.f32 %v3016_v9, %v6171_v6 }
 0x755   : > { %3093 = vrot.lane.b32.xlu1 %v3058_v36, %s5208_s25  ;;  %3095 = vrot.lane.b32.xlu0 %v3059_v60, %s5208_s25 }
 0x756   : > { %v3018_v50 = vpop.permute.xlu1 %3017  ;;  %v3020_v31 = vpop.permute.xlu0 %3019 }
 0x757   : > { %v3060_v46 = vmul.f32 %v3018_v50, %v6183_v30  ;;  %v3061_v45 = vmul.f32 %v3020_v31, %v6179_v35 }
 0x759   : > { %3097 = vrot.lane.b32.xlu1 %v3060_v46, %s5208_s25  ;;  %3099 = vrot.lane.b32.xlu0 %v3061_v45, %s5208_s25 }
 0x75a   : > { %v3022_v17 = vpop.permute.xlu1 %3021 }
 0x75b   : > { %v3062_v42 = vmul.f32 %v3022_v17, %v6193_v13 }
 0x75d   : > { %3101 = vrot.lane.b32.xlu1 %v3062_v42, %s5208_s25  ;;  %v2975_v42 = vmul.f32 %v6142_v3, %v5964_v26  ;;  %v2978_v26 = vmul.f32 %v6167_v38, %v5981_v22 }
 0x767   : > { %v3024_v47 = vpop.permute.xlu0 %3023 }
 0x768   : > { %v3063_v23 = vmul.f32 %v3024_v47, %v6202_v52 }
 0x76a   : > { %3103 = vrot.lane.b32.xlu0 %v3063_v23, %s5208_s25 }
 0x76b   : > { %v3026_v33 = vpop.permute.xlu1 %3025  ;;  %v3028_v43 = vpop.permute.xlu0 %3027 }
 0x76c   : > { %v3064_v19 = vmul.f32 %v3026_v33, %v6213_v32  ;;  %v3065_v15 = vmul.f32 %v3028_v43, %v6209_v28  ;;  %v2976_v33 = vmul.f32 %v6158_v12, %v5971_v48  ;;  %v2977_v43 = vmul.f32 %v6154_v10, %v5973_v0 }
 0x76e   : > { %3105 = vrot.lane.b32.xlu1 %v3064_v19, %s5208_s25  ;;  %3107 = vrot.lane.b32.xlu0 %v3065_v15, %s5208_s25 }
 0x76f   : > { %v3030_v14 = vpop.permute.xlu1 %3029  ;;  %v3032_v20 = vpop.permute.xlu0 %3031 }
 0x770   : > { %v3066_v9 = vmul.f32 %v3030_v14, %v6221_v39  ;;  %v3067_v36 = vmul.f32 %v3032_v20, %v6225_v34 }
 0x772   : > { %3109 = vrot.lane.b32.xlu1 %v3066_v9, %s5208_s25  ;;  %3111 = vrot.lane.b32.xlu0 %v3067_v36, %s5208_s25  ;;  %v2979_v9 = vmul.f32 %v6171_v6, %v5983_v54 }
 0x773   : > { %v3036_v60 = vpop.permute.xlu0 %3035  ;;  %v3034_v50 = vpop.permute.xlu1 %3033 }
 0x774   : > { %v3069_v31 = vmul.f32 %v3036_v60, %v6233_v16  ;;  %v3068_v46 = vmul.f32 %v3034_v50, %v6239_v29  ;;  %v2980_v50 = vmul.f32 %v6183_v30, %v5991_v25 }
 0x776   : > { %3115 = vrot.lane.b32.xlu0 %v3069_v31, %s5208_s25  ;;  %3113 = vrot.lane.b32.xlu1 %v3068_v46, %s5208_s25  ;;  %v2981_v31 = vmul.f32 %v6179_v35, %v5993_v62 }
 0x777   : > { %v3038_v45 = vpop.permute.xlu1 %3037 }
 0x778   : > { %v3070_v17 = vmul.f32 %v3038_v45, %v6245_v44 }
 0x77a   : > { %3117 = vrot.lane.b32.xlu1 %v3070_v17, %s5208_s25  ;;  %v2982_v17 = vmul.f32 %v6193_v13, %v5999_v49 }
 0x7bf   : > { %v3088_v47 = vpop.permute.xlu0 %3087 }
 0x7c0   : > { %v6283_v23 = vadd.f32 %v3088_v47, %v2975_v42 }
 0x7c2   : > { %5018 = vtanh.f32 %v6283_v23 }
 0x7c3   : > { %v3090_v19 = vpop.permute.xlu1 %3089  ;;  %v3092_v15 = vpop.permute.xlu0 %3091 }
 0x7c4   : > { %v6290_v14 = vadd.f32 %v3090_v19, %v2976_v33  ;;  %v6292_v20 = vadd.f32 %v3092_v15, %v2977_v43  ;;  %v2983_v15 = vmul.f32 %v6202_v52, %v6008_v51 }
 0x7c6   : > { %5020 = vtanh.f32 %v6290_v14 }
 0x7c7   : > { %5022 = vtanh.f32 %v6292_v20  ;;  %v3094_v48 = vpop.permute.xlu1 %3093  ;;  %v3096_v36 = vpop.permute.xlu0 %3095 }
 0x7c8   : > { %v6300_v60 = vadd.f32 %v3094_v48, %v2978_v26  ;;  %v6302_v0 = vadd.f32 %v3096_v36, %v2979_v9 }
 0x7ca   : > { %5024 = vtanh.f32 %v6300_v60 }
 0x7cb   : > { %5026 = vtanh.f32 %v6302_v0  ;;  %v3098_v22 = vpop.permute.xlu1 %3097  ;;  %v3100_v54 = vpop.permute.xlu0 %3099 }
 0x7cc   : > { %v6310_v46 = vadd.f32 %v3098_v22, %v2980_v50  ;;  %v6312_v45 = vadd.f32 %v3100_v54, %v2981_v31  ;;  %v2984_v50 = vmul.f32 %v6213_v32, %v6020_v53  ;;  %v2985_v31 = vmul.f32 %v6209_v28, %v6017_v21 }
 0x7ce   : > { %5028 = vtanh.f32 %v6310_v46 }
 0x7cf   : > { %v5019_v42 = vpop.eup %5018  ;;  %5030 = vtanh.f32 %v6312_v45  ;;  %v3102_v25 = vpop.permute.xlu1 %3101 }
 0x7d0   : > { %v6318_v47 = vadd.f32 %v3102_v25, %v2982_v17  ;;  %3183 = vrot.lane.b32.xlu0 %v5019_v42, %s5207_s24  ;;  %v2986_v42 = vmul.f32 %v6221_v39, %v6029_v18  ;;  %v2987_v25 = vmul.f32 %v6225_v34, %v6031_v27  ;;  %v2988_v18 = vmul.f32 %v6239_v29, %v6041_v24 }
 0x7d2   : > { %5032 = vtanh.f32 %v6318_v47 }
 0x7d3   : > { %v5021_v62 = vpop.eup %5020 }
 0x7d4   : > { %v5023_v33 = vpop.eup %5022  ;;  %3185 = vrot.lane.b32.xlu1 %v5021_v62, %s5207_s24 }
 0x7d5   : > { %3187 = vrot.lane.b32.xlu0 %v5023_v33, %s5207_s24 }
 0x7d7   : > { %v5025_v43 = vpop.eup %5024 }
 0x7d8   : > { %v5027_v19 = vpop.eup %5026  ;;  %3189 = vrot.lane.b32.xlu1 %v5025_v43, %s5207_s24  ;;  %v2989_v43 = vmul.f32 %v6233_v16, %v6039_v40  ;;  %v2990_v40 = vmul.f32 %v6245_v44, %v6048_v37  ;;  %v4656_v37 = vld [vmem:[%s5395_s27 + $0xc0] sm:$0xff]  }
 0x7d9   : > { %3191 = vrot.lane.b32.xlu0 %v5027_v19, %s5207_s24  ;;  %4475 = vmatprep.mubr.msk.bf16.mxu1 %vm706_vm0, %v4656_v37 }
 0x7db   : > { %v5029_v49 = vpop.eup %5028 }
 0x7dc   : > { %v5031_v26 = vpop.eup %5030  ;;  %v3104_v9 = vpop.permute.xlu0 %3103  ;;  %3193 = vrot.lane.b32.xlu1 %v5029_v49, %s5207_s24 }
 0x7dd   : > { %v6329_v48 = vadd.f32 %v3104_v9, %v2983_v15  ;;  %3195 = vrot.lane.b32.xlu0 %v5031_v26, %s5207_s24 }
 0x7df   : > { %v5033_v36 = vpop.eup %5032  ;;  %5034 = vtanh.f32 %v6329_v48 }
 0x7e0   : > { %v3106_v22 = vpop.permute.xlu1 %3105  ;;  %v3108_v54 = vpop.permute.xlu0 %3107  ;;  %3197 = vrot.lane.b32.xlu1 %v5033_v36, %s5207_s24 }
 0x7e1   : > { %v6338_v51 = vadd.f32 %v3106_v22, %v2984_v50  ;;  %v6340_v17 = vadd.f32 %v3108_v54, %v2985_v31  ;;  %v4657_v54 = vld [vmem:[%s5395_s27 + $0xc8] sm:$0xff]  }
 0x7e2   : > { %4476 = vmatmul.mubr.msk.bf16.gmra.mxu1 %vm706_vm0, %v4657_v54 }
 0x7e3   : > { %5036 = vtanh.f32 %v6338_v51 }
 0x7e4   : > { %5038 = vtanh.f32 %v6340_v17  ;;  %v3110_v53 = vpop.permute.xlu1 %3109  ;;  %v3112_v21 = vpop.permute.xlu0 %3111 }
 0x7e5   : > { %v6348_v62 = vadd.f32 %v3110_v53, %v2986_v42  ;;  %v6350_v33 = vadd.f32 %v3112_v21, %v2987_v25  ;;  %v4658_v21 = vld [vmem:[%s5395_s27 + $0xd0] sm:$0xff]  }
 0x7e6   : > { %4479 = vmatprep.mubr.msk.bf16.mxu1 %vm706_vm0, %v4658_v21 }
 0x7e7   : > { %5040 = vtanh.f32 %v6348_v62 }
 0x7e8   : > { %5042 = vtanh.f32 %v6350_v33  ;;  %v3116_v19 = vpop.permute.xlu0 %3115  ;;  %v3114_v27 = vpop.permute.xlu1 %3113 }
 0x7e9   : > { %v6358_v49 = vadd.f32 %v3116_v19, %v2989_v43  ;;  %v6360_v15 = vadd.f32 %v3114_v27, %v2988_v18  ;;  %v4659_v18 = vld [vmem:[%s5395_s27 + $0xd8] sm:$0xff]  }
 0x7ea   : > { %4480 = vmatmul.mubr.msk.bf16.gmra.mxu1 %vm706_vm0, %v4659_v18 }
 0x7eb   : > { %5044 = vtanh.f32 %v6358_v49 }
 0x7ec   : > { %v5035_v26 = vpop.eup %5034  ;;  %5046 = vtanh.f32 %v6360_v15  ;;  %v3118_v9 = vpop.permute.xlu1 %3117 }
 0x7ed   : > { %3199 = vrot.lane.b32.xlu0 %v5035_v26, %s5207_s24  ;;  %v6367_v24 = vadd.f32 %v3118_v9, %v2990_v40 }
 0x7ef   : > { %5048 = vtanh.f32 %v6367_v24 }
 0x7f0   : > { %v5037_v36 = vpop.eup %5036 }
 0x7f1   : > { %v5039_v50 = vpop.eup %5038  ;;  %3201 = vrot.lane.b32.xlu1 %v5037_v36, %s5207_s24  ;;  %v4660_v36 = vld [vmem:[%s5395_s27 + $0xe0] sm:$0xff]  }
 0x7f2   : > { %3203 = vrot.lane.b32.xlu0 %v5039_v50, %s5207_s24  ;;  %4483 = vmatprep.mubr.msk.bf16.mxu1 %vm706_vm0, %v4660_v36 }
 0x7f4   : > { %v5041_v31 = vpop.eup %5040 }
 0x7f5   : > { %v5043_v22 = vpop.eup %5042  ;;  %3205 = vrot.lane.b32.xlu1 %v5041_v31, %s5207_s24  ;;  %v4661_v31 = vld [vmem:[%s5395_s27 + $0xe8] sm:$0xff]  }
 0x7f6   : > { %3207 = vrot.lane.b32.xlu0 %v5043_v22, %s5207_s24  ;;  %4484 = vmatmul.mubr.msk.bf16.gmra.mxu1 %vm706_vm0, %v4661_v31 }
 0x7f8   : > { %v5045_v42 = vpop.eup %5044 }
 0x7f9   : > { %v5047_v25 = vpop.eup %5046 }
 0x7fa   : > { %3209 = vrot.lane.b32.xlu1 %v5047_v25, %s5207_s24  ;;  %3211 = vrot.lane.b32.xlu0 %v5045_v42, %s5207_s24 }
 0x7fc   : > { %v5049_v53 = vpop.eup %5048 }
 0x7fe   : > { %3213 = vrot.lane.b32.xlu1 %v5049_v53, %s5207_s24 }
 0x842   : > { %v3184_v43 = vpop.permute.xlu0 %3183 }
 0x843   : > { %v3231_v27 = vmul.f32 %v3184_v43, %v6142_v3 }
 0x846   : > { %v3186_v19 = vpop.permute.xlu1 %3185 }
 0x847   : > { %v3232_v26 = vmul.f32 %v3186_v19, %v6158_v12  ;;  %v3188_v40 = vpop.permute.xlu0 %3187  ;;  %v4662_v19 = vld [vmem:[%s5395_s27 + $0xf0] sm:$0xff]  }
 0x848   : > { %v3233_v22 = vmul.f32 %v3188_v40, %v6154_v10  ;;  %4487 = vmatprep.mubr.msk.bf16.mxu1 %vm706_vm0, %v4662_v19 }
 0x849   : > { %v3263_v9 = vpack.c.bf16 %v3232_v26, %v3231_v27  ;;  %v4663_v27 = vld [vmem:[%s5395_s27 + $0xf8] sm:$0xff]  }
 0x84a   : > { %v3190_v50 = vpop.permute.xlu1 %3189  ;;  %4488 = vmatmul.mubr.msk.bf16.gmra.mxu1 %vm706_vm0, %v4663_v27 }
 0x84b   : > { %v3234_v37 = vmul.f32 %v3190_v50, %v6167_v38  ;;  %v3192_v54 = vpop.permute.xlu0 %3191  ;;  %3279 = vrot.lane.b32.xlu0 %v3263_v9, %s5208_s25 }
 0x84c   : > { %v3235_v42 = vmul.f32 %v3192_v54, %v6171_v6 }
 0x84d   : > { %v3264_v3 = vpack.c.bf16 %v3234_v37, %v3233_v22 }
 0x84e   : > { %v3194_v12 = vpop.permute.xlu1 %3193 }
 0x84f   : > { %v3236_v25 = vmul.f32 %v3194_v12, %v6183_v30  ;;  %3281 = vrot.lane.b32.xlu1 %v3264_v3, %s5208_s25  ;;  %v3196_v10 = vpop.permute.xlu0 %3195 }
 0x850   : > { %v3237_v21 = vmul.f32 %v3196_v10, %v6179_v35 }
 0x851   : > { %v3265_v53 = vpack.c.bf16 %v3236_v25, %v3235_v42 }
 0x852   : > { %v3198_v38 = vpop.permute.xlu1 %3197 }
 0x853   : > { %v3238_v43 = vmul.f32 %v3198_v38, %v6193_v13  ;;  %3283 = vrot.lane.b32.xlu0 %v3265_v53, %s5208_s25 }
 0x855   : > { %v3266_v18 = vpack.c.bf16 %v3238_v43, %v3237_v21 }
 0x857   : > { %3285 = vrot.lane.b32.xlu1 %v3266_v18, %s5208_s25 }
 0x85f   : > { %v3200_v26 = vpop.permute.xlu0 %3199 }
 0x860   : > { %v3239_v30 = vmul.f32 %v3200_v26, %v6202_v52  ;;  %v6428_v26 = vld [vmem:[%s6739_s4] ss:$0 sm:$0xff] }
 0x863   : > { %v3202_v6 = vpop.permute.xlu1 %3201 }
 0x864   : > { %v3240_v40 = vmul.f32 %v3202_v6, %v6213_v32  ;;  %v3204_v35 = vpop.permute.xlu0 %3203 }
 0x865   : > { %v3241_v36 = vmul.f32 %v3204_v35, %v6209_v28 }
 0x866   : > { %v3267_v9 = vpack.c.bf16 %v3240_v40, %v3239_v30 }
 0x867   : > { %v3206_v13 = vpop.permute.xlu1 %3205 }
 0x868   : > { %v3242_v50 = vmul.f32 %v3206_v13, %v6221_v39  ;;  %v3208_v31 = vpop.permute.xlu0 %3207  ;;  %3287 = vrot.lane.b32.xlu0 %v3267_v9, %s5208_s25 }
 0x869   : > { %v3243_v54 = vmul.f32 %v3208_v31, %v6225_v34 }
 0x86a   : > { %v3268_v22 = vpack.c.bf16 %v3242_v50, %v3241_v36 }
 0x86c   : > { %v3210_v37 = vpop.permute.xlu1 %3209  ;;  %3289 = vrot.lane.b32.xlu1 %v3268_v22, %s5208_s25  ;;  %v3212_v3 = vpop.permute.xlu0 %3211 }
 0x86d   : > { %v3244_v52 = vmul.f32 %v3210_v37, %v6239_v29  ;;  %v3245_v42 = vmul.f32 %v3212_v3, %v6233_v16 }
 0x86f   : > { %v3269_v32 = vpack.c.bf16 %v3244_v52, %v3243_v54 }
 0x870   : > { %v3214_v12 = vpop.permute.xlu1 %3213 }
 0x871   : > { %v3246_v28 = vmul.f32 %v3214_v12, %v6245_v44  ;;  %3291 = vrot.lane.b32.xlu0 %v3269_v32, %s5208_s25 }
 0x873   : > { %v3270_v39 = vpack.c.bf16 %v3246_v28, %v3245_v42 }
 0x875   : > { %3293 = vrot.lane.b32.xlu1 %v3270_v39, %s5208_s25 }
 0x8a2   : > { %v4477_v21 = vpop.f32.mrf.mxu1 }
 0x8a3   : > { %v1406_v6 = vadd.f32 %v6428_v26, %v4477_v21 }
 0x8a4   : > { %v1397_v43 = vpop.f32.mrf.mxu1 }
 0x8a5   : > { %v1398_v35 = vadd.f32 %v6428_v26, %v1397_v43 }
 0x8a6   : > { %v4478_v18 = vpop.f32.mrf.mxu1 }
 0x8a7   : > { %v1409_v36 = vadd.f32 %v6428_v26, %v4478_v18 }
 0x8a8   : > { %v1400_v19 = vpop.f32.mrf.mxu1 }
 0x8a9   : > { %v1401_v22 = vadd.f32 %v6428_v26, %v1400_v19 }
 0x8aa   : > { %v4481_v27 = vpop.f32.mrf.mxu1 }
 0x8ab   : > { %v1422_v52 = vadd.f32 %v6428_v26, %v4481_v27 }
 0x8ac   : > { %v1413_v40 = vpop.f32.mrf.mxu1 }
 0x8ae   : > { %v4482_v54 = vpop.f32.mrf.mxu1 }
 0x8b0   : > { %v1416_v39 = vpop.f32.mrf.mxu1 }
 0x8b1   : > { %v1417_v18 = vadd.f32 %v6428_v26, %v1416_v39 }
 0x8b6   : > { %v4485_v21 = vpop.f32.mrf.mxu1 }
 0x8bd   : > { %v3280_v25 = vpop.permute.xlu0 %3279 }
 0x8be   : > { %4555 = vmatprep.mubr.msk.bf16.mxu0 %vm706_vm0, %v3280_v25 }
 0x8c1   : > { %v3282_v10 = vpop.permute.xlu1 %3281 }
 0x8c2   : > { %4556 = vmatmul.mubr.msk.bf16.vlgmr.msra.gmra.mxu0 %vm706_vm0, %v3282_v10  ;;  %v1414_v10 = vadd.f32 %v6428_v26, %v1413_v40 }
 0x8c5   : > { %v3284_v34 = vpop.permute.xlu0 %3283 }
 0x8c6   : > { %4559 = vmatprep.mubr.msk.bf16.mxu0 %vm706_vm0, %v3284_v34 }
 0x8c9   : > { %v3286_v29 = vpop.permute.xlu1 %3285 }
 0x8ca   : > { %4560 = vmatmul.mubr.msk.bf16.gmra.mxu0 %vm706_vm0, %v3286_v29 }
 0x8da   : > { %v3288_v16 = vpop.permute.xlu0 %3287 }
 0x8db   : > { %4563 = vmatprep.mubr.msk.bf16.mxu0 %vm706_vm0, %v3288_v16 }
 0x8de   : > { %v3290_v44 = vpop.permute.xlu1 %3289 }
 0x8df   : > { %4564 = vmatmul.mubr.msk.bf16.gmra.mxu0 %vm706_vm0, %v3290_v44  ;;  %v1425_v44 = vadd.f32 %v6428_v26, %v4482_v54 }
 0x8e3   : > { %v3292_v53 = vpop.permute.xlu0 %3291 }
 0x8e4   : > { %4567 = vmatprep.mubr.msk.bf16.mxu0 %vm706_vm0, %v3292_v53 }
 0x8e7   : > { %v3294_v38 = vpop.permute.xlu1 %3293 }
 0x8e8   : > { %4568 = vmatmul.mubr.msk.bf16.gmra.mxu0 %vm706_vm0, %v3294_v38 }
 0x982   : > { %v4557_v30 = vpop.f32.mrf.mxu0 }
 0x983   : > { %v3418_v9 = vadd.f32 %v4557_v30, %v1406_v6 }
 0x984   : > { %v3353_v13 = vpop.f32.mrf.mxu0 }
 0x985   : > { %v4282_v50 = vmul.f32 -1.442695, %v3418_v9  ;;  %v3416_v31 = vadd.f32 %v3353_v13, %v1398_v35  ;;  %v1429_v35 = vpop.f32.mrf.mxu1 }
 0x986   : > { %v4558_v37 = vpop.f32.mrf.mxu0 }
 0x987   : > { %5050 = vpow2.f32 %v4282_v50  ;;  %v4280_v3 = vmul.f32 -1.442695, %v3416_v31  ;;  %v3419_v32 = vadd.f32 %v4558_v37, %v1409_v36  ;;  %v4486_v37 = vpop.f32.mrf.mxu1 }
 0x988   : > { %v3356_v12 = vpop.f32.mrf.mxu0 }
 0x989   : > { %5052 = vpow2.f32 %v4280_v3  ;;  %v4283_v42 = vmul.f32 -1.442695, %v3419_v32  ;;  %v3417_v28 = vadd.f32 %v3356_v12, %v1401_v22 }
 0x98a   : > { %v4561_v25 = vpop.f32.mrf.mxu0 }
 0x98b   : > { %5054 = vpow2.f32 %v4283_v42  ;;  %v4281_v34 = vmul.f32 -1.442695, %v3417_v28  ;;  %v3422_v29 = vadd.f32 %v4561_v25, %v1422_v52  ;;  %v1432_v42 = vpop.f32.mrf.mxu1 }
 0x98c   : > { %v3369_v16 = vpop.f32.mrf.mxu0 }
 0x98d   : > { %5056 = vpow2.f32 %v4281_v34  ;;  %v4286_v53 = vmul.f32 -1.442695, %v3422_v29  ;;  %v3420_v38 = vadd.f32 %v3369_v16, %v1414_v10  ;;  %v1438_v10 = vadd.f32 %v6428_v26, %v4485_v21  ;;  %v4489_v16 = vpop.f32.mrf.mxu1 }
 0x98e   : > { %v4562_v43 = vpop.f32.mrf.mxu0 }
 0x98f   : > { %5058 = vpow2.f32 %v4286_v53  ;;  %v4284_v19 = vmul.f32 -1.442695, %v3420_v38  ;;  %v6438_v27 = vadd.f32 %v4562_v43, %v1425_v44  ;;  %v1430_v43 = vadd.f32 %v6428_v26, %v1429_v35 }
 0x990   : > { %v3372_v6 = vpop.f32.mrf.mxu0  ;;  %v1433_v35 = vadd.f32 %v6428_v26, %v1432_v42 }
 0x991   : > { %5060 = vpow2.f32 %v4284_v19  ;;  %v4287_v30 = vmul.f32 -1.442695, %v6438_v27  ;;  %v3421_v40 = vadd.f32 %v3372_v6, %v1417_v18 }
 0x993   : > { %5062 = vpow2.f32 %v4287_v30  ;;  %v4285_v13 = vmul.f32 -1.442695, %v3421_v40 }
 0x994   : > { %v5051_v36 = vpop.eup %5050 }
 0x995   : > { %5064 = vpow2.f32 %v4285_v13  ;;  %v3498_v22 = vadd.f32 1.0, %v5051_v36 }
 0x996   : > { %v5053_v50 = vpop.eup %5052  ;;  %5066 = vtanh.f32 %v3418_v9 }
 0x997   : > { %v3496_v54 = vadd.f32 1.0, %v5053_v50  ;;  %5068 = vtanh.f32 %v3416_v31 }
 0x998   : > { %v5055_v52 = vpop.eup %5054 }
 0x999   : > { %5070 = vrcp.f32 %v3496_v54  ;;  %v3499_v12 = vadd.f32 1.0, %v5055_v52 }
 0x99a   : > { %v5057_v3 = vpop.eup %5056  ;;  %5072 = vrcp.f32 %v3498_v22 }
 0x99b   : > { %5074 = vtanh.f32 %v3419_v32  ;;  %v3497_v39 = vadd.f32 1.0, %v5057_v3  ;;  %v1441_v32 = vadd.f32 %v6428_v26, %v4486_v37 }
 0x99c   : > { %v5059_v25 = vpop.eup %5058  ;;  %5076 = vtanh.f32 %v3417_v28 }
 0x99d   : > { %5078 = vrcp.f32 %v3497_v39  ;;  %v3502_v9 = vadd.f32 1.0, %v5059_v25 }
 0x99e   : > { %v5061_v34 = vpop.eup %5060  ;;  %5080 = vrcp.f32 %v3499_v12 }
 0x99f   : > { %5082 = vtanh.f32 %v3422_v29  ;;  %v3500_v44 = vadd.f32 1.0, %v5061_v34  ;;  %v4565_v53 = vpop.f32.mrf.mxu0  ;;  %v1445_v29 = vpop.f32.mrf.mxu1 }
 0x9a0   : > { %v5063_v31 = vpop.eup %5062  ;;  %5084 = vtanh.f32 %v3420_v38  ;;  %v6443_v18 = vadd.f32 %v4565_v53, %v1438_v10 }
 0x9a1   : > { %5086 = vrcp.f32 %v3500_v44  ;;  %v3385_v28 = vpop.f32.mrf.mxu0  ;;  %v3503_v21 = vadd.f32 1.0, %v5063_v31  ;;  %v4490_v12 = vpop.f32.mrf.mxu1  ;;  %v1446_v44 = vadd.f32 %v6428_v26, %v1445_v29 }
 0x9a2   : > { %v5065_v19 = vpop.eup %5064  ;;  %5088 = vtanh.f32 %v3421_v40  ;;  %v4290_v6 = vmul.f32 -1.442695, %v6443_v18  ;;  %v6447_v30 = vadd.f32 %v3385_v28, %v1430_v43  ;;  %v1454_v40 = vadd.f32 %v6428_v26, %v4489_v16 }
 0x9a3   : > { %5090 = vrcp.f32 %v3502_v9  ;;  %v3501_v13 = vadd.f32 1.0, %v5065_v19  ;;  %v4566_v36 = vpop.f32.mrf.mxu0  ;;  %v5067_v38 = vpop.eup %5066  ;;  %v1457_v43 = vadd.f32 %v6428_v26, %v4490_v12 }
 0x9a4   : > { %5092 = vpow2.f32 %v4290_v6  ;;  %v4288_v50 = vmul.f32 -1.442695, %v6447_v30  ;;  %v6451_v22 = vadd.f32 %v4566_v36, %v1441_v32  ;;  %v5069_v37 = vpop.eup %5068  ;;  %v1448_v32 = vpop.f32.mrf.mxu1 }
 0x9a5   : > { %5094 = vrcp.f32 %v3501_v13  ;;  %v3388_v54 = vpop.f32.mrf.mxu0 }
 0x9a6   : > { %v5071_v52 = vpop.eup %5070  ;;  %5096 = vrcp.f32 %v3503_v21  ;;  %v4291_v3 = vmul.f32 -1.442695, %v6451_v22  ;;  %v6455_v39 = vadd.f32 %v3388_v54, %v1433_v35 }
 0x9a7   : > { %v5073_v25 = vpop.eup %5072  ;;  %5098 = vpow2.f32 %v4288_v50  ;;  %v6459_v42 = vsel %vm5492_vm3, %v5069_v37, %v5071_v52 }
 0x9a8   : > { %v5075_v10 = vpop.eup %5074  ;;  %5100 = vtanh.f32 %v6438_v27  ;;  %v4289_v34 = vmul.f32 -1.442695, %v6455_v39  ;;  %v4569_v16 = vpop.f32.mrf.mxu0  ;;  %3592 = vrot.lane.b32.xlu0 %v6459_v42, %s5207_s24  ;;  %v6471_v27 = vsel %vm5492_vm3, %v5067_v38, %v5073_v25  ;;  %v1449_v38 = vadd.f32 %v6428_v26, %v1448_v32 }
 0x9a9   : > { %v5077_v9 = vpop.eup %5076  ;;  %5102 = vpow2.f32 %v4291_v3  ;;  %v6466_v53 = vadd.f32 %v4569_v16, %v1454_v40 }
 0x9aa   : > { %v5079_v31 = vpop.eup %5078  ;;  %v3401_v28 = vpop.f32.mrf.mxu0  ;;  %5104 = vpow2.f32 %v4289_v34 }
 0x9ab   : > { %v5081_v19 = vpop.eup %5080  ;;  %v4294_v21 = vmul.f32 -1.442695, %v6466_v53  ;;  %v3428_v6 = vadd.f32 %v3401_v28, %v1446_v44  ;;  %v6476_v29 = vsel %vm5492_vm3, %v5077_v9, %v5079_v31 }
 0x9ac   : > { %v5083_v13 = vpop.eup %5082  ;;  %v4570_v36 = vpop.f32.mrf.mxu0  ;;  %3596 = vrot.lane.b32.xlu0 %v6471_v27, %s5207_s24  ;;  %3594 = vrot.lane.b32.xlu1 %v6476_v29, %s5207_s24  ;;  %v6485_v52 = vsel %vm5492_vm3, %v5075_v10, %v5081_v19 }
 0x9ad   : > { %v5085_v35 = vpop.eup %5084  ;;  %5106 = vpow2.f32 %v4294_v21  ;;  %v4292_v50 = vmul.f32 -1.442695, %v3428_v6  ;;  %v3431_v37 = vadd.f32 %v4570_v36, %v1457_v43 }
 0x9ae   : > { %v5087_v40 = vpop.eup %5086  ;;  %v3404_v54 = vpop.f32.mrf.mxu0 }
 0x9af   : > { %v5089_v3 = vpop.eup %5088  ;;  %5108 = vpow2.f32 %v4292_v50  ;;  %v4295_v12 = vmul.f32 -1.442695, %v3431_v37  ;;  %v3429_v25 = vadd.f32 %v3404_v54, %v1449_v38  ;;  %v6489_v34 = vsel %vm5492_vm3, %v5085_v35, %v5087_v40 }
 0x9b0   : > { %v5091_v16 = vpop.eup %5090  ;;  %3598 = vrot.lane.b32.xlu1 %v6485_v52, %s5207_s24  ;;  %3600 = vrot.lane.b32.xlu0 %v6489_v34, %s5207_s24 }
 0x9b1   : > { %v5093_v26 = vpop.eup %5092  ;;  %5110 = vpow2.f32 %v4295_v12  ;;  %v4293_v9 = vmul.f32 -1.442695, %v3429_v25  ;;  %v6497_v31 = vsel %vm5492_vm3, %v5083_v13, %v5091_v16 }
 0x9b2   : > { %v5095_v10 = vpop.eup %5094  ;;  %v3506_v19 = vadd.f32 1.0, %v5093_v26 }
 0x9b3   : > { %v5097_v44 = vpop.eup %5096  ;;  %5112 = vpow2.f32 %v4293_v9  ;;  %v6501_v43 = vsel %vm5492_vm3, %v5089_v3, %v5095_v10 }
 0x9b4   : > { %v5099_v32 = vpop.eup %5098  ;;  %3604 = vrot.lane.b32.xlu0 %v6497_v31, %s5207_s24  ;;  %3602 = vrot.lane.b32.xlu1 %v6501_v43, %s5207_s24  ;;  %5114 = vtanh.f32 %v6447_v30 }
 0x9b5   : > { %v5101_v28 = vpop.eup %5100  ;;  %v3504_v21 = vadd.f32 1.0, %v5099_v32 }
 0x9b6   : > { %v5103_v36 = vpop.eup %5102  ;;  %v6510_v13 = vsel %vm5492_vm3, %v5101_v28, %v5097_v44 }
 0x9b7   : > { %5116 = vrcp.f32 %v3504_v21  ;;  %v5105_v35 = vpop.eup %5104  ;;  %v3507_v38 = vadd.f32 1.0, %v5103_v36 }
 0x9b8   : > { %5118 = vtanh.f32 %v6443_v18  ;;  %3606 = vrot.lane.b32.xlu1 %v6510_v13, %s5207_s24  ;;  %v3505_v50 = vadd.f32 1.0, %v5105_v35 }
 0x9b9   : > { %5120 = vrcp.f32 %v3506_v19 }
 0x9ba   : > { %v5107_v40 = vpop.eup %5106  ;;  %5122 = vtanh.f32 %v6455_v39 }
 0x9bb   : > { %5124 = vrcp.f32 %v3505_v50  ;;  %v3510_v30 = vadd.f32 1.0, %v5107_v40 }
 0x9bc   : > { %v5109_v54 = vpop.eup %5108  ;;  %5126 = vtanh.f32 %v6451_v22 }
 0x9bd   : > { %5128 = vrcp.f32 %v3507_v38  ;;  %v3508_v3 = vadd.f32 1.0, %v5109_v54 }
 0x9be   : > { %v5111_v12 = vpop.eup %5110  ;;  %5130 = vtanh.f32 %v3428_v6 }
 0x9bf   : > { %5132 = vrcp.f32 %v3508_v3  ;;  %v3511_v16 = vadd.f32 1.0, %v5111_v12 }
 0x9c0   : > { %v5113_v18 = vpop.eup %5112  ;;  %5134 = vtanh.f32 %v6466_v53 }
 0x9c1   : > { %5136 = vrcp.f32 %v3510_v30  ;;  %v3509_v26 = vadd.f32 1.0, %v5113_v18  ;;  %v5115_v9 = vpop.eup %5114 }
 0x9c2   : > { %5138 = vtanh.f32 %v3429_v25 }
 0x9c3   : > { %5140 = vrcp.f32 %v3509_v26 }
 0x9c4   : > { %v5117_v39 = vpop.eup %5116  ;;  %5142 = vrcp.f32 %v3511_v16 }
 0x9c5   : > { %v5119_v10 = vpop.eup %5118  ;;  %v6520_v22 = vsel %vm5492_vm3, %v5115_v9, %v5117_v39  ;;  %5144 = vtanh.f32 %v3431_v37 }
 0x9c6   : > { %v5121_v44 = vpop.eup %5120  ;;  %3608 = vrot.lane.b32.xlu0 %v6520_v22, %s5207_s24 }
 0x9c7   : > { %v5123_v6 = vpop.eup %5122  ;;  %v6526_v25 = vsel %vm5492_vm3, %v5119_v10, %v5121_v44 }
 0x9c8   : > { %v5125_v53 = vpop.eup %5124 }
 0x9c9   : > { %v5127_v32 = vpop.eup %5126  ;;  %v6530_v28 = vsel %vm5492_vm3, %v5123_v6, %v5125_v53 }
 0x9ca   : > { %v5129_v19 = vpop.eup %5128  ;;  %3612 = vrot.lane.b32.xlu0 %v6526_v25, %s5207_s24  ;;  %3610 = vrot.lane.b32.xlu1 %v6530_v28, %s5207_s24 }
 0x9cb   : > { %v5131_v21 = vpop.eup %5130  ;;  %v6538_v35 = vsel %vm5492_vm3, %v5127_v32, %v5129_v19 }
 0x9cc   : > { %v5133_v36 = vpop.eup %5132 }
 0x9cd   : > { %v5135_v37 = vpop.eup %5134  ;;  %v6542_v38 = vsel %vm5492_vm3, %v5131_v21, %v5133_v36 }
 0x9ce   : > { %v5137_v50 = vpop.eup %5136  ;;  %3614 = vrot.lane.b32.xlu1 %v6538_v35, %s5207_s24  ;;  %3616 = vrot.lane.b32.xlu0 %v6542_v38, %s5207_s24 }
 0x9cf   : > { %v5139_v40 = vpop.eup %5138  ;;  %v6550_v30 = vsel %vm5492_vm3, %v5135_v37, %v5137_v50 }
 0x9d0   : > { %v5141_v54 = vpop.eup %5140 }
 0x9d1   : > { %v6554_v3 = vsel %vm5492_vm3, %v5139_v40, %v5141_v54  ;;  %v5143_v12 = vpop.eup %5142 }
 0x9d2   : > { %3620 = vrot.lane.b32.xlu0 %v6550_v30, %s5207_s24  ;;  %3618 = vrot.lane.b32.xlu1 %v6554_v3, %s5207_s24  ;;  %v5145_v18 = vpop.eup %5144 }
 0x9d3   : > { %v6562_v16 = vsel %vm5492_vm3, %v5145_v18, %v5143_v12 }
 0x9d6   : > { %3622 = vrot.lane.b32.xlu1 %v6562_v16, %s5207_s24 }
 0xa1a   : > { %v3593_v26 = vpop.permute.xlu0 %3592 }
 0xa1b   : > { %v3640_v9 = vmul.f32 %v3593_v26, %v6459_v42 }
 0xa1d   : > { %3672 = vrot.lane.b32.xlu0 %v3640_v9, %s5208_s25 }
 0xa1e   : > { %v3595_v39 = vpop.permute.xlu1 %3594  ;;  %v3597_v10 = vpop.permute.xlu0 %3596 }
 0xa1f   : > { %v3641_v44 = vmul.f32 %v3595_v39, %v6476_v29  ;;  %v3642_v6 = vmul.f32 %v3597_v10, %v6471_v27 }
 0xa21   : > { %3674 = vrot.lane.b32.xlu1 %v3641_v44, %s5208_s25  ;;  %3676 = vrot.lane.b32.xlu0 %v3642_v6, %s5208_s25 }
 0xa22   : > { %v3599_v41 = vpop.permute.xlu1 %3598  ;;  %v3601_v53 = vpop.permute.xlu0 %3600 }
 0xa23   : > { %v3643_v32 = vmul.f32 %v3599_v41, %v6485_v52  ;;  %v3644_v19 = vmul.f32 %v3601_v53, %v6489_v34 }
 0xa25   : > { %3678 = vrot.lane.b32.xlu1 %v3643_v32, %s5208_s25  ;;  %3680 = vrot.lane.b32.xlu0 %v3644_v19, %s5208_s25 }
 0xa26   : > { %v3603_v21 = vpop.permute.xlu1 %3602  ;;  %v3605_v36 = vpop.permute.xlu0 %3604 }
 0xa27   : > { %v3645_v37 = vmul.f32 %v3603_v21, %v6501_v43  ;;  %v3646_v50 = vmul.f32 %v3605_v36, %v6497_v31 }
 0xa29   : > { %3682 = vrot.lane.b32.xlu1 %v3645_v37, %s5208_s25  ;;  %3684 = vrot.lane.b32.xlu0 %v3646_v50, %s5208_s25 }
 0xa2a   : > { %v3607_v40 = vpop.permute.xlu1 %3606 }
 0xa2b   : > { %v3647_v54 = vmul.f32 %v3607_v40, %v6510_v13  ;;  %v4664_v40 = vld [vmem:[%s6741_s6 + $0x8] sm:$0xff]  }
 0xa2c   : > { %4571 = vmatprep.subr.bf16.mxu1 %v4664_v40 }
 0xa2d   : > { %3686 = vrot.lane.b32.xlu1 %v3647_v54, %s5208_s25  ;;  %4572 = vmatpush3.bf16.msra.mxu1 %v4664_v40  ;;  %v3560_v54 = vmul.f32 %v6459_v42, %v6283_v23  ;;  %v3564_v23 = vmul.f32 %v6489_v34, %v6302_v0  ;;  %v3567_v0 = vmul.f32 %v6510_v13, %v6318_v47 }
 0xa38   : > { %v3609_v12 = vpop.permute.xlu0 %3608 }
 0xa39   : > { %v3648_v18 = vmul.f32 %v3609_v12, %v6520_v22 }
 0xa3b   : > { %3688 = vrot.lane.b32.xlu0 %v3648_v18, %s5208_s25 }
 0xa3c   : > { %v3611_v26 = vpop.permute.xlu1 %3610  ;;  %v3613_v9 = vpop.permute.xlu0 %3612 }
 0xa3d   : > { %v3649_v39 = vmul.f32 %v3611_v26, %v6530_v28  ;;  %v3650_v10 = vmul.f32 %v3613_v9, %v6526_v25  ;;  %v3561_v26 = vmul.f32 %v6476_v29, %v6290_v14  ;;  %v3562_v9 = vmul.f32 %v6471_v27, %v6292_v20 }
 0xa3e   : > { %v3565_v14 = vmul.f32 %v6501_v43, %v6310_v46  ;;  %v3566_v20 = vmul.f32 %v6497_v31, %v6312_v45 }
 0xa3f   : > { %3690 = vrot.lane.b32.xlu1 %v3649_v39, %s5208_s25  ;;  %3692 = vrot.lane.b32.xlu0 %v3650_v10, %s5208_s25 }
 0xa40   : > { %v3615_v44 = vpop.permute.xlu1 %3614  ;;  %v3617_v6 = vpop.permute.xlu0 %3616 }
 0xa41   : > { %v3651_v41 = vmul.f32 %v3615_v44, %v6538_v35  ;;  %v3652_v53 = vmul.f32 %v3617_v6, %v6542_v38 }
 0xa43   : > { %3694 = vrot.lane.b32.xlu1 %v3651_v41, %s5208_s25  ;;  %3696 = vrot.lane.b32.xlu0 %v3652_v53, %s5208_s25  ;;  %v3563_v41 = vmul.f32 %v6485_v52, %v6300_v60 }
 0xa44   : > { %v3619_v32 = vpop.permute.xlu1 %3618  ;;  %v3621_v19 = vpop.permute.xlu0 %3620 }
 0xa45   : > { %v3653_v21 = vmul.f32 %v3619_v32, %v6554_v3  ;;  %v3654_v36 = vmul.f32 %v3621_v19, %v6550_v30 }
 0xa47   : > { %3698 = vrot.lane.b32.xlu1 %v3653_v21, %s5208_s25  ;;  %3700 = vrot.lane.b32.xlu0 %v3654_v36, %s5208_s25 }
 0xa48   : > { %v3623_v37 = vpop.permute.xlu1 %3622 }
 0xa49   : > { %v3655_v50 = vmul.f32 %v3623_v37, %v6562_v16 }
 0xa4b   : > { %3702 = vrot.lane.b32.xlu1 %v3655_v50, %s5208_s25 }
 0xa8f   : > { %v3673_v12 = vpop.permute.xlu0 %3672 }
 0xa90   : > { %v3720_v18 = vadd.f32 %v3673_v12, %v3560_v54 }
 0xa92   : > { %5146 = vtanh.f32 %v3720_v18 }
 0xa93   : > { %v3675_v39 = vpop.permute.xlu1 %3674  ;;  %v3677_v10 = vpop.permute.xlu0 %3676 }
 0xa94   : > { %v3721_v44 = vadd.f32 %v3675_v39, %v3561_v26  ;;  %v3722_v6 = vadd.f32 %v3677_v10, %v3562_v9  ;;  %v3568_v39 = vmul.f32 %v6520_v22, %v6329_v48 }
 0xa96   : > { %5148 = vtanh.f32 %v3721_v44 }
 0xa97   : > { %5150 = vtanh.f32 %v3722_v6  ;;  %v3679_v53 = vpop.permute.xlu1 %3678  ;;  %v3681_v32 = vpop.permute.xlu0 %3680 }
 0xa98   : > { %v3723_v19 = vadd.f32 %v3679_v53, %v3563_v41  ;;  %v3724_v21 = vadd.f32 %v3681_v32, %v3564_v23  ;;  %v3569_v41 = vmul.f32 %v6530_v28, %v6338_v51  ;;  %v3570_v23 = vmul.f32 %v6526_v25, %v6340_v17 }
 0xa99   : > { %v3573_v17 = vmul.f32 %v6554_v3, %v6360_v15 }
 0xa9a   : > { %5152 = vtanh.f32 %v3723_v19 }
 0xa9b   : > { %5154 = vtanh.f32 %v3724_v21  ;;  %v3683_v36 = vpop.permute.xlu1 %3682  ;;  %v3685_v37 = vpop.permute.xlu0 %3684  ;;  %v3571_v21 = vmul.f32 %v6538_v35, %v6348_v62 }
 0xa9c   : > { %v3725_v50 = vadd.f32 %v3683_v36, %v3565_v14  ;;  %v3726_v60 = vadd.f32 %v3685_v37, %v3566_v20  ;;  %v3572_v14 = vmul.f32 %v6542_v38, %v6350_v33  ;;  %v3575_v33 = vmul.f32 %v6562_v16, %v6367_v24 }
 0xa9e   : > { %5156 = vtanh.f32 %v3725_v50  ;;  %v3574_v50 = vmul.f32 %v6550_v30, %v6358_v49 }
 0xa9f   : > { %v5147_v40 = vpop.eup %5146  ;;  %5158 = vtanh.f32 %v3726_v60  ;;  %v3687_v54 = vpop.permute.xlu1 %3686 }
 0xaa0   : > { %v3727_v12 = vadd.f32 %v3687_v54, %v3567_v0  ;;  %3768 = vrot.lane.b32.xlu0 %v5147_v40, %s5207_s24 }
 0xaa2   : > { %5160 = vtanh.f32 %v3727_v12 }
 0xaa3   : > { %v5149_v46 = vpop.eup %5148 }
 0xaa4   : > { %v5151_v18 = vpop.eup %5150  ;;  %3770 = vrot.lane.b32.xlu1 %v5149_v46, %s5207_s24 }
 0xaa5   : > { %3772 = vrot.lane.b32.xlu0 %v5151_v18, %s5207_s24 }
 0xaa7   : > { %v5153_v45 = vpop.eup %5152 }
 0xaa8   : > { %v5155_v26 = vpop.eup %5154  ;;  %3774 = vrot.lane.b32.xlu1 %v5153_v45, %s5207_s24  ;;  %v4665_v45 = vld [vmem:[%s6741_s6] sm:$0xff]  }
 0xaa9   : > { %3776 = vrot.lane.b32.xlu0 %v5155_v26, %s5207_s24  ;;  %4573 = vmatprep.subr.bf16.mxu1 %v4665_v45 }
 0xaaa   : > { %4574 = vmatpush3.bf16.msra.mxu1 %v4665_v45 }
 0xaab   : > { %v5157_v47 = vpop.eup %5156 }
 0xaac   : > { %v5159_v9 = vpop.eup %5158  ;;  %3778 = vrot.lane.b32.xlu1 %v5157_v47, %s5207_s24 }
 0xaad   : > { %v3689_v10 = vpop.permute.xlu0 %3688  ;;  %3780 = vrot.lane.b32.xlu0 %v5159_v9, %s5207_s24 }
 0xaae   : > { %v3728_v44 = vadd.f32 %v3689_v10, %v3568_v39 }
 0xaaf   : > { %v5161_v6 = vpop.eup %5160 }
 0xab0   : > { %5162 = vtanh.f32 %v3728_v44  ;;  %3782 = vrot.lane.b32.xlu1 %v5161_v6, %s5207_s24 }
 0xab1   : > { %v3691_v53 = vpop.permute.xlu1 %3690  ;;  %v3693_v32 = vpop.permute.xlu0 %3692 }
 0xab2   : > { %v3729_v19 = vadd.f32 %v3691_v53, %v3569_v41  ;;  %v3730_v48 = vadd.f32 %v3693_v32, %v3570_v23 }
 0xab4   : > { %5164 = vtanh.f32 %v3729_v19 }
 0xab5   : > { %5166 = vtanh.f32 %v3730_v48  ;;  %v3695_v20 = vpop.permute.xlu1 %3694  ;;  %v3697_v36 = vpop.permute.xlu0 %3696 }
 0xab6   : > { %v3731_v51 = vadd.f32 %v3695_v20, %v3571_v21  ;;  %v3732_v37 = vadd.f32 %v3697_v36, %v3572_v14 }
 0xab8   : > { %5168 = vtanh.f32 %v3731_v51 }
 0xab9   : > { %5170 = vtanh.f32 %v3732_v37  ;;  %v3699_v60 = vpop.permute.xlu1 %3698  ;;  %v3701_v0 = vpop.permute.xlu0 %3700 }
 0xaba   : > { %v3733_v40 = vadd.f32 %v3699_v60, %v3573_v17  ;;  %v3734_v62 = vadd.f32 %v3701_v0, %v3574_v50 }
 0xabc   : > { %5172 = vtanh.f32 %v3733_v40 }
 0xabd   : > { %v5163_v54 = vpop.eup %5162  ;;  %5174 = vtanh.f32 %v3734_v62  ;;  %v3703_v12 = vpop.permute.xlu1 %3702 }
 0xabe   : > { %v3735_v46 = vadd.f32 %v3703_v12, %v3575_v33  ;;  %3784 = vrot.lane.b32.xlu0 %v5163_v54, %s5207_s24 }
 0xac0   : > { %5176 = vtanh.f32 %v3735_v46 }
 0xac1   : > { %v5165_v15 = vpop.eup %5164 }
 0xac2   : > { %v5167_v18 = vpop.eup %5166  ;;  %3786 = vrot.lane.b32.xlu1 %v5165_v15, %s5207_s24 }
 0xac3   : > { %3788 = vrot.lane.b32.xlu0 %v5167_v18, %s5207_s24 }
 0xac5   : > { %v5169_v49 = vpop.eup %5168 }
 0xac6   : > { %v5171_v26 = vpop.eup %5170  ;;  %3790 = vrot.lane.b32.xlu1 %v5169_v49, %s5207_s24 }
 0xac7   : > { %3792 = vrot.lane.b32.xlu0 %v5171_v26, %s5207_s24 }
 0xac9   : > { %v5173_v24 = vpop.eup %5172 }
 0xaca   : > { %v5175_v47 = vpop.eup %5174  ;;  %3794 = vrot.lane.b32.xlu1 %v5173_v24, %s5207_s24 }
 0xacb   : > { %3796 = vrot.lane.b32.xlu0 %v5175_v47, %s5207_s24  ;;  %v4120_v47 = vld [vmem:[%s6742_s7] ss:$0 sm:$0xff] }
 0xacd   : > { %v5177_v9 = vpop.eup %5176 }
 0xace   : > { %3798 = vrot.lane.b32.xlu1 %v5177_v9, %s5207_s24  ;;  %v774_v9 = vadd.f32 %v5421_v55, %v4120_v47 }
 0xb12   : > { %v3769_v39 = vpop.permute.xlu0 %3768 }
 0xb13   : > { %v3816_v44 = vmul.f32 %v3769_v39, %v6459_v42 }
 0xb16   : > { %v3771_v10 = vpop.permute.xlu1 %3770 }
 0xb17   : > { %v3817_v6 = vmul.f32 %v3771_v10, %v6476_v29  ;;  %v3773_v41 = vpop.permute.xlu0 %3772  ;;  %v766_v10 = vadd.f32 %v4120_v47, %v5423_v56 }
 0xb18   : > { %v3818_v32 = vmul.f32 %v3773_v41, %v6471_v27  ;;  %v777_v41 = vadd.f32 %v5425_v57, %v4120_v47 }
 0xb19   : > { %v3832_v23 = vpack.c.bf16 %v3817_v6, %v3816_v44 }
 0xb1a   : > { %v3775_v53 = vpop.permute.xlu1 %3774 }
 0xb1b   : > { %v3819_v19 = vmul.f32 %v3775_v53, %v6485_v52  ;;  %v3777_v48 = vpop.permute.xlu0 %3776  ;;  %3852 = vrot.lane.b32.xlu0 %v3832_v23, %s5208_s25  ;;  %v769_v53 = vadd.f32 %v4120_v47, %v5427_v58 }
 0xb1c   : > { %v3820_v20 = vmul.f32 %v3777_v48, %v6489_v34  ;;  %v790_v48 = vadd.f32 %v5429_v59, %v4120_v47 }
 0xb1d   : > { %v3833_v21 = vpack.c.bf16 %v3819_v19, %v3818_v32 }
 0xb1e   : > { %v3779_v14 = vpop.permute.xlu1 %3778 }
 0xb1f   : > { %v3821_v36 = vmul.f32 %v3779_v14, %v6501_v43  ;;  %3854 = vrot.lane.b32.xlu1 %v3833_v21, %s5208_s25  ;;  %v3781_v42 = vpop.permute.xlu0 %3780  ;;  %v782_v14 = vadd.f32 %v4120_v47, %v5431_v61  ;;  %v806_v61 = vadd.f32 %v5437_v2, %v4120_v47  ;;  %v822_v2 = vadd.f32 %v5445_v8, %v4120_v47 }
 0xb20   : > { %v3822_v37 = vmul.f32 %v3781_v42, %v6497_v31 }
 0xb21   : > { %v3834_v29 = vpack.c.bf16 %v3821_v36, %v3820_v20  ;;  %v793_v36 = vadd.f32 %v5433_v63, %v4120_v47 }
 0xb22   : > { %v3783_v51 = vpop.permute.xlu1 %3782 }
 0xb23   : > { %v3823_v27 = vmul.f32 %v3783_v51, %v6510_v13  ;;  %3856 = vrot.lane.b32.xlu0 %v3834_v29, %s5208_s25  ;;  %v785_v29 = vadd.f32 %v4120_v47, %v5435_v1 }
 0xb25   : > { %v3835_v52 = vpack.c.bf16 %v3823_v27, %v3822_v37 }
 0xb27   : > { %3858 = vrot.lane.b32.xlu1 %v3835_v52, %s5208_s25  ;;  %v798_v52 = vadd.f32 %v4120_v47, %v5439_v4 }
 0xb30   : > { %v3785_v17 = vpop.permute.xlu0 %3784 }
 0xb31   : > { %v3824_v34 = vmul.f32 %v3785_v17, %v6520_v22 }
 0xb34   : > { %v3787_v50 = vpop.permute.xlu1 %3786 }
 0xb35   : > { %v3825_v43 = vmul.f32 %v3787_v50, %v6530_v28  ;;  %v3789_v60 = vpop.permute.xlu0 %3788  ;;  %v809_v50 = vadd.f32 %v5441_v5, %v4120_v47 }
 0xb36   : > { %v3826_v62 = vmul.f32 %v3789_v60, %v6526_v25 }
 0xb37   : > { %v3836_v0 = vpack.c.bf16 %v3825_v43, %v3824_v34  ;;  %v801_v43 = vadd.f32 %v4120_v47, %v5443_v7 }
 0xb38   : > { %v3791_v40 = vpop.permute.xlu1 %3790 }
 0xb39   : > { %v3827_v31 = vmul.f32 %v3791_v40, %v6538_v35  ;;  %v3793_v33 = vpop.permute.xlu0 %3792  ;;  %3860 = vrot.lane.b32.xlu0 %v3836_v0, %s5208_s25 }
 0xb3a   : > { %v3828_v12 = vmul.f32 %v3793_v33, %v6542_v38  ;;  %v6748_v33 = vld [vmem:[#allocation4_spill] sm:$0xff] }
 0xb3b   : > { %v3837_v13 = vpack.c.bf16 %v3827_v31, %v3826_v62  ;;  %v814_v62 = vadd.f32 %v4120_v47, %v5452_v11 }
 0xb3c   : > { %v3795_v54 = vpop.permute.xlu1 %3794 }
 0xb3d   : > { %v3829_v46 = vmul.f32 %v3795_v54, %v6554_v3  ;;  %3862 = vrot.lane.b32.xlu1 %v3837_v13, %s5208_s25  ;;  %v3797_v22 = vpop.permute.xlu0 %3796  ;;  %v825_v13 = vadd.f32 %v6748_v33, %v4120_v47 }
 0xb3e   : > { %v3830_v18 = vmul.f32 %v3797_v22, %v6550_v30 }
 0xb3f   : > { %v3838_v28 = vpack.c.bf16 %v3829_v46, %v3828_v12  ;;  %v6749_v12 = vld [vmem:[#allocation5_spill] sm:$0xff] }
 0xb40   : > { %v3799_v15 = vpop.permute.xlu1 %3798  ;;  %v817_v46 = vadd.f32 %v4120_v47, %v6749_v12 }
 0xb41   : > { %v3831_v25 = vmul.f32 %v3799_v15, %v6562_v16  ;;  %3864 = vrot.lane.b32.xlu0 %v3838_v28, %s5208_s25 }
 0xb43   : > { %v3839_v35 = vpack.c.bf16 %v3831_v25, %v3830_v18 }
 0xb45   : > { %3866 = vrot.lane.b32.xlu1 %v3839_v35, %s5208_s25  ;;  %s6692_s25 = scalar_lea.vmem %s6743_s8, %s4119_s21 }
 0xb8d   : > { %v3853_v49 = vpop.permute.xlu0 %3852 }
 0xb8e   : > { %4575 = vmatprep.mubr.msk.bf16.mxu1 %vm706_vm0, %v3853_v49 }
 0xb91   : > { %v3855_v38 = vpop.permute.xlu1 %3854 }
 0xb92   : > { %4576 = vmatmul.mubr.msk.bf16.vlgmr.msra.gmra.mxu1 %vm706_vm0, %v3855_v38 }
 0xb95   : > { %v3857_v3 = vpop.permute.xlu0 %3856 }
 0xb96   : > { %4579 = vmatprep.mubr.msk.bf16.mxu1 %vm706_vm0, %v3857_v3 }
 0xb99   : > { %v3859_v45 = vpop.permute.xlu1 %3858 }
 0xb9a   : > { %4580 = vmatmul.mubr.msk.bf16.gmra.mxu1 %vm706_vm0, %v3859_v45 }
 0xbab   : > { %v3861_v30 = vpop.permute.xlu0 %3860 }
 0xbac   : > { %4583 = vmatprep.mubr.msk.bf16.mxu1 %vm706_vm0, %v3861_v30 }
 0xbaf   : > { %v3863_v16 = vpop.permute.xlu1 %3862 }
 0xbb0   : > { %4584 = vmatmul.mubr.msk.bf16.gmra.mxu1 %vm706_vm0, %v3863_v16 }
 0xbb3   : > { %v3865_v26 = vpop.permute.xlu0 %3864 }
 0xbb4   : > { %4587 = vmatprep.mubr.msk.bf16.mxu1 %vm706_vm0, %v3865_v26 }
 0xbb7   : > { %v3867_v24 = vpop.permute.xlu1 %3866 }
 0xbb8   : > { %4588 = vmatmul.mubr.msk.bf16.gmra.mxu1 %vm706_vm0, %v3867_v24 }
 0xc52   : > { %v4577_v39 = vpop.f32.mrf.mxu1 }
 0xc53   : > { %v4003_v44 = vadd.f32 %v4577_v39, %v774_v9 }
 0xc54   : > { %v3938_v6 = vpop.f32.mrf.mxu1 }
 0xc55   : > { %4019 = vst [vmem:[%s6692_s25 + $0x10] sm:$0xff] %v4003_v44  ;;  %v4001_v23 = vadd.f32 %v3938_v6, %v766_v10 }
 0xc56   : > { %v4578_v55 = vpop.f32.mrf.mxu1 }
 0xc57   : > { %4017 = vst [vmem:[%s6692_s25] sm:$0xff] %v4001_v23  ;;  %v4004_v32 = vadd.f32 %v4578_v55, %v777_v41 }
 0xc58   : > { %v3941_v19 = vpop.f32.mrf.mxu1 }
 0xc59   : > { %4020 = vst [vmem:[%s6692_s25 + $0x18] sm:$0xff] %v4004_v32  ;;  %v4002_v56 = vadd.f32 %v3941_v19, %v769_v53 }
 0xc5a   : > { %v4581_v21 = vpop.f32.mrf.mxu1 }
 0xc5b   : > { %4018 = vst [vmem:[%s6692_s25 + $0x8] sm:$0xff] %v4002_v56  ;;  %v4007_v57 = vadd.f32 %v4581_v21, %v790_v48 }
 0xc5c   : > { %v3954_v20 = vpop.f32.mrf.mxu1 }
 0xc5d   : > { %4023 = vst [vmem:[%s6692_s25 + $0x30] sm:$0xff] %v4007_v57  ;;  %v4005_v58 = vadd.f32 %v3954_v20, %v782_v14 }
 0xc5e   : > { %v4582_v42 = vpop.f32.mrf.mxu1 }
 0xc5f   : > { %4021 = vst [vmem:[%s6692_s25 + $0x20] sm:$0xff] %v4005_v58  ;;  %v4008_v59 = vadd.f32 %v4582_v42, %v793_v36 }
 0xc60   : > { %v3957_v51 = vpop.f32.mrf.mxu1 }
 0xc61   : > { %4024 = vst [vmem:[%s6692_s25 + $0x38] sm:$0xff] %v4008_v59  ;;  %v4006_v37 = vadd.f32 %v3957_v51, %v785_v29 }
 0xc63   : > { %4022 = vst [vmem:[%s6692_s25 + $0x28] sm:$0xff] %v4006_v37 }
 0xc70   : > { %v4585_v27 = vpop.f32.mrf.mxu1 }
 0xc71   : > { %v4011_v63 = vadd.f32 %v4585_v27, %v806_v61 }
 0xc72   : > { %v3970_v17 = vpop.f32.mrf.mxu1 }
 0xc73   : > { %4027 = vst [vmem:[%s6692_s25 + $0x50] sm:$0xff] %v4011_v63  ;;  %v4009_v1 = vadd.f32 %v3970_v17, %v798_v52 }
 0xc74   : > { %v4586_v34 = vpop.f32.mrf.mxu1 }
 0xc75   : > { %4025 = vst [vmem:[%s6692_s25 + $0x40] sm:$0xff] %v4009_v1  ;;  %v4012_v60 = vadd.f32 %v4586_v34, %v809_v50 }
 0xc76   : > { %v3973_v0 = vpop.f32.mrf.mxu1 }
 0xc77   : > { %4028 = vst [vmem:[%s6692_s25 + $0x58] sm:$0xff] %v4012_v60  ;;  %v4010_v4 = vadd.f32 %v3973_v0, %v801_v43 }
 0xc78   : > { %v4589_v40 = vpop.f32.mrf.mxu1 }
 0xc79   : > { %4026 = vst [vmem:[%s6692_s25 + $0x48] sm:$0xff] %v4010_v4  ;;  %v4015_v5 = vadd.f32 %v4589_v40, %v822_v2 }
 0xc7a   : > { %v3986_v31 = vpop.f32.mrf.mxu1 }
 0xc7b   : > { %4031 = vst [vmem:[%s6692_s25 + $0x70] sm:$0xff] %v4015_v5  ;;  %v4013_v7 = vadd.f32 %v3986_v31, %v814_v62 }
 0xc7c   : > { %v4590_v54 = vpop.f32.mrf.mxu1 }
 0xc7d   : > { %4029 = vst [vmem:[%s6692_s25 + $0x60] sm:$0xff] %v4013_v7  ;;  %v4016_v22 = vadd.f32 %v4590_v54, %v825_v13 }
 0xc7e   : > { %v3989_v8 = vpop.f32.mrf.mxu1 }
 0xc7f   : > { %4032 = vst [vmem:[%s6692_s25 + $0x78] sm:$0xff] %v4016_v22  ;;  %v4014_v28 = vadd.f32 %v3989_v8, %v817_v46 }
 0xc81   : > { %4030 = vst [vmem:[%s6692_s25 + $0x68] sm:$0xff] %v4014_v28 }
 0xc82 PF: > { %p15_p9 = scmp.ge.s32.totalorder %s5271_s9, 4   ;;  %s6750_s27 = smov %s5200_s28 }
 0xc83   : > { %s6751_s28 = smov %s5280_s12  ;;  %s6752_s29 = smov %s5271_s9 }
 0xc84   :  { %17 = sbr.rel (!%p15_p9) target bundleno = 2 (0x2), region = 131 }

</bundles_post_ra>
